<compile_context>
chip_gen: v7x
topology: tpu7x:2x2x1
jax: 0.10.0
libtpu: 0.0.40
codegen_flags: <defaults>
</compile_context>

<pallas_src>
import functools

import jax
import jax.numpy as jnp
from jax import lax
from jax.experimental import pallas as pl
from jax.experimental.pallas import tpu as pltpu

K_NEIGHBORS = 40     # knn_graph k=40 (loop=False); PointConv adds self-loop -> K+1 messages/node
BATCH_OFFSET = 1e6   # 4th-coordinate separation between graphs (squared >= 1e12 >> any real d^2)


# ---------------------------------------------------------------------------
# Kernel 1: tiled NEGATED masked pairwise squared distances (pure VPU, no MXU)
# ---------------------------------------------------------------------------
def _pairwise_neg_dist_kernel(pr_ref, pcT_ref, d_ref):
    tm = pr_ref.shape[0]
    tc = pcT_ref.shape[1]
    ncoord = pr_ref.shape[1]               # 4 = (x, y, z, batch*BATCH_OFFSET)
    pr = pr_ref[...]                        # (tm, 4)  row-tile coordinates
    pcT = pcT_ref[...]                      # (4, tc)  col-tile coordinates (lane-dense)
    d = jnp.zeros((tm, tc), jnp.float32)
    for cdim in range(ncoord):              # unrolled broadcast subtract-square-add passes
        diff = pr[:, cdim:cdim + 1] - pcT[cdim:cdim + 1, :]     # (tm,1) - (1,tc) -> (tm,tc)
        d = d + diff * diff
    neg_d = -d                              # negation folded into the kernel (free on VPU)
    d_ref[...] = neg_d

    # Self-loop (loop=False) masking only where the tile touches the diagonal.
    row0 = pl.program_id(0) * tm
    col0 = pl.program_id(1) * tc
    overlaps = jnp.logical_and(row0 < col0 + tc, col0 < row0 + tm)

    @pl.when(overlaps)
    def _():
        ri = row0 + lax.broadcasted_iota(jnp.int32, (tm, tc), 0)
        cj = col0 + lax.broadcasted_iota(jnp.int32, (tm, tc), 1)
        d_ref[...] = jnp.where(ri == cj, jnp.float32(-1e30), neg_d)


def pairwise_neg_distances(pos, batch, tm=512, tc=2048):
    n = pos.shape[0]
    tm = min(tm, n)
    tc = min(tc, n)
    # TODO(synk): ragged N / tiny graphs need masked edge tiles; demo shapes divide evenly.
    assert n % tm == 0 and n % tc == 0
    boff = batch.astype(jnp.float32)[:, None] * jnp.float32(BATCH_OFFSET)
    p4 = jnp.concatenate([pos.astype(jnp.float32), boff], axis=1)   # (N, 4)
    p4T = p4.T                                                      # (4, N) lane-dense cols
    return pl.pallas_call(
        _pairwise_neg_dist_kernel,
        out_shape=jax.ShapeDtypeStruct((n, n), jnp.float32),
        grid=(n // tm, n // tc),
        in_specs=[
            pl.BlockSpec((tm, 4), lambda i, j: (i, 0)),
            pl.BlockSpec((4, tc), lambda i, j: (0, j)),
        ],
        out_specs=pl.BlockSpec((tm, tc), lambda i, j: (i, j)),
        compiler_params=pltpu.CompilerParams(
            dimension_semantics=("parallel", "parallel"),
            vmem_limit_bytes=32 * 1024 * 1024),
    )(p4, p4T)


# ---------------------------------------------------------------------------
# Kernel 2: fused bf16 one-hot gather (w1 pre-folded) + ReLU + layer-2 + max-agg
# ---------------------------------------------------------------------------
def _pointconv_kernel(nbr_ref, a_ref, bias_ref, w2_ref, b2_ref, o_ref, *, kc):
    tn, ke = nbr_ref.shape
    n, hdim = a_ref.shape
    fpad = w2_ref.shape[1]
    a = a_ref[...]                          # (N, hdim)  bf16: precomputed [x|pos] @ w1
    bias = bias_ref[...][:, None, :]        # (tn, 1, hdim) f32: b1 - pos_i @ w1[pos-part]
    w2 = w2_ref[...]                        # (hdim, 128) bf16 (zero-padded cols)
    # Hoisted out of the chunk loop (JAX does not CSE broadcast_in_dim).
    iota = lax.broadcasted_iota(jnp.int32, (tn, kc, n), 2)
    acc = jnp.full((tn, fpad), -jnp.inf, dtype=jnp.float32)
    for s in range(ke // kc):               # chunk neighbors -> bounded VMEM footprint
        idx = nbr_ref[:, s * kc:(s + 1) * kc]                       # (tn, kc) int32 ids
        onehot = (idx[:, :, None] == iota).astype(jnp.bfloat16)     # exact 0/1 in bf16
        # Single fused gather + layer-1 matmul: (tn*kc, N) x (N, hdim), f32 accumulation.
        g = jnp.dot(onehot.reshape(tn * kc, n), a,
                    preferred_element_type=jnp.float32)
        h = g.reshape(tn, kc, hdim) + bias                          # += b1 - pos_i @ w1_pos
        h = jnp.maximum(h, 0.0)                                     # ReLU in f32
        e = jnp.dot(h.reshape(tn * kc, hdim).astype(jnp.bfloat16), w2,
                    preferred_element_type=jnp.float32)             # (tn*kc, 128)
        acc = jnp.maximum(acc, jnp.max(e.reshape(tn, kc, fpad), axis=1))
    o_ref[...] = acc + b2_ref[...]          # max-aggregation, bias once, lane-dense store


def pointconv_aggregate(nbr_sl, a_bf16, bias_rows, w2, b2, tn=64):
    n, ke = nbr_sl.shape
    hdim = a_bf16.shape[1]
    fpad = w2.shape[1]
    # TODO(synk): for large N, grow tn (128-256) while keeping the bf16 one-hot chunk
    # tn*kc*N within a few MiB and the grid size even for v7x megacore.
    tn = min(tn, n)
    assert n % tn == 0
    kc = 24 if ke % 24 == 0 else 8
    assert ke % kc == 0
    kernel = functools.partial(_pointconv_kernel, kc=kc)
    return pl.pallas_call(
        kernel,
        out_shape=jax.ShapeDtypeStruct((n, fpad), jnp.float32),
        grid=(n // tn,),
        in_specs=[
            pl.BlockSpec((tn, ke), lambda i: (i, 0)),      # neighbor ids (row tile)
            pl.BlockSpec((n, hdim), lambda i: (0, 0)),     # full-resident [x|pos]@w1 (bf16)
            pl.BlockSpec((tn, hdim), lambda i: (i, 0)),    # per-target bias rows (f32)
            pl.BlockSpec((hdim, fpad), lambda i: (0, 0)),  # w2 (bf16)
            pl.BlockSpec((1, fpad), lambda i: (0, 0)),     # b2 (f32)
        ],
        out_specs=pl.BlockSpec((tn, fpad), lambda i: (i, 0)),
        compiler_params=pltpu.CompilerParams(
            dimension_semantics=("parallel",),
            vmem_limit_bytes=32 * 1024 * 1024),            # fits v7x 64 MiB/TC with headroom
    )(nbr_sl, a_bf16, bias_rows, w2, b2)


# ---------------------------------------------------------------------------
# Parameter padding / PointConvNet33 forward
# ---------------------------------------------------------------------------
def prepare_params(w1, b1, w2, b2):
    hdim = w1.shape[1]
    fdim = w2.shape[1]
    fpad = ((fdim + 127) // 128) * 128                     # 16 -> 128 (lane-dense output)
    w2p = jnp.zeros((hdim, fpad), jnp.float32).at[:, :fdim].set(w2)
    b2p = jnp.zeros((1, fpad), jnp.float32).at[:, :fdim].set(b2.reshape(1, fdim))
    params = {
        "w1": w1.astype(jnp.float32),                      # kept f32: folded into the gather
        "b1": b1.reshape(1, hdim).astype(jnp.float32),
        "w2p": w2p.astype(jnp.bfloat16),                   # bf16 MXU operand, f32 accumulation
        "b2p": b2p,
    }
    return params, fdim


def pointconv_net33_forward(x, pos, batch, params, *, k=K_NEIGHBORS, out_dim=None):
    n, c = x.shape

    # knn_graph(pos, k, batch, loop=False, flow='source_to_target')
    neg_d = pairwise_neg_distances(pos, batch)                  # Pallas kernel 1
    # TODO(synk): for large N, stream a per-row-tile top-k inside kernel 1 (VMEM scratch of
    # (tm,k) best values/ids) or use lax.approx_max_k to avoid the full N^2 HBM round-trip.
    _, nbr = lax.top_k(neg_d, k)                                # (N, k) source (neighbor) ids
    nbr = nbr.astype(jnp.int32)
    targets = jnp.repeat(jnp.arange(n, dtype=jnp.int32), k)
    edge_index = jnp.stack([nbr.reshape(-1), targets], axis=0)  # (2, N*k) row0=src, row1=dst

    # add_self_loops=True; pad 41 -> 48 neighbors by repeating self (max-agg is idempotent)
    ke_pad = ((k + 1 + 7) // 8) * 8
    self_col = jnp.arange(n, dtype=jnp.int32)[:, None]
    nbr_sl = jnp.concatenate([nbr] + [self_col] * (ke_pad - k), axis=1)   # (N, 48)

    # Fold local_nn layer 1 into the gather (f32 precompute, bf16 only at the MXU boundary):
    #   h_pre(i,j) = [x_j | pos_j - pos_i] @ w1 + b1
    #             = ([x_j | pos_j] @ w1) + (b1 - pos_i @ w1[pos-part])
    w1, b1 = params["w1"], params["b1"]
    a_rows = jnp.concatenate([x, pos], axis=1).astype(jnp.float32) @ w1     # (N, hdim) f32
    a_bf16 = a_rows.astype(jnp.bfloat16)
    bias_rows = b1 - pos.astype(jnp.float32) @ w1[c:c + 3, :]               # (N, hdim) f32

    out_pad = pointconv_aggregate(nbr_sl, a_bf16, bias_rows,
                                  params["w2p"], params["b2p"])             # Pallas kernel 2
    out = out_pad[:, :out_dim] if out_dim is not None else out_pad
    return out, pos, batch, edge_index


if __name__ == "__main__":
    key = jax.random.PRNGKey(0)
    n_per_batch, n_batches = 64, 2          # 64 points per graph so k=40 is valid
    n = n_per_batch * n_batches             # 128 nodes total
    c_in, hidden, c_out = 4, 32, 16

    k_x, k_pos, k_w1, k_w2 = jax.random.split(key, 4)
    x = jax.random.normal(k_x, (n, c_in), dtype=jnp.float32)
    pos = jax.random.normal(k_pos, (n, 3), dtype=jnp.float32)
    batch = jnp.repeat(jnp.arange(n_batches, dtype=jnp.int32), n_per_batch)

    # net = Sequential(Linear(c_in+3, hidden), ReLU(), Linear(hidden, c_out))
    w1 = 0.1 * jax.random.normal(k_w1, (c_in + 3, hidden), jnp.float32)
    b1 = jnp.zeros((1, hidden), jnp.float32)
    w2 = 0.1 * jax.random.normal(k_w2, (hidden, c_out), jnp.float32)
    b2 = jnp.zeros((1, c_out), jnp.float32)
    params, out_dim = prepare_params(w1, b1, w2, b2)

    fwd = jax.jit(functools.partial(pointconv_net33_forward, k=K_NEIGHBORS, out_dim=out_dim))
    out, pos_o, batch_o, edge_index = fwd(x, pos, batch, params)
    jax.block_until_ready((out, pos_o, batch_o, edge_index))

    assert out.shape == (n, c_out)
    assert edge_index.shape == (2, n * K_NEIGHBORS)

    # --- lightweight validation against a pure-JAX PointConv reference ------------------
    nbr = edge_index[0].reshape(n, K_NEIGHBORS)
    arange_n = jnp.arange(n, dtype=jnp.int32)
    assert bool(jnp.all(batch[nbr] == batch[:, None]))          # neighbors stay in-graph
    assert bool(jnp.all(nbr != arange_n[:, None]))              # loop=False respected
    ke_pad = ((K_NEIGHBORS + 1 + 7) // 8) * 8
    nbr_sl = jnp.concatenate([nbr] + [arange_n[:, None]] * (ke_pad - K_NEIGHBORS), axis=1)
    feat = jnp.concatenate([x[nbr_sl], pos[nbr_sl] - pos[:, None, :]], axis=-1)
    ref = jnp.max(jnp.maximum(feat @ w1 + b1, 0.0) @ w2 + b2, axis=1)
    assert bool(jnp.allclose(out, ref, rtol=5e-2, atol=5e-2))   # bf16 MXU tolerance

    print("KERNEL_OK")
</pallas_src>

<mosaic_0001>
module attributes {stable_mosaic.version = 11 : i64} {
  func.func @_pairwise_neg_dist_kernel(%arg0: i32, %arg1: i32, %arg2: memref<128x4xf32, #tpu.memory_space<vmem>>, %arg3: memref<4x128xf32, #tpu.memory_space<vmem>>, %arg4: memref<128x128xf32, #tpu.memory_space<vmem>>) attributes {dimension_semantics = [#tpu.dimension_semantics<parallel>, #tpu.dimension_semantics<parallel>], iteration_bounds = array<i64: 1, 1>, scalar_prefetch = 0 : i64, scratch_operands = 0 : i64, tpu.core_type = #tpu.core_type<tc>, window_params = [{transform_indices = @transform_0, window_bounds = array<i64: 128, 4>}, {transform_indices = @transform_1, window_bounds = array<i64: 4, 128>}, {transform_indices = @transform_2, window_bounds = array<i64: 128, 128>}]} {
    %c0 = arith.constant 0 : index
    %c0_0 = arith.constant 0 : index
    %0 = vector.load %arg2[%c0, %c0_0] : memref<128x4xf32, #tpu.memory_space<vmem>>, vector<128x4xf32>
    %c0_1 = arith.constant 0 : index
    %c0_2 = arith.constant 0 : index
    %1 = vector.load %arg3[%c0_1, %c0_2] : memref<4x128xf32, #tpu.memory_space<vmem>>, vector<4x128xf32>
    %cst = arith.constant 0.000000e+00 : f32
    %2 = vector.broadcast %cst : f32 to vector<128x128xf32>
    %3 = vector.extract_strided_slice %0 {offsets = [0, 0], sizes = [128, 1], strides = [1, 1]} : vector<128x4xf32> to vector<128x1xf32>
    %4 = vector.extract_strided_slice %1 {offsets = [0, 0], sizes = [1, 128], strides = [1, 1]} : vector<4x128xf32> to vector<1x128xf32>
    %5 = vector.broadcast %3 : vector<128x1xf32> to vector<128x128xf32>
    %6 = vector.broadcast %4 : vector<1x128xf32> to vector<128x128xf32>
    %7 = arith.subf %5, %6 : vector<128x128xf32>
    %8 = arith.mulf %7, %7 : vector<128x128xf32>
    %9 = arith.addf %2, %8 : vector<128x128xf32>
    %10 = vector.extract_strided_slice %0 {offsets = [0, 1], sizes = [128, 1], strides = [1, 1]} : vector<128x4xf32> to vector<128x1xf32>
    %11 = vector.extract_strided_slice %1 {offsets = [1, 0], sizes = [1, 128], strides = [1, 1]} : vector<4x128xf32> to vector<1x128xf32>
    %12 = vector.broadcast %10 : vector<128x1xf32> to vector<128x128xf32>
    %13 = vector.broadcast %11 : vector<1x128xf32> to vector<128x128xf32>
    %14 = arith.subf %12, %13 : vector<128x128xf32>
    %15 = arith.mulf %14, %14 : vector<128x128xf32>
    %16 = arith.addf %9, %15 : vector<128x128xf32>
    %17 = vector.extract_strided_slice %0 {offsets = [0, 2], sizes = [128, 1], strides = [1, 1]} : vector<128x4xf32> to vector<128x1xf32>
    %18 = vector.extract_strided_slice %1 {offsets = [2, 0], sizes = [1, 128], strides = [1, 1]} : vector<4x128xf32> to vector<1x128xf32>
    %19 = vector.broadcast %17 : vector<128x1xf32> to vector<128x128xf32>
    %20 = vector.broadcast %18 : vector<1x128xf32> to vector<128x128xf32>
    %21 = arith.subf %19, %20 : vector<128x128xf32>
    %22 = arith.mulf %21, %21 : vector<128x128xf32>
    %23 = arith.addf %16, %22 : vector<128x128xf32>
    %24 = vector.extract_strided_slice %0 {offsets = [0, 3], sizes = [128, 1], strides = [1, 1]} : vector<128x4xf32> to vector<128x1xf32>
    %25 = vector.extract_strided_slice %1 {offsets = [3, 0], sizes = [1, 128], strides = [1, 1]} : vector<4x128xf32> to vector<1x128xf32>
    %26 = vector.broadcast %24 : vector<128x1xf32> to vector<128x128xf32>
    %27 = vector.broadcast %25 : vector<1x128xf32> to vector<128x128xf32>
    %28 = arith.subf %26, %27 : vector<128x128xf32>
    %29 = arith.mulf %28, %28 : vector<128x128xf32>
    %30 = arith.addf %23, %29 : vector<128x128xf32>
    %cst_3 = arith.constant 0.000000e+00 : f32
    %31 = vector.broadcast %cst_3 : f32 to vector<128x128xf32>
    %32 = arith.subf %31, %30 : vector<128x128xf32>
    %c0_4 = arith.constant 0 : index
    %c0_5 = arith.constant 0 : index
    %33 = vector.load %arg4[%c0_4, %c0_5] : memref<128x128xf32, #tpu.memory_space<vmem>>, vector<128x128xf32>
    tpu.vector_store %arg4[%c0_4, %c0_5], %32 {strides = array<i32>} : memref<128x128xf32, #tpu.memory_space<vmem>>, vector<128x128xf32>,
    %c128_i32 = arith.constant 128 : i32
    %34 = arith.muli %arg0, %c128_i32 : i32
    %c128_i32_6 = arith.constant 128 : i32
    %35 = arith.muli %arg1, %c128_i32_6 : i32
    %c128_i32_7 = arith.constant 128 : i32
    %36 = arith.addi %35, %c128_i32_7 : i32
    %37 = arith.cmpi slt, %34, %36 : i32
    %c128_i32_8 = arith.constant 128 : i32
    %38 = arith.addi %34, %c128_i32_8 : i32
    %39 = arith.cmpi slt, %35, %38 : i32
    %40 = arith.andi %37, %39 : i1
    %41 = arith.extui %40 : i1 to i32
    %c0_i32 = arith.constant 0 : i32
    %42 = arith.cmpi ne, %41, %c0_i32 : i32
    scf.if %42 {
      %43 = tpu.iota {dimensions = array<i32: 0>} : vector<128x128xi32>
      %44 = vector.broadcast %34 : i32 to vector<128x128xi32>
      %45 = arith.addi %44, %43 : vector<128x128xi32>
      %46 = tpu.iota {dimensions = array<i32: 1>} : vector<128x128xi32>
      %47 = vector.broadcast %35 : i32 to vector<128x128xi32>
      %48 = arith.addi %47, %46 : vector<128x128xi32>
      %49 = arith.cmpi eq, %45, %48 : vector<128x128xi32>
      %cst_9 = arith.constant -1.000000e+30 : f32
      %50 = vector.broadcast %cst_9 : f32 to vector<128x128xf32>
      %51 = arith.select %49, %50, %32 : vector<128x128xi1>, vector<128x128xf32>
      %c0_10 = arith.constant 0 : index
      %c0_11 = arith.constant 0 : index
      %52 = vector.load %arg4[%c0_10, %c0_11] : memref<128x128xf32, #tpu.memory_space<vmem>>, vector<128x128xf32>
      tpu.vector_store %arg4[%c0_10, %c0_11], %51 {strides = array<i32>} : memref<128x128xf32, #tpu.memory_space<vmem>>, vector<128x128xf32>,
    } else {
    }
    return
  }
  func.func @transform_0(%arg0: i32, %arg1: i32) -> (i32, i32) {
    %c0_i32 = arith.constant 0 : i32
    %c0_i32_0 = arith.constant 0 : i32
    return %arg0, %c0_i32 : i32, i32
  }
  func.func @transform_1(%arg0: i32, %arg1: i32) -> (i32, i32) {
    %c0_i32 = arith.constant 0 : i32
    %c0_i32_0 = arith.constant 0 : i32
    return %c0_i32, %arg1 : i32, i32
  }
  func.func @transform_2(%arg0: i32, %arg1: i32) -> (i32, i32) {
    %c0_i32 = arith.constant 0 : i32
    return %arg0, %arg1 : i32, i32
  }
}

module attributes {stable_mosaic.version = 11 : i64} {
  func.func @_pointconv_kernel(%arg0: i32, %arg1: memref<64x48xi32, #tpu.memory_space<vmem>>, %arg2: memref<128x32xbf16, #tpu.memory_space<vmem>>, %arg3: memref<64x32xf32, #tpu.memory_space<vmem>>, %arg4: memref<32x128xbf16, #tpu.memory_space<vmem>>, %arg5: memref<1x128xf32, #tpu.memory_space<vmem>>, %arg6: memref<64x128xf32, #tpu.memory_space<vmem>>) attributes {dimension_semantics = [#tpu.dimension_semantics<parallel>], iteration_bounds = array<i64: 2>, scalar_prefetch = 0 : i64, scratch_operands = 0 : i64, tpu.core_type = #tpu.core_type<tc>, window_params = [{transform_indices = @transform_0, window_bounds = array<i64: 64, 48>}, {pipeline_mode = #tpu.pipeline_mode<synchronous>, transform_indices = @transform_1, window_bounds = array<i64: 128, 32>}, {transform_indices = @transform_2, window_bounds = array<i64: 64, 32>}, {pipeline_mode = #tpu.pipeline_mode<synchronous>, transform_indices = @transform_3, window_bounds = array<i64: 32, 128>}, {pipeline_mode = #tpu.pipeline_mode<synchronous>, transform_indices = @transform_4, window_bounds = array<i64: 1, 128>}, {transform_indices = @transform_5, window_bounds = array<i64: 64, 128>}]} {
    %c0 = arith.constant 0 : index
    %c0_0 = arith.constant 0 : index
    %0 = vector.load %arg2[%c0, %c0_0] : memref<128x32xbf16, #tpu.memory_space<vmem>>, vector<128x32xbf16>
    %c0_1 = arith.constant 0 : index
    %c0_2 = arith.constant 0 : index
    %1 = vector.load %arg3[%c0_1, %c0_2] : memref<64x32xf32, #tpu.memory_space<vmem>>, vector<64x32xf32>
    %2 = vector.shape_cast %1 : vector<64x32xf32> to vector<64x1x32xf32>
    %c0_3 = arith.constant 0 : index
    %c0_4 = arith.constant 0 : index
    %3 = vector.load %arg4[%c0_3, %c0_4] : memref<32x128xbf16, #tpu.memory_space<vmem>>, vector<32x128xbf16>
    %4 = tpu.iota {dimensions = array<i32: 2>} : vector<64x24x128xi32>
    %cst = arith.constant 0xFF800000 : f32
    %5 = vector.broadcast %cst : f32 to vector<64x128xf32>
    %c0_5 = arith.constant 0 : index
    %c0_6 = arith.constant 0 : index
    %6 = vector.load %arg1[%c0_5, %c0_6] : memref<64x48xi32, #tpu.memory_space<vmem>>, vector<64x24xi32>
    %7 = vector.shape_cast %6 : vector<64x24xi32> to vector<64x24x1xi32>
    %8 = vector.broadcast %7 : vector<64x24x1xi32> to vector<64x24x128xi32>
    %9 = arith.cmpi eq, %8, %4 : vector<64x24x128xi32>
    %10 = arith.extui %9 : vector<64x24x128xi1> to vector<64x24x128xi32>
    %11 = arith.sitofp %10 : vector<64x24x128xi32> to vector<64x24x128xf32>
    %12 = arith.truncf %11 : vector<64x24x128xf32> to vector<64x24x128xbf16>
    %13 = vector.shape_cast %12 : vector<64x24x128xbf16> to vector<1536x128xbf16>
    %cst_7 = arith.constant dense<0.000000e+00> : vector<1536x32xf32>
    %14 = tpu.matmul %13, %0, %cst_7 {dimension_numbers = #tpu.dot_dimension_numbers<[1], [0], [0], [1], [0, 0, 1, 1], [], []>} : vector<1536x128xbf16>, vector<128x32xbf16>, vector<1536x32xf32> -> vector<1536x32xf32>
    %15 = vector.shape_cast %14 : vector<1536x32xf32> to vector<64x24x32xf32>
    %16 = vector.broadcast %2 : vector<64x1x32xf32> to vector<64x24x32xf32>
    %17 = arith.addf %15, %16 : vector<64x24x32xf32>
    %cst_8 = arith.constant 0.000000e+00 : f32
    %18 = vector.broadcast %cst_8 : f32 to vector<64x24x32xf32>
    %19 = arith.maximumf %17, %18 : vector<64x24x32xf32>
    %20 = vector.shape_cast %19 : vector<64x24x32xf32> to vector<1536x32xf32>
    %21 = arith.truncf %20 : vector<1536x32xf32> to vector<1536x32xbf16>
    %cst_9 = arith.constant dense<0.000000e+00> : vector<1536x128xf32>
    %22 = tpu.matmul %21, %3, %cst_9 {dimension_numbers = #tpu.dot_dimension_numbers<[1], [0], [0], [1], [0, 0, 1, 1], [], []>} : vector<1536x32xbf16>, vector<32x128xbf16>, vector<1536x128xf32> -> vector<1536x128xf32>
    %23 = vector.shape_cast %22 : vector<1536x128xf32> to vector<64x24x128xf32>
    %cst_10 = arith.constant dense<0xFF800000> : vector<64x128xf32>
    %24 = vector.multi_reduction <maximumf>, %23, %cst_10 [1] : vector<64x24x128xf32> to vector<64x128xf32>
    %25 = arith.maximumf %5, %24 : vector<64x128xf32>
    %c0_11 = arith.constant 0 : index
    %c24 = arith.constant 24 : index
    %26 = vector.load %arg1[%c0_11, %c24] : memref<64x48xi32, #tpu.memory_space<vmem>>, vector<64x24xi32>
    %27 = vector.shape_cast %26 : vector<64x24xi32> to vector<64x24x1xi32>
    %28 = vector.broadcast %27 : vector<64x24x1xi32> to vector<64x24x128xi32>
    %29 = arith.cmpi eq, %28, %4 : vector<64x24x128xi32>
    %30 = arith.extui %29 : vector<64x24x128xi1> to vector<64x24x128xi32>
    %31 = arith.sitofp %30 : vector<64x24x128xi32> to vector<64x24x128xf32>
    %32 = arith.truncf %31 : vector<64x24x128xf32> to vector<64x24x128xbf16>
    %33 = vector.shape_cast %32 : vector<64x24x128xbf16> to vector<1536x128xbf16>
    %cst_12 = arith.constant dense<0.000000e+00> : vector<1536x32xf32>
    %34 = tpu.matmul %33, %0, %cst_12 {dimension_numbers = #tpu.dot_dimension_numbers<[1], [0], [0], [1], [0, 0, 1, 1], [], []>} : vector<1536x128xbf16>, vector<128x32xbf16>, vector<1536x32xf32> -> vector<1536x32xf32>
    %35 = vector.shape_cast %34 : vector<1536x32xf32> to vector<64x24x32xf32>
    %36 = vector.broadcast %2 : vector<64x1x32xf32> to vector<64x24x32xf32>
    %37 = arith.addf %35, %36 : vector<64x24x32xf32>
    %cst_13 = arith.constant 0.000000e+00 : f32
    %38 = vector.broadcast %cst_13 : f32 to vector<64x24x32xf32>
    %39 = arith.maximumf %37, %38 : vector<64x24x32xf32>
    %40 = vector.shape_cast %39 : vector<64x24x32xf32> to vector<1536x32xf32>
    %41 = arith.truncf %40 : vector<1536x32xf32> to vector<1536x32xbf16>
    %cst_14 = arith.constant dense<0.000000e+00> : vector<1536x128xf32>
    %42 = tpu.matmul %41, %3, %cst_14 {dimension_numbers = #tpu.dot_dimension_numbers<[1], [0], [0], [1], [0, 0, 1, 1], [], []>} : vector<1536x32xbf16>, vector<32x128xbf16>, vector<1536x128xf32> -> vector<1536x128xf32>
    %43 = vector.shape_cast %42 : vector<1536x128xf32> to vector<64x24x128xf32>
    %cst_15 = arith.constant dense<0xFF800000> : vector<64x128xf32>
    %44 = vector.multi_reduction <maximumf>, %43, %cst_15 [1] : vector<64x24x128xf32> to vector<64x128xf32>
    %45 = arith.maximumf %25, %44 : vector<64x128xf32>
    %c0_16 = arith.constant 0 : index
    %c0_17 = arith.constant 0 : index
    %46 = vector.load %arg5[%c0_16, %c0_17] : memref<1x128xf32, #tpu.memory_space<vmem>>, vector<1x128xf32>
    %47 = vector.broadcast %46 : vector<1x128xf32> to vector<64x128xf32>
    %48 = arith.addf %45, %47 : vector<64x128xf32>
    %c0_18 = arith.constant 0 : index
    %c0_19 = arith.constant 0 : index
    %49 = vector.load %arg6[%c0_18, %c0_19] : memref<64x128xf32, #tpu.memory_space<vmem>>, vector<64x128xf32>
    tpu.vector_store %arg6[%c0_18, %c0_19], %48 {strides = array<i32>} : memref<64x128xf32, #tpu.memory_space<vmem>>, vector<64x128xf32>,
    return
  }
  func.func @transform_0(%arg0: i32) -> (i32, i32) {
    %c0_i32 = arith.constant 0 : i32
    %c0_i32_0 = arith.constant 0 : i32
    return %arg0, %c0_i32 : i32, i32
  }
  func.func @transform_1(%arg0: i32) -> (i32, i32) {
    %c0_i32 = arith.constant 0 : i32
    %c0_i32_0 = arith.constant 0 : i32
    %c0_i32_1 = arith.constant 0 : i32
    return %c0_i32, %c0_i32_0 : i32, i32
  }
  func.func @transform_2(%arg0: i32) -> (i32, i32) {
    %c0_i32 = arith.constant 0 : i32
    %c0_i32_0 = arith.constant 0 : i32
    return %arg0, %c0_i32 : i32, i32
  }
  func.func @transform_3(%arg0: i32) -> (i32, i32) {
    %c0_i32 = arith.constant 0 : i32
    %c0_i32_0 = arith.constant 0 : i32
    %c0_i32_1 = arith.constant 0 : i32
    return %c0_i32, %c0_i32_0 : i32, i32
  }
  func.func @transform_4(%arg0: i32) -> (i32, i32) {
    %c0_i32 = arith.constant 0 : i32
    %c0_i32_0 = arith.constant 0 : i32
    %c0_i32_1 = arith.constant 0 : i32
    return %c0_i32, %c0_i32_0 : i32, i32
  }
  func.func @transform_5(%arg0: i32) -> (i32, i32) {
    %c0_i32 = arith.constant 0 : i32
    %c0_i32_0 = arith.constant 0 : i32
    return %arg0, %c0_i32 : i32, i32
  }
}

</mosaic_0001>

<bundles_post_ra>
// kernel: pointconv_net33_forward.2
= control target key start
LH: loop header
LB: loop body
LE: loop exit
PB: predicated region body
PF: predicated region fallthrough
CT: control target
= control target key end

     0   :  { %v652_v0 = vmov 0   ;;  %v653_v17 = vmov 1   ;;  %v654_v18 = vmov 2   ;;  %v655_v19 = vmov 3   ;;  %s1149_s0 = inlined_call_operand.vmem [shape: f32[128,4], index: 0, kind: input, shape index: {}]   ;;  %s1150_s1 = inlined_call_operand.vmem [shape: f32[4,128], index: 1, kind: input, shape index: {}]   ;;  %s1151_s2 = inlined_call_operand.vmem [shape: f32[128,128], index: 2, kind: output, shape index: {}]  }
   0x1   :  { %645 = vset.pattern.permute.xlu1 %v652_v0  ;;  %644 = vset.pattern.permute.xlu0 %v652_v0  ;;  %v674_v1 = vld [vmem:[%s1149_s0 + $0x10] sm:$0xff]  ;;  %v679_v2 = vld [vmem:[%s1149_s0] sm:$0xff]  ;;  %v686_v3 = vld [vmem:[%s1149_s0 + $0x18] sm:$0xff]  ;;  %v108_v30 = vlaneseq }
   0x2   :  { %40 = vperm.xlu1 %645, %v674_v1   ;;  %30 = vperm.xlu0 %644, %v679_v2   ;;  %v691_v4 = vld [vmem:[%s1149_s0 + $0x8] sm:$0xff]  ;;  %v703_v6 = vld [vmem:[%s1149_s0 + $0x20] sm:$0xff]  ;;  %v710_v7 = vld [vmem:[%s1149_s0 + $0x38] sm:$0xff] }
   0x3   :  { %v698_v5 = vld [vmem:[%s1149_s0 + $0x28] sm:$0xff]  ;;  %v715_v8 = vld [vmem:[%s1149_s0 + $0x30] sm:$0xff]  ;;  %v727_v10 = vld [vmem:[%s1149_s0 + $0x40] sm:$0xff]  ;;  %v798_v33 = vshrl.u32 %v108_v30, 7 }
   0x4   :  { %v722_v9 = vld [vmem:[%s1149_s0 + $0x48] sm:$0xff]  ;;  %v22_v11 = vld [vmem:[%s1149_s0 + $0x58] sm:$0xff]  ;;  %v737_v12 = vld [vmem:[%s1149_s0 + $0x50] sm:$0xff] }
   0x5   :  { %v24_v13 = vld [vmem:[%s1149_s0 + $0x68] sm:$0xff]  ;;  %v23_v14 = vld [vmem:[%s1149_s0 + $0x60] sm:$0xff]  ;;  %v26_v15 = vld [vmem:[%s1149_s0 + $0x78] sm:$0xff]  ;;  %v110_v36 = vsub.s32 0, %v798_v33  ;;  %v226_v37 = vsub.s32 1, %v798_v33 }
   0x6   :  { %45 = vperm.xlu1 %645, %v686_v3   ;;  %35 = vperm.xlu0 %644, %v691_v4   ;;  %v25_v16 = vld [vmem:[%s1149_s0 + $0x70] sm:$0xff]  ;;  %v807_v38 = vld [vmem:[%s1150_s1] sm:$0xf] }
   0x7   :  { %v812_v41 = vrot.slane %v807_v38, %v110_v36  ;;  %v815_v42 = vrot.slane %v807_v38, %v226_v37 }
   0xa   :  { %55 = vperm.xlu1 %645, %v698_v5   ;;  %50 = vperm.xlu0 %644, %v703_v6  }
   0xe   :  { %65 = vperm.xlu1 %645, %v710_v7   ;;  %60 = vperm.xlu0 %644, %v715_v8  }
  0x12   :  { %75 = vperm.xlu1 %645, %v722_v9   ;;  %70 = vperm.xlu0 %644, %v727_v10  }
  0x16   :  { %85 = vperm.xlu1 %645, %v22_v11   ;;  %80 = vperm.xlu0 %644, %v737_v12  }
  0x1a   :  { %95 = vperm.xlu1 %645, %v24_v13   ;;  %90 = vperm.xlu0 %644, %v23_v14  }
  0x1e   :  { %105 = vperm.xlu1 %645, %v26_v15   ;;  %100 = vperm.xlu0 %644, %v25_v16  }
  0x22   :  { %647 = vset.pattern.permute.xlu1 %v653_v17  ;;  %646 = vset.pattern.permute.xlu0 %v653_v17 }
  0x23   :  { %165 = vperm.xlu1 %647, %v691_v4   ;;  %161 = vperm.xlu0 %646, %v679_v2  }
  0x27   :  { %169 = vperm.xlu1 %647, %v674_v1   ;;  %173 = vperm.xlu0 %646, %v686_v3  }
  0x2b   :  { %177 = vperm.xlu1 %647, %v703_v6   ;;  %181 = vperm.xlu0 %646, %v698_v5  }
  0x2f   :  { %185 = vperm.xlu1 %647, %v715_v8   ;;  %189 = vperm.xlu0 %646, %v710_v7  }
  0x33   :  { %193 = vperm.xlu1 %647, %v727_v10   ;;  %197 = vperm.xlu0 %646, %v722_v9  }
  0x37   :  { %201 = vperm.xlu1 %647, %v737_v12   ;;  %205 = vperm.xlu0 %646, %v22_v11  }
  0x3b   :  { %209 = vperm.xlu1 %647, %v23_v14   ;;  %213 = vperm.xlu0 %646, %v24_v13  }
  0x3f   :  { %217 = vperm.xlu1 %647, %v25_v16   ;;  %221 = vperm.xlu0 %646, %v26_v15  }
  0x43   :  { %648 = vset.pattern.permute.xlu1 %v654_v18  ;;  %649 = vset.pattern.permute.xlu0 %v654_v18 }
  0x44   :  { %277 = vperm.xlu1 %648, %v679_v2   ;;  %281 = vperm.xlu0 %649, %v691_v4  }
  0x48   :  { %285 = vperm.xlu1 %648, %v674_v1   ;;  %293 = vperm.xlu0 %649, %v703_v6  }
  0x4c   :  { %289 = vperm.xlu1 %648, %v686_v3   ;;  %301 = vperm.xlu0 %649, %v715_v8  }
  0x50   :  { %297 = vperm.xlu1 %648, %v698_v5   ;;  %309 = vperm.xlu0 %649, %v727_v10  }
  0x54   :  { %305 = vperm.xlu1 %648, %v710_v7   ;;  %317 = vperm.xlu0 %649, %v737_v12  }
  0x58   :  { %313 = vperm.xlu1 %648, %v722_v9   ;;  %325 = vperm.xlu0 %649, %v23_v14  }
  0x5c   :  { %321 = vperm.xlu1 %648, %v22_v11   ;;  %333 = vperm.xlu0 %649, %v25_v16  }
  0x60   :  { %329 = vperm.xlu1 %648, %v24_v13   ;;  %650 = vset.pattern.permute.xlu0 %v655_v19 }
  0x61   :  { %393 = vperm.xlu0 %650, %v679_v2  }
  0x64   :  { %337 = vperm.xlu1 %648, %v26_v15  }
  0x65   :  { %405 = vperm.xlu0 %650, %v686_v3  }
  0x68   :  { %651 = vset.pattern.permute.xlu1 %v655_v19 }
  0x69   :  { %397 = vperm.xlu1 %651, %v691_v4   ;;  %413 = vperm.xlu0 %650, %v698_v5  }
  0x6d   :  { %401 = vperm.xlu1 %651, %v674_v1   ;;  %421 = vperm.xlu0 %650, %v710_v7  }
  0x71   :  { %409 = vperm.xlu1 %651, %v703_v6   ;;  %429 = vperm.xlu0 %650, %v722_v9  }
  0x75   :  { %417 = vperm.xlu1 %651, %v715_v8   ;;  %437 = vperm.xlu0 %650, %v22_v11  }
  0x79   :  { %425 = vperm.xlu1 %651, %v727_v10   ;;  %445 = vperm.xlu0 %650, %v24_v13  }
  0x7d   :  { %433 = vperm.xlu1 %651, %v737_v12   ;;  %453 = vperm.xlu0 %650, %v26_v15  }
  0x81   :  { %v41_v20 = vpop.permute.xlu1 %40  ;;  %441 = vperm.xlu1 %651, %v23_v14   ;;  %v785_v21 = vpop.permute.xlu0 %30 }
  0x82   :  { %v114_v47 = vsub.f32 %v41_v20, %v812_v41 }
  0x84   :  { %v130_v54 = vmul.f32 %v114_v47, %v114_v47 }
  0x85   :  { %v787_v22 = vpop.permute.xlu1 %45  ;;  %449 = vperm.xlu1 %651, %v25_v16   ;;  %v36_v23 = vpop.permute.xlu0 %35 }
  0x86   :  { %v113_v43 = vsub.f32 %v36_v23, %v812_v41 }
  0x88   :  { %v129_v48 = vmul.f32 %v113_v43, %v113_v43 }
  0x89   :  { %v789_v24 = vpop.permute.xlu1 %55  ;;  %v51_v25 = vpop.permute.xlu0 %50 }
  0x8a   :  { %v116_v55 = vsub.f32 %v51_v25, %v812_v41 }
  0x8c   :  { %v132_v61 = vmul.f32 %v116_v55, %v116_v55 }
  0x8d   :  { %v791_v26 = vpop.permute.xlu1 %65  ;;  %v61_v27 = vpop.permute.xlu0 %60 }
  0x8e   :  { %v118_v62 = vsub.f32 %v61_v27, %v812_v41 }
  0x90   :  { %v134_v4 = vmul.f32 %v118_v62, %v118_v62 }
  0x91   :  { %v793_v28 = vpop.permute.xlu1 %75  ;;  %v71_v29 = vpop.permute.xlu0 %70 }
  0x92   :  { %v120_v5 = vsub.f32 %v71_v29, %v812_v41 }
  0x94   :  { %v136_v11 = vmul.f32 %v120_v5, %v120_v5 }
  0x95   :  { %v795_v31 = vpop.permute.xlu1 %85  ;;  %v81_v32 = vpop.permute.xlu0 %80 }
  0x96   :  { %v122_v12 = vsub.f32 %v81_v32, %v812_v41 }
  0x98   :  { %v138_v18 = vmul.f32 %v122_v12, %v122_v12  ;;  %v898_v12 = vadd.s32 8, %v798_v33 }
  0x99   :  { %v800_v34 = vpop.permute.xlu1 %95  ;;  %v91_v35 = vpop.permute.xlu0 %90 }
  0x9a   :  { %v124_v19 = vsub.f32 %v91_v35, %v812_v41 }
  0x9c   :  { %v140_v32 = vmul.f32 %v124_v19, %v124_v19  ;;  %v115_v19 = vsub.f32 %v787_v22, %v812_v41  ;;  %v938_v22 = vadd.s32 104, %v798_v33 }
  0x9d   :  { %v809_v39 = vpop.permute.xlu1 %105  ;;  %v101_v40 = vpop.permute.xlu0 %100 }
  0x9e   :  { %v126_v36 = vsub.f32 %v101_v40, %v812_v41 }
  0xa0   :  { %v142_v35 = vmul.f32 %v126_v36, %v126_v36  ;;  %v117_v36 = vsub.f32 %v789_v24, %v812_v41  ;;  %v123_v24 = vsub.f32 %v795_v31, %v812_v41 }
  0xa2   :  { %v166_v44 = vpop.permute.xlu1 %165  ;;  %v818_v45 = vpop.permute.xlu0 %161  ;;  %v133_v31 = vmul.f32 %v117_v36, %v117_v36 }
  0xa3   :  { %v229_v46 = vsub.f32 %v166_v44, %v815_v42 }
  0xa5   :  { %v245_v49 = vmul.f32 %v229_v46, %v229_v46 }
  0xa6   :  { %v170_v50 = vpop.permute.xlu1 %169  ;;  %v822_v51 = vpop.permute.xlu0 %173 }
  0xa7   :  { %v824_v52 = vadd.f32 %v245_v49, %v129_v48  ;;  %v230_v53 = vsub.f32 %v170_v50, %v815_v42 }
  0xa9   :  { %v246_v56 = vmul.f32 %v230_v53, %v230_v53 }
  0xaa   :  { %v178_v57 = vpop.permute.xlu1 %177  ;;  %v828_v58 = vpop.permute.xlu0 %181 }
  0xab   :  { %v830_v59 = vadd.f32 %v246_v56, %v130_v54  ;;  %v232_v60 = vsub.f32 %v178_v57, %v815_v42 }
  0xad   :  { %v248_v63 = vmul.f32 %v232_v60, %v232_v60 }
  0xae   :  { %v186_v0 = vpop.permute.xlu1 %185  ;;  %v834_v1 = vpop.permute.xlu0 %189 }
  0xaf   :  { %v836_v2 = vadd.f32 %v248_v63, %v132_v61  ;;  %v234_v3 = vsub.f32 %v186_v0, %v815_v42  ;;  %v342_v61 = vsub.s32 2, %v798_v33  ;;  %v458_v0 = vsub.s32 3, %v798_v33 }
  0xb1   :  { %v250_v6 = vmul.f32 %v234_v3, %v234_v3  ;;  %v880_v3 = vrot.slane %v807_v38, %v342_v61 }
  0xb2   :  { %v194_v7 = vpop.permute.xlu1 %193  ;;  %v840_v8 = vpop.permute.xlu0 %197 }
  0xb3   :  { %v842_v9 = vadd.f32 %v250_v6, %v134_v4  ;;  %v236_v10 = vsub.f32 %v194_v7, %v815_v42  ;;  %v887_v6 = vrot.slane %v807_v38, %v458_v0  ;;  %v890_v7 = vand.u32 127, %v108_v30 }
  0xb4   :  { %v907_v38 = vadd.s32 56, %v798_v33  ;;  %v910_v30 = vadd.s32 32, %v798_v33 }
  0xb5   :  { %v252_v13 = vmul.f32 %v236_v10, %v236_v10  ;;  %v893_v10 = vadd.s32 24, %v798_v33  ;;  %vm588_vm0 = vcmp.eq.s32.totalorder %v798_v33, %v890_v7  ;;  %vm589_vm2 = vcmp.eq.s32.totalorder %v898_v12, %v890_v7 }
  0xb6   :  { %v202_v14 = vpop.permute.xlu1 %201  ;;  %v846_v15 = vpop.permute.xlu0 %205  ;;  %vm595_vm5 = vcmp.eq.s32.totalorder %v907_v38, %v890_v7  ;;  %vm592_vm6 = vcmp.eq.s32.totalorder %v910_v30, %v890_v7  ;;  %vm601_vm11 = vcmp.eq.s32.totalorder %v938_v22, %v890_v7 }
  0xb7   :  { %v848_v16 = vadd.f32 %v252_v13, %v136_v11  ;;  %v238_v17 = vsub.f32 %v202_v14, %v815_v42  ;;  %v228_v11 = vsub.f32 %v818_v45, %v815_v42  ;;  %v901_v13 = vadd.s32 40, %v798_v33 }
  0xb8   :  { %v904_v14 = vadd.s32 16, %v798_v33  ;;  %v916_v45 = vadd.s32 48, %v798_v33  ;;  %vm591_vm1 = vcmp.eq.s32.totalorder %v893_v10, %v890_v7 }
  0xb9   :  { %1152 = vst [vmem:[#allocation2_spill] sm:$0xff] %v848_v16  ;;  %v254_v20 = vmul.f32 %v238_v17, %v238_v17  ;;  %v913_v17 = vadd.s32 72, %v798_v33  ;;  %vm593_vm3 = vcmp.eq.s32.totalorder %v901_v13, %v890_v7 }
  0xba   :  { %v210_v23 = vpop.permute.xlu1 %209  ;;  %v852_v25 = vpop.permute.xlu0 %213  ;;  %vm590_vm4 = vcmp.eq.s32.totalorder %v904_v14, %v890_v7  ;;  %vm594_vm8 = vcmp.eq.s32.totalorder %v916_v45, %v890_v7 }
  0xbb   :  { %v854_v27 = vadd.f32 %v254_v20, %v138_v18  ;;  %v240_v29 = vsub.f32 %v210_v23, %v815_v42  ;;  %v112_v18 = vsub.f32 %v785_v21, %v812_v41  ;;  %v935_v21 = vadd.s32 64, %v798_v33 }
  0xbc   :  { %vm597_vm7 = vcmp.eq.s32.totalorder %v913_v17, %v890_v7 }
  0xbd   :  { %1153 = vst [vmem:[#allocation3_spill] sm:$0xff] %v854_v27  ;;  %v256_v37 = vmul.f32 %v240_v29, %v240_v29  ;;  %v128_v61 = vmul.f32 %v112_v18, %v112_v18  ;;  %vm596_vm10 = vcmp.eq.s32.totalorder %v935_v21, %v890_v7  ;;  %v563_v21 = vadd.s32 96, %v798_v33 }
  0xbe   :  { %v218_v43 = vpop.permute.xlu1 %217  ;;  %v858_v44 = vpop.permute.xlu0 %221 }
  0xbf   :  { %v860_v46 = vadd.f32 %v256_v37, %v140_v32  ;;  %v242_v47 = vsub.f32 %v218_v43, %v815_v42  ;;  %v928_v32 = vadd.s32 88, %v798_v33  ;;  %v119_v37 = vsub.f32 %v791_v26, %v812_v41 }
  0xc0   :  { %v121_v43 = vsub.f32 %v793_v28, %v812_v41  ;;  %v233_v26 = vsub.f32 %v828_v58, %v815_v42  ;;  %v956_v28 = vadd.s32 120, %v798_v33  ;;  %v125_v58 = vsub.f32 %v800_v34, %v812_v41 }
  0xc1   :  { %1154 = vst [vmem:[#allocation4_spill] sm:$0xff] %v860_v46  ;;  %v258_v48 = vmul.f32 %v242_v47, %v242_v47  ;;  %v244_v47 = vmul.f32 %v228_v11, %v228_v11  ;;  %v135_v46 = vmul.f32 %v119_v37, %v119_v37  ;;  %vm599_vm9 = vcmp.eq.s32.totalorder %v928_v32, %v890_v7 }
  0xc2   :  { %1159 = vst [vmem:[#allocation9_spill] sm:$0xff] %v956_v28  ;;  %vm600_vm14 = vcmp.eq.s32.totalorder %v563_v21, %v890_v7 }
  0xc3   :  { %v863_v49 = vadd.f32 %v258_v48, %v142_v35  ;;  %v278_v50 = vpop.permute.xlu1 %277  ;;  %v282_v53 = vpop.permute.xlu0 %281  ;;  %v231_v35 = vsub.f32 %v822_v51, %v815_v42  ;;  %v945_v48 = vadd.s32 80, %v798_v33  ;;  %v131_v51 = vmul.f32 %v115_v19, %v115_v19 }
  0xc4   :  { %v344_v20 = vsub.f32 %v278_v50, %v880_v3  ;;  %v235_v50 = vsub.f32 %v834_v1, %v815_v42  ;;  %v237_v1 = vsub.f32 %v840_v8, %v815_v42  ;;  %v260_v27 = vadd.f32 %v244_v47, %v128_v61 }
  0xc5   :  { %1155 = vst [vmem:[#allocation5_spill] sm:$0xff] %v863_v49  ;;  %1158 = vst [vmem:[#allocation8_spill] sm:$0xff] %v945_v48  ;;  %v139_v19 = vmul.f32 %v123_v24, %v123_v24 }
  0xc6   :  { %v360_v0 = vmul.f32 %v344_v20, %v344_v20  ;;  %v249_v20 = vmul.f32 %v233_v26, %v233_v26  ;;  %v251_v28 = vmul.f32 %v235_v50, %v235_v50  ;;  %v253_v47 = vmul.f32 %v237_v1, %v237_v1 }
  0xc7   :  { %v865_v54 = vpop.permute.xlu1 %285  ;;  %v867_v55 = vpop.permute.xlu0 %293 }
  0xc8   :  { %v376_v36 = vadd.f32 %v360_v0, %v260_v27  ;;  %v265_v50 = vadd.f32 %v249_v20, %v133_v31  ;;  %v267_v61 = vadd.f32 %v251_v28, %v135_v46 }
  0xcb   :  { %v290_v56 = vpop.permute.xlu1 %289  ;;  %v869_v40 = vpop.permute.xlu0 %301 }
  0xcc   :  { %v347_v11 = vsub.f32 %v290_v56, %v880_v3  ;;  %v345_v56 = vsub.f32 %v282_v53, %v880_v3  ;;  %v978_v53 = vsub.f32 %v809_v39, %v812_v41 }
  0xce   :  { %v363_v37 = vmul.f32 %v347_v11, %v347_v11  ;;  %v361_v0 = vmul.f32 %v345_v56, %v345_v56  ;;  %v346_v11 = vsub.f32 %v865_v54, %v880_v3  ;;  %v348_v56 = vsub.f32 %v867_v55, %v880_v3 }
  0xcf   :  { %v298_v57 = vpop.permute.xlu1 %297  ;;  %v871_v60 = vpop.permute.xlu0 %309 }
  0xd0   :  { %v349_v34 = vsub.f32 %v298_v57, %v880_v3  ;;  %v377_v20 = vadd.f32 %v361_v0, %v824_v52 }
  0xd3   :  { %v874_v62 = vpop.permute.xlu1 %305  ;;  %v876_v63 = vpop.permute.xlu0 %317 }
  0xd4   :  { %v351_v46 = vsub.f32 %v874_v62, %v880_v3  ;;  %v350_v62 = vsub.f32 %v869_v40, %v880_v3 }
  0xd6   :  { %v367_v55 = vmul.f32 %v351_v46, %v351_v46 }
  0xd7   :  { %v882_v4 = vpop.permute.xlu1 %313  ;;  %v884_v5 = vpop.permute.xlu0 %325 }
  0xd8   :  { %1156 = vst [vmem:[#allocation6_spill] sm:$0xff] %v884_v5  ;;  %v247_v5 = vmul.f32 %v231_v35, %v231_v35  ;;  %v239_v35 = vsub.f32 %v846_v15, %v815_v42  ;;  %v353_v40 = vsub.f32 %v882_v4, %v880_v3 }
  0xda   :  { %v263_v27 = vadd.f32 %v247_v5, %v131_v51 }
  0xdb   :  { %v923_v23 = vpop.permute.xlu1 %321  ;;  %v925_v29 = vpop.permute.xlu0 %333 }
  0xdc   :  { %1157 = vst [vmem:[#allocation7_spill] sm:$0xff] %v925_v29  ;;  %v137_v29 = vmul.f32 %v121_v43, %v121_v43  ;;  %v141_v43 = vmul.f32 %v125_v58, %v125_v58  ;;  %v379_v15 = vadd.f32 %v363_v37, %v263_v27  ;;  %v355_v10 = vsub.f32 %v923_v23, %v880_v3 }
  0xde   :  { %v987_v5 = vadd.f32 %v253_v47, %v137_v29  ;;  %v362_v29 = vmul.f32 %v346_v11, %v346_v11  ;;  %v364_v11 = vmul.f32 %v348_v56, %v348_v56 }
  0xdf   :  { %v959_v49 = vpop.permute.xlu1 %329  ;;  %v1161_v30 = vld [vmem:[#allocation6_spill] sm:$0xff] }
  0xe0   :  { %v394_v48 = vpop.permute.xlu0 %393  ;;  %v378_v0 = vadd.f32 %v362_v29, %v830_v59  ;;  %v243_v59 = vsub.f32 %v858_v44, %v815_v42 }
  0xe1   :  { %v460_v18 = vsub.f32 %v394_v48, %v887_v6  ;;  %v241_v48 = vsub.f32 %v852_v25, %v815_v42  ;;  %v365_v25 = vmul.f32 %v349_v34, %v349_v34  ;;  %v352_v42 = vsub.f32 %v871_v60, %v880_v3 }
  0xe2   :  { %v371_v60 = vmul.f32 %v355_v10, %v355_v10 }
  0xe3   :  { %v476_v16 = vmul.f32 %v460_v18, %v460_v18  ;;  %v970_v8 = vpop.permute.xlu1 %337  ;;  %v257_v51 = vmul.f32 %v241_v48, %v241_v48  ;;  %v1163_v32 = vld [vmem:[#allocation7_spill] sm:$0xff] }
  0xe4   :  { %v406_v24 = vpop.permute.xlu0 %405  ;;  %v359_v38 = vsub.f32 %v970_v8, %v880_v3 }
  0xe5   :  { %v492_v26 = vadd.f32 %v476_v16, %v376_v36  ;;  %v463_v57 = vsub.f32 %v406_v24, %v887_v6  ;;  %v255_v16 = vmul.f32 %v239_v35, %v239_v35  ;;  %v381_v36 = vadd.f32 %v365_v25, %v265_v50 }
  0xe6   :  { %v1008_v35 = vadd.f32 %v257_v51, %v141_v43 }
  0xe7   :  { %v508_v39 = vsub.f32 0.0, %v492_v26  ;;  %v479_v41 = vmul.f32 %v463_v57, %v463_v57  ;;  %v271_v52 = vadd.f32 %v255_v16, %v139_v19  ;;  %v366_v19 = vmul.f32 %v350_v62, %v350_v62 }
  0xe8   :  { %v398_v28 = vpop.permute.xlu1 %397  ;;  %v414_v31 = vpop.permute.xlu0 %413 }
  0xe9   :  { %v604_v54 = vsel %vm588_vm0, -1e+30, %v508_v39  ;;  %v495_v58 = vadd.f32 %v479_v41, %v379_v15  ;;  %v461_v1 = vsub.f32 %v398_v28, %v887_v6  ;;  %v465_v18 = vsub.f32 %v414_v31, %v887_v6 }
  0xea   :  { %620 = vst [vmem:[%s1151_s2] sm:$0xff] %v604_v54  ;;  %v383_v39 = vadd.f32 %v367_v55, %v267_v61  ;;  %v369_v41 = vmul.f32 %v353_v40, %v353_v40  ;;  %v387_v14 = vadd.f32 %v371_v60, %v271_v52  ;;  %v358_v60 = vsub.f32 %v1163_v32, %v880_v3 }
  0xeb   :  { %v511_v37 = vsub.f32 0.0, %v495_v58  ;;  %v477_v34 = vmul.f32 %v461_v1, %v461_v1  ;;  %v481_v47 = vmul.f32 %v465_v18, %v465_v18  ;;  %v380_v58 = vadd.f32 %v364_v11, %v836_v2 }
  0xec   :  { %v402_v48 = vpop.permute.xlu1 %401  ;;  %v422_v24 = vpop.permute.xlu0 %421  ;;  %v382_v2 = vadd.f32 %v366_v19, %v842_v9  ;;  %v385_v1 = vadd.f32 %v369_v41, %v987_v5  ;;  %v357_v18 = vsub.f32 %v959_v49, %v880_v3  ;;  %v354_v5 = vsub.f32 %v876_v63, %v880_v3 }
  0xed   :  { %v607_v27 = vsel %vm591_vm1, -1e+30, %v511_v37  ;;  %v493_v26 = vadd.f32 %v477_v34, %v377_v20  ;;  %v497_v57 = vadd.f32 %v481_v47, %v381_v36  ;;  %v462_v50 = vsub.f32 %v402_v48, %v887_v6 }
  0xee   :  { %623 = vst [vmem:[%s1151_s2 + $0x18] sm:$0xff] %v607_v27  ;;  %v467_v4 = vsub.f32 %v422_v24, %v887_v6  ;;  %v368_v47 = vmul.f32 %v352_v42, %v352_v42  ;;  %v259_v24 = vmul.f32 %v243_v59, %v243_v59  ;;  %v373_v27 = vmul.f32 %v357_v18, %v357_v18 }
  0xef   :  { %v509_v43 = vsub.f32 0.0, %v493_v26  ;;  %v513_v15 = vsub.f32 0.0, %v497_v57  ;;  %v478_v25 = vmul.f32 %v462_v50, %v462_v50 }
  0xf0   :  { %v483_v16 = vmul.f32 %v467_v4, %v467_v4  ;;  %v410_v51 = vpop.permute.xlu1 %409  ;;  %v430_v46 = vpop.permute.xlu0 %429  ;;  %v1160_v4 = vld [vmem:[#allocation2_spill] sm:$0xff] }
  0xf1   :  { %v605_v28 = vsel %vm589_vm2, -1e+30, %v509_v43  ;;  %v609_v23 = vsel %vm593_vm3, -1e+30, %v513_v15  ;;  %v494_v31 = vadd.f32 %v478_v25, %v378_v0  ;;  %v464_v54 = vsub.f32 %v410_v51, %v887_v6 }
  0xf2   :  { %621 = vst [vmem:[%s1151_s2 + $0x8] sm:$0xff] %v605_v28  ;;  %625 = vst [vmem:[%s1151_s2 + $0x28] sm:$0xff] %v609_v23  ;;  %v499_v44 = vadd.f32 %v483_v16, %v383_v39  ;;  %v469_v12 = vsub.f32 %v430_v46, %v887_v6  ;;  %v384_v10 = vadd.f32 %v368_v47, %v1160_v4  ;;  %v1166_v47 = vld [vmem:[#allocation4_spill] sm:$0xff] }
  0xf3   :  { %v510_v13 = vsub.f32 0.0, %v494_v31  ;;  %v480_v61 = vmul.f32 %v464_v54, %v464_v54  ;;  %v370_v43 = vmul.f32 %v354_v5, %v354_v5  ;;  %v356_v25 = vsub.f32 %v1161_v30, %v880_v3 }
  0xf4   :  { %v515_v20 = vsub.f32 0.0, %v499_v44  ;;  %v485_v29 = vmul.f32 %v469_v12, %v469_v12  ;;  %v418_v56 = vpop.permute.xlu1 %417  ;;  %v438_v62 = vpop.permute.xlu0 %437  ;;  %v143_v16 = vmul.f32 %v978_v53, %v978_v53  ;;  %v389_v51 = vadd.f32 %v373_v27, %v1008_v35  ;;  %v1162_v12 = vld [vmem:[#allocation3_spill] sm:$0xff] }
  0xf5   :  { %v606_v36 = vsel %vm590_vm4, -1e+30, %v510_v13  ;;  %v496_v37 = vadd.f32 %v480_v61, %v380_v58  ;;  %v466_v34 = vsub.f32 %v418_v56, %v887_v6  ;;  %v471_v9 = vsub.f32 %v438_v62, %v887_v6  ;;  %v1164_v62 = vld [vmem:[#allocation8_spill] sm:$0xff] }
  0xf6   :  { %622 = vst [vmem:[%s1151_s2 + $0x10] sm:$0xff] %v606_v36  ;;  %v611_v49 = vsel %vm595_vm5, -1e+30, %v515_v20  ;;  %v501_v55 = vadd.f32 %v485_v29, %v385_v1  ;;  %v375_v46 = vmul.f32 %v359_v38, %v359_v38  ;;  %v275_v44 = vadd.f32 %v259_v24, %v143_v16 }
  0xf7   :  { %627 = vst [vmem:[%s1151_s2 + $0x38] sm:$0xff] %v611_v49  ;;  %v512_v40 = vsub.f32 0.0, %v496_v37  ;;  %v482_v48 = vmul.f32 %v466_v34, %v466_v34  ;;  %v487_v63 = vmul.f32 %v471_v9, %v471_v9  ;;  %v386_v53 = vadd.f32 %v370_v43, %v1162_v12  ;;  %v1165_v34 = vld [vmem:[#allocation9_spill] sm:$0xff] }
  0xf8   :  { %v517_v26 = vsub.f32 0.0, %v501_v55  ;;  %v426_v57 = vpop.permute.xlu1 %425  ;;  %v446_v50 = vpop.permute.xlu0 %445  ;;  %v391_v1 = vadd.f32 %v375_v46, %v275_v44  ;;  %vm598_vm12 = vcmp.eq.s32.totalorder %v1164_v62, %v890_v7  ;;  %vm603_vm13 = vcmp.eq.s32.totalorder %v1165_v34, %v890_v7 }
  0xf9   :  { %v608_v52 = vsel %vm592_vm6, -1e+30, %v512_v40  ;;  %v498_v0 = vadd.f32 %v482_v48, %v382_v2  ;;  %v503_v11 = vadd.f32 %v487_v63, %v387_v14  ;;  %v468_v19 = vsub.f32 %v426_v57, %v887_v6 }
  0xfa   :  { %624 = vst [vmem:[%s1151_s2 + $0x20] sm:$0xff] %v608_v52  ;;  %v613_v8 = vsel %vm597_vm7, -1e+30, %v517_v26  ;;  %v473_v15 = vsub.f32 %v446_v50, %v887_v6  ;;  %v372_v2 = vmul.f32 %v356_v25, %v356_v25  ;;  %v374_v49 = vmul.f32 %v358_v60, %v358_v60  ;;  %v1167_v26 = vld [vmem:[#allocation5_spill] sm:$0xff] }
  0xfb   :  { %629 = vst [vmem:[%s1151_s2 + $0x48] sm:$0xff] %v613_v8  ;;  %v514_v59 = vsub.f32 0.0, %v498_v0  ;;  %v519_v39 = vsub.f32 0.0, %v503_v11  ;;  %v484_v41 = vmul.f32 %v468_v19, %v468_v19  ;;  %v565_v38 = vadd.s32 112, %v798_v33 }
  0xfc   :  { %v489_v17 = vmul.f32 %v473_v15, %v473_v15  ;;  %v434_v28 = vpop.permute.xlu1 %433  ;;  %v454_v23 = vpop.permute.xlu0 %453  ;;  %v388_v5 = vadd.f32 %v372_v2, %v1166_v47  ;;  %v390_v57 = vadd.f32 %v374_v49, %v1167_v26 }
  0xfd   :  { %v610_v31 = vsel %vm594_vm8, -1e+30, %v514_v59  ;;  %v615_v54 = vsel %vm599_vm9, -1e+30, %v519_v39  ;;  %v500_v58 = vadd.f32 %v484_v41, %v384_v10  ;;  %v470_v42 = vsub.f32 %v434_v28, %v887_v6 }
  0xfe   :  { %626 = vst [vmem:[%s1151_s2 + $0x30] sm:$0xff] %v610_v31  ;;  %631 = vst [vmem:[%s1151_s2 + $0x58] sm:$0xff] %v615_v54  ;;  %v505_v45 = vadd.f32 %v489_v17, %v389_v51  ;;  %v475_v35 = vsub.f32 %v454_v23, %v887_v6  ;;  %vm602_vm15 = vcmp.eq.s32.totalorder %v565_v38, %v890_v7 }
  0xff   :  { %v516_v13 = vsub.f32 0.0, %v500_v58  ;;  %v486_v61 = vmul.f32 %v470_v42, %v470_v42 }
 0x100   :  { %v521_v18 = vsub.f32 0.0, %v505_v45  ;;  %v491_v20 = vmul.f32 %v475_v35, %v475_v35  ;;  %v442_v29 = vpop.permute.xlu1 %441 }
 0x101   :  { %v612_v56 = vsel %vm596_vm10, -1e+30, %v516_v13  ;;  %v502_v36 = vadd.f32 %v486_v61, %v386_v53  ;;  %v472_v37 = vsub.f32 %v442_v29, %v887_v6 }
 0x102   :  { %628 = vst [vmem:[%s1151_s2 + $0x40] sm:$0xff] %v612_v56  ;;  %v617_v3 = vsel %vm601_vm11, -1e+30, %v521_v18  ;;  %v507_v9 = vadd.f32 %v491_v20, %v391_v1 }
 0x103   :  { %633 = vst [vmem:[%s1151_s2 + $0x68] sm:$0xff] %v617_v3  ;;  %v518_v55 = vsub.f32 0.0, %v502_v36  ;;  %v488_v14 = vmul.f32 %v472_v37, %v472_v37 }
 0x104   :  { %v523_v40 = vsub.f32 0.0, %v507_v9  ;;  %v450_v48 = vpop.permute.xlu1 %449 }
 0x105   :  { %v614_v63 = vsel %vm598_vm12, -1e+30, %v518_v55  ;;  %v504_v22 = vadd.f32 %v488_v14, %v388_v5  ;;  %v474_v24 = vsub.f32 %v450_v48, %v887_v6 }
 0x106   :  { %630 = vst [vmem:[%s1151_s2 + $0x50] sm:$0xff] %v614_v63  ;;  %v619_v27 = vsel %vm603_vm13, -1e+30, %v523_v40 }
 0x107   :  { %635 = vst [vmem:[%s1151_s2 + $0x78] sm:$0xff] %v619_v27  ;;  %v520_v50 = vsub.f32 0.0, %v504_v22  ;;  %v490_v52 = vmul.f32 %v474_v24, %v474_v24 }
 0x109   :  { %v616_v0 = vsel %vm600_vm14, -1e+30, %v520_v50  ;;  %v506_v11 = vadd.f32 %v490_v52, %v390_v57 }
 0x10a   :  { %632 = vst [vmem:[%s1151_s2 + $0x60] sm:$0xff] %v616_v0 }
 0x10b   :  { %v522_v6 = vsub.f32 0.0, %v506_v11 }
 0x10d   :  { %v618_v19 = vsel %vm602_vm15, -1e+30, %v522_v6 }
 0x10e   :  { %634 = vst [vmem:[%s1151_s2 + $0x70] sm:$0xff] %v618_v19 }

// kernel: pointconv_net33_forward.3
= control target key start
LH: loop header
LB: loop body
LE: loop exit
PB: predicated region body
PF: predicated region fallthrough
CT: control target
= control target key end

     0   :  { %s13679_s18 = smov 0   ;;  %s17542_s0 = inlined_call_operand.vmem [shape: s32[128,48], index: 0, kind: input, shape index: {}]   ;;  %s17543_s1 = inlined_call_operand.vmem [shape: bf16[128,32], index: 1, kind: input, shape index: {}]   ;;  %s17544_s2 = inlined_call_operand.vmem [shape: f32[128,32], index: 2, kind: input, shape index: {}]   ;;  %s17545_s3 = inlined_call_operand.vmem [shape: bf16[32,128], index: 3, kind: input, shape index: {}]   ;;  %s17546_s4 = inlined_call_operand.vmem [shape: f32[1,128], index: 4, kind: input, shape index: {}]   ;;  %s17547_s5 = inlined_call_operand.vmem [shape: f32[128,128], index: 5, kind: output, shape index: {}]  }
   0x1 LB: > { %s11396_s19 = sadd.s32 4294967295, %s13644_s18   ;;  %p11400_p0 = scmp.ge.s32.totalorder %s13644_s18, 1  ;;  %s13644_s18 = sphi %s13679_s18, %s15_s18  }
   0x2   : > { %p199_p1 = scmp.lt.s32.totalorder %s13644_s18, 3 }
   0x4   : > { %p200_p2 = pnand %p11400_p0, %p199_p1 }
   0x6   : > { %203 = sbr.rel (%p200_p2) target bundleno = 1593 (0x639), region = 40 }
   0xd   : > { %s11401_s20 = sshll.u32 %s11396_s19, 3  ;;  %v287_v0 = vlaneseq  ;;  %v13690_v1 = vld [vmem:[%s17543_s1] sm:$0xff]   ;;  %v13608_v2 = vld [vmem:[%s17543_s1 + $0x8] sm:$0xff]   ;;  %v13609_v5 = vld [vmem:[%s17543_s1 + $0x10] sm:$0xff]   ;;  %v17554_v48 = vmov 0.0  }
   0xe   : > { %p233_p3 = scmp.lt.s32.totalorder %s11401_s20, 15  ;;  %12784 = vmatprep.subr.bf16.mxu0 %v13690_v1  ;;  %v13610_v8 = vld [vmem:[%s17543_s1 + $0x18] sm:$0xff]   ;;  %v13611_v11 = vld [vmem:[%s17543_s1 + $0x20] sm:$0xff]   ;;  %v13612_v13 = vld [vmem:[%s17543_s1 + $0x28] sm:$0xff]   ;;  %v17548_v50 = vmov 1.0|1.0  }
   0xf   : > { %v13696_v3 = vshrl.u32 %v287_v0, 7  ;;  %12785 = vmatpush3.bf16.msra.mxu0 %v13690_v1  ;;  %v13613_v16 = vld [vmem:[%s17543_s1 + $0x30] sm:$0xff]   ;;  %v13614_v18 = vld [vmem:[%s17543_s1 + $0x38] sm:$0xff]   ;;  %v13878_v43 = vand.u32 127, %v287_v0 }
  0x10   : > { %s18305_s20 = smov (!%p233_p3, %s11401_s20), 15  ;;  %12786 = vmatprep.subr.bf16.mxu0 %v13608_v2 }
  0x11   : > { %v13701_v4 = vsub.s32 0, %v13696_v3  ;;  %s13706_s27 = sshll.u32 %s18305_s20, 3  ;;  %v13709_v6 = vsub.s32 1, %v13696_v3  ;;  %v13735_v12 = vsub.s32 2, %v13696_v3  ;;  %v13746_v15 = vsub.s32 3, %v13696_v3 }
  0x12   : > { %s13715_s30 = scalar_lea.vmem %s17542_s0, %s13706_s27  ;;  %v13762_v19 = vsub.s32 4, %v13696_v3  ;;  %v13770_v21 = vsub.s32 5, %v13696_v3  ;;  %v13780_v23 = vsub.s32 6, %v13696_v3  ;;  %v13788_v25 = vsub.s32 7, %v13696_v3  ;;  %s14333_s23 = scalar_lea.vmem %s17544_s2, %s13706_s27 }
  0x13   : > { %v681_v7 = vld [vmem:[%s13715_s30] sm:$0xff]  ;;  %12787 = vmatpush3.bf16.msra.mxu0 %v13608_v2  ;;  %v682_v27 = vld [vmem:[%s13715_s30 + $0x8] sm:$0xff]  ;;  %v13847_v36 = vld [vmem:[%s13715_s30 + $0x10] sm:$0xff]  ;;  %s17171_s28 = scalar_lea.vmem %s17547_s5, %s13706_s27 }
  0x14   : > { %v13722_v9 = vrot.slane %v681_v7, %v13701_v4  ;;  %12788 = vmatprep.subr.bf16.mxu0 %v13609_v5  ;;  %v13727_v10 = vrot.slane %v681_v7, %v13709_v6  ;;  %v13743_v14 = vrot.slane %v681_v7, %v13735_v12  ;;  %v13754_v17 = vrot.slane %v681_v7, %v13746_v15 }
  0x15   : > { %v13767_v20 = vrot.slane %v681_v7, %v13762_v19  ;;  %v13775_v22 = vrot.slane %v681_v7, %v13770_v21  ;;  %v13785_v24 = vrot.slane %v681_v7, %v13780_v23  ;;  %v13793_v26 = vrot.slane %v681_v7, %v13788_v25 }
  0x16   : > { %702 = vbcast.lane.b32.xlu1 %v13722_v9, 272  ;;  %694 = vbcast.lane.b32.xlu0 %v13722_v9, 256  ;;  %v13801_v28 = vrot.slane %v682_v27, %v13701_v4  ;;  %v13806_v29 = vrot.slane %v682_v27, %v13709_v6  ;;  %v13813_v30 = vrot.slane %v682_v27, %v13735_v12 }
  0x17   : > { %12789 = vmatpush3.bf16.msra.mxu0 %v13609_v5  ;;  %v13818_v31 = vrot.slane %v682_v27, %v13746_v15  ;;  %v13825_v32 = vrot.slane %v682_v27, %v13762_v19  ;;  %v13830_v33 = vrot.slane %v682_v27, %v13770_v21  ;;  %v13837_v34 = vrot.slane %v682_v27, %v13780_v23 }
  0x18   : > { %12790 = vmatprep.subr.bf16.mxu0 %v13610_v8  ;;  %v13842_v35 = vrot.slane %v682_v27, %v13788_v25  ;;  %v13853_v37 = vrot.slane %v13847_v36, %v13701_v4  ;;  %v13859_v38 = vrot.slane %v13847_v36, %v13709_v6  ;;  %v13867_v39 = vrot.slane %v13847_v36, %v13735_v12  ;;  %v13931_v27 = vld [vmem:[%s13715_s30 + $0x18] sm:$0xff] }
  0x19   : > { %v13873_v40 = vrot.slane %v13847_v36, %v13746_v15  ;;  %v13884_v44 = vrot.slane %v13847_v36, %v13762_v19  ;;  %v13894_v47 = vrot.slane %v13847_v36, %v13770_v21  ;;  %v13909_v61 = vrot.slane %v13847_v36, %v13780_v23 }
  0x1a   : > { %709 = vbcast.lane.b32.xlu1 %v13727_v10, 256  ;;  %698 = vbcast.lane.b32.xlu0 %v13722_v9, 264  ;;  %v13921_v7 = vrot.slane %v13847_v36, %v13788_v25 }
  0x1b   : > { %12791 = vmatpush3.bf16.msra.mxu0 %v13610_v8 }
  0x1c   : > { %12792 = vmatprep.subr.bf16.mxu0 %v13611_v11 }
  0x1e   : > { %717 = vbcast.lane.b32.xlu1 %v13727_v10, 272  ;;  %713 = vbcast.lane.b32.xlu0 %v13727_v10, 264 }
  0x1f   : > { %12793 = vmatpush3.bf16.msra.mxu0 %v13611_v11 }
  0x20   : > { %12794 = vmatprep.subr.bf16.mxu0 %v13612_v13 }
  0x22   : > { %728 = vbcast.lane.b32.xlu1 %v13743_v14, 264  ;;  %724 = vbcast.lane.b32.xlu0 %v13743_v14, 256 }
  0x23   : > { %12795 = vmatpush3.bf16.msra.mxu0 %v13612_v13 }
  0x24   : > { %12796 = vmatprep.subr.bf16.mxu0 %v13613_v16 }
  0x26   : > { %743 = vbcast.lane.b32.xlu1 %v13754_v17, 264  ;;  %739 = vbcast.lane.b32.xlu0 %v13754_v17, 256 }
  0x27   : > { %12797 = vmatpush3.bf16.msra.mxu0 %v13613_v16 }
  0x28   : > { %12798 = vmatprep.subr.bf16.mxu0 %v13614_v18 }
  0x2a   : > { %732 = vbcast.lane.b32.xlu1 %v13743_v14, 272  ;;  %747 = vbcast.lane.b32.xlu0 %v13754_v17, 272 }
  0x2b   : > { %12799 = vmatpush3.bf16.msra.mxu0 %v13614_v18 }
  0x2e   : > { %758 = vbcast.lane.b32.xlu1 %v13767_v20, 264  ;;  %754 = vbcast.lane.b32.xlu0 %v13767_v20, 256 }
  0x32   : > { %769 = vbcast.lane.b32.xlu1 %v13775_v22, 256  ;;  %762 = vbcast.lane.b32.xlu0 %v13767_v20, 272 }
  0x36   : > { %777 = vbcast.lane.b32.xlu1 %v13775_v22, 272  ;;  %773 = vbcast.lane.b32.xlu0 %v13775_v22, 264 }
  0x3a   : > { %788 = vbcast.lane.b32.xlu1 %v13785_v24, 264  ;;  %784 = vbcast.lane.b32.xlu0 %v13785_v24, 256 }
  0x3e   : > { %803 = vbcast.lane.b32.xlu1 %v13793_v26, 264  ;;  %799 = vbcast.lane.b32.xlu0 %v13793_v26, 256 }
  0x42   : > { %792 = vbcast.lane.b32.xlu1 %v13785_v24, 272  ;;  %807 = vbcast.lane.b32.xlu0 %v13793_v26, 272 }
  0x46   : > { %818 = vbcast.lane.b32.xlu1 %v13801_v28, 264  ;;  %814 = vbcast.lane.b32.xlu0 %v13801_v28, 256 }
  0x4a   : > { %829 = vbcast.lane.b32.xlu1 %v13806_v29, 256  ;;  %822 = vbcast.lane.b32.xlu0 %v13801_v28, 272 }
  0x4e   : > { %837 = vbcast.lane.b32.xlu1 %v13806_v29, 272  ;;  %833 = vbcast.lane.b32.xlu0 %v13806_v29, 264 }
  0x52   : > { %848 = vbcast.lane.b32.xlu1 %v13813_v30, 264  ;;  %844 = vbcast.lane.b32.xlu0 %v13813_v30, 256 }
  0x56   : > { %863 = vbcast.lane.b32.xlu1 %v13818_v31, 264  ;;  %859 = vbcast.lane.b32.xlu0 %v13818_v31, 256 }
  0x5a   : > { %852 = vbcast.lane.b32.xlu1 %v13813_v30, 272  ;;  %867 = vbcast.lane.b32.xlu0 %v13818_v31, 272 }
  0x5e   : > { %878 = vbcast.lane.b32.xlu1 %v13825_v32, 264  ;;  %874 = vbcast.lane.b32.xlu0 %v13825_v32, 256 }
  0x62   : > { %889 = vbcast.lane.b32.xlu1 %v13830_v33, 256  ;;  %882 = vbcast.lane.b32.xlu0 %v13825_v32, 272 }
  0x66   : > { %897 = vbcast.lane.b32.xlu1 %v13830_v33, 272  ;;  %893 = vbcast.lane.b32.xlu0 %v13830_v33, 264 }
  0x6a   : > { %908 = vbcast.lane.b32.xlu1 %v13837_v34, 264  ;;  %904 = vbcast.lane.b32.xlu0 %v13837_v34, 256 }
  0x6e   : > { %923 = vbcast.lane.b32.xlu1 %v13842_v35, 264  ;;  %919 = vbcast.lane.b32.xlu0 %v13842_v35, 256 }
  0x72   : > { %912 = vbcast.lane.b32.xlu1 %v13837_v34, 272  ;;  %927 = vbcast.lane.b32.xlu0 %v13842_v35, 272 }
  0x76   : > { %938 = vbcast.lane.b32.xlu1 %v13853_v37, 264  ;;  %934 = vbcast.lane.b32.xlu0 %v13853_v37, 256 }
  0x7a   : > { %949 = vbcast.lane.b32.xlu1 %v13859_v38, 256  ;;  %942 = vbcast.lane.b32.xlu0 %v13853_v37, 272 }
  0x7e   : > { %957 = vbcast.lane.b32.xlu1 %v13859_v38, 272  ;;  %953 = vbcast.lane.b32.xlu0 %v13859_v38, 264 }
  0x82   : > { %968 = vbcast.lane.b32.xlu1 %v13867_v39, 264  ;;  %964 = vbcast.lane.b32.xlu0 %v13867_v39, 256 }
  0x86   : > { %983 = vbcast.lane.b32.xlu1 %v13873_v40, 264  ;;  %979 = vbcast.lane.b32.xlu0 %v13873_v40, 256 }
  0x88   : > { %v703_v41 = vpop.permute.xlu1 %702  ;;  %v695_v42 = vpop.permute.xlu0 %694 }
  0x89   : > { %vm1651_vm0 = vcmp.eq.s32.totalorder %v703_v41, %v13878_v43  ;;  %vm1649_vm4 = vcmp.eq.s32.totalorder %v695_v42, %v13878_v43 }
  0x8a   : > { %972 = vbcast.lane.b32.xlu1 %v13867_v39, 272  ;;  %987 = vbcast.lane.b32.xlu0 %v13873_v40, 272 }
  0x8c   : > { %v710_v45 = vpop.permute.xlu1 %709  ;;  %v699_v46 = vpop.permute.xlu0 %698 }
  0x8d   : > { %vm1652_vm1 = vcmp.eq.s32.totalorder %v710_v45, %v13878_v43  ;;  %vm1650_vm2 = vcmp.eq.s32.totalorder %v699_v46, %v13878_v43  ;;  %v13937_v46 = vrot.slane %v13931_v27, %v13701_v4 }
  0x8e   : > { %vm12220_vm3 = vmpackc.low %vm1652_vm1, %vm1651_vm0  ;;  %998 = vbcast.lane.b32.xlu1 %v13884_v44, 264  ;;  %994 = vbcast.lane.b32.xlu0 %v13884_v44, 256  ;;  %v11410_v49 = vsel %vm1652_vm1, 1.0, %v17554_v48 }
  0x8f   : > { %vm11639_vm5 = vmpackc.low %vm1650_vm2, %vm1649_vm4 }
  0x90   : > { %12800 = vmatprep.mubr.msk.bf16.mxu0 %vm11639_vm5, %v17548_v50  ;;  %v718_v51 = vpop.permute.xlu1 %717  ;;  %v714_v52 = vpop.permute.xlu0 %713 }
  0x91   : > { %vm1654_vm6 = vcmp.eq.s32.totalorder %v718_v51, %v13878_v43  ;;  %12801 = vmatmul.mubr.msk.bf16.vlgmr.msra.gmra.mrb[0].mxu0 %vm12220_vm3, %v17548_v50  ;;  %vm1653_vm7 = vcmp.eq.s32.totalorder %v714_v52, %v13878_v43 }
  0x92   : > { %v11412_v53 = vsel %vm1654_vm6, 1.0, %v17554_v48  ;;  %v11411_v54 = vsel %vm1653_vm7, 1.0, %v17554_v48  ;;  %1009 = vbcast.lane.b32.xlu1 %v13894_v47, 256  ;;  %1002 = vbcast.lane.b32.xlu0 %v13884_v44, 272 }
  0x93   : > { %v2228_v55 = vpack.c.bf16 %v11412_v53, %v11412_v53  ;;  %v2227_v56 = vpack.c.bf16 %v11411_v54, %v11410_v49  ;;  %v13945_v53 = vrot.slane %v13931_v27, %v13709_v6 }
  0x94   : > { %v729_v57 = vpop.permute.xlu1 %728  ;;  %v725_v58 = vpop.permute.xlu0 %724 }
  0x95   : > { %v2486_v59 = vunpack.c.l.b16 %v2228_v55  ;;  %v2485_v60 = vunpack.c.h.b16 %v2227_v56  ;;  %vm1656_vm8 = vcmp.eq.s32.totalorder %v729_v57, %v13878_v43  ;;  %vm1655_vm9 = vcmp.eq.s32.totalorder %v725_v58, %v13878_v43 }
  0x96   : > { %1017 = vbcast.lane.b32.xlu1 %v13894_v47, 272  ;;  %1013 = vbcast.lane.b32.xlu0 %v13894_v47, 264  ;;  %vm11641_vm12 = vmpackc.low %vm1656_vm8, %vm1655_vm9 }
  0x97   : > { %v2675_v62 = vpack.c.b16 %v2486_v59, %v2485_v60 }
  0x98   : > { %v744_v63 = vpop.permute.xlu1 %743  ;;  %v740_v0 = vpop.permute.xlu0 %739 }
  0x99   : > { %vm1659_vm10 = vcmp.eq.s32.totalorder %v744_v63, %v13878_v43  ;;  %vm1658_vm11 = vcmp.eq.s32.totalorder %v740_v0, %v13878_v43  ;;  %12804 = vmatprep.mubr.bf16.mxu0 %v2675_v62 }
  0x9a   : > { %v11417_v2 = vsel %vm1659_vm10, 1.0, %v17554_v48  ;;  %v11416_v5 = vsel %vm1658_vm11, 1.0, %v17554_v48  ;;  %1028 = vbcast.lane.b32.xlu1 %v13909_v61, 264  ;;  %1024 = vbcast.lane.b32.xlu0 %v13909_v61, 256 }
  0x9b   : > { %12805 = vmatmul.mubr.msk.bf16.gmra.mrb[4].mxu0 %vm11641_vm12, %v17548_v50  ;;  %v2231_v13 = vpack.c.bf16 %v11417_v2, %v11416_v5  ;;  %v13962_v5 = vrot.slane %v13931_v27, %v13735_v12 }
  0x9c   : > { %v733_v8 = vpop.permute.xlu1 %732  ;;  %v748_v11 = vpop.permute.xlu0 %747 }
  0x9d   : > { %vm1657_vm13 = vcmp.eq.s32.totalorder %v733_v8, %v13878_v43  ;;  %vm1660_vm14 = vcmp.eq.s32.totalorder %v748_v11, %v13878_v43  ;;  %v2491_v42 = vunpack.c.h.b16 %v2231_v13 }
  0x9e   : > { %vm12222_vm15 = vmpackc.low %vm1658_vm11, %vm1657_vm13  ;;  %v11418_v16 = vsel %vm1660_vm14, 1.0, %v17554_v48  ;;  %1043 = vbcast.lane.b32.xlu1 %v13921_v7, 264  ;;  %1039 = vbcast.lane.b32.xlu0 %v13921_v7, 256 }
  0x9f   : > { %v2232_v18 = vpack.c.bf16 %v11418_v16, %v11418_v16  ;;  %12808 = vmatprep.mubr.msk.bf16.mxu0 %vm12222_vm15, %v17548_v50 }
  0xa0   : > { %v759_v36 = vpop.permute.xlu1 %758  ;;  %v755_v41 = vpop.permute.xlu0 %754 }
  0xa1   : > { %v2492_v45 = vunpack.c.l.b16 %v2232_v18  ;;  %vm1662_vm0 = vcmp.eq.s32.totalorder %v759_v36, %v13878_v43  ;;  %vm1661_vm1 = vcmp.eq.s32.totalorder %v755_v41, %v13878_v43  ;;  %v13974_v36 = vrot.slane %v13931_v27, %v13746_v15 }
  0xa2   : > { %1032 = vbcast.lane.b32.xlu1 %v13909_v61, 272  ;;  %1047 = vbcast.lane.b32.xlu0 %v13921_v7, 272  ;;  %vm11643_vm2 = vmpackc.low %vm1662_vm0, %vm1661_vm1 }
  0xa3   : > { %v2678_v49 = vpack.c.b16 %v2492_v45, %v2491_v42  ;;  %17799 = vst [vmem:[#allocation2_spill] sm:$0xff] %v13974_v36 }
  0xa4   : > { %v770_v51 = vpop.permute.xlu1 %769  ;;  %v763_v52 = vpop.permute.xlu0 %762 }
  0xa5   : > { %12809 = vmatmul.mubr.bf16.gmra.mrb[8].mxu0 %v2678_v49  ;;  %vm1664_vm3 = vcmp.eq.s32.totalorder %v770_v51, %v13878_v43  ;;  %vm1663_vm4 = vcmp.eq.s32.totalorder %v763_v52, %v13878_v43 }
  0xa6   : > { %1058 = vbcast.lane.b32.xlu1 %v13937_v46, 264  ;;  %1054 = vbcast.lane.b32.xlu0 %v13937_v46, 256  ;;  %v11422_v54 = vsel %vm1664_vm3, 1.0, %v17554_v48  ;;  %vm12224_vm7 = vmpackc.low %vm1664_vm3, %vm1663_vm4 }
  0xa7   : > { %12812 = vmatprep.mubr.msk.bf16.mxu0 %vm11643_vm2, %v17548_v50 }
  0xa8   : > { %v778_v55 = vpop.permute.xlu1 %777  ;;  %v774_v56 = vpop.permute.xlu0 %773 }
  0xa9   : > { %vm1666_vm5 = vcmp.eq.s32.totalorder %v778_v55, %v13878_v43  ;;  %vm1665_vm6 = vcmp.eq.s32.totalorder %v774_v56, %v13878_v43 }
  0xaa   : > { %v11424_v57 = vsel %vm1666_vm5, 1.0, %v17554_v48  ;;  %v11423_v58 = vsel %vm1665_vm6, 1.0, %v17554_v48  ;;  %1069 = vbcast.lane.b32.xlu1 %v13945_v53, 256  ;;  %1062 = vbcast.lane.b32.xlu0 %v13937_v46, 272 }
  0xab   : > { %v2236_v59 = vpack.c.bf16 %v11424_v57, %v11424_v57  ;;  %v2235_v60 = vpack.c.bf16 %v11423_v58, %v11422_v54  ;;  %v13987_v57 = vrot.slane %v13931_v27, %v13762_v19 }
  0xac   : > { %v789_v62 = vpop.permute.xlu1 %788  ;;  %v785_v63 = vpop.permute.xlu0 %784 }
  0xad   : > { %v2498_v0 = vunpack.c.l.b16 %v2236_v59  ;;  %v2497_v2 = vunpack.c.h.b16 %v2235_v60  ;;  %12813 = vmatmul.mubr.msk.bf16.gmra.mrb[12].mxu0 %vm12224_vm7, %v17548_v50  ;;  %vm1668_vm8 = vcmp.eq.s32.totalorder %v789_v62, %v13878_v43  ;;  %vm1667_vm9 = vcmp.eq.s32.totalorder %v785_v63, %v13878_v43  ;;  %17800 = vst [vmem:[#allocation3_spill] sm:$0xff] %v13987_v57 }
  0xae   : > { %1077 = vbcast.lane.b32.xlu1 %v13945_v53, 272  ;;  %1073 = vbcast.lane.b32.xlu0 %v13945_v53, 264  ;;  %vm11645_vm12 = vmpackc.low %vm1668_vm8, %vm1667_vm9  ;;  %v13995_v62 = vrot.slane %v13931_v27, %v13770_v21 }
  0xaf   : > { %v2681_v8 = vpack.c.b16 %v2498_v0, %v2497_v2 }
  0xb0   : > { %v804_v11 = vpop.permute.xlu1 %803  ;;  %v800_v13 = vpop.permute.xlu0 %799  ;;  %17801 = vst [vmem:[#allocation4_spill] sm:$0xff] %v13995_v62 }
  0xb1   : > { %vm1671_vm10 = vcmp.eq.s32.totalorder %v804_v11, %v13878_v43  ;;  %vm1670_vm11 = vcmp.eq.s32.totalorder %v800_v13, %v13878_v43  ;;  %12816 = vmatprep.mubr.bf16.mxu0 %v2681_v8 }
  0xb2   : > { %v11429_v16 = vsel %vm1671_vm10, 1.0, %v17554_v48  ;;  %v11428_v18 = vsel %vm1670_vm11, 1.0, %v17554_v48  ;;  %1088 = vbcast.lane.b32.xlu1 %v13962_v5, 264  ;;  %1084 = vbcast.lane.b32.xlu0 %v13962_v5, 256 }
  0xb3   : > { %v2239_v45 = vpack.c.bf16 %v11429_v16, %v11428_v18 }
  0xb4   : > { %v793_v41 = vpop.permute.xlu1 %792  ;;  %v808_v42 = vpop.permute.xlu0 %807 }
  0xb5   : > { %vm1669_vm13 = vcmp.eq.s32.totalorder %v793_v41, %v13878_v43  ;;  %vm1672_vm14 = vcmp.eq.s32.totalorder %v808_v42, %v13878_v43  ;;  %12817 = vmatmul.mubr.msk.bf16.gmra.mrb[16].mxu0 %vm11645_vm12, %v17548_v50  ;;  %v2503_v55 = vunpack.c.h.b16 %v2239_v45 }
  0xb6   : > { %vm12226_vm15 = vmpackc.low %vm1670_vm11, %vm1669_vm13  ;;  %v11430_v49 = vsel %vm1672_vm14, 1.0, %v17554_v48  ;;  %1103 = vbcast.lane.b32.xlu1 %v13974_v36, 264  ;;  %1099 = vbcast.lane.b32.xlu0 %v13974_v36, 256 }
  0xb7   : > { %v2240_v51 = vpack.c.bf16 %v11430_v49, %v11430_v49  ;;  %12820 = vmatprep.mubr.msk.bf16.mxu0 %vm12226_vm15, %v17548_v50  ;;  %v14012_v49 = vrot.slane %v13931_v27, %v13780_v23 }
  0xb8   : > { %v819_v52 = vpop.permute.xlu1 %818  ;;  %v815_v54 = vpop.permute.xlu0 %814 }
  0xb9   : > { %v2504_v56 = vunpack.c.l.b16 %v2240_v51  ;;  %vm1674_vm0 = vcmp.eq.s32.totalorder %v819_v52, %v13878_v43  ;;  %vm1673_vm1 = vcmp.eq.s32.totalorder %v815_v54, %v13878_v43  ;;  %17802 = vst [vmem:[#allocation5_spill] sm:$0xff] %v14012_v49 }
  0xba   : > { %1092 = vbcast.lane.b32.xlu1 %v13962_v5, 272  ;;  %1107 = vbcast.lane.b32.xlu0 %v13974_v36, 272  ;;  %vm11647_vm2 = vmpackc.low %vm1674_vm0, %vm1673_vm1 }
  0xbb   : > { %v2684_v58 = vpack.c.b16 %v2504_v56, %v2503_v55 }
  0xbc   : > { %v830_v59 = vpop.permute.xlu1 %829  ;;  %v823_v60 = vpop.permute.xlu0 %822 }
  0xbd   : > { %12821 = vmatmul.mubr.bf16.gmra.mrb[20].mxu0 %v2684_v58  ;;  %vm1676_vm3 = vcmp.eq.s32.totalorder %v830_v59, %v13878_v43  ;;  %vm1675_vm4 = vcmp.eq.s32.totalorder %v823_v60, %v13878_v43  ;;  %v14024_v58 = vrot.slane %v13931_v27, %v13788_v25  ;;  %v14034_v27 = vld [vmem:[%s13715_s30 + $0x20] sm:$0xff] }
  0xbe   : > { %1118 = vbcast.lane.b32.xlu1 %v13987_v57, 264  ;;  %1114 = vbcast.lane.b32.xlu0 %v13987_v57, 256  ;;  %v11434_v63 = vsel %vm1676_vm3, 1.0, %v17554_v48  ;;  %vm12228_vm7 = vmpackc.low %vm1676_vm3, %vm1675_vm4 }
  0xbf   : > { %12824 = vmatprep.mubr.msk.bf16.mxu0 %vm11647_vm2, %v17548_v50  ;;  %17803 = vst [vmem:[#allocation6_spill] sm:$0xff] %v14024_v58 }
  0xc0   : > { %v838_v0 = vpop.permute.xlu1 %837  ;;  %v834_v2 = vpop.permute.xlu0 %833 }
  0xc1   : > { %vm1678_vm5 = vcmp.eq.s32.totalorder %v838_v0, %v13878_v43  ;;  %vm1677_vm6 = vcmp.eq.s32.totalorder %v834_v2, %v13878_v43 }
  0xc2   : > { %v11436_v8 = vsel %vm1678_vm5, 1.0, %v17554_v48  ;;  %v11435_v11 = vsel %vm1677_vm6, 1.0, %v17554_v48  ;;  %1129 = vbcast.lane.b32.xlu1 %v13995_v62, 256  ;;  %1122 = vbcast.lane.b32.xlu0 %v13987_v57, 272 }
  0xc3   : > { %v2244_v13 = vpack.c.bf16 %v11436_v8, %v11436_v8  ;;  %v2243_v16 = vpack.c.bf16 %v11435_v11, %v11434_v63 }
  0xc4   : > { %v849_v18 = vpop.permute.xlu1 %848  ;;  %v845_v41 = vpop.permute.xlu0 %844 }
  0xc5   : > { %v2510_v42 = vunpack.c.l.b16 %v2244_v13  ;;  %v2509_v45 = vunpack.c.h.b16 %v2243_v16  ;;  %12825 = vmatmul.mubr.msk.bf16.gmra.mrb[24].mxu0 %vm12228_vm7, %v17548_v50  ;;  %vm1680_vm8 = vcmp.eq.s32.totalorder %v849_v18, %v13878_v43  ;;  %vm1679_vm9 = vcmp.eq.s32.totalorder %v845_v41, %v13878_v43 }
  0xc6   : > { %1137 = vbcast.lane.b32.xlu1 %v13995_v62, 272  ;;  %1133 = vbcast.lane.b32.xlu0 %v13995_v62, 264  ;;  %vm11649_vm12 = vmpackc.low %vm1680_vm8, %vm1679_vm9  ;;  %v14040_v18 = vrot.slane %v14034_v27, %v13701_v4 }
  0xc7   : > { %v2687_v51 = vpack.c.b16 %v2510_v42, %v2509_v45 }
  0xc8   : > { %v864_v52 = vpop.permute.xlu1 %863  ;;  %v860_v54 = vpop.permute.xlu0 %859  ;;  %17804 = vst [vmem:[#allocation7_spill] sm:$0xff] %v14040_v18 }
  0xc9   : > { %vm1683_vm10 = vcmp.eq.s32.totalorder %v864_v52, %v13878_v43  ;;  %vm1682_vm11 = vcmp.eq.s32.totalorder %v860_v54, %v13878_v43  ;;  %12828 = vmatprep.mubr.bf16.mxu0 %v2687_v51  ;;  %v14048_v51 = vrot.slane %v14034_v27, %v13709_v6 }
  0xca   : > { %v11441_v55 = vsel %vm1683_vm10, 1.0, %v17554_v48  ;;  %v11440_v56 = vsel %vm1682_vm11, 1.0, %v17554_v48  ;;  %1148 = vbcast.lane.b32.xlu1 %v14012_v49, 264  ;;  %1144 = vbcast.lane.b32.xlu0 %v14012_v49, 256 }
  0xcb   : > { %v2247_v63 = vpack.c.bf16 %v11441_v55, %v11440_v56  ;;  %17805 = vst [vmem:[#allocation8_spill] sm:$0xff] %v14048_v51 }
  0xcc   : > { %v853_v59 = vpop.permute.xlu1 %852  ;;  %v868_v60 = vpop.permute.xlu0 %867 }
  0xcd   : > { %vm1681_vm13 = vcmp.eq.s32.totalorder %v853_v59, %v13878_v43  ;;  %vm1684_vm14 = vcmp.eq.s32.totalorder %v868_v60, %v13878_v43  ;;  %12829 = vmatmul.mubr.msk.bf16.gmra.mrb[28].mxu0 %vm11649_vm12, %v17548_v50  ;;  %v2515_v13 = vunpack.c.h.b16 %v2247_v63 }
  0xce   : > { %vm12230_vm15 = vmpackc.low %vm1682_vm11, %vm1681_vm13  ;;  %v11442_v0 = vsel %vm1684_vm14, 1.0, %v17554_v48  ;;  %1163 = vbcast.lane.b32.xlu1 %v14024_v58, 264  ;;  %1159 = vbcast.lane.b32.xlu0 %v14024_v58, 256 }
  0xcf   : > { %v2248_v2 = vpack.c.bf16 %v11442_v0, %v11442_v0  ;;  %12832 = vmatprep.mubr.msk.bf16.mxu0 %vm12230_vm15, %v17548_v50 }
  0xd0   : > { %v879_v8 = vpop.permute.xlu1 %878  ;;  %v875_v11 = vpop.permute.xlu0 %874 }
  0xd1   : > { %v2516_v16 = vunpack.c.l.b16 %v2248_v2  ;;  %vm1686_vm0 = vcmp.eq.s32.totalorder %v879_v8, %v13878_v43  ;;  %vm1685_vm1 = vcmp.eq.s32.totalorder %v875_v11, %v13878_v43 }
  0xd2   : > { %1152 = vbcast.lane.b32.xlu1 %v14012_v49, 272  ;;  %1167 = vbcast.lane.b32.xlu0 %v14024_v58, 272  ;;  %vm11651_vm2 = vmpackc.low %vm1686_vm0, %vm1685_vm1 }
  0xd3   : > { %v2690_v41 = vpack.c.b16 %v2516_v16, %v2515_v13  ;;  %v14065_v13 = vrot.slane %v14034_v27, %v13735_v12 }
  0xd4   : > { %v890_v42 = vpop.permute.xlu1 %889  ;;  %v883_v45 = vpop.permute.xlu0 %882 }
  0xd5   : > { %12833 = vmatmul.mubr.bf16.gmra.mrb[32].mxu0 %v2690_v41  ;;  %vm1688_vm3 = vcmp.eq.s32.totalorder %v890_v42, %v13878_v43  ;;  %vm1687_vm4 = vcmp.eq.s32.totalorder %v883_v45, %v13878_v43  ;;  %17806 = vst [vmem:[#allocation9_spill] sm:$0xff] %v14065_v13 }
  0xd6   : > { %1178 = vbcast.lane.b32.xlu1 %v14040_v18, 264  ;;  %1174 = vbcast.lane.b32.xlu0 %v14040_v18, 256  ;;  %v11446_v52 = vsel %vm1688_vm3, 1.0, %v17554_v48  ;;  %vm12232_vm7 = vmpackc.low %vm1688_vm3, %vm1687_vm4 }
  0xd7   : > { %12836 = vmatprep.mubr.msk.bf16.mxu0 %vm11651_vm2, %v17548_v50 }
  0xd8   : > { %v898_v54 = vpop.permute.xlu1 %897  ;;  %v894_v55 = vpop.permute.xlu0 %893 }
  0xd9   : > { %vm1690_vm5 = vcmp.eq.s32.totalorder %v898_v54, %v13878_v43  ;;  %vm1689_vm6 = vcmp.eq.s32.totalorder %v894_v55, %v13878_v43  ;;  %v14079_v54 = vrot.slane %v14034_v27, %v13746_v15 }
  0xda   : > { %v11448_v56 = vsel %vm1690_vm5, 1.0, %v17554_v48  ;;  %v11447_v59 = vsel %vm1689_vm6, 1.0, %v17554_v48  ;;  %1189 = vbcast.lane.b32.xlu1 %v14048_v51, 256  ;;  %1182 = vbcast.lane.b32.xlu0 %v14040_v18, 272 }
  0xdb   : > { %v2252_v60 = vpack.c.bf16 %v11448_v56, %v11448_v56  ;;  %v2251_v63 = vpack.c.bf16 %v11447_v59, %v11446_v52  ;;  %17807 = vst [vmem:[#allocation10_spill] sm:$0xff] %v14079_v54 }
  0xdc   : > { %v909_v0 = vpop.permute.xlu1 %908  ;;  %v905_v2 = vpop.permute.xlu0 %904 }
  0xdd   : > { %v2522_v8 = vunpack.c.l.b16 %v2252_v60  ;;  %v2521_v11 = vunpack.c.h.b16 %v2251_v63  ;;  %12837 = vmatmul.mubr.msk.bf16.gmra.mrb[36].mxu0 %vm12232_vm7, %v17548_v50  ;;  %vm1692_vm8 = vcmp.eq.s32.totalorder %v909_v0, %v13878_v43  ;;  %vm1691_vm9 = vcmp.eq.s32.totalorder %v905_v2, %v13878_v43  ;;  %v13615_v60 = vld [vmem:[%s17545_s3] sm:$0xff]  }
  0xde   : > { %1197 = vbcast.lane.b32.xlu1 %v14048_v51, 272  ;;  %1193 = vbcast.lane.b32.xlu0 %v14048_v51, 264  ;;  %vm11653_vm12 = vmpackc.low %vm1692_vm8, %vm1691_vm9 }
  0xdf   : > { %v2693_v16 = vpack.c.b16 %v2522_v8, %v2521_v11  ;;  %12992 = vmatprep.subr.bf16.mxu1 %v13615_v60  ;;  %13396 = vmatprep.subr.bf16.mxu0 %v13615_v60 }
  0xe0   : > { %v924_v41 = vpop.permute.xlu1 %923  ;;  %v920_v42 = vpop.permute.xlu0 %919  ;;  %12993 = vmatpush3.bf16.msra.mxu1 %v13615_v60  ;;  %13397 = vmatpush3.bf16.msra.mxu0 %v13615_v60 }
  0xe1   : > { %vm1695_vm10 = vcmp.eq.s32.totalorder %v924_v41, %v13878_v43  ;;  %vm1694_vm11 = vcmp.eq.s32.totalorder %v920_v42, %v13878_v43  ;;  %12840 = vmatprep.mubr.bf16.mxu0 %v2693_v16  ;;  %v13616_v41 = vld [vmem:[%s17545_s3 + $0x8] sm:$0xff]   ;;  %v14100_v42 = vrot.slane %v14034_v27, %v13762_v19 }
  0xe2   : > { %v11453_v45 = vsel %vm1695_vm10, 1.0, %v17554_v48  ;;  %v11452_v52 = vsel %vm1694_vm11, 1.0, %v17554_v48  ;;  %1208 = vbcast.lane.b32.xlu1 %v14065_v13, 264  ;;  %1204 = vbcast.lane.b32.xlu0 %v14065_v13, 256 }
  0xe3   : > { %v2255_v59 = vpack.c.bf16 %v11453_v45, %v11452_v52  ;;  %17808 = vst [vmem:[#allocation11_spill] sm:$0xff] %v14100_v42  ;;  %12994 = vmatprep.subr.bf16.mxu1 %v13616_v41  ;;  %13398 = vmatprep.subr.bf16.mxu0 %v13616_v41 }
  0xe4   : > { %v913_v55 = vpop.permute.xlu1 %912  ;;  %v928_v56 = vpop.permute.xlu0 %927  ;;  %12995 = vmatpush3.bf16.msra.mxu1 %v13616_v41  ;;  %13399 = vmatpush3.bf16.msra.mxu0 %v13616_v41 }
  0xe5   : > { %vm1693_vm13 = vcmp.eq.s32.totalorder %v913_v55, %v13878_v43  ;;  %vm1696_vm14 = vcmp.eq.s32.totalorder %v928_v56, %v13878_v43  ;;  %12841 = vmatmul.mubr.msk.bf16.gmra.mrb[40].mxu0 %vm11653_vm12, %v17548_v50  ;;  %v2527_v11 = vunpack.c.h.b16 %v2255_v59  ;;  %13188 = vmatprep.subr.bf16.mxu1 %v13690_v1  ;;  %v14109_v56 = vrot.slane %v14034_v27, %v13770_v21 }
  0xe6   : > { %vm12234_vm15 = vmpackc.low %vm1694_vm11, %vm1693_vm13  ;;  %v11454_v63 = vsel %vm1696_vm14, 1.0, %v17554_v48  ;;  %1223 = vbcast.lane.b32.xlu1 %v14079_v54, 264  ;;  %1219 = vbcast.lane.b32.xlu0 %v14079_v54, 256 }
  0xe7   : > { %v2256_v0 = vpack.c.bf16 %v11454_v63, %v11454_v63  ;;  %12844 = vmatprep.mubr.msk.bf16.mxu0 %vm12234_vm15, %v17548_v50  ;;  %17809 = vst [vmem:[#allocation12_spill] sm:$0xff] %v14109_v56 }
  0xe8   : > { %v939_v2 = vpop.permute.xlu1 %938  ;;  %v935_v8 = vpop.permute.xlu0 %934 }
  0xe9   : > { %v2528_v16 = vunpack.c.l.b16 %v2256_v0  ;;  %vm1698_vm0 = vcmp.eq.s32.totalorder %v939_v2, %v13878_v43  ;;  %vm1697_vm1 = vcmp.eq.s32.totalorder %v935_v8, %v13878_v43 }
  0xea   : > { %1212 = vbcast.lane.b32.xlu1 %v14065_v13, 272  ;;  %1227 = vbcast.lane.b32.xlu0 %v14079_v54, 272  ;;  %vm11655_vm2 = vmpackc.low %vm1698_vm0, %vm1697_vm1 }
  0xeb   : > { %v2696_v45 = vpack.c.b16 %v2528_v16, %v2527_v11 }
  0xec   : > { %v950_v52 = vpop.permute.xlu1 %949  ;;  %v943_v55 = vpop.permute.xlu0 %942 }
  0xed   : > { %12845 = vmatmul.mubr.bf16.gmra.mrb[44].mxu0 %v2696_v45  ;;  %vm1700_vm3 = vcmp.eq.s32.totalorder %v950_v52, %v13878_v43  ;;  %vm1699_vm4 = vcmp.eq.s32.totalorder %v943_v55, %v13878_v43  ;;  %v14130_v55 = vrot.slane %v14034_v27, %v13780_v23 }
  0xee   : > { %1238 = vbcast.lane.b32.xlu1 %v14100_v42, 264  ;;  %1234 = vbcast.lane.b32.xlu0 %v14100_v42, 256  ;;  %v11458_v59 = vsel %vm1700_vm3, 1.0, %v17554_v48  ;;  %vm12236_vm7 = vmpackc.low %vm1700_vm3, %vm1699_vm4 }
  0xef   : > { %12848 = vmatprep.mubr.msk.bf16.mxu0 %vm11655_vm2, %v17548_v50  ;;  %17810 = vst [vmem:[#allocation13_spill] sm:$0xff] %v14130_v55 }
  0xf0   : > { %v958_v60 = vpop.permute.xlu1 %957  ;;  %v954_v1 = vpop.permute.xlu0 %953 }
  0xf1   : > { %vm1702_vm5 = vcmp.eq.s32.totalorder %v958_v60, %v13878_v43  ;;  %vm1701_vm6 = vcmp.eq.s32.totalorder %v954_v1, %v13878_v43 }
  0xf2   : > { %v11460_v63 = vsel %vm1702_vm5, 1.0, %v17554_v48  ;;  %v11459_v0 = vsel %vm1701_vm6, 1.0, %v17554_v48  ;;  %1249 = vbcast.lane.b32.xlu1 %v14109_v56, 256  ;;  %1242 = vbcast.lane.b32.xlu0 %v14100_v42, 272 }
  0xf3   : > { %v2260_v2 = vpack.c.bf16 %v11460_v63, %v11460_v63  ;;  %v2259_v8 = vpack.c.bf16 %v11459_v0, %v11458_v59  ;;  %v14142_v0 = vrot.slane %v14034_v27, %v13788_v25  ;;  %v14152_v27 = vld [vmem:[%s13715_s30 + $0x28] sm:$0xff] }
  0xf4   : > { %v969_v11 = vpop.permute.xlu1 %968  ;;  %v965_v16 = vpop.permute.xlu0 %964 }
  0xf5   : > { %v2534_v41 = vunpack.c.l.b16 %v2260_v2  ;;  %v2533_v45 = vunpack.c.h.b16 %v2259_v8  ;;  %12849 = vmatmul.mubr.msk.bf16.gmra.mrb[48].mxu0 %vm12236_vm7, %v17548_v50  ;;  %vm1704_vm8 = vcmp.eq.s32.totalorder %v969_v11, %v13878_v43  ;;  %vm1703_vm9 = vcmp.eq.s32.totalorder %v965_v16, %v13878_v43  ;;  %17811 = vst [vmem:[#allocation14_spill] sm:$0xff] %v14142_v0 }
  0xf6   : > { %1257 = vbcast.lane.b32.xlu1 %v14109_v56, 272  ;;  %1253 = vbcast.lane.b32.xlu0 %v14109_v56, 264  ;;  %vm11657_vm12 = vmpackc.low %vm1704_vm8, %vm1703_vm9 }
  0xf7   : > { %v2699_v60 = vpack.c.b16 %v2534_v41, %v2533_v45 }
  0xf8   : > { %v984_v1 = vpop.permute.xlu1 %983  ;;  %v980_v59 = vpop.permute.xlu0 %979 }
  0xf9   : > { %vm1707_vm10 = vcmp.eq.s32.totalorder %v984_v1, %v13878_v43  ;;  %vm1706_vm11 = vcmp.eq.s32.totalorder %v980_v59, %v13878_v43  ;;  %12852 = vmatprep.mubr.bf16.mxu0 %v2699_v60 }
  0xfa   : > { %v11465_v52 = vsel %vm1707_vm10, 1.0, %v17554_v48  ;;  %v11464_v63 = vsel %vm1706_vm11, 1.0, %v17554_v48  ;;  %1268 = vbcast.lane.b32.xlu1 %v14130_v55, 264  ;;  %1264 = vbcast.lane.b32.xlu0 %v14130_v55, 256 }
  0xfb   : > { %v2263_v11 = vpack.c.bf16 %v11465_v52, %v11464_v63  ;;  %v14158_v52 = vrot.slane %v14152_v27, %v13701_v4 }
  0xfc   : > { %v973_v2 = vpop.permute.xlu1 %972  ;;  %v988_v8 = vpop.permute.xlu0 %987 }
  0xfd   : > { %vm1705_vm13 = vcmp.eq.s32.totalorder %v973_v2, %v13878_v43  ;;  %vm1708_vm14 = vcmp.eq.s32.totalorder %v988_v8, %v13878_v43  ;;  %12853 = vmatmul.mubr.msk.bf16.gmra.mrb[52].mxu0 %vm11657_vm12, %v17548_v50  ;;  %v2539_v1 = vunpack.c.h.b16 %v2263_v11  ;;  %17812 = vst [vmem:[#allocation15_spill] sm:$0xff] %v14158_v52  ;;  %v14166_v11 = vrot.slane %v14152_v27, %v13709_v6 }
  0xfe   : > { %vm12238_vm15 = vmpackc.low %vm1706_vm11, %vm1705_vm13  ;;  %v11466_v16 = vsel %vm1708_vm14, 1.0, %v17554_v48  ;;  %1283 = vbcast.lane.b32.xlu1 %v14142_v0, 264  ;;  %1279 = vbcast.lane.b32.xlu0 %v14142_v0, 256 }
  0xff   : > { %v2264_v41 = vpack.c.bf16 %v11466_v16, %v11466_v16  ;;  %12856 = vmatprep.mubr.msk.bf16.mxu0 %vm12238_vm15, %v17548_v50  ;;  %17813 = vst [vmem:[#allocation16_spill] sm:$0xff] %v14166_v11 }
 0x100   : > { %v999_v45 = vpop.permute.xlu1 %998  ;;  %v995_v60 = vpop.permute.xlu0 %994 }
 0x101   : > { %v2540_v59 = vunpack.c.l.b16 %v2264_v41  ;;  %vm1710_vm0 = vcmp.eq.s32.totalorder %v999_v45, %v13878_v43  ;;  %vm1709_vm1 = vcmp.eq.s32.totalorder %v995_v60, %v13878_v43 }
 0x102   : > { %1272 = vbcast.lane.b32.xlu1 %v14130_v55, 272  ;;  %1287 = vbcast.lane.b32.xlu0 %v14142_v0, 272  ;;  %vm11659_vm2 = vmpackc.low %vm1710_vm0, %vm1709_vm1 }
 0x103   : > { %v2702_v63 = vpack.c.b16 %v2540_v59, %v2539_v1 }
 0x104   : > { %v1010_v2 = vpop.permute.xlu1 %1009  ;;  %v1003_v8 = vpop.permute.xlu0 %1002 }
 0x105   : > { %12857 = vmatmul.mubr.bf16.gmra.mrb[56].mxu0 %v2702_v63  ;;  %vm1712_vm3 = vcmp.eq.s32.totalorder %v1010_v2, %v13878_v43  ;;  %vm1711_vm4 = vcmp.eq.s32.totalorder %v1003_v8, %v13878_v43  ;;  %v17814_v8 = vmov 1.0|1.0  }
 0x106   : > { %1298 = vbcast.lane.b32.xlu1 %v14158_v52, 264  ;;  %1294 = vbcast.lane.b32.xlu0 %v14158_v52, 256  ;;  %v11470_v16 = vsel %vm1712_vm3, 1.0, %v17554_v48  ;;  %vm12240_vm7 = vmpackc.low %vm1712_vm3, %vm1711_vm4 }
 0x107   : > { %12860 = vmatprep.mubr.msk.bf16.mxu0 %vm11659_vm2, %v17548_v50 }
 0x108   : > { %v1018_v41 = vpop.permute.xlu1 %1017  ;;  %v1014_v45 = vpop.permute.xlu0 %1013 }
 0x109   : > { %vm1714_vm5 = vcmp.eq.s32.totalorder %v1018_v41, %v13878_v43  ;;  %vm1713_vm6 = vcmp.eq.s32.totalorder %v1014_v45, %v13878_v43  ;;  %v14183_v41 = vrot.slane %v14152_v27, %v13735_v12 }
 0x10a   : > { %v11472_v60 = vsel %vm1714_vm5, 1.0, %v17554_v48  ;;  %v11471_v1 = vsel %vm1713_vm6, 1.0, %v17554_v48  ;;  %1309 = vbcast.lane.b32.xlu1 %v14166_v11, 256  ;;  %1302 = vbcast.lane.b32.xlu0 %v14158_v52, 272 }
 0x10b   : > { %v2268_v59 = vpack.c.bf16 %v11472_v60, %v11472_v60  ;;  %v2267_v63 = vpack.c.bf16 %v11471_v1, %v11470_v16  ;;  %17815 = vst [vmem:[#allocation17_spill] sm:$0xff] %v14183_v41  ;;  %v17816_v16 = vmov 0.0  }
 0x10c   : > { %v1029_v2 = vpop.permute.xlu1 %1028  ;;  %v1025_v50 = vpop.permute.xlu0 %1024 }
 0x10d   : > { %v2546_v0 = vunpack.c.l.b16 %v2268_v59  ;;  %v2545_v55 = vunpack.c.h.b16 %v2267_v63  ;;  %12861 = vmatmul.mubr.msk.bf16.gmra.mrb[60].mxu0 %vm12240_vm7, %v17814_v8  ;;  %vm1716_vm8 = vcmp.eq.s32.totalorder %v1029_v2, %v13878_v43  ;;  %vm1715_vm9 = vcmp.eq.s32.totalorder %v1025_v50, %v13878_v43 }
 0x10e   : > { %1317 = vbcast.lane.b32.xlu1 %v14166_v11, 272  ;;  %1313 = vbcast.lane.b32.xlu0 %v14166_v11, 264  ;;  %vm11661_vm12 = vmpackc.low %vm1716_vm8, %vm1715_vm9 }
 0x10f   : > { %v2705_v45 = vpack.c.b16 %v2546_v0, %v2545_v55  ;;  %v14195_v55 = vrot.slane %v14152_v27, %v13746_v15 }
 0x110   : > { %v1044_v48 = vpop.permute.xlu1 %1043  ;;  %v1040_v52 = vpop.permute.xlu0 %1039 }
 0x111   : > { %vm1719_vm10 = vcmp.eq.s32.totalorder %v1044_v48, %v13878_v43  ;;  %vm1718_vm11 = vcmp.eq.s32.totalorder %v1040_v52, %v13878_v43  ;;  %12864 = vmatprep.mubr.bf16.mxu0 %v2705_v45  ;;  %17817 = vst [vmem:[#allocation18_spill] sm:$0xff] %v14195_v55 }
 0x112   : > { %v11477_v60 = vsel %vm1719_vm10, 1.0, %v17816_v16  ;;  %v11476_v1 = vsel %vm1718_vm11, 1.0, %v17816_v16  ;;  %1328 = vbcast.lane.b32.xlu1 %v14183_v41, 264  ;;  %1324 = vbcast.lane.b32.xlu0 %v14183_v41, 256 }
 0x113   : > { %v2271_v59 = vpack.c.bf16 %v11477_v60, %v11476_v1  ;;  %v14208_v1 = vrot.slane %v14152_v27, %v13762_v19 }
 0x114   : > { %v1033_v0 = vpop.permute.xlu1 %1032  ;;  %v1048_v50 = vpop.permute.xlu0 %1047 }
 0x115   : > { %vm1717_vm13 = vcmp.eq.s32.totalorder %v1033_v0, %v13878_v43  ;;  %vm1720_vm14 = vcmp.eq.s32.totalorder %v1048_v50, %v13878_v43  ;;  %12865 = vmatmul.mubr.msk.bf16.gmra.mrb[64].mxu0 %vm11661_vm12, %v17814_v8  ;;  %v2551_v45 = vunpack.c.h.b16 %v2271_v59  ;;  %17818 = vst [vmem:[#allocation19_spill] sm:$0xff] %v14208_v1  ;;  %v14216_v59 = vrot.slane %v14152_v27, %v13770_v21 }
 0x116   : > { %vm12242_vm15 = vmpackc.low %vm1718_vm11, %vm1717_vm13  ;;  %v11478_v48 = vsel %vm1720_vm14, 1.0, %v17816_v16  ;;  %1343 = vbcast.lane.b32.xlu1 %v14195_v55, 264  ;;  %1339 = vbcast.lane.b32.xlu0 %v14195_v55, 256 }
 0x117   : > { %v2272_v52 = vpack.c.bf16 %v11478_v48, %v11478_v48  ;;  %12868 = vmatprep.mubr.msk.bf16.mxu0 %vm12242_vm15, %v17814_v8  ;;  %17819 = vst [vmem:[#allocation20_spill] sm:$0xff] %v14216_v59 }
 0x118   : > { %v1059_v63 = vpop.permute.xlu1 %1058  ;;  %v1055_v2 = vpop.permute.xlu0 %1054 }
 0x119   : > { %v2552_v60 = vunpack.c.l.b16 %v2272_v52  ;;  %vm1722_vm0 = vcmp.eq.s32.totalorder %v1059_v63, %v13878_v43  ;;  %vm1721_vm1 = vcmp.eq.s32.totalorder %v1055_v2, %v13878_v43 }
 0x11a   : > { %1332 = vbcast.lane.b32.xlu1 %v14183_v41, 272  ;;  %1347 = vbcast.lane.b32.xlu0 %v14195_v55, 272  ;;  %vm11663_vm2 = vmpackc.low %vm1722_vm0, %vm1721_vm1 }
 0x11b   : > { %v2708_v0 = vpack.c.b16 %v2552_v60, %v2551_v45 }
 0x11c   : > { %v1070_v50 = vpop.permute.xlu1 %1069  ;;  %v1063_v48 = vpop.permute.xlu0 %1062 }
 0x11d   : > { %12869 = vmatmul.mubr.bf16.gmra.mrb[68].mxu0 %v2708_v0  ;;  %vm1724_vm3 = vcmp.eq.s32.totalorder %v1070_v50, %v13878_v43  ;;  %vm1723_vm4 = vcmp.eq.s32.totalorder %v1063_v48, %v13878_v43  ;;  %v14233_v48 = vrot.slane %v14152_v27, %v13780_v23 }
 0x11e   : > { %1358 = vbcast.lane.b32.xlu1 %v14208_v1, 264  ;;  %1354 = vbcast.lane.b32.xlu0 %v14208_v1, 256  ;;  %v11482_v52 = vsel %vm1724_vm3, 1.0, %v17816_v16  ;;  %vm12244_vm7 = vmpackc.low %vm1724_vm3, %vm1723_vm4 }
 0x11f   : > { %12872 = vmatprep.mubr.msk.bf16.mxu0 %vm11663_vm2, %v17814_v8  ;;  %17820 = vst [vmem:[#allocation21_spill] sm:$0xff] %v14233_v48 }
 0x120   : > { %v1078_v63 = vpop.permute.xlu1 %1077  ;;  %v1074_v2 = vpop.permute.xlu0 %1073 }
 0x121   : > { %vm1726_vm5 = vcmp.eq.s32.totalorder %v1078_v63, %v13878_v43  ;;  %vm1725_vm6 = vcmp.eq.s32.totalorder %v1074_v2, %v13878_v43 }
 0x122   : > { %v11484_v45 = vsel %vm1726_vm5, 1.0, %v17816_v16  ;;  %v11483_v60 = vsel %vm1725_vm6, 1.0, %v17816_v16  ;;  %1369 = vbcast.lane.b32.xlu1 %v14216_v59, 256  ;;  %1362 = vbcast.lane.b32.xlu0 %v14208_v1, 272 }
 0x123   : > { %v2276_v0 = vpack.c.bf16 %v11484_v45, %v11484_v45  ;;  %v2275_v50 = vpack.c.bf16 %v11483_v60, %v11482_v52 }
 0x124   : > { %v1089_v55 = vpop.permute.xlu1 %1088  ;;  %v1085_v41 = vpop.permute.xlu0 %1084 }
 0x125   : > { %v2558_v11 = vunpack.c.l.b16 %v2276_v0  ;;  %v2557_v56 = vunpack.c.h.b16 %v2275_v50  ;;  %12873 = vmatmul.mubr.msk.bf16.gmra.mrb[72].mxu0 %vm12244_vm7, %v17814_v8  ;;  %vm1728_vm8 = vcmp.eq.s32.totalorder %v1089_v55, %v13878_v43  ;;  %vm1727_vm9 = vcmp.eq.s32.totalorder %v1085_v41, %v13878_v43 }
 0x126   : > { %1377 = vbcast.lane.b32.xlu1 %v14216_v59, 272  ;;  %1373 = vbcast.lane.b32.xlu0 %v14216_v59, 264  ;;  %vm11665_vm12 = vmpackc.low %vm1728_vm8, %vm1727_vm9 }
 0x127   : > { %v2711_v63 = vpack.c.b16 %v2558_v11, %v2557_v56  ;;  %v14245_v56 = vrot.slane %v14152_v27, %v13788_v25  ;;  %v14255_v27 = vld [vmem:[%s13715_s30 + $0x30] sm:$0xff] }
 0x128   : > { %v1104_v2 = vpop.permute.xlu1 %1103  ;;  %v1100_v1 = vpop.permute.xlu0 %1099 }
 0x129   : > { %vm1731_vm10 = vcmp.eq.s32.totalorder %v1104_v2, %v13878_v43  ;;  %vm1730_vm11 = vcmp.eq.s32.totalorder %v1100_v1, %v13878_v43  ;;  %12876 = vmatprep.mubr.bf16.mxu0 %v2711_v63  ;;  %17821 = vst [vmem:[#allocation22_spill] sm:$0xff] %v14245_v56 }
 0x12a   : > { %v11489_v52 = vsel %vm1731_vm10, 1.0, %v17816_v16  ;;  %v11488_v45 = vsel %vm1730_vm11, 1.0, %v17816_v16  ;;  %1388 = vbcast.lane.b32.xlu1 %v14233_v48, 264  ;;  %1384 = vbcast.lane.b32.xlu0 %v14233_v48, 256 }
 0x12b   : > { %v2279_v55 = vpack.c.bf16 %v11489_v52, %v11488_v45  ;;  %v14261_v52 = vrot.slane %v14255_v27, %v13701_v4 }
 0x12c   : > { %v1093_v11 = vpop.permute.xlu1 %1092  ;;  %v1108_v41 = vpop.permute.xlu0 %1107 }
 0x12d   : > { %vm1729_vm13 = vcmp.eq.s32.totalorder %v1093_v11, %v13878_v43  ;;  %vm1732_vm14 = vcmp.eq.s32.totalorder %v1108_v41, %v13878_v43  ;;  %12877 = vmatmul.mubr.msk.bf16.gmra.mrb[76].mxu0 %vm11665_vm12, %v17814_v8  ;;  %v2563_v63 = vunpack.c.h.b16 %v2279_v55  ;;  %17822 = vst [vmem:[#allocation23_spill] sm:$0xff] %v14261_v52  ;;  %v14269_v55 = vrot.slane %v14255_v27, %v13709_v6 }
 0x12e   : > { %vm12246_vm15 = vmpackc.low %vm1730_vm11, %vm1729_vm13  ;;  %v11490_v1 = vsel %vm1732_vm14, 1.0, %v17816_v16  ;;  %1403 = vbcast.lane.b32.xlu1 %v14245_v56, 264  ;;  %1399 = vbcast.lane.b32.xlu0 %v14245_v56, 256 }
 0x12f   : > { %v2280_v60 = vpack.c.bf16 %v11490_v1, %v11490_v1  ;;  %12880 = vmatprep.mubr.msk.bf16.mxu0 %vm12246_vm15, %v17814_v8  ;;  %17823 = vst [vmem:[#allocation24_spill] sm:$0xff] %v14269_v55 }
 0x130   : > { %v1119_v0 = vpop.permute.xlu1 %1118  ;;  %v1115_v50 = vpop.permute.xlu0 %1114 }
 0x131   : > { %v2564_v2 = vunpack.c.l.b16 %v2280_v60  ;;  %vm1734_vm0 = vcmp.eq.s32.totalorder %v1119_v0, %v13878_v43  ;;  %vm1733_vm1 = vcmp.eq.s32.totalorder %v1115_v50, %v13878_v43 }
 0x132   : > { %1392 = vbcast.lane.b32.xlu1 %v14233_v48, 272  ;;  %1407 = vbcast.lane.b32.xlu0 %v14245_v56, 272  ;;  %vm11667_vm2 = vmpackc.low %vm1734_vm0, %vm1733_vm1 }
 0x133   : > { %v2714_v45 = vpack.c.b16 %v2564_v2, %v2563_v63 }
 0x134   : > { %v1130_v11 = vpop.permute.xlu1 %1129  ;;  %v1123_v41 = vpop.permute.xlu0 %1122 }
 0x135   : > { %12881 = vmatmul.mubr.bf16.gmra.mrb[80].mxu0 %v2714_v45  ;;  %vm1736_vm3 = vcmp.eq.s32.totalorder %v1130_v11, %v13878_v43  ;;  %vm1735_vm4 = vcmp.eq.s32.totalorder %v1123_v41, %v13878_v43  ;;  %v14286_v41 = vrot.slane %v14255_v27, %v13735_v12 }
 0x136   : > { %1418 = vbcast.lane.b32.xlu1 %v14261_v52, 264  ;;  %1414 = vbcast.lane.b32.xlu0 %v14261_v52, 256  ;;  %v11494_v1 = vsel %vm1736_vm3, 1.0, %v17816_v16  ;;  %vm12248_vm7 = vmpackc.low %vm1736_vm3, %vm1735_vm4 }
 0x137   : > { %12884 = vmatprep.mubr.msk.bf16.mxu0 %vm11667_vm2, %v17814_v8  ;;  %17824 = vst [vmem:[#allocation25_spill] sm:$0xff] %v14286_v41 }
 0x138   : > { %v1138_v60 = vpop.permute.xlu1 %1137  ;;  %v1134_v0 = vpop.permute.xlu0 %1133 }
 0x139   : > { %vm1738_vm5 = vcmp.eq.s32.totalorder %v1138_v60, %v13878_v43  ;;  %vm1737_vm6 = vcmp.eq.s32.totalorder %v1134_v0, %v13878_v43 }
 0x13a   : > { %v11496_v50 = vsel %vm1738_vm5, 1.0, %v17816_v16  ;;  %v11495_v63 = vsel %vm1737_vm6, 1.0, %v17816_v16  ;;  %1429 = vbcast.lane.b32.xlu1 %v14269_v55, 256  ;;  %1422 = vbcast.lane.b32.xlu0 %v14261_v52, 272 }
 0x13b   : > { %v2284_v2 = vpack.c.bf16 %v11496_v50, %v11496_v50  ;;  %v2283_v45 = vpack.c.bf16 %v11495_v63, %v11494_v1 }
 0x13c   : > { %v1149_v11 = vpop.permute.xlu1 %1148  ;;  %v1145_v56 = vpop.permute.xlu0 %1144 }
 0x13d   : > { %v2570_v48 = vunpack.c.l.b16 %v2284_v2  ;;  %v2569_v59 = vunpack.c.h.b16 %v2283_v45  ;;  %12885 = vmatmul.mubr.msk.bf16.gmra.mrb[84].mxu0 %vm12248_vm7, %v17814_v8  ;;  %vm1740_vm8 = vcmp.eq.s32.totalorder %v1149_v11, %v13878_v43  ;;  %vm1739_vm9 = vcmp.eq.s32.totalorder %v1145_v56, %v13878_v43 }
 0x13e   : > { %1437 = vbcast.lane.b32.xlu1 %v14269_v55, 272  ;;  %1433 = vbcast.lane.b32.xlu0 %v14269_v55, 264  ;;  %vm11669_vm12 = vmpackc.low %vm1740_vm8, %vm1739_vm9 }
 0x13f   : > { %v2717_v60 = vpack.c.b16 %v2570_v48, %v2569_v59  ;;  %v14298_v59 = vrot.slane %v14255_v27, %v13746_v15 }
 0x140   : > { %v1164_v0 = vpop.permute.xlu1 %1163  ;;  %v1160_v52 = vpop.permute.xlu0 %1159 }
 0x141   : > { %vm1743_vm10 = vcmp.eq.s32.totalorder %v1164_v0, %v13878_v43  ;;  %vm1742_vm11 = vcmp.eq.s32.totalorder %v1160_v52, %v13878_v43  ;;  %12888 = vmatprep.mubr.bf16.mxu0 %v2717_v60  ;;  %17825 = vst [vmem:[#allocation26_spill] sm:$0xff] %v14298_v59 }
 0x142   : > { %v11501_v1 = vsel %vm1743_vm10, 1.0, %v17816_v16  ;;  %v11500_v50 = vsel %vm1742_vm11, 1.0, %v17816_v16  ;;  %1448 = vbcast.lane.b32.xlu1 %v14286_v41, 264  ;;  %1444 = vbcast.lane.b32.xlu0 %v14286_v41, 256 }
 0x143   : > { %v2287_v63 = vpack.c.bf16 %v11501_v1, %v11500_v50  ;;  %v14311_v1 = vrot.slane %v14255_v27, %v13762_v19 }
 0x144   : > { %v1153_v48 = vpop.permute.xlu1 %1152  ;;  %v1168_v56 = vpop.permute.xlu0 %1167 }
 0x145   : > { %vm1741_vm13 = vcmp.eq.s32.totalorder %v1153_v48, %v13878_v43  ;;  %vm1744_vm14 = vcmp.eq.s32.totalorder %v1168_v56, %v13878_v43  ;;  %12889 = vmatmul.mubr.msk.bf16.gmra.mrb[88].mxu0 %vm11669_vm12, %v17814_v8  ;;  %v2575_v60 = vunpack.c.h.b16 %v2287_v63  ;;  %17826 = vst [vmem:[#allocation27_spill] sm:$0xff] %v14311_v1  ;;  %v13648_v48 = vmov 1966171168  }
 0x146   : > { %vm12250_vm15 = vmpackc.low %vm1742_vm11, %vm1741_vm13  ;;  %v11502_v52 = vsel %vm1744_vm14, 1.0, %v17816_v16  ;;  %1463 = vbcast.lane.b32.xlu1 %v14298_v59, 264  ;;  %1459 = vbcast.lane.b32.xlu0 %v14298_v59, 256  ;;  %v285_v56 = vunpack.c.l.s4 %v13648_v48  ;;  %v14319_v63 = vrot.slane %v14255_v27, %v13770_v21 }
 0x147   : > { %v2288_v2 = vpack.c.bf16 %v11502_v52, %v11502_v52  ;;  %12892 = vmatprep.mubr.msk.bf16.mxu0 %vm12250_vm15, %v17814_v8 }
 0x148   : > { %v1179_v45 = vpop.permute.xlu1 %1178  ;;  %v1175_v11 = vpop.permute.xlu0 %1174  ;;  %17827 = vst [vmem:[#allocation28_spill] sm:$0xff] %v14319_v63 }
 0x149   : > { %v2576_v0 = vunpack.c.l.b16 %v2288_v2  ;;  %vm1746_vm0 = vcmp.eq.s32.totalorder %v1179_v45, %v13878_v43  ;;  %vm1745_vm1 = vcmp.eq.s32.totalorder %v1175_v11, %v13878_v43  ;;  %v286_v2 = vunpack.c.0.s8 %v285_v56 }
 0x14a   : > { %1452 = vbcast.lane.b32.xlu1 %v14286_v41, 272  ;;  %1467 = vbcast.lane.b32.xlu0 %v14298_v59, 272  ;;  %vm11671_vm2 = vmpackc.low %vm1746_vm0, %vm1745_vm1  ;;  %v14345_v59 = vld [vmem:[%s14333_s23] sm:$0xff] }
 0x14b   : > { %v2720_v50 = vpack.c.b16 %v2576_v0, %v2575_v60  ;;  %v14340_v56 = vsub.s32 %v286_v2, %v13696_v3 }
 0x14c   : > { %v1190_v52 = vpop.permute.xlu1 %1189  ;;  %v1183_v55 = vpop.permute.xlu0 %1182 }
 0x14d   : > { %12893 = vmatmul.mubr.bf16.gmra.mrb[92].mxu0 %v2720_v50  ;;  %vm1748_vm3 = vcmp.eq.s32.totalorder %v1190_v52, %v13878_v43  ;;  %vm1747_vm4 = vcmp.eq.s32.totalorder %v1183_v55, %v13878_v43  ;;  %v290_v52 = vrot.slane %v14345_v59, %v14340_v56 }
 0x14e   : > { %1478 = vbcast.lane.b32.xlu1 %v14311_v1, 264  ;;  %1474 = vbcast.lane.b32.xlu0 %v14311_v1, 256  ;;  %v11506_v45 = vsel %vm1748_vm3, 1.0, %v17816_v16  ;;  %vm12252_vm7 = vmpackc.low %vm1748_vm3, %vm1747_vm4 }
 0x14f   : > { %12896 = vmatprep.mubr.msk.bf16.mxu0 %vm11671_vm2, %v17814_v8 }
 0x150   : > { %v1198_v11 = vpop.permute.xlu1 %1197  ;;  %v1194_v60 = vpop.permute.xlu0 %1193 }
 0x151   : > { %vm1750_vm5 = vcmp.eq.s32.totalorder %v1198_v11, %v13878_v43  ;;  %vm1749_vm6 = vcmp.eq.s32.totalorder %v1194_v60, %v13878_v43 }
 0x152   : > { %v11508_v0 = vsel %vm1750_vm5, 1.0, %v17816_v16  ;;  %v11507_v50 = vsel %vm1749_vm6, 1.0, %v17816_v16  ;;  %1489 = vbcast.lane.b32.xlu1 %v14319_v63, 256  ;;  %1482 = vbcast.lane.b32.xlu0 %v14311_v1, 272 }
 0x153   : > { %v2292_v48 = vpack.c.bf16 %v11508_v0, %v11508_v0  ;;  %v2291_v55 = vpack.c.bf16 %v11507_v50, %v11506_v45  ;;  %v14352_v45 = vrot.slane %v14255_v27, %v13780_v23 }
 0x154   : > { %v1209_v11 = vpop.permute.xlu1 %1208  ;;  %v1205_v60 = vpop.permute.xlu0 %1204 }
 0x155   : > { %v2582_v41 = vunpack.c.l.b16 %v2292_v48  ;;  %v2581_v42 = vunpack.c.h.b16 %v2291_v55  ;;  %12897 = vmatmul.mubr.msk.bf16.gmra.mrb[96].mxu0 %vm12252_vm7, %v17814_v8  ;;  %17828 = vst [vmem:[#allocation29_spill] sm:$0xff] %v14352_v45  ;;  %vm1752_vm8 = vcmp.eq.s32.totalorder %v1209_v11, %v13878_v43  ;;  %vm1751_vm9 = vcmp.eq.s32.totalorder %v1205_v60, %v13878_v43 }
 0x156   : > { %1497 = vbcast.lane.b32.xlu1 %v14319_v63, 272  ;;  %1493 = vbcast.lane.b32.xlu0 %v14319_v63, 264  ;;  %v298_v48 = vcombine.high %v290_v52, %v290_v52  ;;  %vm11673_vm12 = vmpackc.low %vm1752_vm8, %vm1751_vm9  ;;  %vm17735_vm7 = vcmask 261120  }
 0x157   : > { %v2723_v3 = vpack.c.b16 %v2582_v41, %v2581_v42  ;;  %v14368_v41 = vrot.slane %v14255_v27, %v13788_v25 }
 0x158   : > { %v1224_v2 = vpop.permute.xlu1 %1223  ;;  %v1220_v0 = vpop.permute.xlu0 %1219 }
 0x159   : > { %vm1755_vm10 = vcmp.eq.s32.totalorder %v1224_v2, %v13878_v43  ;;  %vm1754_vm11 = vcmp.eq.s32.totalorder %v1220_v0, %v13878_v43  ;;  %12900 = vmatprep.mubr.bf16.mxu0 %v2723_v3  ;;  %17829 = vst [vmem:[#allocation30_spill] sm:$0xff] %v14368_v41  ;;  %v306_v3 = vrot.slane %v290_v52, %v14340_v56 }
 0x15a   : > { %v11513_v50 = vsel %vm1755_vm10, 1.0, %v17816_v16  ;;  %v11512_v42 = vsel %vm1754_vm11, 1.0, %v17816_v16  ;;  %1508 = vbcast.lane.b32.xlu1 %v14352_v45, 264  ;;  %1504 = vbcast.lane.b32.xlu0 %v14352_v45, 256 }
 0x15b   : > { %v2295_v60 = vpack.c.bf16 %v11513_v50, %v11512_v42  ;;  %v14381_v50 = vrot.slane %v298_v48, %v14340_v56  ;;  %v14384_v42 = vld [vmem:[%s13715_s30 + $0x38] sm:$0xff]  ;;  %v14387_v0 = vrot.slane %v306_v3, %v13701_v4  ;;  %v328_v54 = vcombine.high %v306_v3, %v306_v3 }
 0x15c   : > { %v1213_v55 = vpop.permute.xlu1 %1212  ;;  %v1228_v11 = vpop.permute.xlu0 %1227 }
 0x15d   : > { %vm1753_vm13 = vcmp.eq.s32.totalorder %v1213_v55, %v13878_v43  ;;  %vm1756_vm14 = vcmp.eq.s32.totalorder %v1228_v11, %v13878_v43  ;;  %12901 = vmatmul.mubr.msk.bf16.gmra.mrb[100].mxu0 %vm11673_vm12, %v17814_v8  ;;  %v2587_v52 = vunpack.c.h.b16 %v2295_v60  ;;  %17830 = vst [vmem:[#allocation31_spill] sm:$0xff] %v14387_v0  ;;  %v14399_v48 = vrot.slane %v14381_v50, %v13701_v4 }
 0x15e   : > { %vm12254_vm15 = vmpackc.low %vm1754_vm11, %vm1753_vm13  ;;  %v11514_v27 = vsel %vm1756_vm14, 1.0, %v17816_v16  ;;  %1523 = vbcast.lane.b32.xlu1 %v14368_v41, 264  ;;  %1519 = vbcast.lane.b32.xlu0 %v14368_v41, 256 }
 0x15f   : > { %v2296_v2 = vpack.c.bf16 %v11514_v27, %v11514_v27  ;;  %12904 = vmatprep.mubr.msk.bf16.mxu0 %vm12254_vm15, %v17814_v8  ;;  %v14393_v27 = vrot.slane %v14384_v42, %v13701_v4  ;;  %17831 = vst [vmem:[#allocation32_spill] sm:$0xff] %v14399_v48 }
 0x160   : > { %v1239_v55 = vpop.permute.xlu1 %1238  ;;  %v1235_v11 = vpop.permute.xlu0 %1234 }
 0x161   : > { %v2588_v63 = vunpack.c.l.b16 %v2296_v2  ;;  %vm1758_vm0 = vcmp.eq.s32.totalorder %v1239_v55, %v13878_v43  ;;  %vm1757_vm1 = vcmp.eq.s32.totalorder %v1235_v11, %v13878_v43  ;;  %v14407_v55 = vrot.slane %v14384_v42, %v13709_v6 }
 0x162   : > { %1512 = vbcast.lane.b32.xlu1 %v14352_v45, 272  ;;  %1527 = vbcast.lane.b32.xlu0 %v14368_v41, 272  ;;  %vm11675_vm2 = vmpackc.low %vm1758_vm0, %vm1757_vm1 }
 0x163   : > { %v2726_v60 = vpack.c.b16 %v2588_v63, %v2587_v52 }
 0x164   : > { %v12802_v2 = vpop.f32.mrb[0].mxu0  ;;  %v1250_v1 = vpop.permute.xlu1 %1249 }
 0x165   : > { %v4036_v45 = vadd.f32 %v12802_v2, %v14387_v0  ;;  %v2947_v13 = vpop.f32.mrb[1].mxu0  ;;  %v1243_v41 = vpop.permute.xlu0 %1242  ;;  %12905 = vmatmul.mubr.bf16.gmra.mrb[104].mxu0 %v2726_v60  ;;  %vm1760_vm3 = vcmp.eq.s32.totalorder %v1250_v1, %v13878_v43  ;;  %v14417_v60 = vrot.slane %v328_v54, %v13701_v4 }
 0x166   : > { %v4034_v51 = vadd.f32 %v14387_v0, %v2947_v13  ;;  %v12803_v18 = vpop.f32.mrb[2].mxu0  ;;  %1538 = vbcast.lane.b32.xlu1 %v14393_v27, 264  ;;  %1534 = vbcast.lane.b32.xlu0 %v14393_v27, 256  ;;  %v11518_v13 = vsel %vm1760_vm3, 1.0, %v17816_v16  ;;  %vm1759_vm4 = vcmp.eq.s32.totalorder %v1243_v41, %v13878_v43 }
 0x167   : > { %v4037_v63 = vadd.f32 %v12803_v18, %v14399_v48  ;;  %v2950_v3 = vpop.f32.mrb[3].mxu0  ;;  %12908 = vmatprep.mubr.msk.bf16.mxu0 %vm11675_vm2, %v17814_v8  ;;  %17832 = vst [vmem:[#allocation33_spill] sm:$0xff] %v14417_v60  ;;  %v4228_v2 = vmax.f32 %v4036_v45, 0.0  ;;  %vm12256_vm8 = vmpackc.low %vm1760_vm3, %vm1759_vm4 }
 0x168   : > { %v4035_v11 = vadd.f32 %v14387_v0, %v2950_v3  ;;  %v1258_v52 = vpop.permute.xlu1 %1257  ;;  %v4226_v3 = vmax.f32 %v4034_v51, 0.0  ;;  %v283_v51 = vcombine.high %v14345_v59, %v14345_v59  ;;  %v14446_v59 = vrot.slane %v14384_v42, %v13746_v15 }
 0x169   : > { %v4229_v6 = vmax.f32 %v4037_v63, 0.0  ;;  %vm1762_vm5 = vcmp.eq.s32.totalorder %v1258_v52, %v13878_v43  ;;  %v1254_v18 = vpop.permute.xlu0 %1253 }
 0x16a   : > { %v11520_v58 = vsel %vm1762_vm5, 1.0, %v17816_v16  ;;  %vm1761_vm6 = vcmp.eq.s32.totalorder %v1254_v18, %v13878_v43  ;;  %1549 = vbcast.lane.b32.xlu1 %v14407_v55, 256  ;;  %1542 = vbcast.lane.b32.xlu0 %v14393_v27, 272  ;;  %v4227_v0 = vmax.f32 %v4035_v11, 0.0 }
 0x16b   : > { %v4419_v49 = vpack.c.bf16 %v4229_v6, %v4228_v2  ;;  %v2300_v54 = vpack.c.bf16 %v11520_v58, %v11520_v58  ;;  %v11519_v45 = vsel %vm1761_vm6, 1.0, %v17816_v16  ;;  %v14433_v58 = vrot.slane %v14384_v42, %v13735_v12  ;;  %v13625_v12 = vld [vmem:[%s17543_s1] sm:$0xff]  }
 0x16c   : > { %v2299_v41 = vpack.c.bf16 %v11519_v45, %v11518_v13  ;;  %v1269_v63 = vpop.permute.xlu1 %1268  ;;  %v4418_v52 = vpack.c.bf16 %v4227_v0, %v4226_v3 }
 0x16d   : > { %v2594_v62 = vunpack.c.l.b16 %v2300_v54  ;;  %v1265_v57 = vpop.permute.xlu0 %1264  ;;  %12909 = vmatmul.mubr.msk.bf16.gmra.mrb[108].mxu0 %vm12256_vm8, %v17814_v8  ;;  %vm1764_vm9 = vcmp.eq.s32.totalorder %v1269_v63, %v13878_v43  ;;  %v13626_v54 = vld [vmem:[%s17543_s1 + $0x8] sm:$0xff]  }
 0x16e   : > { %v2593_v18 = vunpack.c.h.b16 %v2299_v41  ;;  %v12806_v36 = vpop.f32.mrb[4].mxu0  ;;  %12996 = vmatprep.mubr.msk.bf16.mxu1 %vm17735_vm7, %v4418_v52  ;;  %1557 = vbcast.lane.b32.xlu1 %v14407_v55, 272  ;;  %vm1763_vm10 = vcmp.eq.s32.totalorder %v1265_v57, %v13878_v43  ;;  %v13627_v57 = vld [vmem:[%s17543_s1 + $0x10] sm:$0xff]  }
 0x16f   : > { %v4040_v1 = vadd.f32 %v12806_v36, %v14417_v60  ;;  %v2963_v0 = vpop.f32.mrb[5].mxu0  ;;  %12997 = vmatmul.mubr.msk.bf16.vlgmr.msra.gmra.mrb[0].mxu1 %vm17735_vm7, %v4419_v49  ;;  %1553 = vbcast.lane.b32.xlu0 %v14407_v55, 264  ;;  %v330_v36 = vcombine.high %v14381_v50, %v14381_v50  ;;  %v297_v50 = vrot.slane %v283_v51, %v14340_v56  ;;  %vm11677_vm13 = vmpackc.low %vm1764_vm9, %vm1763_vm10 }
 0x170   : > { %v4038_v13 = vadd.f32 %v14399_v48, %v2963_v0  ;;  %v12807_v11 = vpop.f32.mrb[6].mxu0  ;;  %v1284_v2 = vpop.permute.xlu1 %1283  ;;  %v2729_v6 = vpack.c.b16 %v2594_v62, %v2593_v18  ;;  %13189 = vmatpush3.bf16.msra.mxu1 %v13625_v12 }
 0x171   : > { %v4041_v49 = vadd.f32 %v12807_v11, %v14417_v60  ;;  %vm1767_vm11 = vcmp.eq.s32.totalorder %v1284_v2, %v13878_v43  ;;  %v2966_v62 = vpop.f32.mrb[7].mxu0  ;;  %v1280_v3 = vpop.permute.xlu0 %1279  ;;  %13190 = vmatprep.subr.bf16.mxu1 %v13626_v54  ;;  %v4232_v45 = vmax.f32 %v4040_v1, 0.0 }
 0x172   : > { %v4039_v15 = vadd.f32 %v14399_v48, %v2966_v62  ;;  %vm1766_vm12 = vcmp.eq.s32.totalorder %v1280_v3, %v13878_v43  ;;  %12912 = vmatprep.mubr.bf16.mxu0 %v2729_v6  ;;  %1568 = vbcast.lane.b32.xlu1 %v14433_v58, 264  ;;  %v11525_v52 = vsel %vm1767_vm11, 1.0, %v17816_v16  ;;  %v4230_v0 = vmax.f32 %v4038_v13, 0.0 }
 0x173   : > { %v4233_v41 = vmax.f32 %v4041_v49, 0.0  ;;  %v11524_v18 = vsel %vm1766_vm12, 1.0, %v17816_v16  ;;  %1564 = vbcast.lane.b32.xlu0 %v14433_v58, 256  ;;  %v14473_v6 = vrot.slane %v330_v36, %v13701_v4  ;;  %v299_v36 = vcombine.high %v297_v50, %v297_v50 }
 0x174   : > { %v4231_v11 = vmax.f32 %v4039_v15, 0.0  ;;  %v1273_v2 = vpop.permute.xlu1 %1272  ;;  %13191 = vmatpush3.bf16.msra.mxu1 %v13626_v54  ;;  %v2303_v12 = vpack.c.bf16 %v11525_v52, %v11524_v18  ;;  %v13628_v52 = vld [vmem:[%s17543_s1 + $0x18] sm:$0xff]  }
 0x175   : > { %v4421_v51 = vpack.c.bf16 %v4233_v41, %v4232_v45  ;;  %vm1765_vm14 = vcmp.eq.s32.totalorder %v1273_v2, %v13878_v43  ;;  %v1288_v1 = vpop.permute.xlu0 %1287  ;;  %12913 = vmatmul.mubr.msk.bf16.gmra.mrb[112].mxu0 %vm11677_vm13, %v17814_v8  ;;  %17833 = vst [vmem:[#allocation34_spill] sm:$0xff] %v14473_v6  ;;  %13192 = vmatprep.subr.bf16.mxu1 %v13627_v57 }
 0x176   : > { %v4420_v63 = vpack.c.bf16 %v4231_v11, %v4230_v0  ;;  %vm12258_vm15 = vmpackc.low %vm1766_vm12, %vm1765_vm14  ;;  %vm1768_vm0 = vcmp.eq.s32.totalorder %v1288_v1, %v13878_v43  ;;  %1583 = vbcast.lane.b32.xlu1 %v14446_v59, 264  ;;  %v14489_v41 = vrot.slane %v297_v50, %v14340_v56  ;;  %v2599_v18 = vunpack.c.h.b16 %v2303_v12 }
 0x177   : > { %v11526_v13 = vsel %vm1768_vm0, 1.0, %v17816_v16  ;;  %1579 = vbcast.lane.b32.xlu0 %v14446_v59, 256  ;;  %12916 = vmatprep.mubr.msk.bf16.mxu0 %vm12258_vm15, %v17814_v8 }
 0x178   : > { %v2304_v49 = vpack.c.bf16 %v11526_v13, %v11526_v13  ;;  %13000 = vmatprep.mubr.msk.bf16.mxu1 %vm17735_vm7, %v4420_v63  ;;  %v1299_v62 = vpop.permute.xlu1 %1298  ;;  %v12810_v54 = vpop.f32.mrb[8].mxu0  ;;  %13193 = vmatpush3.bf16.msra.mxu1 %v13627_v57  ;;  %v14505_v57 = vrot.slane %v299_v36, %v14340_v56 }
 0x179   : > { %v4044_v3 = vadd.f32 %v12810_v54, %v14473_v6  ;;  %13001 = vmatmul.mubr.msk.bf16.gmra.mrb[4].mxu1 %vm17735_vm7, %v4421_v51  ;;  %v1295_v15 = vpop.permute.xlu0 %1294  ;;  %v2979_v45 = vpop.f32.mrb[9].mxu0  ;;  %13194 = vmatprep.subr.bf16.mxu1 %v13628_v52  ;;  %v14498_v51 = vrot.slane %v14384_v42, %v13762_v19  ;;  %vm1770_vm1 = vcmp.eq.s32.totalorder %v1299_v62, %v13878_v43 }
 0x17a   : > { %v2600_v0 = vunpack.c.l.b16 %v2304_v49  ;;  %v4042_v11 = vadd.f32 %v14417_v60, %v2979_v45  ;;  %1572 = vbcast.lane.b32.xlu1 %v14433_v58, 272  ;;  %v12811_v2 = vpop.f32.mrb[10].mxu0  ;;  %vm1769_vm2 = vcmp.eq.s32.totalorder %v1295_v15, %v13878_v43  ;;  %v14510_v45 = vrot.slane %v14489_v41, %v13701_v4 }
 0x17b   : > { %v4045_v50 = vadd.f32 %v12811_v2, %v14473_v6  ;;  %1587 = vbcast.lane.b32.xlu0 %v14446_v59, 272  ;;  %v2982_v1 = vpop.f32.mrb[11].mxu0  ;;  %v4236_v49 = vmax.f32 %v4044_v3, 0.0  ;;  %v13629_v2 = vld [vmem:[%s17543_s1 + $0x20] sm:$0xff]   ;;  %vm11679_vm3 = vmpackc.low %vm1770_vm1, %vm1769_vm2  ;;  %v14522_v3 = vrot.slane %v14384_v42, %v13770_v21  ;;  %v14528_v15 = vrot.slane %v14505_v57, %v13701_v4 }
 0x17c   : > { %v4043_v63 = vadd.f32 %v14473_v6, %v2982_v1  ;;  %v1310_v12 = vpop.permute.xlu1 %1309  ;;  %v2732_v13 = vpack.c.b16 %v2600_v0, %v2599_v18  ;;  %13195 = vmatpush3.bf16.msra.mxu1 %v13628_v52  ;;  %17834 = vst [vmem:[#allocation35_spill] sm:$0xff] %v14510_v45  ;;  %v4234_v36 = vmax.f32 %v4042_v11, 0.0 }
 0x17d   : > { %v4237_v19 = vmax.f32 %v4045_v50, 0.0  ;;  %v1303_v54 = vpop.permute.xlu0 %1302  ;;  %13196 = vmatprep.subr.bf16.mxu1 %v13629_v2  ;;  %17835 = vst [vmem:[#allocation36_spill] sm:$0xff] %v14528_v15  ;;  %vm1772_vm4 = vcmp.eq.s32.totalorder %v1310_v12, %v13878_v43  ;;  %v14566_v12 = vrot.slane %v14384_v42, %v13780_v23 }
 0x17e   : > { %v4235_v18 = vmax.f32 %v4043_v63, 0.0  ;;  %12917 = vmatmul.mubr.bf16.gmra.mrb[116].mxu0 %v2732_v13  ;;  %1598 = vbcast.lane.b32.xlu1 %v14498_v51, 264  ;;  %v11530_v21 = vsel %vm1772_vm4, 1.0, %v17816_v16  ;;  %v329_v13 = vcombine.high %v14489_v41, %v14489_v41  ;;  %vm1771_vm6 = vcmp.eq.s32.totalorder %v1303_v54, %v13878_v43 }
 0x17f   : > { %v4423_v52 = vpack.c.bf16 %v4237_v19, %v4236_v49  ;;  %1594 = vbcast.lane.b32.xlu0 %v14498_v51, 256  ;;  %12920 = vmatprep.mubr.msk.bf16.mxu0 %vm11679_vm3, %v17814_v8  ;;  %v13630_v49 = vld [vmem:[%s17543_s1 + $0x28] sm:$0xff]   ;;  %vm12260_vm9 = vmpackc.low %vm1772_vm4, %vm1771_vm6 }
 0x180   : > { %v4422_v62 = vpack.c.bf16 %v4235_v18, %v4234_v36  ;;  %v1318_v0 = vpop.permute.xlu1 %1317  ;;  %v12814_v11 = vpop.f32.mrb[12].mxu0  ;;  %13197 = vmatpush3.bf16.msra.mxu1 %v13629_v2 }
 0x181   : > { %vm1774_vm5 = vcmp.eq.s32.totalorder %v1318_v0, %v13878_v43  ;;  %v4048_v50 = vadd.f32 %v12814_v11, %v14510_v45  ;;  %v1314_v1 = vpop.permute.xlu0 %1313  ;;  %v2995_v63 = vpop.f32.mrb[13].mxu0  ;;  %13198 = vmatprep.subr.bf16.mxu1 %v13630_v49 }
 0x182   : > { %v11532_v19 = vsel %vm1774_vm5, 1.0, %v17816_v16  ;;  %vm1773_vm8 = vcmp.eq.s32.totalorder %v1314_v1, %v13878_v43  ;;  %v4046_v2 = vadd.f32 %v14510_v45, %v2995_v63  ;;  %1609 = vbcast.lane.b32.xlu1 %v14522_v3, 256  ;;  %v12815_v36 = vpop.f32.mrb[14].mxu0  ;;  %13004 = vmatprep.mubr.msk.bf16.mxu1 %vm17735_vm7, %v4422_v62 }
 0x183   : > { %v2308_v18 = vpack.c.bf16 %v11532_v19, %v11532_v19  ;;  %v11531_v41 = vsel %vm1773_vm8, 1.0, %v17816_v16  ;;  %v4049_v0 = vadd.f32 %v12815_v36, %v14528_v15  ;;  %1602 = vbcast.lane.b32.xlu0 %v14498_v51, 272  ;;  %v2998_v11 = vpop.f32.mrb[15].mxu0  ;;  %13005 = vmatmul.mubr.msk.bf16.gmra.mrb[8].mxu1 %vm17735_vm7, %v4423_v52  ;;  %v4240_v63 = vmax.f32 %v4048_v50, 0.0  ;;  %v13631_v52 = vld [vmem:[%s17543_s1 + $0x30] sm:$0xff]  }
 0x184   : > { %v2307_v6 = vpack.c.bf16 %v11531_v41, %v11530_v21  ;;  %v4047_v1 = vadd.f32 %v14510_v45, %v2998_v11  ;;  %v1329_v60 = vpop.permute.xlu1 %1328  ;;  %13199 = vmatpush3.bf16.msra.mxu1 %v13630_v49  ;;  %v14557_v36 = vrot.slane %v329_v13, %v13701_v4  ;;  %v4238_v49 = vmax.f32 %v4046_v2, 0.0  ;;  %v14574_v2 = vld [vmem:[%s14333_s23 + $0x8] sm:$0xff] }
 0x185   : > { %v2606_v62 = vunpack.c.l.b16 %v2308_v18  ;;  %v4241_v19 = vmax.f32 %v4049_v0, 0.0  ;;  %v1325_v48 = vpop.permute.xlu0 %1324  ;;  %13200 = vmatprep.subr.bf16.mxu1 %v13631_v52  ;;  %vm1776_vm10 = vcmp.eq.s32.totalorder %v1329_v60, %v13878_v43 }
 0x186   : > { %17836 = vst [vmem:[#allocation37_spill] sm:$0xff] %v14557_v36  ;;  %v2605_v21 = vunpack.c.h.b16 %v2307_v6  ;;  %v4239_v41 = vmax.f32 %v4047_v1, 0.0  ;;  %12921 = vmatmul.mubr.msk.bf16.gmra.mrb[120].mxu0 %vm12260_vm9, %v17814_v8  ;;  %1617 = vbcast.lane.b32.xlu1 %v14522_v3, 272  ;;  %v14571_v6 = vrot.slane %v14384_v42, %v13788_v25  ;;  %vm1775_vm12 = vcmp.eq.s32.totalorder %v1325_v48, %v13878_v43 }
 0x187   : > { %v4425_v54 = vpack.c.bf16 %v4241_v19, %v4240_v63  ;;  %1613 = vbcast.lane.b32.xlu0 %v14522_v3, 264  ;;  %v331_v63 = vcombine.high %v14505_v57, %v14505_v57  ;;  %vm11681_vm14 = vmpackc.low %vm1776_vm10, %vm1775_vm12 }
 0x188   : > { %v4424_v50 = vpack.c.bf16 %v4239_v41, %v4238_v49  ;;  %v1344_v13 = vpop.permute.xlu1 %1343  ;;  %v12818_v18 = vpop.f32.mrb[16].mxu0  ;;  %v2735_v0 = vpack.c.b16 %v2606_v62, %v2605_v21  ;;  %13201 = vmatpush3.bf16.msra.mxu1 %v13631_v52  ;;  %v13632_v62 = vld [vmem:[%s17543_s1 + $0x38] sm:$0xff]   ;;  %v339_v49 = vrot.slane %v14574_v2, %v14340_v56 }
 0x189   : > { %vm1779_vm11 = vcmp.eq.s32.totalorder %v1344_v13, %v13878_v43  ;;  %v4052_v23 = vadd.f32 %v12818_v18, %v14557_v36  ;;  %v1340_v11 = vpop.permute.xlu0 %1339  ;;  %v3011_v1 = vpop.f32.mrb[17].mxu0  ;;  %13202 = vmatprep.subr.bf16.mxu1 %v13632_v62 }
 0x18a   : > { %vm1778_vm13 = vcmp.eq.s32.totalorder %v1340_v11, %v13878_v43  ;;  %v4050_v25 = vadd.f32 %v14528_v15, %v3011_v1  ;;  %12924 = vmatprep.mubr.bf16.mxu0 %v2735_v0  ;;  %1628 = vbcast.lane.b32.xlu1 %v14566_v12, 264  ;;  %v12819_v42 = vpop.f32.mrb[18].mxu0  ;;  %v11537_v19 = vsel %vm1779_vm11, 1.0, %v17816_v16  ;;  %v14605_v1 = vrot.slane %v331_v63, %v13701_v4  ;;  %v13633_v11 = vld [vmem:[%s17545_s3] sm:$0xff]  }
 0x18b   : > { %v11536_v57 = vsel %vm1778_vm13, 1.0, %v17816_v16  ;;  %v4053_v52 = vadd.f32 %v12819_v42, %v14557_v36  ;;  %13008 = vmatprep.mubr.msk.bf16.mxu1 %vm17735_vm7, %v4424_v50  ;;  %1624 = vbcast.lane.b32.xlu0 %v14566_v12, 256  ;;  %v3014_v21 = vpop.f32.mrb[19].mxu0  ;;  %v4244_v18 = vmax.f32 %v4052_v23, 0.0 }
 0x18c   : > { %v4051_v41 = vadd.f32 %v14528_v15, %v3014_v21  ;;  %13009 = vmatmul.mubr.msk.bf16.gmra.mrb[12].mxu1 %vm17735_vm7, %v4425_v54  ;;  %v1333_v13 = vpop.permute.xlu1 %1332  ;;  %17837 = vst [vmem:[#allocation38_spill] sm:$0xff] %v14605_v1  ;;  %v2311_v42 = vpack.c.bf16 %v11537_v19, %v11536_v57  ;;  %v4242_v45 = vmax.f32 %v4050_v25, 0.0  ;;  %v347_v54 = vcombine.high %v339_v49, %v339_v49 }
 0x18d   : > { %v4245_v0 = vmax.f32 %v4053_v52, 0.0  ;;  %vm1777_vm15 = vcmp.eq.s32.totalorder %v1333_v13, %v13878_v43  ;;  %v1348_v50 = vpop.permute.xlu0 %1347  ;;  %13203 = vmatpush3.bf16.msra.mxu1 %v13632_v62 }
 0x18e   : > { %v4243_v21 = vmax.f32 %v4051_v41, 0.0  ;;  %vm12262_vm0 = vmpackc.low %vm1778_vm13, %vm1777_vm15  ;;  %vm1780_vm1 = vcmp.eq.s32.totalorder %v1348_v50, %v13878_v43  ;;  %12925 = vmatmul.mubr.msk.bf16.gmra.mrb[124].mxu0 %vm11681_vm14, %v17814_v8  ;;  %1643 = vbcast.lane.b32.xlu1 %v14571_v6, 264  ;;  %v355_v41 = vrot.slane %v339_v49, %v14340_v56  ;;  %v2611_v13 = vunpack.c.h.b16 %v2311_v42 }
 0x18f   : > { %v4427_v48 = vpack.c.bf16 %v4245_v0, %v4244_v18  ;;  %v11538_v60 = vsel %vm1780_vm1, 1.0, %v17816_v16  ;;  %1639 = vbcast.lane.b32.xlu0 %v14571_v6, 256  ;;  %12928 = vmatprep.mubr.msk.bf16.mxu0 %vm12262_vm0, %v17814_v8  ;;  %v14628_v49 = vrot.slane %v347_v54, %v14340_v56 }
 0x190   : > { %v4426_v23 = vpack.c.bf16 %v4243_v21, %v4242_v45  ;;  %v2312_v63 = vpack.c.bf16 %v11538_v60, %v11538_v60  ;;  %v1359_v62 = vpop.permute.xlu1 %1358  ;;  %v12822_v25 = vpop.f32.mrb[20].mxu0  ;;  %13592 = vmatprep.subr.bf16.mxu1 %v13633_v11 }
 0x191   : > { %v4056_v19 = vadd.f32 %v12822_v25, %v14605_v1  ;;  %v1355_v57 = vpop.permute.xlu0 %1354  ;;  %v3027_v52 = vpop.f32.mrb[21].mxu0  ;;  %vm1782_vm2 = vcmp.eq.s32.totalorder %v1359_v62, %v13878_v43  ;;  %v14633_v62 = vrot.slane %v355_v41, %v13701_v4 }
 0x192   : > { %v2612_v18 = vunpack.c.l.b16 %v2312_v63  ;;  %v4054_v0 = vadd.f32 %v14557_v36, %v3027_v52  ;;  %1632 = vbcast.lane.b32.xlu1 %v14566_v12, 272  ;;  %v12823_v45 = vpop.f32.mrb[22].mxu0  ;;  %13012 = vmatprep.mubr.msk.bf16.mxu1 %vm17735_vm7, %v4426_v23  ;;  %vm1781_vm3 = vcmp.eq.s32.totalorder %v1355_v57, %v13878_v43 }
 0x193   : > { %v4057_v50 = vadd.f32 %v12823_v45, %v14605_v1  ;;  %1647 = vbcast.lane.b32.xlu0 %v14571_v6, 272  ;;  %v3030_v21 = vpop.f32.mrb[23].mxu0  ;;  %v4248_v25 = vmax.f32 %v4056_v19, 0.0  ;;  %17838 = vst [vmem:[#allocation39_spill] sm:$0xff] %v14633_v62  ;;  %vm11683_vm4 = vmpackc.low %vm1782_vm2, %vm1781_vm3 }
 0x194   : > { %v4055_v42 = vadd.f32 %v14605_v1, %v3030_v21  ;;  %13013 = vmatmul.mubr.msk.bf16.gmra.mrb[16].mxu1 %vm17735_vm7, %v4427_v48  ;;  %v1370_v60 = vpop.permute.xlu1 %1369  ;;  %v2738_v63 = vpack.c.b16 %v2612_v18, %v2611_v13  ;;  %v4246_v57 = vmax.f32 %v4054_v0, 0.0  ;;  %v14639_v48 = vrot.slane %v14628_v49, %v13701_v4 }
 0x195   : > { %v4249_v23 = vmax.f32 %v4057_v50, 0.0  ;;  %v1363_v11 = vpop.permute.xlu0 %1362  ;;  %vm1784_vm5 = vcmp.eq.s32.totalorder %v1370_v60, %v13878_v43 }
 0x196   : > { %v4247_v52 = vmax.f32 %v4055_v42, 0.0  ;;  %12929 = vmatmul.mubr.bf16.gmra.mrb[128].mxu0 %v2738_v63  ;;  %6134 = vbcast.lane.b32.xlu1 %v13722_v9, 288  ;;  %17839 = vst [vmem:[#allocation40_spill] sm:$0xff] %v14639_v48  ;;  %v11542_v0 = vsel %vm1784_vm5, 1.0, %v17816_v16  ;;  %v377_v42 = vcombine.high %v355_v41, %v355_v41  ;;  %vm1783_vm8 = vcmp.eq.s32.totalorder %v1363_v11, %v13878_v43 }
 0x197   : > { %v4429_v54 = vpack.c.bf16 %v4249_v23, %v4248_v25  ;;  %12932 = vmatprep.mubr.msk.bf16.mxu0 %vm11683_vm4, %v17814_v8  ;;  %6130 = vbcast.lane.b32.xlu0 %v13722_v9, 280  ;;  %vm12264_vm10 = vmpackc.low %vm1784_vm5, %vm1783_vm8  ;;  %v332_v11 = vcombine.high %v14574_v2, %v14574_v2 }
 0x198   : > { %v4428_v19 = vpack.c.bf16 %v4247_v52, %v4246_v57  ;;  %v1378_v13 = vpop.permute.xlu1 %1377  ;;  %v12826_v18 = vpop.f32.mrb[24].mxu0 }
 0x199   : > { %vm1786_vm6 = vcmp.eq.s32.totalorder %v1378_v13, %v13878_v43  ;;  %v4060_v45 = vadd.f32 %v12826_v18, %v14633_v62  ;;  %v1374_v50 = vpop.permute.xlu0 %1373  ;;  %v3043_v21 = vpop.f32.mrb[25].mxu0 }
 0x19a   : > { %v11544_v63 = vsel %vm1786_vm6, 1.0, %v17816_v16  ;;  %vm1785_vm9 = vcmp.eq.s32.totalorder %v1374_v50, %v13878_v43  ;;  %v4058_v25 = vadd.f32 %v14633_v62, %v3043_v21  ;;  %v12827_v23 = vpop.f32.mrb[26].mxu0  ;;  %13016 = vmatprep.mubr.msk.bf16.mxu1 %vm17735_vm7, %v4428_v19  ;;  %6142 = vbcast.lane.b32.xlu1 %v13727_v10, 280 }
 0x19b   : > { %v2316_v57 = vpack.c.bf16 %v11544_v63, %v11544_v63  ;;  %v11543_v52 = vsel %vm1785_vm9, 1.0, %v17816_v16  ;;  %v4061_v13 = vadd.f32 %v12827_v23, %v14639_v48  ;;  %v3046_v18 = vpop.f32.mrb[27].mxu0  ;;  %6138 = vbcast.lane.b32.xlu0 %v13722_v9, 296  ;;  %v4252_v21 = vmax.f32 %v4060_v45, 0.0 }
 0x19c   : > { %v2315_v41 = vpack.c.bf16 %v11543_v52, %v11542_v0  ;;  %v4059_v1 = vadd.f32 %v14633_v62, %v3046_v18  ;;  %13017 = vmatmul.mubr.msk.bf16.gmra.mrb[20].mxu1 %vm17735_vm7, %v4429_v54  ;;  %v1389_v50 = vpop.permute.xlu1 %1388  ;;  %v14664_v23 = vrot.slane %v377_v42, %v13701_v4  ;;  %v4250_v9 = vmax.f32 %v4058_v25, 0.0 }
 0x19d   : > { %v2618_v19 = vunpack.c.l.b16 %v2316_v57  ;;  %v4253_v63 = vmax.f32 %v4061_v13, 0.0  ;;  %v1385_v36 = vpop.permute.xlu0 %1384  ;;  %vm1788_vm11 = vcmp.eq.s32.totalorder %v1389_v50, %v13878_v43  ;;  %v379_v13 = vcombine.high %v14628_v49, %v14628_v49 }
 0x19e   : > { %17840 = vst [vmem:[#allocation41_spill] sm:$0xff] %v14664_v23  ;;  %v2617_v15 = vunpack.c.h.b16 %v2315_v41  ;;  %v4251_v0 = vmax.f32 %v4059_v1, 0.0  ;;  %12933 = vmatmul.mubr.msk.bf16.gmra.mrb[132].mxu0 %vm12264_vm10, %v17814_v8  ;;  %6150 = vbcast.lane.b32.xlu1 %v13727_v10, 296  ;;  %vm1787_vm13 = vcmp.eq.s32.totalorder %v1385_v36, %v13878_v43  ;;  %v346_v49 = vrot.slane %v332_v11, %v14340_v56 }
 0x19f   : > { %v4431_v54 = vpack.c.bf16 %v4253_v63, %v4252_v21  ;;  %6146 = vbcast.lane.b32.xlu0 %v13727_v10, 288  ;;  %vm11685_vm15 = vmpackc.low %vm1788_vm11, %vm1787_vm13  ;;  %v14696_v11 = vrot.slane %v379_v13, %v13701_v4 }
 0x1a0   : > { %v4430_v60 = vpack.c.bf16 %v4251_v0, %v4250_v9  ;;  %v1404_v45 = vpop.permute.xlu1 %1403  ;;  %v12830_v57 = vpop.f32.mrb[28].mxu0  ;;  %v2741_v52 = vpack.c.b16 %v2618_v19, %v2617_v15 }
 0x1a1   : > { %vm1791_vm12 = vcmp.eq.s32.totalorder %v1404_v45, %v13878_v43  ;;  %v4064_v1 = vadd.f32 %v12830_v57, %v14664_v23  ;;  %v1400_v42 = vpop.permute.xlu0 %1399  ;;  %v3059_v25 = vpop.f32.mrb[29].mxu0  ;;  %17841 = vst [vmem:[#allocation42_spill] sm:$0xff] %v14696_v11 }
 0x1a2   : > { %vm1790_vm14 = vcmp.eq.s32.totalorder %v1400_v42, %v13878_v43  ;;  %v4062_v10 = vadd.f32 %v14639_v48, %v3059_v25  ;;  %12936 = vmatprep.mubr.bf16.mxu0 %v2741_v52  ;;  %v12831_v2 = vpop.f32.mrb[30].mxu0  ;;  %13020 = vmatprep.mubr.msk.bf16.mxu1 %vm17735_vm7, %v4430_v60  ;;  %v11549_v15 = vsel %vm1791_vm12, 1.0, %v17816_v16 }
 0x1a3   : > { %v11548_v18 = vsel %vm1790_vm14, 1.0, %v17816_v16  ;;  %v4065_v41 = vadd.f32 %v12831_v2, %v14664_v23  ;;  %v3062_v19 = vpop.f32.mrb[31].mxu0  ;;  %6158 = vbcast.lane.b32.xlu1 %v13743_v14, 288  ;;  %6154 = vbcast.lane.b32.xlu0 %v13743_v14, 280  ;;  %v4256_v9 = vmax.f32 %v4064_v1, 0.0 }
 0x1a4   : > { %v4063_v21 = vadd.f32 %v14639_v48, %v3062_v19  ;;  %13021 = vmatmul.mubr.msk.bf16.gmra.mrb[24].mxu1 %vm17735_vm7, %v4431_v54  ;;  %v1393_v63 = vpop.permute.xlu1 %1392  ;;  %v2319_v45 = vpack.c.bf16 %v11549_v15, %v11548_v18  ;;  %v4254_v57 = vmax.f32 %v4062_v10, 0.0  ;;  %v348_v54 = vcombine.high %v346_v49, %v346_v49 }
 0x1a5   : > { %v4257_v0 = vmax.f32 %v4065_v41, 0.0  ;;  %vm1789_vm0 = vcmp.eq.s32.totalorder %v1393_v63, %v13878_v43  ;;  %v1408_v60 = vpop.permute.xlu0 %1407  ;;  %v362_v18 = vrot.slane %v346_v49, %v14340_v56 }
 0x1a6   : > { %v4255_v52 = vmax.f32 %v4063_v21, 0.0  ;;  %vm12266_vm1 = vmpackc.low %vm1790_vm14, %vm1789_vm0  ;;  %vm1792_vm2 = vcmp.eq.s32.totalorder %v1408_v60, %v13878_v43  ;;  %12937 = vmatmul.mubr.msk.bf16.gmra.mrb[136].mxu0 %vm11685_vm15, %v17814_v8  ;;  %v2623_v41 = vunpack.c.h.b16 %v2319_v45  ;;  %v14714_v60 = vrot.slane %v348_v54, %v14340_v56 }
 0x1a7   : > { %v4433_v36 = vpack.c.bf16 %v4257_v0, %v4256_v9  ;;  %v11550_v50 = vsel %vm1792_vm2, 1.0, %v17816_v16  ;;  %12940 = vmatprep.mubr.msk.bf16.mxu0 %vm12266_vm1, %v17814_v8  ;;  %6170 = vbcast.lane.b32.xlu1 %v13754_v17, 288 }
 0x1a8   : > { %v4432_v1 = vpack.c.bf16 %v4255_v52, %v4254_v57  ;;  %v2320_v25 = vpack.c.bf16 %v11550_v50, %v11550_v50  ;;  %v1419_v13 = vpop.permute.xlu1 %1418  ;;  %v12834_v10 = vpop.f32.mrb[32].mxu0  ;;  %6166 = vbcast.lane.b32.xlu0 %v13754_v17, 280 }
 0x1a9   : > { %v4068_v42 = vadd.f32 %v12834_v10, %v14696_v11  ;;  %v1415_v2 = vpop.permute.xlu0 %1414  ;;  %v3075_v15 = vpop.f32.mrb[33].mxu0  ;;  %vm1794_vm3 = vcmp.eq.s32.totalorder %v1419_v13, %v13878_v43 }
 0x1aa   : > { %v2624_v19 = vunpack.c.l.b16 %v2320_v25  ;;  %v4066_v21 = vadd.f32 %v14664_v23, %v3075_v15  ;;  %v12835_v63 = vpop.f32.mrb[34].mxu0  ;;  %13024 = vmatprep.mubr.msk.bf16.mxu1 %vm17735_vm7, %v4432_v1  ;;  %vm1793_vm4 = vcmp.eq.s32.totalorder %v1415_v2, %v13878_v43  ;;  %v14721_v25 = vrot.slane %v362_v18, %v13701_v4 }
 0x1ab   : > { %v4069_v9 = vadd.f32 %v12835_v63, %v14696_v11  ;;  %v3078_v0 = vpop.f32.mrb[35].mxu0  ;;  %6162 = vbcast.lane.b32.xlu1 %v13743_v14, 296  ;;  %v4260_v52 = vmax.f32 %v4068_v42, 0.0  ;;  %vm11687_vm5 = vmpackc.low %vm1794_vm3, %vm1793_vm4 }
 0x1ac   : > { %v4067_v49 = vadd.f32 %v14696_v11, %v3078_v0  ;;  %13025 = vmatmul.mubr.msk.bf16.gmra.mrb[28].mxu1 %vm17735_vm7, %v4433_v36  ;;  %v1430_v45 = vpop.permute.xlu1 %1429  ;;  %v2744_v57 = vpack.c.b16 %v2624_v19, %v2623_v41  ;;  %6174 = vbcast.lane.b32.xlu0 %v13754_v17, 296  ;;  %17842 = vst [vmem:[#allocation43_spill] sm:$0xff] %v14721_v25  ;;  %v4258_v54 = vmax.f32 %v4066_v21, 0.0  ;;  %v17941_v11 = vld [vmem:[#allocation20_spill] sm:$0xff] }
 0x1ad   : > { %v4261_v50 = vmax.f32 %v4069_v9, 0.0  ;;  %v1423_v1 = vpop.permute.xlu0 %1422  ;;  %v14728_v36 = vrot.slane %v14714_v60, %v13701_v4  ;;  %vm1796_vm6 = vcmp.eq.s32.totalorder %v1430_v45, %v13878_v43  ;;  %v378_v21 = vcombine.high %v362_v18, %v362_v18 }
 0x1ae   : > { %v4259_v10 = vmax.f32 %v4067_v49, 0.0  ;;  %12941 = vmatmul.mubr.bf16.gmra.mrb[140].mxu0 %v2744_v57  ;;  %v11554_v13 = vsel %vm1796_vm6, 1.0, %v17816_v16  ;;  %vm1795_vm9 = vcmp.eq.s32.totalorder %v1423_v1, %v13878_v43 }
 0x1af   : > { %v4435_v14 = vpack.c.bf16 %v4261_v50, %v4260_v52  ;;  %12944 = vmatprep.mubr.msk.bf16.mxu0 %vm11687_vm5, %v17814_v8  ;;  %17843 = vst [vmem:[#allocation44_spill] sm:$0xff] %v14728_v36  ;;  %6182 = vbcast.lane.b32.xlu1 %v13767_v20, 288  ;;  %vm12268_vm11 = vmpackc.low %vm1796_vm6, %vm1795_vm9 }
 0x1b0   : > { %v4434_v17 = vpack.c.bf16 %v4259_v10, %v4258_v54  ;;  %v1438_v42 = vpop.permute.xlu1 %1437  ;;  %v12838_v2 = vpop.f32.mrb[36].mxu0  ;;  %6178 = vbcast.lane.b32.xlu0 %v13767_v20, 280 }
 0x1b1   : > { %vm1798_vm8 = vcmp.eq.s32.totalorder %v1438_v42, %v13878_v43  ;;  %v4072_v15 = vadd.f32 %v12838_v2, %v14721_v25  ;;  %v1434_v41 = vpop.permute.xlu0 %1433  ;;  %v3091_v19 = vpop.f32.mrb[37].mxu0 }
 0x1b2   : > { %v11556_v63 = vsel %vm1798_vm8, 1.0, %v17816_v16  ;;  %vm1797_vm10 = vcmp.eq.s32.totalorder %v1434_v41, %v13878_v43  ;;  %v4070_v9 = vadd.f32 %v14721_v25, %v3091_v19  ;;  %v12839_v0 = vpop.f32.mrb[38].mxu0  ;;  %13028 = vmatprep.mubr.msk.bf16.mxu1 %vm17735_vm7, %v4434_v17  ;;  %v14754_v19 = vrot.slane %v378_v21, %v13701_v4 }
 0x1b3   : > { %v2324_v49 = vpack.c.bf16 %v11556_v63, %v11556_v63  ;;  %v11555_v57 = vsel %vm1797_vm10, 1.0, %v17816_v16  ;;  %v4073_v52 = vadd.f32 %v12839_v0, %v14728_v36  ;;  %v3094_v50 = vpop.f32.mrb[39].mxu0  ;;  %6190 = vbcast.lane.b32.xlu1 %v13775_v22, 280  ;;  %v4264_v42 = vmax.f32 %v4072_v15, 0.0 }
 0x1b4   : > { %v2323_v18 = vpack.c.bf16 %v11555_v57, %v11554_v13  ;;  %v4071_v54 = vadd.f32 %v14721_v25, %v3094_v50  ;;  %13029 = vmatmul.mubr.msk.bf16.gmra.mrb[32].mxu1 %vm17735_vm7, %v4435_v14  ;;  %v1449_v10 = vpop.permute.xlu1 %1448  ;;  %6186 = vbcast.lane.b32.xlu0 %v13767_v20, 296  ;;  %17844 = vst [vmem:[#allocation45_spill] sm:$0xff] %v14754_v19  ;;  %v4262_v63 = vmax.f32 %v4070_v9, 0.0  ;;  %v14759_v50 = vld [vmem:[%s14333_s23 + $0x10] sm:$0xff] }
 0x1b5   : > { %v2630_v17 = vunpack.c.l.b16 %v2324_v49  ;;  %v4265_v2 = vmax.f32 %v4073_v52, 0.0  ;;  %v1445_v41 = vpop.permute.xlu0 %1444  ;;  %vm1800_vm12 = vcmp.eq.s32.totalorder %v1449_v10, %v13878_v43  ;;  %v380_v49 = vcombine.high %v14714_v60, %v14714_v60 }
 0x1b6   : > { %v2629_v13 = vunpack.c.h.b16 %v2323_v18  ;;  %v4263_v0 = vmax.f32 %v4071_v54, 0.0  ;;  %12945 = vmatmul.mubr.msk.bf16.gmra.mrb[144].mxu0 %vm12268_vm11, %v17814_v8  ;;  %vm1799_vm14 = vcmp.eq.s32.totalorder %v1445_v41, %v13878_v43  ;;  %v388_v60 = vrot.slane %v14759_v50, %v14340_v56 }
 0x1b7   : > { %v4437_v14 = vpack.c.bf16 %v4265_v2, %v4264_v42  ;;  %6198 = vbcast.lane.b32.xlu1 %v13775_v22, 296  ;;  %vm11689_vm0 = vmpackc.low %vm1800_vm12, %vm1799_vm14 }
 0x1b8   : > { %v4436_v20 = vpack.c.bf16 %v4263_v0, %v4262_v63  ;;  %v1464_v1 = vpop.permute.xlu1 %1463  ;;  %v12842_v45 = vpop.f32.mrb[40].mxu0  ;;  %v2747_v57 = vpack.c.b16 %v2630_v17, %v2629_v13  ;;  %6194 = vbcast.lane.b32.xlu0 %v13775_v22, 288 }
 0x1b9   : > { %vm1803_vm13 = vcmp.eq.s32.totalorder %v1464_v1, %v13878_v43  ;;  %v4076_v15 = vadd.f32 %v12842_v45, %v14754_v19  ;;  %v1460_v21 = vpop.permute.xlu0 %1459  ;;  %v3107_v9 = vpop.f32.mrb[41].mxu0  ;;  %v14788_v1 = vrot.slane %v380_v49, %v13701_v4 }
 0x1ba   : > { %vm1802_vm15 = vcmp.eq.s32.totalorder %v1460_v21, %v13878_v43  ;;  %v4074_v52 = vadd.f32 %v14728_v36, %v3107_v9  ;;  %12948 = vmatprep.mubr.bf16.mxu0 %v2747_v57  ;;  %v12843_v18 = vpop.f32.mrb[42].mxu0  ;;  %13032 = vmatprep.mubr.msk.bf16.mxu1 %vm17735_vm7, %v4436_v20  ;;  %v11561_v22 = vsel %vm1803_vm13, 1.0, %v17816_v16 }
 0x1bb   : > { %v11560_v54 = vsel %vm1802_vm15, 1.0, %v17816_v16  ;;  %v4077_v17 = vadd.f32 %v12843_v18, %v14754_v19  ;;  %v3110_v42 = vpop.f32.mrb[43].mxu0  ;;  %6206 = vbcast.lane.b32.xlu1 %v13785_v24, 288  ;;  %v4268_v63 = vmax.f32 %v4076_v15, 0.0  ;;  %17845 = vst [vmem:[#allocation46_spill] sm:$0xff] %v14788_v1 }
 0x1bc   : > { %v4075_v2 = vadd.f32 %v14728_v36, %v3110_v42  ;;  %13033 = vmatmul.mubr.msk.bf16.gmra.mrb[36].mxu1 %vm17735_vm7, %v4437_v14  ;;  %v1453_v13 = vpop.permute.xlu1 %1452  ;;  %6202 = vbcast.lane.b32.xlu0 %v13785_v24, 280  ;;  %v2327_v45 = vpack.c.bf16 %v11561_v22, %v11560_v54  ;;  %v4266_v57 = vmax.f32 %v4074_v52, 0.0  ;;  %v396_v14 = vcombine.high %v388_v60, %v388_v60 }
 0x1bd   : > { %v4269_v0 = vmax.f32 %v4077_v17, 0.0  ;;  %vm1801_vm1 = vcmp.eq.s32.totalorder %v1453_v13, %v13878_v43  ;;  %v1468_v20 = vpop.permute.xlu0 %1467  ;;  %v404_v17 = vrot.slane %v388_v60, %v14340_v56 }
 0x1be   : > { %v4267_v9 = vmax.f32 %v4075_v2, 0.0  ;;  %vm12270_vm2 = vmpackc.low %vm1802_vm15, %vm1801_vm1  ;;  %vm1804_vm3 = vcmp.eq.s32.totalorder %v1468_v20, %v13878_v43  ;;  %12949 = vmatmul.mubr.msk.bf16.gmra.mrb[148].mxu0 %vm11689_vm0, %v17814_v8  ;;  %v2635_v42 = vunpack.c.h.b16 %v2327_v45 }
 0x1bf   : > { %v4439_v10 = vpack.c.bf16 %v4269_v0, %v4268_v63  ;;  %v11562_v41 = vsel %vm1804_vm3, 1.0, %v17816_v16  ;;  %12952 = vmatprep.mubr.msk.bf16.mxu0 %vm12270_vm2, %v17814_v8  ;;  %6218 = vbcast.lane.b32.xlu1 %v13793_v26, 288 }
 0x1c0   : > { %v4438_v15 = vpack.c.bf16 %v4267_v9, %v4266_v57  ;;  %v2328_v49 = vpack.c.bf16 %v11562_v41, %v11562_v41  ;;  %v1479_v18 = vpop.permute.xlu1 %1478  ;;  %v12846_v52 = vpop.f32.mrb[44].mxu0  ;;  %6214 = vbcast.lane.b32.xlu0 %v13793_v26, 280  ;;  %v14806_v57 = vrot.slane %v396_v14, %v14340_v56 }
 0x1c1   : > { %v4080_v21 = vadd.f32 %v12846_v52, %v14788_v1  ;;  %v1475_v22 = vpop.permute.xlu0 %1474  ;;  %v3123_v54 = vpop.f32.mrb[45].mxu0  ;;  %vm1806_vm4 = vcmp.eq.s32.totalorder %v1479_v18, %v13878_v43  ;;  %v14813_v52 = vrot.slane %v404_v17, %v13701_v4 }
 0x1c2   : > { %v2636_v2 = vunpack.c.l.b16 %v2328_v49  ;;  %v4078_v13 = vadd.f32 %v14754_v19, %v3123_v54  ;;  %v12847_v63 = vpop.f32.mrb[46].mxu0  ;;  %13036 = vmatprep.mubr.msk.bf16.mxu1 %vm17735_vm7, %v4438_v15  ;;  %vm1805_vm5 = vcmp.eq.s32.totalorder %v1475_v22, %v13878_v43 }
 0x1c3   : > { %v4081_v0 = vadd.f32 %v12847_v63, %v14788_v1  ;;  %v3126_v20 = vpop.f32.mrb[47].mxu0  ;;  %6210 = vbcast.lane.b32.xlu1 %v13785_v24, 296  ;;  %v4272_v41 = vmax.f32 %v4080_v21, 0.0  ;;  %17846 = vst [vmem:[#allocation47_spill] sm:$0xff] %v14813_v52  ;;  %vm11691_vm6 = vmpackc.low %vm1806_vm4, %vm1805_vm5  ;;  %v426_v63 = vcombine.high %v404_v17, %v404_v17 }
 0x1c4   : > { %v4079_v60 = vadd.f32 %v14788_v1, %v3126_v20  ;;  %13037 = vmatmul.mubr.msk.bf16.gmra.mrb[40].mxu1 %vm17735_vm7, %v4439_v10  ;;  %v1490_v45 = vpop.permute.xlu1 %1489  ;;  %v2750_v9 = vpack.c.b16 %v2636_v2, %v2635_v42  ;;  %6222 = vbcast.lane.b32.xlu0 %v13793_v26, 296  ;;  %v4270_v14 = vmax.f32 %v4078_v13, 0.0  ;;  %v14820_v10 = vrot.slane %v14806_v57, %v13701_v4 }
 0x1c5   : > { %v4273_v15 = vmax.f32 %v4081_v0, 0.0  ;;  %v1483_v49 = vpop.permute.xlu0 %1482  ;;  %vm1808_vm8 = vcmp.eq.s32.totalorder %v1490_v45, %v13878_v43 }
 0x1c6   : > { %v4271_v22 = vmax.f32 %v4079_v60, 0.0  ;;  %12953 = vmatmul.mubr.bf16.gmra.mrb[152].mxu0 %v2750_v9  ;;  %17847 = vst [vmem:[#allocation48_spill] sm:$0xff] %v14820_v10  ;;  %v11566_v18 = vsel %vm1808_vm8, 1.0, %v17816_v16  ;;  %vm1807_vm10 = vcmp.eq.s32.totalorder %v1483_v49, %v13878_v43 }
 0x1c7   : > { %v4441_v24 = vpack.c.bf16 %v4273_v15, %v4272_v41  ;;  %12956 = vmatprep.mubr.msk.bf16.mxu0 %vm11691_vm6, %v17814_v8  ;;  %6230 = vbcast.lane.b32.xlu1 %v13801_v28, 288  ;;  %vm12272_vm12 = vmpackc.low %vm1808_vm8, %vm1807_vm10 }
 0x1c8   : > { %v4440_v26 = vpack.c.bf16 %v4271_v22, %v4270_v14  ;;  %v1498_v21 = vpop.permute.xlu1 %1497  ;;  %v12850_v54 = vpop.f32.mrb[48].mxu0  ;;  %6226 = vbcast.lane.b32.xlu0 %v13801_v28, 280 }
 0x1c9   : > { %vm1810_vm9 = vcmp.eq.s32.totalorder %v1498_v21, %v13878_v43  ;;  %v4084_v42 = vadd.f32 %v12850_v54, %v14813_v52  ;;  %v1494_v2 = vpop.permute.xlu0 %1493  ;;  %v3139_v13 = vpop.f32.mrb[49].mxu0 }
 0x1ca   : > { %v11568_v0 = vsel %vm1810_vm9, 1.0, %v17816_v16  ;;  %vm1809_vm11 = vcmp.eq.s32.totalorder %v1494_v2, %v13878_v43  ;;  %v4082_v20 = vadd.f32 %v14813_v52, %v3139_v13  ;;  %v12851_v60 = vpop.f32.mrb[50].mxu0  ;;  %13040 = vmatprep.mubr.msk.bf16.mxu1 %vm17735_vm7, %v4440_v26 }
 0x1cb   : > { %v2332_v9 = vpack.c.bf16 %v11568_v0, %v11568_v0  ;;  %v11567_v41 = vsel %vm1809_vm11, 1.0, %v17816_v16  ;;  %v4085_v15 = vadd.f32 %v12851_v60, %v14820_v10  ;;  %v3142_v14 = vpop.f32.mrb[51].mxu0  ;;  %6238 = vbcast.lane.b32.xlu1 %v13806_v29, 280  ;;  %v4276_v54 = vmax.f32 %v4084_v42, 0.0 }
 0x1cc   : > { %v2331_v17 = vpack.c.bf16 %v11567_v41, %v11566_v18  ;;  %v4083_v22 = vadd.f32 %v14813_v52, %v3142_v14  ;;  %13041 = vmatmul.mubr.msk.bf16.gmra.mrb[44].mxu1 %vm17735_vm7, %v4441_v24  ;;  %v1509_v21 = vpop.permute.xlu1 %1508  ;;  %6234 = vbcast.lane.b32.xlu0 %v13801_v28, 296  ;;  %v14846_v0 = vrot.slane %v426_v63, %v13701_v4  ;;  %v4274_v60 = vmax.f32 %v4082_v20, 0.0 }
 0x1cd   : > { %v2642_v26 = vunpack.c.l.b16 %v2332_v9  ;;  %v4277_v2 = vmax.f32 %v4085_v15, 0.0  ;;  %v1505_v13 = vpop.permute.xlu0 %1504  ;;  %v381_v28 = vcombine.high %v14759_v50, %v14759_v50  ;;  %vm1812_vm13 = vcmp.eq.s32.totalorder %v1509_v21, %v13878_v43 }
 0x1ce   : > { %17848 = vst [vmem:[#allocation49_spill] sm:$0xff] %v14846_v0  ;;  %v2641_v18 = vunpack.c.h.b16 %v2331_v17  ;;  %v4275_v41 = vmax.f32 %v4083_v22, 0.0  ;;  %12957 = vmatmul.mubr.msk.bf16.gmra.mrb[156].mxu0 %vm12272_vm12, %v17814_v8  ;;  %v428_v14 = vcombine.high %v14806_v57, %v14806_v57  ;;  %vm1811_vm15 = vcmp.eq.s32.totalorder %v1505_v13, %v13878_v43 }
 0x1cf   : > { %v4443_v24 = vpack.c.bf16 %v4277_v2, %v4276_v54  ;;  %6246 = vbcast.lane.b32.xlu1 %v13806_v29, 296  ;;  %v395_v57 = vrot.slane %v381_v28, %v14340_v56  ;;  %vm11693_vm1 = vmpackc.low %vm1812_vm13, %vm1811_vm15 }
 0x1d0   : > { %v4442_v45 = vpack.c.bf16 %v4275_v41, %v4274_v60  ;;  %v1524_v49 = vpop.permute.xlu1 %1523  ;;  %v12854_v9 = vpop.f32.mrb[52].mxu0  ;;  %v2753_v42 = vpack.c.b16 %v2642_v26, %v2641_v18  ;;  %6242 = vbcast.lane.b32.xlu0 %v13806_v29, 288  ;;  %v14878_v28 = vrot.slane %v428_v14, %v13701_v4 }
 0x1d1   : > { %vm1815_vm14 = vcmp.eq.s32.totalorder %v1524_v49, %v13878_v43  ;;  %v4088_v63 = vadd.f32 %v12854_v9, %v14846_v0  ;;  %v1520_v20 = vpop.permute.xlu0 %1519  ;;  %v3155_v15 = vpop.f32.mrb[53].mxu0 }
 0x1d2   : > { %vm1814_vm0 = vcmp.eq.s32.totalorder %v1520_v20, %v13878_v43  ;;  %v4086_v50 = vadd.f32 %v14820_v10, %v3155_v15  ;;  %12960 = vmatprep.mubr.bf16.mxu0 %v2753_v42  ;;  %v12855_v17 = vpop.f32.mrb[54].mxu0  ;;  %13044 = vmatprep.mubr.msk.bf16.mxu1 %vm17735_vm7, %v4442_v45  ;;  %v11573_v29 = vsel %vm1815_vm14, 1.0, %v17816_v16  ;;  %17849 = vst [vmem:[#allocation50_spill] sm:$0xff] %v14878_v28 }
 0x1d3   : > { %v11572_v22 = vsel %vm1814_vm0, 1.0, %v17816_v16  ;;  %v4089_v26 = vadd.f32 %v12855_v17, %v14846_v0  ;;  %v3158_v54 = vpop.f32.mrb[55].mxu0  ;;  %6254 = vbcast.lane.b32.xlu1 %v13813_v30, 288  ;;  %v4280_v60 = vmax.f32 %v4088_v63, 0.0 }
 0x1d4   : > { %v4087_v2 = vadd.f32 %v14820_v10, %v3158_v54  ;;  %13045 = vmatmul.mubr.msk.bf16.gmra.mrb[48].mxu1 %vm17735_vm7, %v4443_v24  ;;  %v1513_v18 = vpop.permute.xlu1 %1512  ;;  %6250 = vbcast.lane.b32.xlu0 %v13813_v30, 280  ;;  %v2335_v49 = vpack.c.bf16 %v11573_v29, %v11572_v22  ;;  %v4278_v9 = vmax.f32 %v4086_v50, 0.0  ;;  %v397_v24 = vcombine.high %v395_v57, %v395_v57 }
 0x1d5   : > { %v4281_v41 = vmax.f32 %v4089_v26, 0.0  ;;  %vm1813_vm2 = vcmp.eq.s32.totalorder %v1513_v18, %v13878_v43  ;;  %v1528_v45 = vpop.permute.xlu0 %1527  ;;  %v411_v22 = vrot.slane %v395_v57, %v14340_v56 }
 0x1d6   : > { %v4279_v42 = vmax.f32 %v4087_v2, 0.0  ;;  %vm12274_vm3 = vmpackc.low %vm1814_vm0, %vm1813_vm2  ;;  %vm1816_vm4 = vcmp.eq.s32.totalorder %v1528_v45, %v13878_v43  ;;  %12961 = vmatmul.mubr.msk.bf16.gmra.mrb[160].mxu0 %vm11693_vm1, %v17814_v8  ;;  %v2647_v26 = vunpack.c.h.b16 %v2335_v49  ;;  %v14896_v45 = vrot.slane %v397_v24, %v14340_v56 }
 0x1d7   : > { %v4445_v21 = vpack.c.bf16 %v4281_v41, %v4280_v60  ;;  %v11574_v13 = vsel %vm1816_vm4, 1.0, %v17816_v16  ;;  %12964 = vmatprep.mubr.msk.bf16.mxu0 %vm12274_vm3, %v17814_v8  ;;  %6266 = vbcast.lane.b32.xlu1 %v13818_v31, 288 }
 0x1d8   : > { %v4444_v63 = vpack.c.bf16 %v4279_v42, %v4278_v9  ;;  %v2336_v15 = vpack.c.bf16 %v11574_v13, %v11574_v13  ;;  %v1539_v14 = vpop.permute.xlu1 %1538  ;;  %v12858_v50 = vpop.f32.mrb[56].mxu0  ;;  %6262 = vbcast.lane.b32.xlu0 %v13818_v31, 280 }
 0x1d9   : > { %v4092_v20 = vadd.f32 %v12858_v50, %v14878_v28  ;;  %v1535_v17 = vpop.permute.xlu0 %1534  ;;  %v3171_v29 = vpop.f32.mrb[57].mxu0  ;;  %vm1818_vm5 = vcmp.eq.s32.totalorder %v1539_v14, %v13878_v43 }
 0x1da   : > { %v2648_v54 = vunpack.c.l.b16 %v2336_v15  ;;  %v4090_v2 = vadd.f32 %v14846_v0, %v3171_v29  ;;  %v12859_v18 = vpop.f32.mrb[58].mxu0  ;;  %13048 = vmatprep.mubr.msk.bf16.mxu1 %vm17735_vm7, %v4444_v63  ;;  %vm1817_vm6 = vcmp.eq.s32.totalorder %v1535_v17, %v13878_v43  ;;  %v14903_v15 = vrot.slane %v411_v22, %v13701_v4 }
 0x1db   : > { %v4093_v60 = vadd.f32 %v12859_v18, %v14878_v28  ;;  %v3174_v41 = vpop.f32.mrb[59].mxu0  ;;  %6258 = vbcast.lane.b32.xlu1 %v13813_v30, 296  ;;  %v4284_v42 = vmax.f32 %v4092_v20, 0.0  ;;  %vm11695_vm8 = vmpackc.low %vm1818_vm5, %vm1817_vm6 }
 0x1dc   : > { %v4091_v57 = vadd.f32 %v14878_v28, %v3174_v41  ;;  %13049 = vmatmul.mubr.msk.bf16.gmra.mrb[52].mxu1 %vm17735_vm7, %v4445_v21  ;;  %v1550_v49 = vpop.permute.xlu1 %1549  ;;  %v2756_v9 = vpack.c.b16 %v2648_v54, %v2647_v26  ;;  %6270 = vbcast.lane.b32.xlu0 %v13818_v31, 296  ;;  %17850 = vst [vmem:[#allocation51_spill] sm:$0xff] %v14903_v15  ;;  %v4282_v24 = vmax.f32 %v4090_v2, 0.0  ;;  %v17921_v28 = vld [vmem:[#allocation16_spill] sm:$0xff] }
 0x1dd   : > { %v4285_v13 = vmax.f32 %v4093_v60, 0.0  ;;  %v1543_v63 = vpop.permute.xlu0 %1542  ;;  %v14910_v21 = vrot.slane %v14896_v45, %v13701_v4  ;;  %vm1820_vm9 = vcmp.eq.s32.totalorder %v1550_v49, %v13878_v43  ;;  %v427_v2 = vcombine.high %v411_v22, %v411_v22 }
 0x1de   : > { %v4283_v50 = vmax.f32 %v4091_v57, 0.0  ;;  %12965 = vmatmul.mubr.bf16.gmra.mrb[164].mxu0 %v2756_v9  ;;  %v11578_v14 = vsel %vm1820_vm9, 1.0, %v17816_v16  ;;  %vm1819_vm11 = vcmp.eq.s32.totalorder %v1543_v63, %v13878_v43 }
 0x1df   : > { %v4447_v30 = vpack.c.bf16 %v4285_v13, %v4284_v42  ;;  %12968 = vmatprep.mubr.msk.bf16.mxu0 %vm11695_vm8, %v17814_v8  ;;  %17851 = vst [vmem:[#allocation52_spill] sm:$0xff] %v14910_v21  ;;  %6278 = vbcast.lane.b32.xlu1 %v13825_v32, 288  ;;  %vm12276_vm13 = vmpackc.low %vm1820_vm9, %vm1819_vm11 }
 0x1e0   : > { %v4446_v31 = vpack.c.bf16 %v4283_v50, %v4282_v24  ;;  %v1558_v20 = vpop.permute.xlu1 %1557  ;;  %v12862_v17 = vpop.f32.mrb[60].mxu0  ;;  %6274 = vbcast.lane.b32.xlu0 %v13825_v32, 280 }
 0x1e1   : > { %vm1822_vm10 = vcmp.eq.s32.totalorder %v1558_v20, %v13878_v43  ;;  %v4096_v29 = vadd.f32 %v12862_v17, %v14903_v15  ;;  %v1554_v26 = vpop.permute.xlu0 %1553  ;;  %v3187_v54 = vpop.f32.mrb[61].mxu0 }
 0x1e2   : > { %v11580_v18 = vsel %vm1822_vm10, 1.0, %v17816_v16  ;;  %vm1821_vm12 = vcmp.eq.s32.totalorder %v1554_v26, %v13878_v43  ;;  %v4094_v60 = vadd.f32 %v14903_v15, %v3187_v54  ;;  %v12863_v41 = vpop.f32.mrb[62].mxu0  ;;  %13052 = vmatprep.mubr.msk.bf16.mxu1 %vm17735_vm7, %v4446_v31  ;;  %v14936_v54 = vrot.slane %v427_v2, %v13701_v4 }
 0x1e3   : > { %v2340_v57 = vpack.c.bf16 %v11580_v18, %v11580_v18  ;;  %v11579_v9 = vsel %vm1821_vm12, 1.0, %v17816_v16  ;;  %v4097_v42 = vadd.f32 %v12863_v41, %v14910_v21  ;;  %v3190_v13 = vpop.f32.mrb[63].mxu0  ;;  %6286 = vbcast.lane.b32.xlu1 %v13830_v33, 280  ;;  %v4288_v20 = vmax.f32 %v4096_v29, 0.0 }
 0x1e4   : > { %v2339_v22 = vpack.c.bf16 %v11579_v9, %v11578_v14  ;;  %v4095_v24 = vadd.f32 %v14903_v15, %v3190_v13  ;;  %13053 = vmatmul.mubr.msk.bf16.gmra.mrb[56].mxu1 %vm17735_vm7, %v4447_v30  ;;  %v1569_v50 = vpop.permute.xlu1 %1568  ;;  %6282 = vbcast.lane.b32.xlu0 %v13825_v32, 296  ;;  %17852 = vst [vmem:[#allocation53_spill] sm:$0xff] %v14936_v54  ;;  %v4286_v18 = vmax.f32 %v4094_v60, 0.0  ;;  %v14941_v13 = vld [vmem:[%s14333_s23 + $0x18] sm:$0xff] }
 0x1e5   : > { %v2654_v31 = vunpack.c.l.b16 %v2340_v57  ;;  %v4289_v17 = vmax.f32 %v4097_v42, 0.0  ;;  %v1565_v26 = vpop.permute.xlu0 %1564  ;;  %vm1824_vm14 = vcmp.eq.s32.totalorder %v1569_v50, %v13878_v43  ;;  %v429_v57 = vcombine.high %v14896_v45, %v14896_v45 }
 0x1e6   : > { %v2653_v14 = vunpack.c.h.b16 %v2339_v22  ;;  %v4287_v41 = vmax.f32 %v4095_v24, 0.0  ;;  %12969 = vmatmul.mubr.msk.bf16.gmra.mrb[168].mxu0 %vm12276_vm13, %v17814_v8  ;;  %vm1823_vm0 = vcmp.eq.s32.totalorder %v1565_v26, %v13878_v43  ;;  %v437_v45 = vrot.slane %v14941_v13, %v14340_v56 }
 0x1e7   : > { %v4449_v30 = vpack.c.bf16 %v4289_v17, %v4288_v20  ;;  %6294 = vbcast.lane.b32.xlu1 %v13830_v33, 296  ;;  %vm11697_vm2 = vmpackc.low %vm1824_vm14, %vm1823_vm0 }
 0x1e8   : > { %v4448_v32 = vpack.c.bf16 %v4287_v41, %v4286_v18  ;;  %v1584_v63 = vpop.permute.xlu1 %1583  ;;  %v12866_v49 = vpop.f32.mrb[64].mxu0  ;;  %v2759_v9 = vpack.c.b16 %v2654_v31, %v2653_v14  ;;  %6290 = vbcast.lane.b32.xlu0 %v13830_v33, 288 }
 0x1e9   : > { %vm1827_vm15 = vcmp.eq.s32.totalorder %v1584_v63, %v13878_v43  ;;  %v4100_v29 = vadd.f32 %v12866_v49, %v14936_v54  ;;  %v1580_v2 = vpop.permute.xlu0 %1579  ;;  %v3203_v60 = vpop.f32.mrb[65].mxu0  ;;  %v14970_v63 = vrot.slane %v429_v57, %v13701_v4 }
 0x1ea   : > { %vm1826_vm1 = vcmp.eq.s32.totalorder %v1580_v2, %v13878_v43  ;;  %v4098_v42 = vadd.f32 %v14910_v21, %v3203_v60  ;;  %12972 = vmatprep.mubr.bf16.mxu0 %v2759_v9  ;;  %v12867_v22 = vpop.f32.mrb[66].mxu0  ;;  %13056 = vmatprep.mubr.msk.bf16.mxu1 %vm17735_vm7, %v4448_v32  ;;  %v11585_v33 = vsel %vm1827_vm15, 1.0, %v17816_v16 }
 0x1eb   : > { %v11584_v24 = vsel %vm1826_vm1, 1.0, %v17816_v16  ;;  %v4101_v31 = vadd.f32 %v12867_v22, %v14936_v54  ;;  %v3206_v20 = vpop.f32.mrb[67].mxu0  ;;  %6302 = vbcast.lane.b32.xlu1 %v13837_v34, 288  ;;  %v4292_v18 = vmax.f32 %v4100_v29, 0.0  ;;  %17853 = vst [vmem:[#allocation54_spill] sm:$0xff] %v14970_v63 }
 0x1ec   : > { %v4099_v17 = vadd.f32 %v14910_v21, %v3206_v20  ;;  %13057 = vmatmul.mubr.msk.bf16.gmra.mrb[60].mxu1 %vm17735_vm7, %v4449_v30  ;;  %v1573_v14 = vpop.permute.xlu1 %1572  ;;  %6298 = vbcast.lane.b32.xlu0 %v13837_v34, 280  ;;  %v2343_v49 = vpack.c.bf16 %v11585_v33, %v11584_v24  ;;  %v4290_v9 = vmax.f32 %v4098_v42, 0.0  ;;  %v445_v30 = vcombine.high %v437_v45, %v437_v45 }
 0x1ed   : > { %v4293_v41 = vmax.f32 %v4101_v31, 0.0  ;;  %vm1825_vm3 = vcmp.eq.s32.totalorder %v1573_v14, %v13878_v43  ;;  %v1588_v32 = vpop.permute.xlu0 %1587  ;;  %v453_v31 = vrot.slane %v437_v45, %v14340_v56 }
 0x1ee   : > { %v4291_v60 = vmax.f32 %v4099_v17, 0.0  ;;  %vm12278_vm4 = vmpackc.low %vm1826_vm1, %vm1825_vm3  ;;  %vm1828_vm5 = vcmp.eq.s32.totalorder %v1588_v32, %v13878_v43  ;;  %12973 = vmatmul.mubr.msk.bf16.gmra.mrb[172].mxu0 %vm11697_vm2, %v17814_v8  ;;  %v2659_v20 = vunpack.c.h.b16 %v2343_v49 }
 0x1ef   : > { %v4451_v50 = vpack.c.bf16 %v4293_v41, %v4292_v18  ;;  %v11586_v26 = vsel %vm1828_vm5, 1.0, %v17816_v16  ;;  %12976 = vmatprep.mubr.msk.bf16.mxu0 %vm12278_vm4, %v17814_v8  ;;  %6314 = vbcast.lane.b32.xlu1 %v13842_v35, 288 }
 0x1f0   : > { %v4450_v29 = vpack.c.bf16 %v4291_v60, %v4290_v9  ;;  %v2344_v57 = vpack.c.bf16 %v11586_v26, %v11586_v26  ;;  %v1599_v22 = vpop.permute.xlu1 %1598  ;;  %v12870_v42 = vpop.f32.mrb[68].mxu0  ;;  %6310 = vbcast.lane.b32.xlu0 %v13842_v35, 280  ;;  %v14988_v9 = vrot.slane %v445_v30, %v14340_v56 }
 0x1f1   : > { %v4104_v2 = vadd.f32 %v12870_v42, %v14970_v63  ;;  %v1595_v33 = vpop.permute.xlu0 %1594  ;;  %v3219_v24 = vpop.f32.mrb[69].mxu0  ;;  %vm1830_vm6 = vcmp.eq.s32.totalorder %v1599_v22, %v13878_v43  ;;  %v14995_v42 = vrot.slane %v453_v31, %v13701_v4 }
 0x1f2   : > { %v2660_v17 = vunpack.c.l.b16 %v2344_v57  ;;  %v4102_v14 = vadd.f32 %v14936_v54, %v3219_v24  ;;  %v12871_v18 = vpop.f32.mrb[70].mxu0  ;;  %13060 = vmatprep.mubr.msk.bf16.mxu1 %vm17735_vm7, %v4450_v29  ;;  %vm1829_vm8 = vcmp.eq.s32.totalorder %v1595_v33, %v13878_v43 }
 0x1f3   : > { %v4105_v41 = vadd.f32 %v12871_v18, %v14970_v63  ;;  %v3222_v32 = vpop.f32.mrb[71].mxu0  ;;  %6306 = vbcast.lane.b32.xlu1 %v13837_v34, 296  ;;  %v4296_v26 = vmax.f32 %v4104_v2, 0.0  ;;  %17854 = vst [vmem:[#allocation55_spill] sm:$0xff] %v14995_v42  ;;  %vm11699_vm9 = vmpackc.low %vm1830_vm6, %vm1829_vm8  ;;  %v475_v18 = vcombine.high %v453_v31, %v453_v31 }
 0x1f4   : > { %v4103_v45 = vadd.f32 %v14970_v63, %v3222_v32  ;;  %13061 = vmatmul.mubr.msk.bf16.gmra.mrb[64].mxu1 %vm17735_vm7, %v4451_v50  ;;  %v1610_v49 = vpop.permute.xlu1 %1609  ;;  %v2762_v60 = vpack.c.b16 %v2660_v17, %v2659_v20  ;;  %6318 = vbcast.lane.b32.xlu0 %v13842_v35, 296  ;;  %v4294_v30 = vmax.f32 %v4102_v14, 0.0  ;;  %v15002_v50 = vrot.slane %v14988_v9, %v13701_v4 }
 0x1f5   : > { %v4297_v29 = vmax.f32 %v4105_v41, 0.0  ;;  %v1603_v57 = vpop.permute.xlu0 %1602  ;;  %vm1832_vm10 = vcmp.eq.s32.totalorder %v1610_v49, %v13878_v43 }
 0x1f6   : > { %v4295_v33 = vmax.f32 %v4103_v45, 0.0  ;;  %12977 = vmatmul.mubr.bf16.gmra.mrb[176].mxu0 %v2762_v60  ;;  %17855 = vst [vmem:[#allocation56_spill] sm:$0xff] %v15002_v50  ;;  %v11590_v22 = vsel %vm1832_vm10, 1.0, %v17816_v16  ;;  %vm1831_vm12 = vcmp.eq.s32.totalorder %v1603_v57, %v13878_v43 }
 0x1f7   : > { %v4453_v34 = vpack.c.bf16 %v4297_v29, %v4296_v26  ;;  %12980 = vmatprep.mubr.msk.bf16.mxu0 %vm11699_vm9, %v17814_v8  ;;  %6326 = vbcast.lane.b32.xlu1 %v13853_v37, 288  ;;  %vm12280_vm14 = vmpackc.low %vm1832_vm10, %vm1831_vm12 }
 0x1f8   : > { %v4452_v35 = vpack.c.bf16 %v4295_v33, %v4294_v30  ;;  %v1618_v2 = vpop.permute.xlu1 %1617  ;;  %v12874_v24 = vpop.f32.mrb[72].mxu0  ;;  %6322 = vbcast.lane.b32.xlu0 %v13853_v37, 280 }
 0x1f9   : > { %vm1834_vm11 = vcmp.eq.s32.totalorder %v1618_v2, %v13878_v43  ;;  %v4108_v20 = vadd.f32 %v12874_v24, %v14995_v42  ;;  %v1614_v17 = vpop.permute.xlu0 %1613  ;;  %v3235_v14 = vpop.f32.mrb[73].mxu0 }
 0x1fa   : > { %v11592_v41 = vsel %vm1834_vm11, 1.0, %v17816_v16  ;;  %vm1833_vm13 = vcmp.eq.s32.totalorder %v1614_v17, %v13878_v43  ;;  %v4106_v32 = vadd.f32 %v14995_v42, %v3235_v14  ;;  %v12875_v45 = vpop.f32.mrb[74].mxu0  ;;  %13064 = vmatprep.mubr.msk.bf16.mxu1 %vm17735_vm7, %v4452_v35 }
 0x1fb   : > { %v2348_v60 = vpack.c.bf16 %v11592_v41, %v11592_v41  ;;  %v11591_v26 = vsel %vm1833_vm13, 1.0, %v17816_v16  ;;  %v4109_v29 = vadd.f32 %v12875_v45, %v15002_v50  ;;  %v3238_v30 = vpop.f32.mrb[75].mxu0  ;;  %6334 = vbcast.lane.b32.xlu1 %v13859_v38, 280  ;;  %v4300_v24 = vmax.f32 %v4108_v20, 0.0 }
 0x1fc   : > { %v2347_v31 = vpack.c.bf16 %v11591_v26, %v11590_v22  ;;  %v4107_v33 = vadd.f32 %v14995_v42, %v3238_v30  ;;  %13065 = vmatmul.mubr.msk.bf16.gmra.mrb[68].mxu1 %vm17735_vm7, %v4453_v34  ;;  %v1629_v2 = vpop.permute.xlu1 %1628  ;;  %6330 = vbcast.lane.b32.xlu0 %v13853_v37, 296  ;;  %v15028_v41 = vrot.slane %v475_v18, %v13701_v4  ;;  %v4298_v45 = vmax.f32 %v4106_v32, 0.0 }
 0x1fd   : > { %v2666_v35 = vunpack.c.l.b16 %v2348_v60  ;;  %v4301_v17 = vmax.f32 %v4109_v29, 0.0  ;;  %v1625_v14 = vpop.permute.xlu0 %1624  ;;  %v430_v37 = vcombine.high %v14941_v13, %v14941_v13  ;;  %vm1836_vm15 = vcmp.eq.s32.totalorder %v1629_v2, %v13878_v43 }
 0x1fe   : > { %17856 = vst [vmem:[#allocation57_spill] sm:$0xff] %v15028_v41  ;;  %v2665_v22 = vunpack.c.h.b16 %v2347_v31  ;;  %v4299_v26 = vmax.f32 %v4107_v33, 0.0  ;;  %12981 = vmatmul.mubr.msk.bf16.gmra.mrb[180].mxu0 %vm12280_vm14, %v17814_v8  ;;  %v477_v30 = vcombine.high %v14988_v9, %v14988_v9  ;;  %vm1835_vm1 = vcmp.eq.s32.totalorder %v1625_v14, %v13878_v43 }
 0x1ff   : > { %v4455_v34 = vpack.c.bf16 %v4301_v17, %v4300_v24  ;;  %6342 = vbcast.lane.b32.xlu1 %v13859_v38, 296  ;;  %v444_v9 = vrot.slane %v430_v37, %v14340_v56  ;;  %vm11701_vm3 = vmpackc.low %vm1836_vm15, %vm1835_vm1 }
 0x200   : > { %v4454_v49 = vpack.c.bf16 %v4299_v26, %v4298_v45  ;;  %v1644_v57 = vpop.permute.xlu1 %1643  ;;  %v12878_v60 = vpop.f32.mrb[76].mxu0  ;;  %v2765_v20 = vpack.c.b16 %v2666_v35, %v2665_v22  ;;  %6338 = vbcast.lane.b32.xlu0 %v13859_v38, 288  ;;  %v15060_v37 = vrot.slane %v477_v30, %v13701_v4 }
 0x201   : > { %vm1839_vm0 = vcmp.eq.s32.totalorder %v1644_v57, %v13878_v43  ;;  %v4112_v18 = vadd.f32 %v12878_v60, %v15028_v41  ;;  %v1640_v32 = vpop.permute.xlu0 %1639  ;;  %v3251_v29 = vpop.f32.mrb[77].mxu0 }
 0x202   : > { %vm1838_vm2 = vcmp.eq.s32.totalorder %v1640_v32, %v13878_v43  ;;  %v4110_v13 = vadd.f32 %v15002_v50, %v3251_v29  ;;  %12984 = vmatprep.mubr.bf16.mxu0 %v2765_v20  ;;  %v12879_v31 = vpop.f32.mrb[78].mxu0  ;;  %13068 = vmatprep.mubr.msk.bf16.mxu1 %vm17735_vm7, %v4454_v49  ;;  %v11597_v38 = vsel %vm1839_vm0, 1.0, %v17816_v16  ;;  %17857 = vst [vmem:[#allocation58_spill] sm:$0xff] %v15060_v37 }
 0x203   : > { %v11596_v33 = vsel %vm1838_vm2, 1.0, %v17816_v16  ;;  %v4113_v35 = vadd.f32 %v12879_v31, %v15028_v41  ;;  %v3254_v24 = vpop.f32.mrb[79].mxu0  ;;  %6350 = vbcast.lane.b32.xlu1 %v13867_v39, 288  ;;  %v4304_v45 = vmax.f32 %v4112_v18, 0.0  ;;  %v460_v31 = vrot.slane %v444_v9, %v14340_v56 }
 0x204   : > { %v4111_v17 = vadd.f32 %v15002_v50, %v3254_v24  ;;  %13069 = vmatmul.mubr.msk.bf16.gmra.mrb[72].mxu1 %vm17735_vm7, %v4455_v34  ;;  %v1633_v22 = vpop.permute.xlu1 %1632  ;;  %6346 = vbcast.lane.b32.xlu0 %v13867_v39, 280  ;;  %v2351_v57 = vpack.c.bf16 %v11597_v38, %v11596_v33  ;;  %v4302_v60 = vmax.f32 %v4110_v13, 0.0  ;;  %v446_v34 = vcombine.high %v444_v9, %v444_v9 }
 0x205   : > { %v4305_v26 = vmax.f32 %v4113_v35, 0.0  ;;  %vm1837_vm4 = vcmp.eq.s32.totalorder %v1633_v22, %v13878_v43  ;;  %v1648_v49 = vpop.permute.xlu0 %1647 }
 0x206   : > { %v4303_v20 = vmax.f32 %v4111_v17, 0.0  ;;  %vm12282_vm5 = vmpackc.low %vm1838_vm2, %vm1837_vm4  ;;  %vm1840_vm6 = vcmp.eq.s32.totalorder %v1648_v49, %v13878_v43  ;;  %12985 = vmatmul.mubr.msk.bf16.gmra.mrb[184].mxu0 %vm11701_vm3, %v17814_v8  ;;  %v2671_v38 = vunpack.c.h.b16 %v2351_v57 }
 0x207   : > { %v4457_v2 = vpack.c.bf16 %v4305_v26, %v4304_v45  ;;  %v11598_v14 = vsel %vm1840_vm6, 1.0, %v17816_v16  ;;  %12988 = vmatprep.mubr.msk.bf16.mxu0 %vm12282_vm5, %v17814_v8  ;;  %6362 = vbcast.lane.b32.xlu1 %v13873_v40, 288  ;;  %v474_v45 = vrot.slane %v446_v34, %v14340_v56 }
 0x208   : > { %v4456_v18 = vpack.c.bf16 %v4303_v20, %v4302_v60  ;;  %v2352_v29 = vpack.c.bf16 %v11598_v14, %v11598_v14  ;;  %v12882_v30 = vpop.f32.mrb[80].mxu0  ;;  %6358 = vbcast.lane.b32.xlu0 %v13873_v40, 280  ;;  %v15081_v60 = vrot.slane %v460_v31, %v13701_v4 }
 0x209   : > { %v4116_v32 = vadd.f32 %v12882_v30, %v15060_v37  ;;  %v3267_v13 = vpop.f32.mrb[81].mxu0  ;;  %v15084_v34 = vrot.slane %v474_v45, %v13701_v4  ;;  %v476_v30 = vcombine.high %v460_v31, %v460_v31 }
 0x20a   : > { %v2672_v33 = vunpack.c.l.b16 %v2352_v29  ;;  %v4114_v35 = vadd.f32 %v15028_v41, %v3267_v13  ;;  %v12883_v24 = vpop.f32.mrb[82].mxu0  ;;  %13072 = vmatprep.mubr.msk.bf16.mxu1 %vm17735_vm7, %v4456_v18  ;;  %17858 = vst [vmem:[#allocation59_spill] sm:$0xff] %v15081_v60 }
 0x20b   : > { %v4117_v17 = vadd.f32 %v12883_v24, %v15060_v37  ;;  %v3270_v22 = vpop.f32.mrb[83].mxu0  ;;  %6354 = vbcast.lane.b32.xlu1 %v13867_v39, 296  ;;  %v4308_v9 = vmax.f32 %v4116_v32, 0.0  ;;  %17859 = vst [vmem:[#allocation60_spill] sm:$0xff] %v15084_v34  ;;  %v15097_v31 = vrot.slane %v476_v30, %v13701_v4 }
 0x20c   : > { %v4115_v26 = vadd.f32 %v15060_v37, %v3270_v22  ;;  %13073 = vmatmul.mubr.msk.bf16.gmra.mrb[76].mxu1 %vm17735_vm7, %v4457_v2  ;;  %v2768_v49 = vpack.c.b16 %v2672_v33, %v2671_v38  ;;  %6366 = vbcast.lane.b32.xlu0 %v13873_v40, 296  ;;  %v4306_v20 = vmax.f32 %v4114_v35, 0.0  ;;  %v17901_v37 = vld [vmem:[#allocation12_spill] sm:$0xff] }
 0x20d   : > { %v4309_v57 = vmax.f32 %v4117_v17, 0.0  ;;  %17860 = vst [vmem:[#allocation61_spill] sm:$0xff] %v15097_v31 }
 0x20e   : > { %v4307_v14 = vmax.f32 %v4115_v26, 0.0  ;;  %12989 = vmatmul.mubr.bf16.gmra.mrb[188].mxu0 %v2768_v49 }
 0x20f   : > { %v4459_v18 = vpack.c.bf16 %v4309_v57, %v4308_v9  ;;  %6374 = vbcast.lane.b32.xlu1 %v13884_v44, 288 }
 0x210   : > { %v4458_v39 = vpack.c.bf16 %v4307_v14, %v4306_v20  ;;  %v12886_v29 = vpop.f32.mrb[84].mxu0  ;;  %6370 = vbcast.lane.b32.xlu0 %v13884_v44, 280  ;;  %v15101_v20 = vld [vmem:[%s14333_s23 + $0x20] sm:$0xff] }
 0x211   : > { %v4120_v40 = vadd.f32 %v12886_v29, %v15081_v60  ;;  %v3283_v2 = vpop.f32.mrb[85].mxu0  ;;  %v486_v30 = vrot.slane %v15101_v20, %v14340_v56 }
 0x212   : > { %v4118_v32 = vadd.f32 %v15081_v60, %v3283_v2  ;;  %v12887_v13 = vpop.f32.mrb[86].mxu0  ;;  %13076 = vmatprep.mubr.msk.bf16.mxu1 %vm17735_vm7, %v4458_v39 }
 0x213   : > { %v4121_v38 = vadd.f32 %v12887_v13, %v15084_v34  ;;  %v3286_v33 = vpop.f32.mrb[87].mxu0  ;;  %6382 = vbcast.lane.b32.xlu1 %v13894_v47, 280  ;;  %v4312_v24 = vmax.f32 %v4120_v40, 0.0 }
 0x214   : > { %v4119_v35 = vadd.f32 %v15081_v60, %v3286_v33  ;;  %13077 = vmatmul.mubr.msk.bf16.gmra.mrb[80].mxu1 %vm17735_vm7, %v4459_v18  ;;  %6378 = vbcast.lane.b32.xlu0 %v13884_v44, 296  ;;  %v4310_v22 = vmax.f32 %v4118_v32, 0.0  ;;  %v478_v44 = vcombine.high %v474_v45, %v474_v45 }
 0x215   : > { %v4313_v17 = vmax.f32 %v4121_v38, 0.0 }
 0x216   : > { %v4311_v26 = vmax.f32 %v4119_v35, 0.0  ;;  %v15115_v13 = vrot.slane %v478_v44, %v13701_v4 }
 0x217   : > { %v4461_v49 = vpack.c.bf16 %v4313_v17, %v4312_v24  ;;  %6390 = vbcast.lane.b32.xlu1 %v13894_v47, 296  ;;  %v494_v24 = vcombine.high %v486_v30, %v486_v30 }
 0x218   : > { %v4460_v9 = vpack.c.bf16 %v4311_v26, %v4310_v22  ;;  %v12890_v57 = vpop.f32.mrb[88].mxu0  ;;  %6386 = vbcast.lane.b32.xlu0 %v13894_v47, 288  ;;  %17861 = vst [vmem:[#allocation62_spill] sm:$0xff] %v15115_v13 }
 0x219   : > { %v4124_v14 = vadd.f32 %v12890_v57, %v15097_v31  ;;  %v3299_v18 = vpop.f32.mrb[89].mxu0 }
 0x21a   : > { %v4122_v39 = vadd.f32 %v15084_v34, %v3299_v18  ;;  %v12891_v29 = vpop.f32.mrb[90].mxu0  ;;  %13080 = vmatprep.mubr.msk.bf16.mxu1 %vm17735_vm7, %v4460_v9  ;;  %v502_v9 = vrot.slane %v486_v30, %v14340_v56 }
 0x21b   : > { %v4125_v40 = vadd.f32 %v12891_v29, %v15097_v31  ;;  %v3302_v2 = vpop.f32.mrb[91].mxu0  ;;  %6398 = vbcast.lane.b32.xlu1 %v13909_v61, 288  ;;  %v4316_v47 = vmax.f32 %v4124_v14, 0.0 }
 0x21c   : > { %v4123_v32 = vadd.f32 %v15084_v34, %v3302_v2  ;;  %13081 = vmatmul.mubr.msk.bf16.gmra.mrb[84].mxu1 %vm17735_vm7, %v4461_v49  ;;  %6394 = vbcast.lane.b32.xlu0 %v13909_v61, 280  ;;  %v4314_v38 = vmax.f32 %v4122_v39, 0.0  ;;  %v516_v39 = vrot.slane %v494_v24, %v14340_v56  ;;  %v15130_v30 = vrot.slane %v502_v9, %v13701_v4 }
 0x21d   : > { %v4317_v45 = vmax.f32 %v4125_v40, 0.0  ;;  %v524_v24 = vcombine.high %v502_v9, %v502_v9 }
 0x21e   : > { %v4315_v33 = vmax.f32 %v4123_v32, 0.0  ;;  %17862 = vst [vmem:[#allocation63_spill] sm:$0xff] %v15130_v30 }
 0x21f   : > { %v4463_v35 = vpack.c.bf16 %v4317_v45, %v4316_v47  ;;  %6410 = vbcast.lane.b32.xlu1 %v13921_v7, 288  ;;  %v15146_v9 = vrot.slane %v524_v24, %v13701_v4 }
 0x220   : > { %v4462_v17 = vpack.c.bf16 %v4315_v33, %v4314_v38  ;;  %v12894_v22 = vpop.f32.mrb[92].mxu0  ;;  %6406 = vbcast.lane.b32.xlu0 %v13921_v7, 280  ;;  %v15133_v38 = vrot.slane %v516_v39, %v13701_v4 }
 0x221   : > { %v4128_v26 = vadd.f32 %v12894_v22, %v15115_v13  ;;  %v3315_v49 = vpop.f32.mrb[93].mxu0  ;;  %17864 = vst [vmem:[#allocation65_spill] sm:$0xff] %v15146_v9 }
 0x222   : > { %v4126_v57 = vadd.f32 %v15097_v31, %v3315_v49  ;;  %v12895_v14 = vpop.f32.mrb[94].mxu0  ;;  %13084 = vmatprep.mubr.msk.bf16.mxu1 %vm17735_vm7, %v4462_v17  ;;  %17863 = vst [vmem:[#allocation64_spill] sm:$0xff] %v15133_v38 }
 0x223   : > { %v4129_v18 = vadd.f32 %v12895_v14, %v15115_v13  ;;  %v3318_v44 = vpop.f32.mrb[95].mxu0  ;;  %6402 = vbcast.lane.b32.xlu1 %v13909_v61, 296  ;;  %v4320_v40 = vmax.f32 %v4128_v26, 0.0 }
 0x224   : > { %v4127_v29 = vadd.f32 %v15115_v13, %v3318_v44  ;;  %13085 = vmatmul.mubr.msk.bf16.gmra.mrb[88].mxu1 %vm17735_vm7, %v4463_v35  ;;  %6414 = vbcast.lane.b32.xlu0 %v13921_v7, 296  ;;  %v4318_v32 = vmax.f32 %v4126_v57, 0.0 }
 0x225   : > { %v4321_v2 = vmax.f32 %v4129_v18, 0.0 }
 0x226   : > { %v4319_v47 = vmax.f32 %v4127_v29, 0.0 }
 0x227   : > { %v4465_v45 = vpack.c.bf16 %v4321_v2, %v4320_v40  ;;  %6422 = vbcast.lane.b32.xlu1 %v13937_v46, 288  ;;  %v479_v2 = vcombine.high %v15101_v20, %v15101_v20 }
 0x228   : > { %v4464_v61 = vpack.c.bf16 %v4319_v47, %v4318_v32  ;;  %v12898_v33 = vpop.f32.mrb[96].mxu0  ;;  %6418 = vbcast.lane.b32.xlu0 %v13937_v46, 280 }
 0x229   : > { %v4132_v35 = vadd.f32 %v12898_v33, %v15130_v30  ;;  %v3331_v7 = vpop.f32.mrb[97].mxu0  ;;  %v493_v20 = vrot.slane %v479_v2, %v14340_v56 }
 0x22a   : > { %v4130_v17 = vadd.f32 %v15130_v30, %v3331_v7  ;;  %v12899_v22 = vpop.f32.mrb[98].mxu0  ;;  %13088 = vmatprep.mubr.msk.bf16.mxu1 %vm17735_vm7, %v4464_v61  ;;  %v526_v61 = vcombine.high %v516_v39, %v516_v39 }
 0x22b   : > { %v4133_v26 = vadd.f32 %v12899_v22, %v15133_v38  ;;  %v3334_v49 = vpop.f32.mrb[99].mxu0  ;;  %6430 = vbcast.lane.b32.xlu1 %v13945_v53, 280  ;;  %v4324_v14 = vmax.f32 %v4132_v35, 0.0 }
 0x22c   : > { %v4131_v57 = vadd.f32 %v15130_v30, %v3334_v49  ;;  %13089 = vmatmul.mubr.msk.bf16.gmra.mrb[92].mxu1 %vm17735_vm7, %v4465_v45  ;;  %6426 = vbcast.lane.b32.xlu0 %v13937_v46, 296  ;;  %v4322_v44 = vmax.f32 %v4130_v17, 0.0  ;;  %v15162_v22 = vrot.slane %v526_v61, %v13701_v4 }
 0x22d   : > { %v4325_v18 = vmax.f32 %v4133_v26, 0.0 }
 0x22e   : > { %v4323_v29 = vmax.f32 %v4131_v57, 0.0  ;;  %17865 = vst [vmem:[#allocation66_spill] sm:$0xff] %v15162_v22 }
 0x22f   : > { %v4467_v40 = vpack.c.bf16 %v4325_v18, %v4324_v14  ;;  %6438 = vbcast.lane.b32.xlu1 %v13945_v53, 296  ;;  %v495_v14 = vcombine.high %v493_v20, %v493_v20  ;;  %v17866_v18 = vld [vmem:[#allocation2_spill] sm:$0xff] }
 0x230   : > { %v4466_v32 = vpack.c.bf16 %v4323_v29, %v4322_v44  ;;  %v12902_v47 = vpop.f32.mrb[100].mxu0  ;;  %6434 = vbcast.lane.b32.xlu0 %v13945_v53, 288 }
 0x231   : > { %v4136_v45 = vadd.f32 %v12902_v47, %v15146_v9  ;;  %v3347_v46 = vpop.f32.mrb[101].mxu0 }
 0x232   : > { %v4134_v33 = vadd.f32 %v15133_v38, %v3347_v46  ;;  %v12903_v35 = vpop.f32.mrb[102].mxu0  ;;  %13092 = vmatprep.mubr.msk.bf16.mxu1 %vm17735_vm7, %v4466_v32  ;;  %v509_v32 = vrot.slane %v493_v20, %v14340_v56 }
 0x233   : > { %v4137_v7 = vadd.f32 %v12903_v35, %v15146_v9  ;;  %v3350_v24 = vpop.f32.mrb[103].mxu0  ;;  %6446 = vbcast.lane.b32.xlu1 %v13962_v5, 288  ;;  %v4328_v53 = vmax.f32 %v4136_v45, 0.0 }
 0x234   : > { %v4135_v17 = vadd.f32 %v15133_v38, %v3350_v24  ;;  %13093 = vmatmul.mubr.msk.bf16.gmra.mrb[96].mxu1 %vm17735_vm7, %v4467_v40  ;;  %6442 = vbcast.lane.b32.xlu0 %v13962_v5, 280  ;;  %v4326_v26 = vmax.f32 %v4134_v33, 0.0  ;;  %v15172_v33 = vrot.slane %v495_v14, %v14340_v56  ;;  %v15179_v20 = vrot.slane %v509_v32, %v13701_v4 }
 0x235   : > { %v4329_v39 = vmax.f32 %v4137_v7, 0.0 }
 0x236   : > { %v4327_v49 = vmax.f32 %v4135_v17, 0.0  ;;  %17867 = vst [vmem:[#allocation2_spill] sm:$0xff] %v15179_v20 }
 0x237   : > { %v4469_v57 = vpack.c.bf16 %v4329_v39, %v4328_v53  ;;  %6458 = vbcast.lane.b32.xlu1 %v17866_v18, 288 }
 0x238   : > { %v4468_v44 = vpack.c.bf16 %v4327_v49, %v4326_v26  ;;  %v12906_v29 = vpop.f32.mrb[104].mxu0  ;;  %6454 = vbcast.lane.b32.xlu0 %v17866_v18, 280  ;;  %v15183_v26 = vrot.slane %v15172_v33, %v13701_v4  ;;  %v17869_v49 = vld [vmem:[#allocation3_spill] sm:$0xff] }
 0x239   : > { %v4140_v2 = vadd.f32 %v12906_v29, %v15162_v22  ;;  %v3363_v40 = vpop.f32.mrb[105].mxu0 }
 0x23a   : > { %v4138_v47 = vadd.f32 %v15146_v9, %v3363_v40  ;;  %v12907_v45 = vpop.f32.mrb[106].mxu0  ;;  %13096 = vmatprep.mubr.msk.bf16.mxu1 %vm17735_vm7, %v4468_v44  ;;  %17868 = vst [vmem:[#allocation67_spill] sm:$0xff] %v15183_v26  ;;  %v525_v44 = vcombine.high %v509_v32, %v509_v32 }
 0x23b   : > { %v4141_v46 = vadd.f32 %v12907_v45, %v15162_v22  ;;  %v3366_v61 = vpop.f32.mrb[107].mxu0  ;;  %6450 = vbcast.lane.b32.xlu1 %v13962_v5, 296  ;;  %v4332_v7 = vmax.f32 %v4140_v2, 0.0 }
 0x23c   : > { %v4139_v35 = vadd.f32 %v15162_v22, %v3366_v61  ;;  %13097 = vmatmul.mubr.msk.bf16.gmra.mrb[100].mxu1 %vm17735_vm7, %v4469_v57  ;;  %6462 = vbcast.lane.b32.xlu0 %v17866_v18, 296  ;;  %v4330_v17 = vmax.f32 %v4138_v47, 0.0  ;;  %v17870_v61 = vld [vmem:[#allocation4_spill] sm:$0xff] }
 0x23d   : > { %v4333_v24 = vmax.f32 %v4141_v46, 0.0 }
 0x23e   : > { %v4331_v53 = vmax.f32 %v4139_v35, 0.0 }
 0x23f   : > { %v4471_v39 = vpack.c.bf16 %v4333_v24, %v4332_v7  ;;  %6470 = vbcast.lane.b32.xlu1 %v17869_v49, 288 }
 0x240   : > { %v4470_v5 = vpack.c.bf16 %v4331_v53, %v4330_v17  ;;  %v12910_v14 = vpop.f32.mrb[108].mxu0  ;;  %6466 = vbcast.lane.b32.xlu0 %v17869_v49, 280  ;;  %v15196_v53 = vrot.slane %v525_v44, %v13701_v4 }
 0x241   : > { %v4144_v57 = vadd.f32 %v12910_v14, %v15179_v20  ;;  %v3379_v18 = vpop.f32.mrb[109].mxu0 }
 0x242   : > { %v4142_v29 = vadd.f32 %v15179_v20, %v3379_v18  ;;  %v12998_v2 = vpop.f32.mrb[0].mxu1  ;;  %v12911_v40 = vpop.f32.mrb[110].mxu0  ;;  %13100 = vmatprep.mubr.msk.bf16.mxu1 %vm17735_vm7, %v4470_v5  ;;  %17871 = vst [vmem:[#allocation3_spill] sm:$0xff] %v15196_v53 }
 0x243   : > { %v4145_v47 = vadd.f32 %v12911_v40, %v15183_v26  ;;  %v4849_v45 = vpop.f32.mrb[1].mxu1  ;;  %v3382_v46 = vpop.f32.mrb[111].mxu0  ;;  %6478 = vbcast.lane.b32.xlu1 %v17870_v61, 280  ;;  %v4336_v32 = vmax.f32 %v4144_v57, 0.0 }
 0x244   : > { %v4143_v35 = vadd.f32 %v15179_v20, %v3382_v46  ;;  %v12999_v7 = vpop.f32.mrb[2].mxu1  ;;  %13101 = vmatmul.mubr.msk.bf16.gmra.mrb[104].mxu1 %vm17735_vm7, %v4471_v39  ;;  %6474 = vbcast.lane.b32.xlu0 %v17869_v49, 296  ;;  %v4334_v5 = vmax.f32 %v4142_v29, 0.0  ;;  %v527_v29 = vcombine.high %v15172_v33, %v15172_v33 }
 0x245   : > { %v4337_v24 = vmax.f32 %v4145_v47, 0.0  ;;  %v4852_v17 = vpop.f32.mrb[3].mxu1  ;;  %v15208_v47 = vld [vmem:[%s14333_s23 + $0x28] sm:$0xff] }
 0x246   : > { %v4335_v14 = vmax.f32 %v4143_v35, 0.0  ;;  %v5616_v18 = vmax.f32 %v4849_v45, %v4852_v17  ;;  %v17873_v35 = vld [vmem:[#allocation5_spill] sm:$0xff]  ;;  %v535_v33 = vrot.slane %v15208_v47, %v14340_v56 }
 0x247   : > { %v4473_v40 = vpack.c.bf16 %v4337_v24, %v4336_v32  ;;  %6486 = vbcast.lane.b32.xlu1 %v17870_v61, 296 }
 0x248   : > { %v4472_v22 = vpack.c.bf16 %v4335_v14, %v4334_v5  ;;  %v15199_v46 = vmax.f32 %v5616_v18, %v12998_v2  ;;  %v12914_v20 = vpop.f32.mrb[112].mxu0  ;;  %6482 = vbcast.lane.b32.xlu0 %v17870_v61, 288 }
 0x249   : > { %v4148_v39 = vadd.f32 %v12914_v20, %v15196_v53  ;;  %v3395_v49 = vpop.f32.mrb[113].mxu0 }
 0x24a   : > { %17872 = vst [vmem:[#allocation4_spill] sm:$0xff] %v15199_v46  ;;  %v4146_v57 = vadd.f32 %v15183_v26, %v3395_v49  ;;  %v12915_v44 = vpop.f32.mrb[114].mxu0  ;;  %13104 = vmatprep.mubr.msk.bf16.mxu1 %vm17735_vm7, %v4472_v22  ;;  %v15218_v49 = vrot.slane %v527_v29, %v13701_v4  ;;  %v17875_v46 = vld [vmem:[#allocation6_spill] sm:$0xff] }
 0x24b   : > { %v4149_v45 = vadd.f32 %v12915_v44, %v15196_v53  ;;  %v3398_v2 = vpop.f32.mrb[115].mxu0  ;;  %6494 = vbcast.lane.b32.xlu1 %v17873_v35, 288  ;;  %v4340_v20 = vmax.f32 %v4148_v39, 0.0 }
 0x24c   : > { %v4147_v61 = vadd.f32 %v15183_v26, %v3398_v2  ;;  %v13002_v32 = vpop.f32.mrb[4].mxu1  ;;  %13105 = vmatmul.mubr.msk.bf16.gmra.mrb[108].mxu1 %vm17735_vm7, %v4473_v40  ;;  %6490 = vbcast.lane.b32.xlu0 %v17873_v35, 280  ;;  %v4338_v17 = vmax.f32 %v4146_v57, 0.0  ;;  %17874 = vst [vmem:[#allocation5_spill] sm:$0xff] %v15218_v49 }
 0x24d   : > { %v4341_v24 = vmax.f32 %v4149_v45, 0.0  ;;  %v4865_v22 = vpop.f32.mrb[5].mxu1  ;;  %v543_v45 = vcombine.high %v535_v33, %v535_v33 }
 0x24e   : > { %v4339_v5 = vmax.f32 %v4147_v61, 0.0  ;;  %v5624_v14 = vmax.f32 %v12999_v7, %v4865_v22  ;;  %v13003_v18 = vpop.f32.mrb[6].mxu1 }
 0x24f   : > { %v4475_v44 = vpack.c.bf16 %v4341_v24, %v4340_v20  ;;  %v5632_v2 = vmax.f32 %v13002_v32, %v13003_v18  ;;  %v4868_v26 = vpop.f32.mrb[7].mxu1  ;;  %6506 = vbcast.lane.b32.xlu1 %v17875_v46, 288  ;;  %v551_v32 = vrot.slane %v535_v33, %v14340_v56  ;;  %v565_v22 = vrot.slane %v543_v45, %v14340_v56 }
 0x250   : > { %v4474_v40 = vpack.c.bf16 %v4339_v5, %v4338_v17  ;;  %v15221_v9 = vmax.f32 %v5624_v14, %v4868_v26  ;;  %6502 = vbcast.lane.b32.xlu0 %v17875_v46, 280 }
 0x251   : > { %v12918_v39 = vpop.f32.mrb[116].mxu0  ;;  %v15235_v33 = vrot.slane %v551_v32, %v13701_v4 }
 0x252   : > { %17876 = vst [vmem:[#allocation6_spill] sm:$0xff] %v15221_v9  ;;  %v4152_v57 = vadd.f32 %v12918_v39, %v15218_v49  ;;  %v3411_v61 = vpop.f32.mrb[117].mxu0  ;;  %13108 = vmatprep.mubr.msk.bf16.mxu1 %vm17735_vm7, %v4474_v40 }
 0x253   : > { %v4150_v7 = vadd.f32 %v15196_v53, %v3411_v61  ;;  %v12919_v29 = vpop.f32.mrb[118].mxu0  ;;  %6498 = vbcast.lane.b32.xlu1 %v17873_v35, 296  ;;  %17877 = vst [vmem:[#allocation68_spill] sm:$0xff] %v15235_v33  ;;  %v17878_v35 = vld [vmem:[#allocation7_spill] sm:$0xff] }
 0x254   : > { %v4153_v20 = vadd.f32 %v12919_v29, %v15218_v49  ;;  %v3414_v26 = vpop.f32.mrb[119].mxu0  ;;  %13109 = vmatmul.mubr.msk.bf16.gmra.mrb[112].mxu1 %vm17735_vm7, %v4475_v44  ;;  %6510 = vbcast.lane.b32.xlu0 %v17875_v46, 296  ;;  %v4344_v17 = vmax.f32 %v4152_v57, 0.0  ;;  %v15242_v57 = vrot.slane %v565_v22, %v13701_v4 }
 0x255   : > { %v4151_v24 = vadd.f32 %v15218_v49, %v3414_v26  ;;  %v4342_v18 = vmax.f32 %v4150_v7, 0.0 }
 0x256   : > { %v4345_v5 = vmax.f32 %v4153_v20, 0.0  ;;  %v13006_v14 = vpop.f32.mrb[8].mxu1  ;;  %17880 = vst [vmem:[#allocation69_spill] sm:$0xff] %v15242_v57 }
 0x257   : > { %v4343_v40 = vmax.f32 %v4151_v24, 0.0  ;;  %v4881_v39 = vpop.f32.mrb[9].mxu1  ;;  %6518 = vbcast.lane.b32.xlu1 %v17878_v35, 288  ;;  %v573_v24 = vcombine.high %v551_v32, %v551_v32 }
 0x258   : > { %v4477_v61 = vpack.c.bf16 %v4345_v5, %v4344_v17  ;;  %v15238_v29 = vmax.f32 %v5632_v2, %v4881_v39  ;;  %v13007_v44 = vpop.f32.mrb[10].mxu1  ;;  %6514 = vbcast.lane.b32.xlu0 %v17878_v35, 280 }
 0x259   : > { %v4476_v46 = vpack.c.bf16 %v4343_v40, %v4342_v18  ;;  %v12922_v26 = vpop.f32.mrb[120].mxu0  ;;  %v4884_v45 = vpop.f32.mrb[11].mxu1  ;;  %v15253_v40 = vrot.slane %v573_v24, %v13701_v4 }
 0x25a   : > { %17879 = vst [vmem:[#allocation7_spill] sm:$0xff] %v15238_v29  ;;  %v3427_v7 = vpop.f32.mrb[121].mxu0  ;;  %v5640_v20 = vmax.f32 %v4884_v45, %v13006_v14  ;;  %v4156_v49 = vadd.f32 %v12922_v26, %v15235_v33 }
 0x25b   : > { %v4154_v53 = vadd.f32 %v15235_v33, %v3427_v7  ;;  %v12923_v9 = vpop.f32.mrb[122].mxu0  ;;  %13112 = vmatprep.mubr.msk.bf16.mxu1 %vm17735_vm7, %v4476_v46  ;;  %17882 = vst [vmem:[#allocation71_spill] sm:$0xff] %v15253_v40 }
 0x25c   : > { %v15247_v2 = vmax.f32 %v5640_v20, %v13007_v44  ;;  %v3430_v17 = vpop.f32.mrb[123].mxu0  ;;  %13113 = vmatmul.mubr.msk.bf16.gmra.mrb[116].mxu1 %vm17735_vm7, %v4477_v61  ;;  %v4157_v5 = vadd.f32 %v12923_v9, %v15242_v57  ;;  %v4348_v32 = vmax.f32 %v4156_v49, 0.0  ;;  %v528_v44 = vcombine.high %v15208_v47, %v15208_v47 }
 0x25d   : > { %v4155_v18 = vadd.f32 %v15235_v33, %v3430_v17  ;;  %v4346_v14 = vmax.f32 %v4154_v53, 0.0  ;;  %v575_v33 = vcombine.high %v565_v22, %v565_v22 }
 0x25e   : > { %17881 = vst [vmem:[#allocation70_spill] sm:$0xff] %v15247_v2  ;;  %v4349_v39 = vmax.f32 %v4157_v5, 0.0  ;;  %v542_v47 = vrot.slane %v528_v44, %v14340_v56 }
 0x25f   : > { %v4347_v26 = vmax.f32 %v4155_v18, 0.0  ;;  %v13010_v45 = vpop.f32.mrb[12].mxu1 }
 0x260   : > { %v4897_v7 = vpop.f32.mrb[13].mxu1  ;;  %v4479_v46 = vpack.c.bf16 %v4349_v39, %v4348_v32  ;;  %v6135_v32 = vpop.permute.xlu1 %6134  ;;  %v544_v38 = vcombine.high %v542_v47, %v542_v47 }
 0x261   : > { %v4478_v20 = vpack.c.bf16 %v4347_v26, %v4346_v14  ;;  %v12926_v2 = vpop.f32.mrb[124].mxu0  ;;  %v13011_v61 = vpop.f32.mrb[14].mxu1  ;;  %v17883_v14 = vld [vmem:[#allocation8_spill] sm:$0xff]  ;;  %vm6897_vm8 = vcmp.eq.s32.totalorder %v6135_v32, %v13878_v43 }
 0x262   : > { %v4160_v9 = vadd.f32 %v12926_v2, %v15253_v40  ;;  %v3443_v29 = vpop.f32.mrb[125].mxu0  ;;  %v4900_v17 = vpop.f32.mrb[15].mxu1  ;;  %6526 = vbcast.lane.b32.xlu1 %v17883_v14, 280 }
 0x263   : > { %v4158_v24 = vadd.f32 %v15242_v57, %v3443_v29  ;;  %v5648_v49 = vmax.f32 %v4897_v7, %v4900_v17  ;;  %v12927_v53 = vpop.f32.mrb[126].mxu0  ;;  %13116 = vmatprep.mubr.msk.bf16.mxu1 %vm17735_vm7, %v4478_v20  ;;  %v6131_v39 = vpop.permute.xlu0 %6130  ;;  %6522 = vbcast.lane.b32.xlu0 %v17878_v35, 296  ;;  %v15269_v7 = vrot.slane %v575_v33, %v13701_v4 }
 0x264   : > { %v4161_v5 = vadd.f32 %v12927_v53, %v15253_v40  ;;  %v3446_v18 = vpop.f32.mrb[127].mxu0  ;;  %13117 = vmatmul.mubr.msk.bf16.gmra.mrb[120].mxu1 %vm17735_vm7, %v4479_v46  ;;  %v4352_v29 = vmax.f32 %v4160_v9, 0.0  ;;  %v6143_v30 = vpop.permute.xlu1 %6142  ;;  %v15273_v35 = vrot.slane %v542_v47, %v14340_v56  ;;  %vm6896_vm9 = vcmp.eq.s32.totalorder %v6131_v39, %v13878_v43 }
 0x265   : > { %v15264_v2 = vmax.f32 %v5648_v49, %v13010_v45  ;;  %v4159_v22 = vadd.f32 %v15242_v57, %v3446_v18  ;;  %17885 = vst [vmem:[#allocation72_spill] sm:$0xff] %v15269_v7  ;;  %v4350_v20 = vmax.f32 %v4158_v24, 0.0  ;;  %vm15282_vm10 = vmpackc.low %vm6897_vm8, %vm6896_vm9  ;;  %v15290_v39 = vrot.slane %v544_v38, %v14340_v56  ;;  %v13635_v38 = vld [vmem:[%s17545_s3 + $0x8] sm:$0xff]  }
 0x266   : > { %v4353_v26 = vmax.f32 %v4161_v5, 0.0  ;;  %6534 = vbcast.lane.b32.xlu1 %v17883_v14, 296  ;;  %vm6899_vm11 = vcmp.eq.s32.totalorder %v6143_v30, %v13878_v43 }
 0x267   : > { %17884 = vst [vmem:[#allocation8_spill] sm:$0xff] %v15264_v2  ;;  %v4351_v17 = vmax.f32 %v4159_v22, 0.0  ;;  %v13014_v46 = vpop.f32.mrb[16].mxu1  ;;  %v6139_v47 = vpop.permute.xlu0 %6138  ;;  %6530 = vbcast.lane.b32.xlu0 %v17883_v14, 288 }
 0x268   : > { %v4481_v53 = vpack.c.bf16 %v4353_v26, %v4352_v29  ;;  %v4913_v44 = vpop.f32.mrb[17].mxu1  ;;  %vm6898_vm12 = vcmp.eq.s32.totalorder %v6139_v47, %v13878_v43  ;;  %v17894_v47 = vld [vmem:[#allocation10_spill] sm:$0xff] }
 0x269   : > { %v4480_v45 = vpack.c.bf16 %v4351_v17, %v4350_v20  ;;  %v5656_v49 = vmax.f32 %v13011_v61, %v4913_v44  ;;  %v12930_v18 = vpop.f32.mrb[128].mxu0  ;;  %v13015_v57 = vpop.f32.mrb[18].mxu1  ;;  %v17889_v17 = vld [vmem:[#allocation9_spill] sm:$0xff]  ;;  %v15296_v44 = vrot.slane %v15273_v35, %v13701_v4  ;;  %vm15302_vm13 = vmpackc.low %vm6899_vm11, %vm6898_vm12 }
 0x26a   : > { %v4164_v33 = vadd.f32 %v12930_v18, %v15269_v7  ;;  %v5664_v9 = vmax.f32 %v13014_v46, %v13015_v57  ;;  %v3459_v24 = vpop.f32.mrb[129].mxu0  ;;  %v4916_v5 = vpop.f32.mrb[19].mxu1 }
 0x26b   : > { %v4162_v22 = vadd.f32 %v15253_v40, %v3459_v24  ;;  %v15279_v29 = vmax.f32 %v5656_v49, %v4916_v5  ;;  %v12931_v26 = vpop.f32.mrb[130].mxu0  ;;  %13120 = vmatprep.mubr.msk.bf16.mxu1 %vm17735_vm7, %v4480_v45  ;;  %v6151_v20 = vpop.permute.xlu1 %6150  ;;  %6542 = vbcast.lane.b32.xlu1 %v17889_v17, 288  ;;  %17890 = vst [vmem:[#allocation9_spill] sm:$0xff] %v15296_v44 }
 0x26c   : > { %v4165_v57 = vadd.f32 %v12931_v26, %v15269_v7  ;;  %v3462_v32 = vpop.f32.mrb[131].mxu0  ;;  %13121 = vmatmul.mubr.msk.bf16.gmra.mrb[124].mxu1 %vm17735_vm7, %v4481_v53  ;;  %v4356_v45 = vmax.f32 %v4164_v33, 0.0  ;;  %v6147_v24 = vpop.permute.xlu0 %6146  ;;  %6538 = vbcast.lane.b32.xlu0 %v17889_v17, 280  ;;  %v15309_v33 = vrot.slane %v15290_v39, %v13701_v4  ;;  %vm6901_vm14 = vcmp.eq.s32.totalorder %v6151_v20, %v13878_v43 }
 0x26d   : > { %17886 = vst [vmem:[#allocation73_spill] sm:$0xff] %v15279_v29  ;;  %v4163_v46 = vadd.f32 %v15269_v7, %v3462_v32  ;;  %v4354_v14 = vmax.f32 %v4162_v22, 0.0  ;;  %vm6900_vm15 = vcmp.eq.s32.totalorder %v6147_v24, %v13878_v43  ;;  %v11806_v24 = vsel %vm6901_vm14, 1.0, %v17816_v16 }
 0x26e   : > { %v4357_v49 = vmax.f32 %v4165_v57, 0.0  ;;  %17893 = vst [vmem:[#allocation74_spill] sm:$0xff] %v15309_v33  ;;  %v11805_v2 = vsel %vm6900_vm15, 1.0, %v17816_v16 }
 0x26f   : > { %v4355_v53 = vmax.f32 %v4163_v46, 0.0  ;;  %v13018_v18 = vpop.f32.mrb[20].mxu1  ;;  %v6159_v22 = vpop.permute.xlu1 %6158  ;;  %6554 = vbcast.lane.b32.xlu1 %v17894_v47, 288 }
 0x270   : > { %v4483_v5 = vpack.c.bf16 %v4357_v49, %v4356_v45  ;;  %v4929_v26 = vpop.f32.mrb[21].mxu1  ;;  %v574_v45 = vcombine.high %v15273_v35, %v15273_v35  ;;  %v11804_v49 = vsel %vm6899_vm11, 1.0, %v17816_v16  ;;  %vm6903_vm0 = vcmp.eq.s32.totalorder %v6159_v22, %v13878_v43 }
 0x271   : > { %v4482_v57 = vpack.c.bf16 %v4355_v53, %v4354_v14  ;;  %v15314_v32 = vmax.f32 %v5664_v9, %v4929_v26  ;;  %v13019_v46 = vpop.f32.mrb[22].mxu1  ;;  %v12934_v7 = vpop.f32.mrb[132].mxu0  ;;  %v576_v22 = vcombine.high %v15290_v39, %v15290_v39 }
 0x272   : > { %v4168_v40 = vadd.f32 %v12934_v7, %v15296_v44  ;;  %v3475_v20 = vpop.f32.mrb[133].mxu0  ;;  %v4932_v29 = vpop.f32.mrb[23].mxu1  ;;  %v7475_v7 = vpack.c.bf16 %v11806_v24, %v11806_v24 }
 0x273   : > { %17895 = vst [vmem:[#allocation10_spill] sm:$0xff] %v15314_v32  ;;  %v4166_v9 = vadd.f32 %v15296_v44, %v3475_v20  ;;  %v5672_v14 = vmax.f32 %v4932_v29, %v13018_v18  ;;  %v12935_v53 = vpop.f32.mrb[134].mxu0  ;;  %13124 = vmatprep.mubr.msk.bf16.mxu1 %vm17735_vm7, %v4482_v57  ;;  %v6155_v26 = vpop.permute.xlu0 %6154  ;;  %6550 = vbcast.lane.b32.xlu0 %v17894_v47, 280 }
 0x274   : > { %v4169_v30 = vadd.f32 %v12935_v53, %v15309_v33  ;;  %v3478_v35 = vpop.f32.mrb[135].mxu0  ;;  %13125 = vmatmul.mubr.msk.bf16.gmra.mrb[128].mxu1 %vm17735_vm7, %v4483_v5  ;;  %v7474_v32 = vpack.c.bf16 %v11805_v2, %v11804_v49  ;;  %v6171_v13 = vpop.permute.xlu1 %6170  ;;  %6546 = vbcast.lane.b32.xlu1 %v17889_v17, 296  ;;  %v4360_v31 = vmax.f32 %v4168_v40, 0.0  ;;  %v15333_v29 = vrot.slane %v574_v45, %v13701_v4  ;;  %v15343_v49 = vld [vmem:[%s14333_s23 + $0x30] sm:$0xff] }
 0x275   : > { %v15330_v20 = vmax.f32 %v5672_v14, %v13019_v46  ;;  %v4167_v57 = vadd.f32 %v15296_v44, %v3478_v35  ;;  %v15336_v34 = vunpack.c.l.b16 %v7475_v7  ;;  %v4358_v5 = vmax.f32 %v4166_v9, 0.0 }
 0x276   : > { %17897 = vst [vmem:[#allocation76_spill] sm:$0xff] %v15333_v29  ;;  %v4361_v18 = vmax.f32 %v4169_v30, 0.0  ;;  %v15338_v53 = vunpack.c.h.b16 %v7474_v32  ;;  %vm6902_vm1 = vcmp.eq.s32.totalorder %v6155_v26, %v13878_v43  ;;  %v17898_v32 = vld [vmem:[#allocation11_spill] sm:$0xff]  ;;  %vm6906_vm3 = vcmp.eq.s32.totalorder %v6171_v13, %v13878_v43 }
 0x277   : > { %17896 = vst [vmem:[#allocation75_spill] sm:$0xff] %v15330_v20  ;;  %v13022_v24 = vpop.f32.mrb[24].mxu1  ;;  %v6167_v2 = vpop.permute.xlu0 %6166  ;;  %6558 = vbcast.lane.b32.xlu0 %v17894_v47, 296  ;;  %v4359_v17 = vmax.f32 %v4167_v57, 0.0  ;;  %vm15351_vm2 = vmpackc.low %vm6903_vm0, %vm6902_vm1  ;;  %v584_v13 = vrot.slane %v15343_v49, %v14340_v56 }
 0x278   : > { %v4485_v40 = vpack.c.bf16 %v4361_v18, %v4360_v31  ;;  %v4945_v46 = vpop.f32.mrb[25].mxu1  ;;  %v6163_v45 = vpop.permute.xlu1 %6162  ;;  %6566 = vbcast.lane.b32.xlu1 %v17898_v32, 288  ;;  %vm6905_vm4 = vcmp.eq.s32.totalorder %v6167_v2, %v13878_v43  ;;  %v11811_v18 = vsel %vm6906_vm3, 1.0, %v17816_v16 }
 0x279   : > { %v13023_v9 = vpop.f32.mrb[26].mxu1  ;;  %v12938_v30 = vpop.f32.mrb[136].mxu0  ;;  %v4484_v31 = vpack.c.bf16 %v4359_v17, %v4358_v5  ;;  %v11810_v57 = vsel %vm6905_vm4, 1.0, %v17816_v16  ;;  %vm6904_vm5 = vcmp.eq.s32.totalorder %v6163_v45, %v13878_v43 }
 0x27a   : > { %v4172_v26 = vadd.f32 %v12938_v30, %v15333_v29  ;;  %v3491_v35 = vpop.f32.mrb[137].mxu0  ;;  %v4948_v7 = vpop.f32.mrb[27].mxu1  ;;  %v7478_v30 = vpack.c.bf16 %v11811_v18, %v11810_v57  ;;  %vm15378_vm6 = vmpackc.low %vm6905_vm4, %vm6904_vm5 }
 0x27b   : > { %v4170_v39 = vadd.f32 %v15309_v33, %v3491_v35  ;;  %v5680_v14 = vmax.f32 %v4945_v46, %v4948_v7  ;;  %v12939_v44 = vpop.f32.mrb[138].mxu0  ;;  %v6175_v20 = vpop.permute.xlu0 %6174  ;;  %6562 = vbcast.lane.b32.xlu0 %v17898_v32, 280  ;;  %13128 = vmatprep.mubr.msk.bf16.mxu1 %vm17735_vm7, %v4484_v31  ;;  %v15374_v46 = vrot.slane %v576_v22, %v13701_v4 }
 0x27c   : > { %v4173_v5 = vadd.f32 %v12939_v44, %v15333_v29  ;;  %v3494_v17 = vpop.f32.mrb[139].mxu0  ;;  %v6183_v60 = vpop.permute.xlu1 %6182  ;;  %6574 = vbcast.lane.b32.xlu1 %v17901_v37, 280  ;;  %13129 = vmatmul.mubr.msk.bf16.gmra.mrb[132].mxu1 %vm17735_vm7, %v4485_v40  ;;  %v4364_v31 = vmax.f32 %v4172_v26, 0.0  ;;  %vm6907_vm8 = vcmp.eq.s32.totalorder %v6175_v20, %v13878_v43  ;;  %v15386_v41 = vunpack.c.h.b16 %v7478_v30 }
 0x27d   : > { %v15370_v35 = vmax.f32 %v5680_v14, %v13022_v24  ;;  %17903 = vst [vmem:[#allocation12_spill] sm:$0xff] %v15374_v46  ;;  %v4171_v45 = vadd.f32 %v15309_v33, %v3494_v17  ;;  %v4362_v18 = vmax.f32 %v4170_v39, 0.0  ;;  %v592_v14 = vcombine.high %v584_v13, %v584_v13 }
 0x27e   : > { %v4365_v7 = vmax.f32 %v4173_v5, 0.0  ;;  %v11812_v40 = vsel %vm6907_vm8, 1.0, %v17816_v16  ;;  %v15390_v39 = vrot.slane %v584_v13, %v14340_v56  ;;  %vm6909_vm9 = vcmp.eq.s32.totalorder %v6183_v60, %v13878_v43 }
 0x27f   : > { %17902 = vst [vmem:[#allocation11_spill] sm:$0xff] %v15370_v35  ;;  %v13026_v24 = vpop.f32.mrb[28].mxu1  ;;  %v6179_v57 = vpop.permute.xlu0 %6178  ;;  %6570 = vbcast.lane.b32.xlu0 %v17898_v32, 296  ;;  %v4363_v2 = vmax.f32 %v4171_v45, 0.0  ;;  %v7479_v50 = vpack.c.bf16 %v11812_v40, %v11812_v40 }
 0x280   : > { %v4487_v22 = vpack.c.bf16 %v4365_v7, %v4364_v31  ;;  %v4961_v35 = vpop.f32.mrb[29].mxu1  ;;  %v6191_v26 = vpop.permute.xlu1 %6190  ;;  %6582 = vbcast.lane.b32.xlu1 %v17901_v37, 296  ;;  %vm6908_vm11 = vcmp.eq.s32.totalorder %v6179_v57, %v13878_v43 }
 0x281   : > { %v5688_v5 = vmax.f32 %v13023_v9, %v4961_v35  ;;  %v13027_v17 = vpop.f32.mrb[30].mxu1  ;;  %v12942_v20 = vpop.f32.mrb[140].mxu0  ;;  %v4486_v33 = vpack.c.bf16 %v4363_v2, %v4362_v18  ;;  %v15394_v30 = vunpack.c.l.b16 %v7479_v50  ;;  %vm15408_vm12 = vmpackc.low %vm6909_vm9, %vm6908_vm11  ;;  %vm6911_vm14 = vcmp.eq.s32.totalorder %v6191_v26, %v13878_v43 }
 0x282   : > { %v5696_v42 = vmax.f32 %v13026_v24, %v13027_v17  ;;  %v4176_v32 = vadd.f32 %v12942_v20, %v15374_v46  ;;  %v3507_v31 = vpop.f32.mrb[141].mxu0  ;;  %v4964_v7 = vpop.f32.mrb[31].mxu1  ;;  %v15404_v24 = vrot.slane %v592_v14, %v14340_v56 }
 0x283   : > { %v4174_v45 = vadd.f32 %v15333_v29, %v3507_v31  ;;  %v15397_v40 = vmax.f32 %v5688_v5, %v4964_v7  ;;  %v12943_v9 = vpop.f32.mrb[142].mxu0  ;;  %v6187_v35 = vpop.permute.xlu0 %6186  ;;  %6578 = vbcast.lane.b32.xlu0 %v17901_v37, 288  ;;  %13132 = vmatprep.mubr.msk.bf16.mxu1 %vm17735_vm7, %v4486_v33  ;;  %v17909_v5 = vld [vmem:[#allocation13_spill] sm:$0xff]  ;;  %v15419_v33 = vrot.slane %v15390_v39, %v13701_v4 }
 0x284   : > { %v4177_v13 = vadd.f32 %v12943_v9, %v15374_v46  ;;  %v3510_v18 = vpop.f32.mrb[143].mxu0  ;;  %v6199_v2 = vpop.permute.xlu1 %6198  ;;  %6590 = vbcast.lane.b32.xlu1 %v17909_v5, 288  ;;  %13133 = vmatmul.mubr.msk.bf16.gmra.mrb[136].mxu1 %vm17735_vm7, %v4487_v22  ;;  %v4368_v14 = vmax.f32 %v4176_v32, 0.0  ;;  %vm6910_vm15 = vcmp.eq.s32.totalorder %v6187_v35, %v13878_v43  ;;  %v15432_v32 = vrot.slane %v15404_v24, %v13701_v4  ;;  %v17914_v35 = vld [vmem:[#allocation14_spill] sm:$0xff] }
 0x285   : > { %17906 = vst [vmem:[#allocation77_spill] sm:$0xff] %v15397_v40  ;;  %v4175_v37 = vadd.f32 %v15374_v46, %v3510_v18  ;;  %17910 = vst [vmem:[#allocation13_spill] sm:$0xff] %v15419_v33  ;;  %v4366_v17 = vmax.f32 %v4174_v45, 0.0  ;;  %vm6913_vm1 = vcmp.eq.s32.totalorder %v6199_v2, %v13878_v43 }
 0x286   : > { %v4369_v60 = vmax.f32 %v4177_v13, 0.0  ;;  %vm15425_vm0 = vmpackc.low %vm6911_vm14, %vm6910_vm15  ;;  %17913 = vst [vmem:[#allocation78_spill] sm:$0xff] %v15432_v32 }
 0x287   : > { %v4367_v20 = vmax.f32 %v4175_v37, 0.0  ;;  %v13030_v31 = vpop.f32.mrb[32].mxu1  ;;  %v6195_v22 = vpop.permute.xlu0 %6194  ;;  %6586 = vbcast.lane.b32.xlu0 %v17909_v5, 280 }
 0x288   : > { %v4489_v9 = vpack.c.bf16 %v4369_v60, %v4368_v14  ;;  %v4977_v18 = vpop.f32.mrb[33].mxu1  ;;  %vm6912_vm3 = vcmp.eq.s32.totalorder %v6195_v22, %v13878_v43  ;;  %v6207_v45 = vpop.permute.xlu1 %6206  ;;  %6602 = vbcast.lane.b32.xlu1 %v17914_v35, 288  ;;  %v622_v14 = vcombine.high %v15390_v39, %v15390_v39  ;;  %v11816_v60 = vsel %vm6911_vm14, 1.0, %v17816_v16 }
 0x289   : > { %v4488_v13 = vpack.c.bf16 %v4367_v20, %v4366_v17  ;;  %v15437_v37 = vmax.f32 %v5696_v42, %v4977_v18  ;;  %v13031_v57 = vpop.f32.mrb[34].mxu1  ;;  %v12946_v46 = vpop.f32.mrb[144].mxu0  ;;  %v11818_v22 = vsel %vm6913_vm1, 1.0, %v17816_v16  ;;  %v11817_v63 = vsel %vm6912_vm3, 1.0, %v17816_v16 }
 0x28a   : > { %v4180_v29 = vadd.f32 %v12946_v46, %v15419_v33  ;;  %v3523_v2 = vpop.f32.mrb[145].mxu0  ;;  %v4980_v40 = vpop.f32.mrb[35].mxu1  ;;  %v7482_v46 = vpack.c.bf16 %v11817_v63, %v11816_v60  ;;  %vm6915_vm4 = vcmp.eq.s32.totalorder %v6207_v45, %v13878_v43 }
 0x28b   : > { %17915 = vst [vmem:[#allocation14_spill] sm:$0xff] %v15437_v37  ;;  %v4178_v42 = vadd.f32 %v15419_v33, %v3523_v2  ;;  %v5704_v17 = vmax.f32 %v4980_v40, %v13030_v31  ;;  %v12947_v20 = vpop.f32.mrb[146].mxu0  ;;  %13136 = vmatprep.mubr.msk.bf16.mxu1 %vm17735_vm7, %v4488_v13  ;;  %v6203_v18 = vpop.permute.xlu0 %6202  ;;  %6598 = vbcast.lane.b32.xlu0 %v17914_v35, 280 }
 0x28c   : > { %v4181_v26 = vadd.f32 %v12947_v20, %v15432_v32  ;;  %v3526_v39 = vpop.f32.mrb[147].mxu0  ;;  %v7483_v37 = vpack.c.bf16 %v11818_v22, %v11818_v22  ;;  %v6219_v54 = vpop.permute.xlu1 %6218  ;;  %6594 = vbcast.lane.b32.xlu1 %v17909_v5, 296  ;;  %v4372_v21 = vmax.f32 %v4180_v29, 0.0  ;;  %13137 = vmatmul.mubr.msk.bf16.gmra.mrb[140].mxu1 %vm17735_vm7, %v4489_v9  ;;  %v15456_v40 = vrot.slane %v622_v14, %v13701_v4 }
 0x28d   : > { %v15452_v15 = vmax.f32 %v5704_v17, %v13031_v57  ;;  %v4179_v13 = vadd.f32 %v15419_v33, %v3526_v39  ;;  %v15461_v20 = vunpack.c.h.b16 %v7482_v46  ;;  %v4370_v22 = vmax.f32 %v4178_v42, 0.0  ;;  %v17918_v17 = vld [vmem:[#allocation15_spill] sm:$0xff] }
 0x28e   : > { %17917 = vst [vmem:[#allocation80_spill] sm:$0xff] %v15456_v40  ;;  %v4373_v31 = vmax.f32 %v4181_v26, 0.0  ;;  %v15459_v2 = vunpack.c.l.b16 %v7483_v37  ;;  %v577_v5 = vcombine.high %v15343_v49, %v15343_v49  ;;  %vm6914_vm5 = vcmp.eq.s32.totalorder %v6203_v18, %v13878_v43 }
 0x28f   : > { %17916 = vst [vmem:[#allocation79_spill] sm:$0xff] %v15452_v15  ;;  %v13034_v63 = vpop.f32.mrb[36].mxu1  ;;  %v6215_v29 = vpop.permute.xlu0 %6214  ;;  %6606 = vbcast.lane.b32.xlu0 %v17914_v35, 296  ;;  %v4371_v9 = vmax.f32 %v4179_v13, 0.0  ;;  %v624_v49 = vcombine.high %v15404_v24, %v15404_v24  ;;  %vm15473_vm8 = vmpackc.low %vm6915_vm4, %vm6914_vm5  ;;  %vm6918_vm9 = vcmp.eq.s32.totalorder %v6219_v54, %v13878_v43 }
 0x290   : > { %v4491_v57 = vpack.c.bf16 %v4373_v31, %v4372_v21  ;;  %v4993_v14 = vpop.f32.mrb[37].mxu1  ;;  %v6211_v60 = vpop.permute.xlu1 %6210  ;;  %6614 = vbcast.lane.b32.xlu1 %v17918_v17, 288  ;;  %vm6917_vm11 = vcmp.eq.s32.totalorder %v6215_v29, %v13878_v43  ;;  %v11823_v46 = vsel %vm6918_vm9, 1.0, %v17816_v16  ;;  %v591_v33 = vrot.slane %v577_v5, %v14340_v56 }
 0x291   : > { %v13035_v42 = vpop.f32.mrb[38].mxu1  ;;  %v12950_v26 = vpop.f32.mrb[148].mxu0  ;;  %v4490_v21 = vpack.c.bf16 %v4371_v9, %v4370_v22  ;;  %v11822_v31 = vsel %vm6917_vm11, 1.0, %v17816_v16  ;;  %vm6916_vm14 = vcmp.eq.s32.totalorder %v6211_v60, %v13878_v43  ;;  %v15495_v5 = vrot.slane %v624_v49, %v13701_v4 }
 0x292   : > { %v4184_v35 = vadd.f32 %v12950_v26, %v15456_v40  ;;  %v3539_v18 = vpop.f32.mrb[149].mxu0  ;;  %v4996_v39 = vpop.f32.mrb[39].mxu1  ;;  %v7486_v26 = vpack.c.bf16 %v11823_v46, %v11822_v31  ;;  %vm15499_vm15 = vmpackc.low %vm6917_vm11, %vm6916_vm14 }
 0x293   : > { %v4182_v24 = vadd.f32 %v15432_v32, %v3539_v18  ;;  %v5712_v13 = vmax.f32 %v4993_v14, %v4996_v39  ;;  %v12951_v37 = vpop.f32.mrb[150].mxu0  ;;  %v6223_v54 = vpop.permute.xlu0 %6222  ;;  %6610 = vbcast.lane.b32.xlu0 %v17918_v17, 280  ;;  %13140 = vmatprep.mubr.msk.bf16.mxu1 %vm17735_vm7, %v4490_v21  ;;  %17923 = vst [vmem:[#allocation16_spill] sm:$0xff] %v15495_v5 }
 0x294   : > { %v4185_v22 = vadd.f32 %v12951_v37, %v15456_v40  ;;  %v3542_v9 = vpop.f32.mrb[151].mxu0  ;;  %v6231_v15 = vpop.permute.xlu1 %6230  ;;  %6622 = vbcast.lane.b32.xlu1 %v17921_v28, 280  ;;  %13141 = vmatmul.mubr.msk.bf16.gmra.mrb[144].mxu1 %vm17735_vm7, %v4491_v57  ;;  %v4376_v37 = vmax.f32 %v4184_v35, 0.0  ;;  %vm6919_vm1 = vcmp.eq.s32.totalorder %v6223_v54, %v13878_v43  ;;  %v593_v39 = vcombine.high %v591_v33, %v591_v33 }
 0x295   : > { %v15491_v0 = vmax.f32 %v5712_v13, %v13034_v63  ;;  %v4183_v60 = vadd.f32 %v15432_v32, %v3542_v9  ;;  %v4374_v18 = vmax.f32 %v4182_v24, 0.0  ;;  %v11824_v57 = vsel %vm6919_vm1, 1.0, %v17816_v16 }
 0x296   : > { %v4377_v21 = vmax.f32 %v4185_v22, 0.0  ;;  %v15507_v13 = vunpack.c.h.b16 %v7486_v26  ;;  %v15511_v24 = vrot.slane %v591_v33, %v14340_v56  ;;  %vm6921_vm3 = vcmp.eq.s32.totalorder %v6231_v15, %v13878_v43 }
 0x297   : > { %17922 = vst [vmem:[#allocation15_spill] sm:$0xff] %v15491_v0  ;;  %v13038_v63 = vpop.f32.mrb[40].mxu1  ;;  %v6227_v46 = vpop.permute.xlu0 %6226  ;;  %6618 = vbcast.lane.b32.xlu0 %v17918_v17, 296  ;;  %v4375_v29 = vmax.f32 %v4183_v60, 0.0  ;;  %v7487_v0 = vpack.c.bf16 %v11824_v57, %v11824_v57 }
 0x298   : > { %v4493_v49 = vpack.c.bf16 %v4377_v21, %v4376_v37  ;;  %v5009_v31 = vpop.f32.mrb[41].mxu1  ;;  %v6239_v35 = vpop.permute.xlu1 %6238  ;;  %6630 = vbcast.lane.b32.xlu1 %v17921_v28, 296  ;;  %vm6920_vm4 = vcmp.eq.s32.totalorder %v6227_v46, %v13878_v43 }
 0x299   : > { %v5720_v22 = vmax.f32 %v13035_v42, %v5009_v31  ;;  %v13039_v9 = vpop.f32.mrb[42].mxu1  ;;  %v12954_v54 = vpop.f32.mrb[152].mxu0  ;;  %v4492_v32 = vpack.c.bf16 %v4375_v29, %v4374_v18  ;;  %v15515_v26 = vunpack.c.l.b16 %v7487_v0  ;;  %vm15529_vm5 = vmpackc.low %vm6921_vm3, %vm6920_vm4  ;;  %vm6923_vm9 = vcmp.eq.s32.totalorder %v6239_v35, %v13878_v43 }
 0x29a   : > { %v5728_v10 = vmax.f32 %v13038_v63, %v13039_v9  ;;  %v4188_v17 = vadd.f32 %v12954_v54, %v15495_v5  ;;  %v3555_v37 = vpop.f32.mrb[153].mxu0  ;;  %v5012_v21 = vpop.f32.mrb[43].mxu1  ;;  %v15525_v63 = vrot.slane %v593_v39, %v14340_v56 }
 0x29b   : > { %v4186_v60 = vadd.f32 %v15456_v40, %v3555_v37  ;;  %v15518_v57 = vmax.f32 %v5720_v22, %v5012_v21  ;;  %v12955_v42 = vpop.f32.mrb[154].mxu0  ;;  %v6235_v31 = vpop.permute.xlu0 %6234  ;;  %6626 = vbcast.lane.b32.xlu0 %v17921_v28, 288  ;;  %13144 = vmatprep.mubr.msk.bf16.mxu1 %vm17735_vm7, %v4492_v32  ;;  %v17929_v22 = vld [vmem:[#allocation17_spill] sm:$0xff]  ;;  %v15540_v32 = vrot.slane %v15511_v24, %v13701_v4 }
 0x29c   : > { %v4189_v33 = vadd.f32 %v12955_v42, %v15495_v5  ;;  %v3558_v18 = vpop.f32.mrb[155].mxu0  ;;  %v6247_v29 = vpop.permute.xlu1 %6246  ;;  %6638 = vbcast.lane.b32.xlu1 %v17929_v22, 288  ;;  %13145 = vmatmul.mubr.msk.bf16.gmra.mrb[148].mxu1 %vm17735_vm7, %v4493_v49  ;;  %v4380_v39 = vmax.f32 %v4188_v17, 0.0  ;;  %vm6922_vm11 = vcmp.eq.s32.totalorder %v6235_v31, %v13878_v43  ;;  %v15553_v17 = vrot.slane %v15525_v63, %v13701_v4  ;;  %v17934_v31 = vld [vmem:[#allocation18_spill] sm:$0xff] }
 0x29d   : > { %17926 = vst [vmem:[#allocation81_spill] sm:$0xff] %v15518_v57  ;;  %v4187_v28 = vadd.f32 %v15495_v5, %v3558_v18  ;;  %17930 = vst [vmem:[#allocation17_spill] sm:$0xff] %v15540_v32  ;;  %v4378_v9 = vmax.f32 %v4186_v60, 0.0  ;;  %vm6925_vm1 = vcmp.eq.s32.totalorder %v6247_v29, %v13878_v43 }
 0x29e   : > { %v4381_v15 = vmax.f32 %v4189_v33, 0.0  ;;  %vm15546_vm14 = vmpackc.low %vm6923_vm9, %vm6922_vm11  ;;  %17933 = vst [vmem:[#allocation82_spill] sm:$0xff] %v15553_v17 }
 0x29f   : > { %v4379_v54 = vmax.f32 %v4187_v28, 0.0  ;;  %v13042_v37 = vpop.f32.mrb[44].mxu1  ;;  %v6243_v49 = vpop.permute.xlu0 %6242  ;;  %6634 = vbcast.lane.b32.xlu0 %v17929_v22, 280 }
 0x2a0   : > { %v4495_v42 = vpack.c.bf16 %v4381_v15, %v4380_v39  ;;  %v5025_v18 = vpop.f32.mrb[45].mxu1  ;;  %vm6924_vm3 = vcmp.eq.s32.totalorder %v6243_v49, %v13878_v43  ;;  %v6255_v60 = vpop.permute.xlu1 %6254  ;;  %6650 = vbcast.lane.b32.xlu1 %v17934_v31, 288  ;;  %v623_v39 = vcombine.high %v15511_v24, %v15511_v24  ;;  %v11828_v15 = vsel %vm6923_vm9, 1.0, %v17816_v16 }
 0x2a1   : > { %v4494_v33 = vpack.c.bf16 %v4379_v54, %v4378_v9  ;;  %v15558_v28 = vmax.f32 %v5728_v10, %v5025_v18  ;;  %v13043_v46 = vpop.f32.mrb[46].mxu1  ;;  %v12958_v5 = vpop.f32.mrb[156].mxu0  ;;  %v11830_v49 = vsel %vm6925_vm1, 1.0, %v17816_v16  ;;  %v11829_v52 = vsel %vm6924_vm3, 1.0, %v17816_v16 }
 0x2a2   : > { %v4192_v40 = vadd.f32 %v12958_v5, %v15540_v32  ;;  %v3571_v29 = vpop.f32.mrb[157].mxu0  ;;  %v5028_v57 = vpop.f32.mrb[47].mxu1  ;;  %v7490_v5 = vpack.c.bf16 %v11829_v52, %v11828_v15  ;;  %vm6927_vm4 = vcmp.eq.s32.totalorder %v6255_v60, %v13878_v43  ;;  %v625_v60 = vcombine.high %v15525_v63, %v15525_v63 }
 0x2a3   : > { %17935 = vst [vmem:[#allocation18_spill] sm:$0xff] %v15558_v28  ;;  %v4190_v10 = vadd.f32 %v15540_v32, %v3571_v29  ;;  %v5736_v9 = vmax.f32 %v5028_v57, %v13042_v37  ;;  %v12959_v54 = vpop.f32.mrb[158].mxu0  ;;  %13148 = vmatprep.mubr.msk.bf16.mxu1 %vm17735_vm7, %v4494_v33  ;;  %v6251_v18 = vpop.permute.xlu0 %6250  ;;  %6646 = vbcast.lane.b32.xlu0 %v17934_v31, 280 }
 0x2a4   : > { %v4193_v35 = vadd.f32 %v12959_v54, %v15553_v17  ;;  %v3574_v24 = vpop.f32.mrb[159].mxu0  ;;  %v7491_v28 = vpack.c.bf16 %v11830_v49, %v11830_v49  ;;  %v6267_v1 = vpop.permute.xlu1 %6266  ;;  %6642 = vbcast.lane.b32.xlu1 %v17929_v22, 296  ;;  %v4384_v19 = vmax.f32 %v4192_v40, 0.0  ;;  %13149 = vmatmul.mubr.msk.bf16.gmra.mrb[152].mxu1 %vm17735_vm7, %v4495_v42  ;;  %v15577_v57 = vrot.slane %v623_v39, %v13701_v4  ;;  %v15587_v49 = vld [vmem:[%s14333_s23 + $0x38] sm:$0xff] }
 0x2a5   : > { %v15573_v36 = vmax.f32 %v5736_v9, %v13043_v46  ;;  %v4191_v33 = vadd.f32 %v15540_v32, %v3574_v24  ;;  %v15582_v54 = vunpack.c.h.b16 %v7490_v5  ;;  %v4382_v52 = vmax.f32 %v4190_v10, 0.0  ;;  %v17938_v9 = vld [vmem:[#allocation19_spill] sm:$0xff] }
 0x2a6   : > { %17937 = vst [vmem:[#allocation84_spill] sm:$0xff] %v15577_v57  ;;  %v4385_v37 = vmax.f32 %v4193_v35, 0.0  ;;  %v15580_v29 = vunpack.c.l.b16 %v7491_v28  ;;  %vm6926_vm9 = vcmp.eq.s32.totalorder %v6251_v18, %v13878_v43  ;;  %vm6930_vm1 = vcmp.eq.s32.totalorder %v6267_v1, %v13878_v43 }
 0x2a7   : > { %17936 = vst [vmem:[#allocation83_spill] sm:$0xff] %v15573_v36  ;;  %v13046_v15 = vpop.f32.mrb[48].mxu1  ;;  %v6263_v40 = vpop.permute.xlu0 %6262  ;;  %6654 = vbcast.lane.b32.xlu0 %v17934_v31, 296  ;;  %v4383_v22 = vmax.f32 %v4191_v33, 0.0  ;;  %vm15595_vm11 = vmpackc.low %vm6927_vm4, %vm6926_vm9  ;;  %v17939_v31 = vmov 0  ;;  %v633_v1 = vrot.slane %v15587_v49, %v14340_v56 }
 0x2a8   : > { %v4497_v46 = vpack.c.bf16 %v4385_v37, %v4384_v19  ;;  %v5041_v42 = vpop.f32.mrb[49].mxu1  ;;  %v6259_v39 = vpop.permute.xlu1 %6258  ;;  %6662 = vbcast.lane.b32.xlu1 %v17938_v9, 288  ;;  %v17940_v31 = vsel %vm15595_vm11, 4294967295, %v17939_v31  ;;  %vm6929_vm3 = vcmp.eq.s32.totalorder %v6263_v40, %v13878_v43  ;;  %v11835_v37 = vsel %vm6930_vm1, 1.0, %v17816_v16 }
 0x2a9   : > { %v13047_v10 = vpop.f32.mrb[50].mxu1  ;;  %v12962_v35 = vpop.f32.mrb[160].mxu0  ;;  %v4496_v19 = vpack.c.bf16 %v4383_v22, %v4382_v52  ;;  %v11834_v33 = vsel %vm6929_vm3, 1.0, %v17816_v16  ;;  %vm6928_vm4 = vcmp.eq.s32.totalorder %v6259_v39, %v13878_v43 }
 0x2aa   : > { %v4196_v18 = vadd.f32 %v12962_v35, %v15577_v57  ;;  %v3587_v24 = vpop.f32.mrb[161].mxu0  ;;  %v5044_v5 = vpop.f32.mrb[51].mxu1  ;;  %v7494_v35 = vpack.c.bf16 %v11835_v37, %v11834_v33  ;;  %vm15622_vm9 = vmpackc.low %vm6929_vm3, %vm6928_vm4 }
 0x2ab   : > { %v4194_v63 = vadd.f32 %v15553_v17, %v3587_v24  ;;  %v5744_v28 = vmax.f32 %v5041_v42, %v5044_v5  ;;  %v12963_v32 = vpop.f32.mrb[162].mxu0  ;;  %v6271_v36 = vpop.permute.xlu0 %6270  ;;  %6658 = vbcast.lane.b32.xlu0 %v17938_v9, 280  ;;  %13152 = vmatprep.mubr.msk.bf16.mxu1 %vm17735_vm7, %v4496_v19  ;;  %v15618_v42 = vrot.slane %v625_v60, %v13701_v4 }
 0x2ac   : > { %v4197_v52 = vadd.f32 %v12963_v32, %v15577_v57  ;;  %v3590_v22 = vpop.f32.mrb[163].mxu0  ;;  %v6279_v25 = vpop.permute.xlu1 %6278  ;;  %6670 = vbcast.lane.b32.xlu1 %v17941_v11, 280  ;;  %13153 = vmatmul.mubr.msk.bf16.gmra.mrb[156].mxu1 %vm17735_vm7, %v4497_v46  ;;  %v17944_v32 = vmov 0  ;;  %v4388_v19 = vmax.f32 %v4196_v18, 0.0  ;;  %vm6931_vm1 = vcmp.eq.s32.totalorder %v6271_v36, %v13878_v43 }
 0x2ad   : > { %v15614_v24 = vmax.f32 %v5744_v28, %v13046_v15  ;;  %17943 = vst [vmem:[#allocation20_spill] sm:$0xff] %v15618_v42  ;;  %v17945_v32 = vsel %vm15622_vm9, 4294967295, %v17944_v32  ;;  %v4195_v39 = vadd.f32 %v15553_v17, %v3590_v22  ;;  %v4386_v37 = vmax.f32 %v4194_v63, 0.0 }
 0x2ae   : > { %v4389_v5 = vmax.f32 %v4197_v52, 0.0  ;;  %v641_v28 = vcombine.high %v633_v1, %v633_v1  ;;  %v11836_v46 = vsel %vm6931_vm1, 1.0, %v17816_v16  ;;  %v15630_v23 = vunpack.c.h.b16 %v7494_v35 }
 0x2af   : > { %17942 = vst [vmem:[#allocation19_spill] sm:$0xff] %v15614_v24  ;;  %v13050_v15 = vpop.f32.mrb[52].mxu1  ;;  %v6275_v33 = vpop.permute.xlu0 %6274  ;;  %6666 = vbcast.lane.b32.xlu0 %v17938_v9, 296  ;;  %v4387_v40 = vmax.f32 %v4195_v39, 0.0  ;;  %v7495_v48 = vpack.c.bf16 %v11836_v46, %v11836_v46  ;;  %v15634_v63 = vrot.slane %v633_v1, %v14340_v56  ;;  %vm6933_vm3 = vcmp.eq.s32.totalorder %v6279_v25, %v13878_v43 }
 0x2b0   : > { %v4499_v60 = vpack.c.bf16 %v4389_v5, %v4388_v19  ;;  %v5057_v24 = vpop.f32.mrb[53].mxu1  ;;  %17946 = vst [vmem:[#allocation85_spill] sm:$0xff] %v15630_v23  ;;  %v6287_v18 = vpop.permute.xlu1 %6286  ;;  %6678 = vbcast.lane.b32.xlu1 %v17941_v11, 296  ;;  %vm6932_vm4 = vcmp.eq.s32.totalorder %v6275_v33, %v13878_v43 }
 0x2b1   : > { %v5752_v52 = vmax.f32 %v13047_v10, %v5057_v24  ;;  %v13051_v22 = vpop.f32.mrb[54].mxu1  ;;  %v12966_v36 = vpop.f32.mrb[164].mxu0  ;;  %v4498_v17 = vpack.c.bf16 %v4387_v40, %v4386_v37  ;;  %v15638_v35 = vunpack.c.l.b16 %v7495_v48  ;;  %vm15652_vm1 = vmpackc.low %vm6933_vm3, %vm6932_vm4  ;;  %v17949_v48 = vmov 0 }
 0x2b2   : > { %v5760_v62 = vmax.f32 %v13050_v15, %v13051_v22  ;;  %v4200_v9 = vadd.f32 %v12966_v36, %v15618_v42  ;;  %v3603_v19 = vpop.f32.mrb[165].mxu0  ;;  %v5060_v5 = vpop.f32.mrb[55].mxu1  ;;  %v15648_v15 = vrot.slane %v641_v28, %v14340_v56  ;;  %v17950_v48 = vsel %vm15652_vm1, 4294967295, %v17949_v48 }
 0x2b3   : > { %17947 = vst [vmem:[#allocation86_spill] sm:$0xff] %v15638_v35  ;;  %v4198_v39 = vadd.f32 %v15577_v57, %v3603_v19  ;;  %v15641_v46 = vmax.f32 %v5752_v52, %v5060_v5  ;;  %v12967_v10 = vpop.f32.mrb[166].mxu0  ;;  %v6283_v24 = vpop.permute.xlu0 %6282  ;;  %6674 = vbcast.lane.b32.xlu0 %v17941_v11, 288  ;;  %13156 = vmatprep.mubr.msk.bf16.mxu1 %vm17735_vm7, %v4498_v17  ;;  %17951 = vst [vmem:[#allocation88_spill] sm:$0xff] %v17950_v48  ;;  %v17952_v52 = vld [vmem:[#allocation21_spill] sm:$0xff]  ;;  %v17954_v5 = vmov 0 }
 0x2b4   : > { %v4201_v1 = vadd.f32 %v12967_v10, %v15618_v42  ;;  %v3606_v37 = vpop.f32.mrb[167].mxu0  ;;  %v6295_v40 = vpop.permute.xlu1 %6294  ;;  %6686 = vbcast.lane.b32.xlu1 %v17952_v52, 288  ;;  %13157 = vmatmul.mubr.msk.bf16.gmra.mrb[160].mxu1 %vm17735_vm7, %v4499_v60  ;;  %v15663_v17 = vrot.slane %v15634_v63, %v13701_v4  ;;  %v4392_v28 = vmax.f32 %v4200_v9, 0.0  ;;  %vm6935_vm3 = vcmp.eq.s32.totalorder %v6287_v18, %v13878_v43 }
 0x2b5   : > { %17948 = vst [vmem:[#allocation87_spill] sm:$0xff] %v15641_v46  ;;  %v4199_v11 = vadd.f32 %v15618_v42, %v3606_v37  ;;  %vm6934_vm4 = vcmp.eq.s32.totalorder %v6283_v24, %v13878_v43  ;;  %v4390_v22 = vmax.f32 %v4198_v39, 0.0  ;;  %v15676_v9 = vrot.slane %v15648_v15, %v13701_v4  ;;  %v17958_v24 = vld [vmem:[#allocation22_spill] sm:$0xff] }
 0x2b6   : > { %17953 = vst [vmem:[#allocation21_spill] sm:$0xff] %v15663_v17  ;;  %v4393_v25 = vmax.f32 %v4201_v1, 0.0  ;;  %vm15669_vm1 = vmpackc.low %vm6935_vm3, %vm6934_vm4  ;;  %vm6937_vm7 = vcmp.eq.s32.totalorder %v6295_v40, %v13878_v43  ;;  %vm17960_vm4 = vcmask 261120  }
 0x2b7   : > { %v4391_v36 = vmax.f32 %v4199_v11, 0.0  ;;  %v13054_v19 = vpop.f32.mrb[56].mxu1  ;;  %v17955_v5 = vsel %vm15669_vm1, 4294967295, %v17954_v5  ;;  %v6291_v60 = vpop.permute.xlu0 %6290  ;;  %6682 = vbcast.lane.b32.xlu0 %v17952_v52, 280  ;;  %17957 = vst [vmem:[#allocation90_spill] sm:$0xff] %v15676_v9 }
 0x2b8   : > { %17956 = vst [vmem:[#allocation89_spill] sm:$0xff] %v17955_v5  ;;  %v4501_v10 = vpack.c.bf16 %v4393_v25, %v4392_v28  ;;  %v5073_v37 = vpop.f32.mrb[57].mxu1  ;;  %vm6936_vm9 = vcmp.eq.s32.totalorder %v6291_v60, %v13878_v43  ;;  %v6303_v39 = vpop.permute.xlu1 %6302  ;;  %6698 = vbcast.lane.b32.xlu1 %v17958_v24, 288  ;;  %v671_v28 = vcombine.high %v15634_v63, %v15634_v63  ;;  %v11840_v25 = vsel %vm6935_vm3, 1.0, %v17816_v16 }
 0x2b9   : > { %v4500_v1 = vpack.c.bf16 %v4391_v36, %v4390_v22  ;;  %v15681_v11 = vmax.f32 %v5760_v62, %v5073_v37  ;;  %v13055_v33 = vpop.f32.mrb[58].mxu1  ;;  %v12970_v42 = vpop.f32.mrb[168].mxu0  ;;  %v11842_v60 = vsel %vm6937_vm7, 1.0, %v17816_v16  ;;  %v11841_v5 = vsel %vm6936_vm9, 1.0, %v17816_v16  ;;  %vm17962_vm7 = vmmov %vm17960_vm4 }
 0x2ba   : > { %v4204_v57 = vadd.f32 %v12970_v42, %v15663_v17  ;;  %v3619_v40 = vpop.f32.mrb[169].mxu0  ;;  %v5076_v46 = vpop.f32.mrb[59].mxu1  ;;  %v7498_v42 = vpack.c.bf16 %v11841_v5, %v11840_v25  ;;  %vm6939_vm9 = vcmp.eq.s32.totalorder %v6303_v39, %v13878_v43  ;;  %v17966_v39 = vmov 0 }
 0x2bb   : > { %17959 = vst [vmem:[#allocation22_spill] sm:$0xff] %v15681_v11  ;;  %v4202_v62 = vadd.f32 %v15663_v17, %v3619_v40  ;;  %v5768_v22 = vmax.f32 %v5076_v46, %v13054_v19  ;;  %v12971_v36 = vpop.f32.mrb[170].mxu0  ;;  %13160 = vmatprep.mubr.msk.bf16.mxu1 %vm17960_vm4, %v4500_v1  ;;  %v6299_v37 = vpop.permute.xlu0 %6298  ;;  %6694 = vbcast.lane.b32.xlu0 %v17958_v24, 280 }
 0x2bc   : > { %v4205_v18 = vadd.f32 %v12971_v36, %v15676_v9  ;;  %v3622_v63 = vpop.f32.mrb[171].mxu0  ;;  %v7499_v11 = vpack.c.bf16 %v11842_v60, %v11842_v60  ;;  %v6315_v48 = vpop.permute.xlu1 %6314  ;;  %6690 = vbcast.lane.b32.xlu1 %v17952_v52, 296  ;;  %v4396_v23 = vmax.f32 %v4204_v57, 0.0  ;;  %13161 = vmatmul.mubr.msk.bf16.gmra.mrb[164].mxu1 %vm17962_vm7, %v4501_v10  ;;  %v15700_v46 = vrot.slane %v671_v28, %v13701_v4 }
 0x2bd   : > { %v15696_v35 = vmax.f32 %v5768_v22, %v13055_v33  ;;  %v4203_v1 = vadd.f32 %v15663_v17, %v3622_v63  ;;  %v15705_v36 = vunpack.c.h.b16 %v7498_v42  ;;  %v4394_v60 = vmax.f32 %v4202_v62, 0.0  ;;  %v17965_v22 = vld [vmem:[#allocation23_spill] sm:$0xff] }
 0x2be   : > { %17963 = vst [vmem:[#allocation92_spill] sm:$0xff] %v15700_v46  ;;  %v4397_v19 = vmax.f32 %v4205_v18, 0.0  ;;  %v15703_v40 = vunpack.c.l.b16 %v7499_v11  ;;  %v626_v52 = vcombine.high %v15587_v49, %v15587_v49  ;;  %vm6938_vm3 = vcmp.eq.s32.totalorder %v6299_v37, %v13878_v43 }
 0x2bf   : > { %17961 = vst [vmem:[#allocation91_spill] sm:$0xff] %v15696_v35  ;;  %17964 = vst [vmem:[#allocation93_spill] sm:$0xff] %v15705_v36  ;;  %v13058_v5 = vpop.f32.mrb[60].mxu1  ;;  %v6311_v57 = vpop.permute.xlu0 %6310  ;;  %6702 = vbcast.lane.b32.xlu0 %v17958_v24, 296  ;;  %v4395_v10 = vmax.f32 %v4203_v1, 0.0  ;;  %v673_v49 = vcombine.high %v15648_v15, %v15648_v15  ;;  %vm6942_vm7 = vcmp.eq.s32.totalorder %v6315_v48, %v13878_v43 }
 0x2c0   : > { %v4503_v33 = vpack.c.bf16 %v4397_v19, %v4396_v23  ;;  %v5089_v28 = vpop.f32.mrb[61].mxu1  ;;  %v6307_v25 = vpop.permute.xlu1 %6306  ;;  %6710 = vbcast.lane.b32.xlu1 %v17965_v22, 288  ;;  %vm15717_vm4 = vmpackc.low %vm6939_vm9, %vm6938_vm3  ;;  %vm6941_vm1 = vcmp.eq.s32.totalorder %v6311_v57, %v13878_v43  ;;  %v11847_v42 = vsel %vm6942_vm7, 1.0, %v17816_v16  ;;  %v640_v17 = vrot.slane %v626_v52, %v14340_v56 }
 0x2c1   : > { %v13059_v62 = vpop.f32.mrb[62].mxu1  ;;  %v12974_v18 = vpop.f32.mrb[172].mxu0  ;;  %v17967_v39 = vsel %vm15717_vm4, 4294967295, %v17966_v39  ;;  %v4502_v23 = vpack.c.bf16 %v4395_v10, %v4394_v60  ;;  %v11846_v19 = vsel %vm6941_vm1, 1.0, %v17816_v16  ;;  %vm17969_vm9 = vcmask 261120  }
 0x2c2   : > { %17968 = vst [vmem:[#allocation23_spill] sm:$0xff] %v17967_v39  ;;  %v4208_v24 = vadd.f32 %v12974_v18, %v15700_v46  ;;  %v3635_v37 = vpop.f32.mrb[173].mxu0  ;;  %v5092_v63 = vpop.f32.mrb[63].mxu1  ;;  %v7502_v18 = vpack.c.bf16 %v11847_v42, %v11846_v19  ;;  %vm6940_vm3 = vcmp.eq.s32.totalorder %v6307_v25, %v13878_v43  ;;  %v17970_v39 = vld [vmem:[#allocation24_spill] sm:$0xff]  ;;  %vm17972_vm7 = vmmov %vm17969_vm9  ;;  %v15739_v52 = vrot.slane %v673_v49, %v13701_v4 }
 0x2c3   : > { %v4206_v15 = vadd.f32 %v15676_v9, %v3635_v37  ;;  %v5776_v1 = vmax.f32 %v5089_v28, %v5092_v63  ;;  %v12975_v11 = vpop.f32.mrb[174].mxu0  ;;  %v6319_v48 = vpop.permute.xlu0 %6318  ;;  %6706 = vbcast.lane.b32.xlu0 %v17965_v22, 280  ;;  %13164 = vmatprep.mubr.msk.bf16.mxu1 %vm17969_vm9, %v4502_v23  ;;  %vm15743_vm4 = vmpackc.low %vm6941_vm1, %vm6940_vm3  ;;  %v17974_v28 = vmov 0  ;;  %v642_v63 = vcombine.high %v640_v17, %v640_v17 }
 0x2c4   : > { %v4209_v60 = vadd.f32 %v12975_v11, %v15700_v46  ;;  %v3638_v10 = vpop.f32.mrb[175].mxu0  ;;  %v6327_v35 = vpop.permute.xlu1 %6326  ;;  %6718 = vbcast.lane.b32.xlu1 %v17970_v39, 280  ;;  %13165 = vmatmul.mubr.msk.bf16.gmra.mrb[168].mxu1 %vm17972_vm7, %v4503_v33  ;;  %17973 = vst [vmem:[#allocation94_spill] sm:$0xff] %v15739_v52  ;;  %v17975_v28 = vsel %vm15743_vm4, 4294967295, %v17974_v28  ;;  %v4400_v11 = vmax.f32 %v4208_v24, 0.0  ;;  %vm6943_vm9 = vcmp.eq.s32.totalorder %v6319_v48, %v13878_v43  ;;  %vm17983_vm4 = vmmov %vm17972_vm7 }
 0x2c5   : > { %v15735_v36 = vmax.f32 %v5776_v1, %v13058_v5  ;;  %17976 = vst [vmem:[#allocation95_spill] sm:$0xff] %v17975_v28  ;;  %v4207_v25 = vadd.f32 %v15676_v9, %v3638_v10  ;;  %v4398_v37 = vmax.f32 %v4206_v15, 0.0  ;;  %v11848_v33 = vsel %vm6943_vm9, 1.0, %v17816_v16 }
 0x2c6   : > { %v4401_v23 = vmax.f32 %v4209_v60, 0.0  ;;  %v15751_v1 = vunpack.c.h.b16 %v7502_v18  ;;  %v15755_v15 = vrot.slane %v640_v17, %v14340_v56  ;;  %vm6945_vm1 = vcmp.eq.s32.totalorder %v6327_v35, %v13878_v43 }
 0x2c7   : > { %17971 = vst [vmem:[#allocation24_spill] sm:$0xff] %v15735_v36  ;;  %v13062_v5 = vpop.f32.mrb[64].mxu1  ;;  %v6323_v42 = vpop.permute.xlu0 %6322  ;;  %6714 = vbcast.lane.b32.xlu0 %v17965_v22, 296  ;;  %v4399_v57 = vmax.f32 %v4207_v25, 0.0  ;;  %v7503_v36 = vpack.c.bf16 %v11848_v33, %v11848_v33 }
 0x2c8   : > { %v4505_v49 = vpack.c.bf16 %v4401_v23, %v4400_v11  ;;  %v5105_v19 = vpop.f32.mrb[65].mxu1  ;;  %17977 = vst [vmem:[#allocation96_spill] sm:$0xff] %v15751_v1  ;;  %v6335_v24 = vpop.permute.xlu1 %6334  ;;  %6726 = vbcast.lane.b32.xlu1 %v17970_v39, 296  ;;  %vm6944_vm3 = vcmp.eq.s32.totalorder %v6323_v42, %v13878_v43 }
 0x2c9   : > { %v5784_v60 = vmax.f32 %v13059_v62, %v5105_v19  ;;  %v13063_v10 = vpop.f32.mrb[66].mxu1  ;;  %v12978_v48 = vpop.f32.mrb[176].mxu0  ;;  %v4504_v9 = vpack.c.bf16 %v4399_v57, %v4398_v37  ;;  %v15759_v18 = vunpack.c.l.b16 %v7503_v36  ;;  %vm15773_vm9 = vmpackc.low %vm6945_vm1, %vm6944_vm3  ;;  %v17979_v36 = vmov 0 }
 0x2ca   : > { %v5792_v28 = vmax.f32 %v13062_v5, %v13063_v10  ;;  %v4212_v22 = vadd.f32 %v12978_v48, %v15739_v52  ;;  %v3651_v11 = vpop.f32.mrb[177].mxu0  ;;  %v5108_v23 = vpop.f32.mrb[67].mxu1  ;;  %v15769_v5 = vrot.slane %v642_v63, %v14340_v56  ;;  %v17980_v36 = vsel %vm15773_vm9, 4294967295, %v17979_v36 }
 0x2cb   : > { %v4210_v25 = vadd.f32 %v15700_v46, %v3651_v11  ;;  %v15762_v33 = vmax.f32 %v5784_v60, %v5108_v23  ;;  %v12979_v62 = vpop.f32.mrb[178].mxu0  ;;  %v6331_v19 = vpop.permute.xlu0 %6330  ;;  %6722 = vbcast.lane.b32.xlu0 %v17970_v39, 288  ;;  %13168 = vmatprep.mubr.msk.bf16.mxu1 %vm17972_vm7, %v4504_v9  ;;  %17981 = vst [vmem:[#allocation98_spill] sm:$0xff] %v17980_v36  ;;  %v17982_v60 = vld [vmem:[#allocation25_spill] sm:$0xff]  ;;  %v17985_v11 = vmov 0 }
 0x2cc   : > { %v4213_v17 = vadd.f32 %v12979_v62, %v15739_v52  ;;  %v3654_v37 = vpop.f32.mrb[179].mxu0  ;;  %v6343_v57 = vpop.permute.xlu1 %6342  ;;  %6734 = vbcast.lane.b32.xlu1 %v17982_v60, 288  ;;  %13169 = vmatmul.mubr.msk.bf16.gmra.mrb[172].mxu1 %vm17983_vm4, %v4505_v49  ;;  %v15784_v56 = vrot.slane %v15755_v15, %v13701_v4  ;;  %v4404_v9 = vmax.f32 %v4212_v22, 0.0  ;;  %vm6947_vm1 = vcmp.eq.s32.totalorder %v6335_v24, %v13878_v43 }
 0x2cd   : > { %17978 = vst [vmem:[#allocation97_spill] sm:$0xff] %v15762_v33  ;;  %v4211_v39 = vadd.f32 %v15739_v52, %v3654_v37  ;;  %vm6946_vm3 = vcmp.eq.s32.totalorder %v6331_v19, %v13878_v43  ;;  %v4402_v63 = vmax.f32 %v4210_v25, 0.0  ;;  %v15797_v22 = vrot.slane %v15769_v5, %v13701_v4  ;;  %v17989_v19 = vld [vmem:[#allocation26_spill] sm:$0xff] }
 0x2ce   : > { %17984 = vst [vmem:[#allocation25_spill] sm:$0xff] %v15784_v56  ;;  %v4405_v35 = vmax.f32 %v4213_v17, 0.0  ;;  %vm15790_vm7 = vmpackc.low %vm6947_vm1, %vm6946_vm3  ;;  %vm6949_vm4 = vcmp.eq.s32.totalorder %v6343_v57, %v13878_v43  ;;  %vm17991_vm3 = vcmask 261120  }
 0x2cf   : > { %v4403_v10 = vmax.f32 %v4211_v39, 0.0  ;;  %v13066_v48 = vpop.f32.mrb[68].mxu1  ;;  %v17986_v11 = vsel %vm15790_vm7, 4294967295, %v17985_v11  ;;  %v6339_v49 = vpop.permute.xlu0 %6338  ;;  %6730 = vbcast.lane.b32.xlu0 %v17982_v60, 280  ;;  %17988 = vst [vmem:[#allocation100_spill] sm:$0xff] %v15797_v22 }
 0x2d0   : > { %17987 = vst [vmem:[#allocation99_spill] sm:$0xff] %v17986_v11  ;;  %v4507_v23 = vpack.c.bf16 %v4405_v35, %v4404_v9  ;;  %v5121_v62 = vpop.f32.mrb[69].mxu1  ;;  %vm6948_vm9 = vcmp.eq.s32.totalorder %v6339_v49, %v13878_v43  ;;  %v6351_v25 = vpop.permute.xlu1 %6350  ;;  %6746 = vbcast.lane.b32.xlu1 %v17989_v19, 288  ;;  %v672_v9 = vcombine.high %v15755_v15, %v15755_v15  ;;  %v11852_v35 = vsel %vm6947_vm1, 1.0, %v17816_v16 }
 0x2d1   : > { %v4506_v17 = vpack.c.bf16 %v4403_v10, %v4402_v63  ;;  %v15802_v37 = vmax.f32 %v5792_v28, %v5121_v62  ;;  %v13067_v39 = vpop.f32.mrb[70].mxu1  ;;  %v12982_v42 = vpop.f32.mrb[180].mxu0  ;;  %v11854_v49 = vsel %vm6949_vm4, 1.0, %v17816_v16  ;;  %v11853_v33 = vsel %vm6948_vm9, 1.0, %v17816_v16  ;;  %vm17993_vm9 = vmmov %vm17991_vm3 }
 0x2d2   : > { %v4216_v52 = vadd.f32 %v12982_v42, %v15784_v56  ;;  %v3667_v57 = vpop.f32.mrb[181].mxu0  ;;  %v5124_v46 = vpop.f32.mrb[71].mxu1  ;;  %v7506_v42 = vpack.c.bf16 %v11853_v33, %v11852_v35  ;;  %vm6951_vm1 = vcmp.eq.s32.totalorder %v6351_v25, %v13878_v43  ;;  %v17995_v25 = vmov 0 }
 0x2d3   : > { %17990 = vst [vmem:[#allocation26_spill] sm:$0xff] %v15802_v37  ;;  %v4214_v28 = vadd.f32 %v15784_v56, %v3667_v57  ;;  %v5800_v63 = vmax.f32 %v5124_v46, %v13066_v48  ;;  %v12983_v10 = vpop.f32.mrb[182].mxu0  ;;  %13172 = vmatprep.mubr.msk.bf16.mxu1 %vm17991_vm3, %v4506_v17  ;;  %v6347_v62 = vpop.permute.xlu0 %6346  ;;  %6742 = vbcast.lane.b32.xlu0 %v17989_v19, 280 }
 0x2d4   : > { %v4217_v24 = vadd.f32 %v12983_v10, %v15797_v22  ;;  %v3670_v15 = vpop.f32.mrb[183].mxu0  ;;  %v7507_v37 = vpack.c.bf16 %v11854_v49, %v11854_v49  ;;  %v6363_v11 = vpop.permute.xlu1 %6362  ;;  %6738 = vbcast.lane.b32.xlu1 %v17982_v60, 296  ;;  %v4408_v36 = vmax.f32 %v4216_v52, 0.0  ;;  %13173 = vmatmul.mubr.msk.bf16.gmra.mrb[176].mxu1 %vm17993_vm9, %v4507_v23  ;;  %v15821_v46 = vrot.slane %v672_v9, %v13701_v4 }
 0x2d5   : > { %v15817_v1 = vmax.f32 %v5800_v63, %v13067_v39  ;;  %v4215_v17 = vadd.f32 %v15784_v56, %v3670_v15  ;;  %v15826_v10 = vunpack.c.h.b16 %v7506_v42  ;;  %v4406_v49 = vmax.f32 %v4214_v28, 0.0 }
 0x2d6   : > { %v4409_v48 = vmax.f32 %v4217_v24, 0.0  ;;  %v15824_v57 = vunpack.c.l.b16 %v7507_v37  ;;  %vm6950_vm4 = vcmp.eq.s32.totalorder %v6347_v62, %v13878_v43  ;;  %v17994_v37 = vld [vmem:[#allocation27_spill] sm:$0xff]  ;;  %v674_v28 = vcombine.high %v15769_v5, %v15769_v5 }
 0x2d7   : > { %17992 = vst [vmem:[#allocation101_spill] sm:$0xff] %v15817_v1  ;;  %v13070_v33 = vpop.f32.mrb[72].mxu1  ;;  %v6359_v60 = vpop.permute.xlu0 %6358  ;;  %6750 = vbcast.lane.b32.xlu0 %v17989_v19, 296  ;;  %v4407_v39 = vmax.f32 %v4215_v17, 0.0  ;;  %vm15836_vm3 = vmpackc.low %vm6951_vm1, %vm6950_vm4  ;;  %vm6954_vm9 = vcmp.eq.s32.totalorder %v6363_v11, %v13878_v43  ;;  %vm17998_vm1 = vcmask 261120   ;;  %v17999_v1 = vld [vmem:[#allocation28_spill] sm:$0xff] }
 0x2d8   : > { %v4509_v52 = vpack.c.bf16 %v4409_v48, %v4408_v36  ;;  %v5137_v23 = vpop.f32.mrb[73].mxu1  ;;  %v6355_v9 = vpop.permute.xlu1 %6354  ;;  %6758 = vbcast.lane.b32.xlu1 %v17994_v37, 288  ;;  %v17996_v25 = vsel %vm15836_vm3, 4294967295, %v17995_v25  ;;  %vm6953_vm7 = vcmp.eq.s32.totalorder %v6359_v60, %v13878_v43  ;;  %v11859_v42 = vsel %vm6954_vm9, 1.0, %v17816_v16  ;;  %vm18001_vm9 = vmmov %vm17998_vm1 }
 0x2d9   : > { %v13071_v63 = vpop.f32.mrb[74].mxu1  ;;  %v12986_v24 = vpop.f32.mrb[184].mxu0  ;;  %17997 = vst [vmem:[#allocation27_spill] sm:$0xff] %v17996_v25  ;;  %v4508_v36 = vpack.c.bf16 %v4407_v39, %v4406_v49  ;;  %v11858_v48 = vsel %vm6953_vm7, 1.0, %v17816_v16  ;;  %vm6952_vm4 = vcmp.eq.s32.totalorder %v6355_v9, %v13878_v43 }
 0x2da   : > { %v4220_v19 = vadd.f32 %v12986_v24, %v15821_v46  ;;  %v3683_v62 = vpop.f32.mrb[185].mxu0  ;;  %v5140_v15 = vpop.f32.mrb[75].mxu1  ;;  %v7510_v39 = vpack.c.bf16 %v11859_v42, %v11858_v48  ;;  %vm15861_vm3 = vmpackc.low %vm6953_vm7, %vm6952_vm4 }
 0x2db   : > { %v4218_v5 = vadd.f32 %v15797_v22, %v3683_v62  ;;  %v5808_v17 = vmax.f32 %v5137_v23, %v5140_v15  ;;  %v12987_v35 = vpop.f32.mrb[186].mxu0  ;;  %v6367_v56 = vpop.permute.xlu0 %6366  ;;  %6754 = vbcast.lane.b32.xlu0 %v17994_v37, 280  ;;  %13176 = vmatprep.mubr.msk.bf16.mxu1 %vm17998_vm1, %v4508_v36  ;;  %v15857_v23 = vrot.slane %v674_v28, %v13701_v4 }
 0x2dc   : > { %v4221_v11 = vadd.f32 %v12987_v35, %v15821_v46  ;;  %v3686_v49 = vpop.f32.mrb[187].mxu0  ;;  %v6375_v24 = vpop.permute.xlu1 %6374  ;;  %6766 = vbcast.lane.b32.xlu1 %v17999_v1, 280  ;;  %13177 = vmatmul.mubr.msk.bf16.gmra.mrb[180].mxu1 %vm18001_vm9, %v4509_v52  ;;  %v18002_v35 = vmov 0  ;;  %v4412_v36 = vmax.f32 %v4220_v19, 0.0  ;;  %vm6955_vm1 = vcmp.eq.s32.totalorder %v6367_v56, %v13878_v43 }
 0x2dd   : > { %v15853_v25 = vmax.f32 %v5808_v17, %v13070_v33  ;;  %v18003_v35 = vsel %vm15861_vm3, 4294967295, %v18002_v35  ;;  %v4219_v9 = vadd.f32 %v15797_v22, %v3686_v49  ;;  %v4410_v15 = vmax.f32 %v4218_v5, 0.0  ;;  %vm18008_vm3 = vmmov %vm18001_vm9 }
 0x2de   : > { %18004 = vst [vmem:[#allocation102_spill] sm:$0xff] %v18003_v35  ;;  %v4413_v62 = vmax.f32 %v4221_v11, 0.0  ;;  %v11860_v42 = vsel %vm6955_vm1, 1.0, %v17816_v16  ;;  %v15869_v48 = vunpack.c.h.b16 %v7510_v39  ;;  %vm6957_vm7 = vcmp.eq.s32.totalorder %v6375_v24, %v13878_v43 }
 0x2df   : > { %18000 = vst [vmem:[#allocation28_spill] sm:$0xff] %v15853_v25  ;;  %v13074_v33 = vpop.f32.mrb[76].mxu1  ;;  %v6371_v52 = vpop.permute.xlu0 %6370  ;;  %6762 = vbcast.lane.b32.xlu0 %v17994_v37, 296  ;;  %v4411_v28 = vmax.f32 %v4219_v9, 0.0  ;;  %v7511_v17 = vpack.c.bf16 %v11860_v42, %v11860_v42 }
 0x2e0   : > { %v4511_v4 = vpack.c.bf16 %v4413_v62, %v4412_v36  ;;  %v5153_v60 = vpop.f32.mrb[77].mxu1  ;;  %v6383_v25 = vpop.permute.xlu1 %6382  ;;  %6774 = vbcast.lane.b32.xlu1 %v17999_v1, 296  ;;  %vm6956_vm4 = vcmp.eq.s32.totalorder %v6371_v52, %v13878_v43 }
 0x2e1   : > { %v5816_v19 = vmax.f32 %v13071_v63, %v5153_v60  ;;  %v13075_v11 = vpop.f32.mrb[78].mxu1  ;;  %v12990_v49 = vpop.f32.mrb[188].mxu0  ;;  %v4510_v56 = vpack.c.bf16 %v4411_v28, %v4410_v15  ;;  %v15874_v36 = vunpack.c.l.b16 %v7511_v17  ;;  %vm15885_vm1 = vmpackc.low %vm6957_vm7, %vm6956_vm4  ;;  %v18007_v60 = vld [vmem:[#allocation29_spill] sm:$0xff] }
 0x2e2   : > { %v5824_v5 = vmax.f32 %v13074_v33, %v13075_v11  ;;  %v4224_v22 = vadd.f32 %v12990_v49, %v15857_v23  ;;  %v3699_v35 = vpop.f32.mrb[189].mxu0  ;;  %v5156_v37 = vpop.f32.mrb[79].mxu1  ;;  %v18009_v49 = vmov 0 }
 0x2e3   : > { %v4222_v39 = vadd.f32 %v15821_v46, %v3699_v35  ;;  %v15877_v62 = vmax.f32 %v5816_v19, %v5156_v37  ;;  %v12991_v9 = vpop.f32.mrb[190].mxu0  ;;  %v6379_v63 = vpop.permute.xlu0 %6378  ;;  %6770 = vbcast.lane.b32.xlu0 %v17999_v1, 288  ;;  %13180 = vmatprep.mubr.msk.bf16.mxu1 %vm18001_vm9, %v4510_v56  ;;  %vm6959_vm9 = vcmp.eq.s32.totalorder %v6383_v25, %v13878_v43 }
 0x2e4   : > { %v4225_v42 = vadd.f32 %v12991_v9, %v15857_v23  ;;  %v3702_v15 = vpop.f32.mrb[191].mxu0  ;;  %v6391_v35 = vpop.permute.xlu1 %6390  ;;  %6782 = vbcast.lane.b32.xlu1 %v18007_v60, 288  ;;  %13181 = vmatmul.mubr.msk.bf16.gmra.mrb[184].mxu1 %vm18008_vm3, %v4511_v4  ;;  %v4416_v1 = vmax.f32 %v4224_v22, 0.0  ;;  %vm6958_vm11 = vcmp.eq.s32.totalorder %v6379_v63, %v13878_v43  ;;  %v18011_v9 = vld [vmem:[#allocation30_spill] sm:$0xff] }
 0x2e5   : > { %v4223_v52 = vadd.f32 %v15857_v23, %v3702_v15  ;;  %v4414_v24 = vmax.f32 %v4222_v39, 0.0  ;;  %vm15898_vm7 = vmpackc.low %vm6959_vm9, %vm6958_vm11  ;;  %vm6961_vm3 = vcmp.eq.s32.totalorder %v6391_v35, %v13878_v43  ;;  %v11864_v15 = vsel %vm6959_vm9, 1.0, %v17816_v16 }
 0x2e6   : > { %v4417_v17 = vmax.f32 %v4225_v42, 0.0  ;;  %v18010_v49 = vsel %vm15898_vm7, 4294967295, %v18009_v49  ;;  %v11866_v28 = vsel %vm6961_vm3, 1.0, %v17816_v16  ;;  %vm18012_vm11 = vcmask 261120  }
 0x2e7   : > { %v4415_v19 = vmax.f32 %v4223_v52, 0.0  ;;  %v13078_v11 = vpop.f32.mrb[80].mxu1  ;;  %v6387_v56 = vpop.permute.xlu0 %6386  ;;  %6778 = vbcast.lane.b32.xlu0 %v18007_v60, 280  ;;  %v7515_v35 = vpack.c.bf16 %v11866_v28, %v11866_v28  ;;  %vm18013_vm7 = vmmov %vm18012_vm11 }
 0x2e8   : > { %v4513_v37 = vpack.c.bf16 %v4417_v17, %v4416_v1  ;;  %v5169_v4 = vpop.f32.mrb[81].mxu1  ;;  %vm6960_vm4 = vcmp.eq.s32.totalorder %v6387_v56, %v13878_v43  ;;  %v6399_v22 = vpop.permute.xlu1 %6398  ;;  %6794 = vbcast.lane.b32.xlu1 %v18011_v9, 288 }
 0x2e9   : > { %v4512_v39 = vpack.c.bf16 %v4415_v19, %v4414_v24  ;;  %v15906_v63 = vmax.f32 %v5824_v5, %v5169_v4  ;;  %v13079_v42 = vpop.f32.mrb[82].mxu1  ;;  %v11865_v1 = vsel %vm6960_vm4, 1.0, %v17816_v16  ;;  %v15919_v25 = vunpack.c.l.b16 %v7515_v35 }
 0x2ea   : > { %v5172_v52 = vpop.f32.mrb[83].mxu1  ;;  %v7514_v24 = vpack.c.bf16 %v11865_v1, %v11864_v15  ;;  %vm6963_vm9 = vcmp.eq.s32.totalorder %v6399_v22, %v13878_v43 }
 0x2eb   : > { %v5832_v17 = vmax.f32 %v5172_v52, %v13078_v11  ;;  %13184 = vmatprep.mubr.msk.bf16.mxu1 %vm18012_vm11, %v4512_v39  ;;  %v6395_v56 = vpop.permute.xlu0 %6394  ;;  %6790 = vbcast.lane.b32.xlu0 %v18011_v9, 280 }
 0x2ec   : > { %v6411_v5 = vpop.permute.xlu1 %6410  ;;  %6786 = vbcast.lane.b32.xlu1 %v18007_v60, 296  ;;  %13185 = vmatmul.mubr.msk.bf16.gmra.mrb[188].mxu1 %vm18013_vm7, %v4513_v37  ;;  %v15924_v11 = vunpack.c.h.b16 %v7514_v24  ;;  %vm6962_vm3 = vcmp.eq.s32.totalorder %v6395_v56, %v13878_v43 }
 0x2ed   : > { %v15916_v19 = vmax.f32 %v5832_v17, %v13079_v42  ;;  %13204 = vmatprep.mubr.msk.bf16.mxu1 %vm15282_vm10, %v17814_v8  ;;  %vm15928_vm4 = vmpackc.low %vm6963_vm9, %vm6962_vm3  ;;  %vm6966_vm10 = vcmp.eq.s32.totalorder %v6411_v5, %v13878_v43  ;;  %v18018_v5 = vpack.c.b16 %v15336_v34, %v15338_v53 }
 0x2ee   : > { %v11871_v15 = vsel %vm6966_vm10, 1.0, %v17816_v16  ;;  %v18084_v33 = vpack.c.b16 %v15919_v25, %v15924_v11 }
 0x2ef   : > { %v13082_v28 = vpop.f32.mrb[84].mxu1  ;;  %v6407_v60 = vpop.permute.xlu0 %6406  ;;  %6798 = vbcast.lane.b32.xlu0 %v18011_v9, 296 }
 0x2f0   : > { %v5185_v37 = vpop.f32.mrb[85].mxu1  ;;  %v6403_v39 = vpop.permute.xlu1 %6402  ;;  %6806 = vbcast.lane.b32.xlu1 %v14393_v27, 288  ;;  %vm6965_vm7 = vcmp.eq.s32.totalorder %v6407_v60, %v13878_v43 }
 0x2f1   : > { %v13083_v42 = vpop.f32.mrb[86].mxu1  ;;  %v11870_v52 = vsel %vm6965_vm7, 1.0, %v17816_v16  ;;  %vm6964_vm11 = vcmp.eq.s32.totalorder %v6403_v39, %v13878_v43 }
 0x2f2   : > { %v5188_v22 = vpop.f32.mrb[87].mxu1  ;;  %v7518_v1 = vpack.c.bf16 %v11871_v15, %v11870_v52  ;;  %vm15941_vm9 = vmpackc.low %vm6965_vm7, %vm6964_vm11 }
 0x2f3   : > { %v5840_v9 = vmax.f32 %v5185_v37, %v5188_v22  ;;  %v6415_v35 = vpop.permute.xlu0 %6414  ;;  %6802 = vbcast.lane.b32.xlu0 %v14393_v27, 280  ;;  %v13634_v37 = vld [vmem:[%s17545_s3] sm:$0xff]  }
 0x2f4   : > { %vm6967_vm3 = vcmp.eq.s32.totalorder %v6415_v35, %v13878_v43  ;;  %v6423_v56 = vpop.permute.xlu1 %6422  ;;  %6814 = vbcast.lane.b32.xlu1 %v14407_v55, 280  ;;  %13205 = vmatmul.mubr.msk.bf16.vlgmr.msra.gmra.mrb[192].mxu1 %vm15302_vm13, %v17814_v8  ;;  %v15960_v22 = vunpack.c.h.b16 %v7518_v1 }
 0x2f5   : > { %v15948_v24 = vmax.f32 %v5840_v9, %v13082_v28  ;;  %13208 = vmatprep.mubr.bf16.mxu1 %v18018_v5  ;;  %v11872_v60 = vsel %vm6967_vm3, 1.0, %v17816_v16  ;;  %13594 = vmatpush3.bf16.msra.mxu1 %v13634_v37  ;;  %vm6969_vm13 = vcmp.eq.s32.totalorder %v6423_v56, %v13878_v43 }
 0x2f6   : > { %v7519_v28 = vpack.c.bf16 %v11872_v60, %v11872_v60  ;;  %13593 = vmatprep.subr.bf16.mxu1 %v13635_v38 }
 0x2f7   : > { %v13086_v39 = vpop.f32.mrb[88].mxu1  ;;  %v6419_v15 = vpop.permute.xlu0 %6418  ;;  %6810 = vbcast.lane.b32.xlu0 %v14393_v27, 296 }
 0x2f8   : > { %v5201_v34 = vpop.f32.mrb[89].mxu1  ;;  %v6431_v53 = vpop.permute.xlu1 %6430  ;;  %6822 = vbcast.lane.b32.xlu1 %v14407_v55, 296  ;;  %v15967_v35 = vunpack.c.l.b16 %v7519_v28  ;;  %vm6968_vm10 = vcmp.eq.s32.totalorder %v6419_v15, %v13878_v43 }
 0x2f9   : > { %v5848_v52 = vmax.f32 %v13083_v42, %v5201_v34  ;;  %v13087_v9 = vpop.f32.mrb[90].mxu1  ;;  %13595 = vmatpush3.bf16.msra.mxu1 %v13635_v38  ;;  %vm15975_vm7 = vmpackc.low %vm6969_vm13, %vm6968_vm10  ;;  %vm6971_vm11 = vcmp.eq.s32.totalorder %v6431_v53, %v13878_v43 }
 0x2fa   : > { %v5856_v5 = vmax.f32 %v13086_v39, %v13087_v9  ;;  %v5204_v1 = vpop.f32.mrb[91].mxu1  ;;  %v11876_v47 = vsel %vm6971_vm11, 1.0, %v17816_v16  ;;  %v18087_v4 = vpack.c.b16 %v15967_v35, %v15960_v22 }
 0x2fb   : > { %v15971_v27 = vmax.f32 %v5848_v52, %v5204_v1  ;;  %v6427_v42 = vpop.permute.xlu0 %6426  ;;  %6818 = vbcast.lane.b32.xlu0 %v14407_v55, 288 }
 0x2fc   : > { %v6439_v28 = vpop.permute.xlu1 %6438  ;;  %6830 = vbcast.lane.b32.xlu1 %v14433_v58, 288  ;;  %13209 = vmatmul.mubr.msk.bf16.gmra.mrb[196].mxu1 %vm15351_vm2, %v17814_v8  ;;  %vm6970_vm3 = vcmp.eq.s32.totalorder %v6427_v42, %v13878_v43 }
 0x2fd   : > { %18019 = vst [vmem:[#allocation29_spill] sm:$0xff] %v15971_v27  ;;  %13212 = vmatprep.mubr.msk.bf16.mxu1 %vm15378_vm6, %v17814_v8  ;;  %vm15989_vm13 = vmpackc.low %vm6971_vm11, %vm6970_vm3  ;;  %vm6973_vm2 = vcmp.eq.s32.totalorder %v6439_v28, %v13878_v43 }
 0x2fe   : > { %v11878_v53 = vsel %vm6973_vm2, 1.0, %v17816_v16 }
 0x2ff   : > { %v13090_v55 = vpop.f32.mrb[92].mxu1  ;;  %v6435_v39 = vpop.permute.xlu0 %6434  ;;  %6826 = vbcast.lane.b32.xlu0 %v14433_v58, 280  ;;  %v7523_v9 = vpack.c.bf16 %v11878_v53, %v11878_v53 }
 0x300   : > { %v5217_v15 = vpop.f32.mrb[93].mxu1  ;;  %vm6972_vm10 = vcmp.eq.s32.totalorder %v6435_v39, %v13878_v43  ;;  %v6447_v38 = vpop.permute.xlu1 %6446  ;;  %6842 = vbcast.lane.b32.xlu1 %v14446_v59, 288 }
 0x301   : > { %v15998_v44 = vmax.f32 %v5856_v5, %v5217_v15  ;;  %v13091_v34 = vpop.f32.mrb[94].mxu1  ;;  %v11877_v1 = vsel %vm6972_vm10, 1.0, %v17816_v16  ;;  %v16003_v28 = vunpack.c.l.b16 %v7523_v9  ;;  %v18025_v5 = vpack.c.b16 %v15394_v30, %v15386_v41 }
 0x302   : > { %v5220_v52 = vpop.f32.mrb[95].mxu1  ;;  %v7522_v60 = vpack.c.bf16 %v11877_v1, %v11876_v47  ;;  %vm6975_vm6 = vcmp.eq.s32.totalorder %v6447_v38, %v13878_v43 }
 0x303   : > { %v5864_v42 = vmax.f32 %v5220_v52, %v13090_v55  ;;  %v6443_v61 = vpop.permute.xlu0 %6442  ;;  %6838 = vbcast.lane.b32.xlu0 %v14446_v59, 280 }
 0x304   : > { %v6459_v39 = vpop.permute.xlu1 %6458  ;;  %6834 = vbcast.lane.b32.xlu1 %v14433_v58, 296  ;;  %13213 = vmatmul.mubr.bf16.gmra.mrb[200].mxu1 %v18025_v5  ;;  %v16011_v15 = vunpack.c.h.b16 %v7522_v60  ;;  %vm6974_vm11 = vcmp.eq.s32.totalorder %v6443_v61, %v13878_v43 }
 0x305   : > { %v16006_v27 = vmax.f32 %v5864_v42, %v13091_v34  ;;  %13216 = vmatprep.mubr.msk.bf16.mxu1 %vm15408_vm12, %v17814_v8  ;;  %vm16018_vm3 = vmpackc.low %vm6975_vm6, %vm6974_vm11  ;;  %vm6978_vm12 = vcmp.eq.s32.totalorder %v6459_v39, %v13878_v43  ;;  %v18031_v39 = vpack.c.b16 %v15459_v2, %v15461_v20 }
 0x306   : > { %v11883_v38 = vsel %vm6978_vm12, 1.0, %v17816_v16  ;;  %v18089_v37 = vpack.c.b16 %v16003_v28, %v16011_v15 }
 0x307   : > { %18024 = vst [vmem:[#allocation30_spill] sm:$0xff] %v16006_v27  ;;  %v13094_v55 = vpop.f32.mrb[96].mxu1  ;;  %v6455_v58 = vpop.permute.xlu0 %6454  ;;  %6846 = vbcast.lane.b32.xlu0 %v14446_v59, 296 }
 0x308   : > { %v5233_v30 = vpop.f32.mrb[97].mxu1  ;;  %v6451_v60 = vpop.permute.xlu1 %6450  ;;  %6854 = vbcast.lane.b32.xlu1 %v14498_v51, 288  ;;  %vm6977_vm2 = vcmp.eq.s32.totalorder %v6455_v58, %v13878_v43 }
 0x309   : > { %v13095_v50 = vpop.f32.mrb[98].mxu1  ;;  %v11882_v34 = vsel %vm6977_vm2, 1.0, %v17816_v16  ;;  %vm6976_vm10 = vcmp.eq.s32.totalorder %v6451_v60, %v13878_v43 }
 0x30a   : > { %v5236_v61 = vpop.f32.mrb[99].mxu1  ;;  %v7526_v52 = vpack.c.bf16 %v11883_v38, %v11882_v34  ;;  %vm16031_vm6 = vmpackc.low %vm6977_vm2, %vm6976_vm10 }
 0x30b   : > { %v5872_v53 = vmax.f32 %v5233_v30, %v5236_v61  ;;  %v6463_v9 = vpop.permute.xlu0 %6462  ;;  %6850 = vbcast.lane.b32.xlu0 %v14498_v51, 280 }
 0x30c   : > { %vm6979_vm11 = vcmp.eq.s32.totalorder %v6463_v9, %v13878_v43  ;;  %v6471_v1 = vpop.permute.xlu1 %6470  ;;  %6862 = vbcast.lane.b32.xlu1 %v14522_v3, 280  ;;  %13217 = vmatmul.mubr.msk.bf16.gmra.mrb[204].mxu1 %vm15425_vm0, %v17814_v8  ;;  %v16047_v30 = vunpack.c.h.b16 %v7526_v52 }
 0x30d   : > { %v16038_v42 = vmax.f32 %v5872_v53, %v13094_v55  ;;  %13220 = vmatprep.mubr.bf16.mxu1 %v18031_v39  ;;  %v11884_v5 = vsel %vm6979_vm11, 1.0, %v17816_v16  ;;  %vm6981_vm0 = vcmp.eq.s32.totalorder %v6471_v1, %v13878_v43 }
 0x30e   : > { %v7527_v60 = vpack.c.bf16 %v11884_v5, %v11884_v5 }
 0x30f   : > { %18030 = vst [vmem:[#allocation103_spill] sm:$0xff] %v16038_v42  ;;  %v13098_v58 = vpop.f32.mrb[100].mxu1  ;;  %v6467_v61 = vpop.permute.xlu0 %6466  ;;  %6858 = vbcast.lane.b32.xlu0 %v14498_v51, 296  ;;  %v18075_v42 = vld [vmem:[#allocation27_spill] sm:$0xff] }
 0x310   : > { %v5249_v38 = vpop.f32.mrb[101].mxu1  ;;  %v6479_v55 = vpop.permute.xlu1 %6478  ;;  %6870 = vbcast.lane.b32.xlu1 %v14522_v3, 296  ;;  %v16051_v53 = vunpack.c.l.b16 %v7527_v60  ;;  %vm6980_vm12 = vcmp.eq.s32.totalorder %v6467_v61, %v13878_v43 }
 0x311   : > { %v5880_v34 = vmax.f32 %v13095_v50, %v5249_v38  ;;  %v13099_v7 = vpop.f32.mrb[102].mxu1  ;;  %vm16059_vm2 = vmpackc.low %vm6981_vm0, %vm6980_vm12  ;;  %vm6983_vm10 = vcmp.eq.s32.totalorder %v6479_v55, %v13878_v43 }
 0x312   : > { %v5888_v9 = vmax.f32 %v13098_v58, %v13099_v7  ;;  %v5252_v2 = vpop.f32.mrb[103].mxu1  ;;  %v11888_v45 = vsel %vm6983_vm10, 1.0, %v17816_v16  ;;  %v18092_v47 = vpack.c.b16 %v16051_v53, %v16047_v30 }
 0x313   : > { %v16055_v20 = vmax.f32 %v5880_v34, %v5252_v2  ;;  %v6475_v39 = vpop.permute.xlu0 %6474  ;;  %6866 = vbcast.lane.b32.xlu0 %v14522_v3, 288 }
 0x314   : > { %v6487_v50 = vpop.permute.xlu1 %6486  ;;  %6878 = vbcast.lane.b32.xlu1 %v14566_v12, 288  ;;  %13221 = vmatmul.mubr.msk.bf16.gmra.mrb[208].mxu1 %vm15473_vm8, %v17814_v8  ;;  %vm6982_vm11 = vcmp.eq.s32.totalorder %v6475_v39, %v13878_v43 }
 0x315   : > { %18032 = vst [vmem:[#allocation104_spill] sm:$0xff] %v16055_v20  ;;  %13224 = vmatprep.mubr.msk.bf16.mxu1 %vm15499_vm15, %v17814_v8  ;;  %vm16073_vm0 = vmpackc.low %vm6983_vm10, %vm6982_vm11  ;;  %vm6985_vm8 = vcmp.eq.s32.totalorder %v6487_v50, %v13878_v43 }
 0x316   : > { %v11890_v38 = vsel %vm6985_vm8, 1.0, %v17816_v16 }
 0x317   : > { %v13102_v3 = vpop.f32.mrb[104].mxu1  ;;  %v6483_v5 = vpop.permute.xlu0 %6482  ;;  %6874 = vbcast.lane.b32.xlu0 %v14566_v12, 280  ;;  %v7531_v34 = vpack.c.bf16 %v11890_v38, %v11890_v38 }
 0x318   : > { %v5265_v58 = vpop.f32.mrb[105].mxu1  ;;  %vm6984_vm12 = vcmp.eq.s32.totalorder %v6483_v5, %v13878_v43  ;;  %v6495_v60 = vpop.permute.xlu1 %6494  ;;  %6890 = vbcast.lane.b32.xlu1 %v14571_v6, 288 }
 0x319   : > { %v16082_v14 = vmax.f32 %v5888_v9, %v5265_v58  ;;  %v13103_v61 = vpop.f32.mrb[106].mxu1  ;;  %v11889_v7 = vsel %vm6984_vm12, 1.0, %v17816_v16  ;;  %v16087_v50 = vunpack.c.l.b16 %v7531_v34  ;;  %v18039_v9 = vpack.c.b16 %v15515_v26, %v15507_v13 }
 0x31a   : > { %v5268_v55 = vpop.f32.mrb[107].mxu1  ;;  %v7530_v39 = vpack.c.bf16 %v11889_v7, %v11888_v45  ;;  %vm6987_vm15 = vcmp.eq.s32.totalorder %v6495_v60, %v13878_v43  ;;  %v18043_v34 = vpack.c.b16 %v15580_v29, %v15582_v54  ;;  %vm18045_vm12 = vnez %v17940_v31  ;;  %v18052_v31 = vld [vmem:[#allocation88_spill] sm:$0xff] }
 0x31b   : > { %18037 = vst [vmem:[#allocation105_spill] sm:$0xff] %v16082_v14  ;;  %v5896_v2 = vmax.f32 %v5268_v55, %v13102_v3  ;;  %v6491_v52 = vpop.permute.xlu0 %6490  ;;  %6886 = vbcast.lane.b32.xlu0 %v14571_v6, 280 }
 0x31c   : > { %v6507_v5 = vpop.permute.xlu1 %6506  ;;  %6882 = vbcast.lane.b32.xlu1 %v14566_v12, 296  ;;  %13225 = vmatmul.mubr.bf16.gmra.mrb[212].mxu1 %v18039_v9  ;;  %v16095_v58 = vunpack.c.h.b16 %v7530_v39  ;;  %vm6986_vm10 = vcmp.eq.s32.totalorder %v6491_v52, %v13878_v43 }
 0x31d   : > { %v16090_v41 = vmax.f32 %v5896_v2, %v13103_v61  ;;  %13228 = vmatprep.mubr.msk.bf16.mxu1 %vm15529_vm5, %v17814_v8  ;;  %vm16102_vm11 = vmpackc.low %vm6987_vm15, %vm6986_vm10  ;;  %vm6990_vm5 = vcmp.eq.s32.totalorder %v6507_v5, %v13878_v43  ;;  %vm18046_vm15 = vnez %v17945_v32 }
 0x31e   : > { %v16115_v52 = vsel %vm6990_vm5, 1.0, %v17816_v16  ;;  %v18095_v51 = vpack.c.b16 %v16087_v50, %v16095_v58 }
 0x31f   : > { %18038 = vst [vmem:[#allocation106_spill] sm:$0xff] %v16090_v41  ;;  %v13106_v3 = vpop.f32.mrb[108].mxu1  ;;  %v16106_v12 = vpop.permute.xlu0 %6502  ;;  %6894 = vbcast.lane.b32.xlu0 %v14571_v6, 296 }
 0x320   : > { %v5281_v26 = vpop.f32.mrb[109].mxu1  ;;  %vm6989_vm8 = vcmp.eq.s32.totalorder %v16106_v12, %v13878_v43 }
 0x321   : > { %v13107_v61 = vpop.f32.mrb[110].mxu1  ;;  %v16121_v60 = vsel %vm6989_vm8, 1.0, %v17816_v16 }
 0x322   : > { %v5284_v0 = vpop.f32.mrb[111].mxu1  ;;  %v18097_v50 = vpack.c.bf16 %v16115_v52, %v16121_v60 }
 0x323   : > { %v5904_v38 = vmax.f32 %v5281_v26, %v5284_v0  ;;  %v16151_v6 = vpop.permute.xlu0 %6510 }
 0x324   : > { %13229 = vmatmul.mubr.msk.bf16.gmra.mrb[216].mxu1 %vm15546_vm14, %v17814_v8  ;;  %vm18053_vm14 = vnez %v18052_v31  ;;  %v7822_v58 = vunpack.c.h.b16 %v18097_v50 }
 0x325   : > { %v16125_v55 = vmax.f32 %v5904_v38, %v13106_v3  ;;  %13232 = vmatprep.mubr.bf16.mxu1 %v18043_v34  ;;  %v18049_v34 = vld [vmem:[#allocation86_spill] sm:$0xff] }
 0x327   : > { %18042 = vst [vmem:[#allocation107_spill] sm:$0xff] %v16125_v55  ;;  %v13110_v7 = vpop.f32.mrb[112].mxu1 }
 0x328   : > { %v5297_v2 = vpop.f32.mrb[113].mxu1 }
 0x329   : > { %v5912_v39 = vmax.f32 %v13107_v61, %v5297_v2  ;;  %v13111_v5 = vpop.f32.mrb[114].mxu1 }
 0x32a   : > { %v5920_v9 = vmax.f32 %v13110_v7, %v13111_v5  ;;  %v5300_v13 = vpop.f32.mrb[115].mxu1 }
 0x32b   : > { %v16133_v26 = vmax.f32 %v5912_v39, %v5300_v13  ;;  %v18050_v13 = vld [vmem:[#allocation85_spill] sm:$0xff] }
 0x32c   : > { %13233 = vmatmul.mubr.msk.bf16.gmra.mrb[220].mxu1 %vm18045_vm12, %v17814_v8  ;;  %v18051_v7 = vpack.c.b16 %v18049_v34, %v18050_v13 }
 0x32d   : > { %18044 = vst [vmem:[#allocation108_spill] sm:$0xff] %v16133_v26  ;;  %13236 = vmatprep.mubr.msk.bf16.mxu1 %vm18046_vm15, %v17814_v8 }
 0x32f   : > { %v13114_v21 = vpop.f32.mrb[116].mxu1 }
 0x330   : > { %v5313_v3 = vpop.f32.mrb[117].mxu1 }
 0x331   : > { %v16141_v29 = vmax.f32 %v5920_v9, %v5313_v3  ;;  %v13115_v54 = vpop.f32.mrb[118].mxu1 }
 0x332   : > { %v5316_v0 = vpop.f32.mrb[119].mxu1 }
 0x333   : > { %18047 = vst [vmem:[#allocation109_spill] sm:$0xff] %v16141_v29  ;;  %v5928_v61 = vmax.f32 %v5316_v0, %v13114_v21  ;;  %v18055_v21 = vld [vmem:[#allocation89_spill] sm:$0xff] }
 0x334   : > { %13237 = vmatmul.mubr.bf16.gmra.mrb[224].mxu1 %v18051_v7  ;;  %vm18056_vm10 = vnez %v18055_v21  ;;  %v18057_v0 = vld [vmem:[#allocation93_spill] sm:$0xff]  ;;  %v16163_v7 = vpop.permute.xlu0 %6514  ;;  %v18062_v21 = vld [vmem:[#allocation95_spill] sm:$0xff] }
 0x335   : > { %v16143_v38 = vmax.f32 %v5928_v61, %v13115_v54  ;;  %13240 = vmatprep.mubr.msk.bf16.mxu1 %vm18053_vm14, %v17814_v8  ;;  %v16158_v54 = vpop.permute.xlu1 %6498  ;;  %v18058_v61 = vpack.c.b16 %v15703_v40, %v18057_v0  ;;  %vm18063_vm12 = vnez %v18062_v21  ;;  %v18068_v21 = vld [vmem:[#allocation98_spill] sm:$0xff] }
 0x336   : > { %vm18069_vm15 = vnez %v18068_v21 }
 0x337   : > { %18048 = vst [vmem:[#allocation110_spill] sm:$0xff] %v16143_v38  ;;  %v13118_v2 = vpop.f32.mrb[120].mxu1 }
 0x338   : > { %v5329_v32 = vpop.f32.mrb[121].mxu1  ;;  %v16175_v40 = vpop.permute.xlu0 %6522 }
 0x339   : > { %v13119_v39 = vpop.f32.mrb[122].mxu1 }
 0x33a   : > { %v5332_v5 = vpop.f32.mrb[123].mxu1 }
 0x33b   : > { %v5936_v9 = vmax.f32 %v5329_v32, %v5332_v5  ;;  %v16167_v5 = vpop.permute.xlu1 %6518 }
 0x33c   : > { %13241 = vmatmul.mubr.msk.bf16.gmra.mrb[228].mxu1 %vm18056_vm10, %v17814_v8  ;;  %vm18076_vm10 = vnez %v18075_v42  ;;  %v18080_v42 = vpack.c.b16 %v15874_v36, %v15869_v48 }
 0x33d   : > { %v16153_v3 = vmax.f32 %v5936_v9, %v13118_v2  ;;  %13244 = vmatprep.mubr.bf16.mxu1 %v18058_v61  ;;  %v18060_v9 = vld [vmem:[#allocation23_spill] sm:$0xff] }
 0x33e   : > { %vm18061_vm5 = vnez %v18060_v9  ;;  %v18066_v9 = vld [vmem:[#allocation96_spill] sm:$0xff] }
 0x33f   : > { %18054 = vst [vmem:[#allocation86_spill] sm:$0xff] %v16153_v3  ;;  %v13122_v34 = vpop.f32.mrb[124].mxu1  ;;  %v18067_v3 = vpack.c.b16 %v15759_v18, %v18066_v9 }
 0x340   : > { %v5345_v13 = vpop.f32.mrb[125].mxu1 }
 0x341   : > { %v5944_v31 = vmax.f32 %v13119_v39, %v5345_v13  ;;  %v13123_v38 = vpop.f32.mrb[126].mxu1 }
 0x342   : > { %v5952_v29 = vmax.f32 %v13122_v34, %v13123_v38  ;;  %v5348_v32 = vpop.f32.mrb[127].mxu1  ;;  %v16179_v34 = vpop.permute.xlu1 %6526 }
 0x343   : > { %v16165_v2 = vmax.f32 %v5944_v31, %v5348_v32  ;;  %v16181_v32 = vpop.permute.xlu0 %6530 }
 0x344   : > { %13245 = vmatmul.mubr.msk.bf16.gmra.mrb[232].mxu1 %vm18061_vm5, %v17814_v8 }
 0x345   : > { %18059 = vst [vmem:[#allocation85_spill] sm:$0xff] %v16165_v2  ;;  %13248 = vmatprep.mubr.msk.bf16.mxu1 %vm18063_vm12, %v17814_v8  ;;  %vm18082_vm12 = vnez %v18010_v49 }
 0x346   : > { %v16191_v26 = vpop.permute.xlu1 %6534 }
 0x347   : > { %v13126_v0 = vpop.f32.mrb[128].mxu1  ;;  %v16193_v55 = vpop.permute.xlu0 %6538 }
 0x348   : > { %v5361_v61 = vpop.f32.mrb[129].mxu1 }
 0x349   : > { %v16177_v39 = vmax.f32 %v5952_v29, %v5361_v61  ;;  %v13127_v38 = vpop.f32.mrb[130].mxu1 }
 0x34a   : > { %v5364_v13 = vpop.f32.mrb[131].mxu1 }
 0x34b   : > { %18064 = vst [vmem:[#allocation88_spill] sm:$0xff] %v16177_v39  ;;  %v5960_v31 = vmax.f32 %v5364_v13, %v13126_v0  ;;  %v16205_v21 = vpop.permute.xlu0 %6550 }
 0x34c   : > { %13249 = vmatmul.mubr.bf16.gmra.mrb[236].mxu1 %v18067_v3  ;;  %v18073_v3 = vpack.c.b16 %v15824_v57, %v15826_v10 }
 0x34d   : > { %v16183_v2 = vmax.f32 %v5960_v31, %v13127_v38  ;;  %13252 = vmatprep.mubr.msk.bf16.mxu1 %vm18069_vm15, %v17814_v8  ;;  %v18070_v38 = vld [vmem:[#allocation99_spill] sm:$0xff]  ;;  %v16198_v31 = vpop.permute.xlu1 %6542 }
 0x34e   : > { %vm18071_vm14 = vnez %v18070_v38 }
 0x34f   : > { %18065 = vst [vmem:[#allocation89_spill] sm:$0xff] %v16183_v2  ;;  %v13130_v29 = vpop.f32.mrb[132].mxu1  ;;  %v16217_v57 = vpop.permute.xlu0 %6558 }
 0x350   : > { %v5377_v61 = vpop.f32.mrb[133].mxu1 }
 0x351   : > { %v13131_v39 = vpop.f32.mrb[134].mxu1 }
 0x352   : > { %v5380_v0 = vpop.f32.mrb[135].mxu1 }
 0x353   : > { %v5968_v13 = vmax.f32 %v5377_v61, %v5380_v0  ;;  %v16207_v0 = vpop.permute.xlu1 %6554 }
 0x354   : > { %13253 = vmatmul.mubr.msk.bf16.gmra.mrb[240].mxu1 %vm18071_vm14, %v17814_v8  ;;  %vm7002_vm15 = vcmp.eq.s32.totalorder %v16207_v0, %v13878_v43  ;;  %vm7001_vm14 = vcmp.eq.s32.totalorder %v16205_v21, %v13878_v43 }
 0x355   : > { %v16200_v18 = vmax.f32 %v5968_v13, %v13130_v29  ;;  %13256 = vmatprep.mubr.bf16.mxu1 %v18073_v3  ;;  %v18077_v29 = vld [vmem:[#allocation102_spill] sm:$0xff]  ;;  %v11906_v0 = vsel %vm7001_vm14, 1.0, %v17816_v16 }
 0x356   : > { %vm18078_vm5 = vnez %v18077_v29 }
 0x357   : > { %18072 = vst [vmem:[#allocation93_spill] sm:$0xff] %v16200_v18  ;;  %v13134_v9 = vpop.f32.mrb[136].mxu1 }
 0x358   : > { %v5393_v2 = vpop.f32.mrb[137].mxu1 }
 0x359   : > { %v5976_v41 = vmax.f32 %v13131_v39, %v5393_v2  ;;  %v13135_v14 = vpop.f32.mrb[138].mxu1  ;;  %v16219_v2 = vpop.permute.xlu1 %6546 }
 0x35a   : > { %v5984_v20 = vmax.f32 %v13134_v9, %v13135_v14  ;;  %v5396_v61 = vpop.f32.mrb[139].mxu1  ;;  %v16223_v9 = vpop.permute.xlu0 %6562 }
 0x35b   : > { %v16209_v38 = vmax.f32 %v5976_v41, %v5396_v61 }
 0x35c   : > { %13257 = vmatmul.mubr.msk.bf16.gmra.mrb[244].mxu1 %vm18076_vm10, %v17814_v8  ;;  %vm7003_vm10 = vcmp.eq.s32.totalorder %v16217_v57, %v13878_v43 }
 0x35d   : > { %18074 = vst [vmem:[#allocation23_spill] sm:$0xff] %v16209_v38  ;;  %13260 = vmatprep.mubr.msk.bf16.mxu1 %vm18078_vm5, %v17814_v8  ;;  %v16233_v29 = vpop.permute.xlu1 %6566  ;;  %vm6999_vm5 = vcmp.eq.s32.totalorder %v16198_v31, %v13878_v43 }
 0x35f   : > { %v13138_v10 = vpop.f32.mrb[140].mxu1 }
 0x360   : > { %v5409_v13 = vpop.f32.mrb[141].mxu1 }
 0x361   : > { %v16221_v14 = vmax.f32 %v5984_v20, %v5409_v13  ;;  %v13139_v39 = vpop.f32.mrb[142].mxu1  ;;  %v16240_v48 = vpop.permute.xlu1 %6574 }
 0x362   : > { %v5412_v3 = vpop.f32.mrb[143].mxu1 }
 0x363   : > { %18079 = vst [vmem:[#allocation95_spill] sm:$0xff] %v16221_v14  ;;  %v5992_v41 = vmax.f32 %v5412_v3, %v13138_v10  ;;  %v16235_v14 = vpop.permute.xlu0 %6570 }
 0x364   : > { %13261 = vmatmul.mubr.bf16.gmra.mrb[248].mxu1 %v18080_v42 }
 0x365   : > { %v16228_v61 = vmax.f32 %v5992_v41, %v13139_v39  ;;  %13264 = vmatprep.mubr.msk.bf16.mxu1 %vm15885_vm1, %v17814_v8  ;;  %vm6991_vm1 = vcmp.eq.s32.totalorder %v16151_v6, %v13878_v43 }
 0x367   : > { %18081 = vst [vmem:[#allocation96_spill] sm:$0xff] %v16228_v61  ;;  %v13142_v38 = vpop.f32.mrb[144].mxu1  ;;  %v16247_v41 = vpop.permute.xlu0 %6578 }
 0x368   : > { %v5425_v20 = vpop.f32.mrb[145].mxu1 }
 0x369   : > { %v13143_v13 = vpop.f32.mrb[146].mxu1 }
 0x36a   : > { %v5428_v10 = vpop.f32.mrb[147].mxu1 }
 0x36b   : > { %v6000_v3 = vmax.f32 %v5425_v20, %v5428_v10  ;;  %v16249_v10 = vpop.permute.xlu1 %6582  ;;  %v16259_v25 = vpop.permute.xlu0 %6586 }
 0x36c   : > { %13265 = vmatmul.mubr.msk.bf16.gmra.mrb[252].mxu1 %vm18082_vm12, %v17814_v8  ;;  %vm6998_vm12 = vcmp.eq.s32.totalorder %v16193_v55, %v13878_v43 }
 0x36d   : > { %v16242_v36 = vmax.f32 %v6000_v3, %v13142_v38  ;;  %13268 = vmatprep.mubr.bf16.mxu1 %v18084_v33 }
 0x36f   : > { %18083 = vst [vmem:[#allocation98_spill] sm:$0xff] %v16242_v36  ;;  %v13146_v39 = vpop.f32.mrb[148].mxu1 }
 0x370   : > { %v5441_v42 = vpop.f32.mrb[149].mxu1 }
 0x371   : > { %v6008_v61 = vmax.f32 %v13143_v13, %v5441_v42  ;;  %v13147_v18 = vpop.f32.mrb[150].mxu1  ;;  %v16261_v13 = vpop.permute.xlu1 %6590 }
 0x372   : > { %v6016_v27 = vmax.f32 %v13146_v39, %v13147_v18  ;;  %v5444_v20 = vpop.f32.mrb[151].mxu1  ;;  %v16265_v39 = vpop.permute.xlu0 %6598 }
 0x373   : > { %v16251_v49 = vmax.f32 %v6008_v61, %v5444_v20 }
 0x374   : > { %13269 = vmatmul.mubr.msk.bf16.gmra.mrb[0].mxu1 %vm15928_vm4, %v17814_v8  ;;  %vm6988_vm4 = vcmp.eq.s32.totalorder %v16158_v54, %v13878_v43 }
 0x375   : > { %18085 = vst [vmem:[#allocation99_spill] sm:$0xff] %v16251_v49  ;;  %13272 = vmatprep.mubr.msk.bf16.mxu1 %vm15941_vm9, %v17814_v8  ;;  %v16275_v17 = vpop.permute.xlu1 %6602  ;;  %vm6997_vm9 = vcmp.eq.s32.totalorder %v16191_v26, %v13878_v43 }
 0x376   : > { %v11902_v45 = vsel %vm6997_vm9, 1.0, %v17816_v16  ;;  %vm7009_vm9 = vcmp.eq.s32.totalorder %v16249_v10, %v13878_v43 }
 0x377   : > { %v13150_v11 = vpop.f32.mrb[152].mxu1  ;;  %v11914_v10 = vsel %vm7009_vm9, 1.0, %v17816_v16 }
 0x378   : > { %v5457_v38 = vpop.f32.mrb[153].mxu1 }
 0x379   : > { %v16263_v18 = vmax.f32 %v6016_v27, %v5457_v38  ;;  %v13151_v3 = vpop.f32.mrb[154].mxu1  ;;  %v16282_v22 = vpop.permute.xlu1 %6594 }
 0x37a   : > { %v5460_v33 = vpop.f32.mrb[155].mxu1 }
 0x37b   : > { %18086 = vst [vmem:[#allocation27_spill] sm:$0xff] %v16263_v18  ;;  %v6024_v61 = vmax.f32 %v5460_v33, %v13150_v11  ;;  %v16277_v18 = vpop.permute.xlu0 %6606 }
 0x37c   : > { %13273 = vmatmul.mubr.bf16.gmra.mrb[4].mxu1 %v18087_v4 }
 0x37d   : > { %v16270_v42 = vmax.f32 %v6024_v61, %v13151_v3  ;;  %13276 = vmatprep.mubr.msk.bf16.mxu1 %vm15975_vm7, %v17814_v8  ;;  %vm6996_vm7 = vcmp.eq.s32.totalorder %v16181_v32, %v13878_v43 }
 0x37e   : > { %v11901_v32 = vsel %vm6996_vm7, 1.0, %v17816_v16  ;;  %vm7008_vm7 = vcmp.eq.s32.totalorder %v16247_v41, %v13878_v43 }
 0x37f   : > { %18088 = vst [vmem:[#allocation102_spill] sm:$0xff] %v16270_v42  ;;  %v13154_v20 = vpop.f32.mrb[156].mxu1  ;;  %v16289_v61 = vpop.permute.xlu0 %6610  ;;  %v11913_v21 = vsel %vm7008_vm7, 1.0, %v17816_v16 }
 0x380   : > { %v5473_v27 = vpop.f32.mrb[157].mxu1 }
 0x381   : > { %v13155_v38 = vpop.f32.mrb[158].mxu1 }
 0x382   : > { %v5476_v11 = vpop.f32.mrb[159].mxu1 }
 0x383   : > { %v6032_v33 = vmax.f32 %v5473_v27, %v5476_v11  ;;  %v16291_v11 = vpop.permute.xlu1 %6614  ;;  %v16301_v28 = vpop.permute.xlu0 %6618 }
 0x384   : > { %13277 = vmatmul.mubr.msk.bf16.gmra.mrb[8].mxu1 %vm15989_vm13, %v17814_v8  ;;  %vm12346_vm13 = vmpackc.low %vm6989_vm8, %vm6988_vm4 }
 0x385   : > { %v16284_v35 = vmax.f32 %v6032_v33, %v13154_v20  ;;  %13280 = vmatprep.mubr.bf16.mxu1 %v18089_v37  ;;  %vm12059_vm4 = vmpackc.low %vm6999_vm5, %vm6998_vm12  ;;  %vm7011_vm5 = vcmp.eq.s32.totalorder %v16261_v13, %v13878_v43  ;;  %vm7010_vm12 = vcmp.eq.s32.totalorder %v16259_v25, %v13878_v43 }
 0x386   : > { %vm12063_vm7 = vmpackc.low %vm7011_vm5, %vm7010_vm12 }
 0x387   : > { %v13158_v3 = vpop.f32.mrb[160].mxu1 }
 0x388   : > { %v5489_v4 = vpop.f32.mrb[161].mxu1 }
 0x389   : > { %v6040_v42 = vmax.f32 %v13155_v38, %v5489_v4  ;;  %v13159_v49 = vpop.f32.mrb[162].mxu1  ;;  %v16303_v38 = vpop.permute.xlu1 %6622 }
 0x38a   : > { %v6048_v36 = vmax.f32 %v13158_v3, %v13159_v49  ;;  %v5492_v27 = vpop.f32.mrb[163].mxu1  ;;  %v16307_v3 = vpop.permute.xlu0 %6626 }
 0x38b   : > { %v16293_v56 = vmax.f32 %v6040_v42, %v5492_v27 }
 0x38c   : > { %13281 = vmatmul.mubr.msk.bf16.gmra.mrb[12].mxu1 %vm16018_vm3, %v17814_v8  ;;  %vm6995_vm3 = vcmp.eq.s32.totalorder %v16179_v34, %v13878_v43  ;;  %v11907_v34 = vsel %vm7002_vm15, 1.0, %v17816_v16  ;;  %vm7013_vm15 = vcmp.eq.s32.totalorder %v16265_v39, %v13878_v43 }
 0x38d   : > { %18090 = vst [vmem:[#allocation111_spill] sm:$0xff] %v16293_v56  ;;  %13284 = vmatprep.mubr.msk.bf16.mxu1 %vm16031_vm6, %v17814_v8  ;;  %v16317_v59 = vpop.permute.xlu1 %6630  ;;  %v11900_v12 = vsel %vm6995_vm3, 1.0, %v17816_v16  ;;  %vm6993_vm6 = vcmp.eq.s32.totalorder %v16167_v5, %v13878_v43 }
 0x38f   : > { %v13162_v15 = vpop.f32.mrb[164].mxu1 }
 0x390   : > { %v5505_v20 = vpop.f32.mrb[165].mxu1 }
 0x391   : > { %v16305_v49 = vmax.f32 %v6048_v36, %v5505_v20  ;;  %v13163_v33 = vpop.f32.mrb[166].mxu1  ;;  %v16326_v30 = vpop.permute.xlu1 %6638 }
 0x392   : > { %v5508_v37 = vpop.f32.mrb[167].mxu1 }
 0x393   : > { %18091 = vst [vmem:[#allocation112_spill] sm:$0xff] %v16305_v49  ;;  %v6056_v42 = vmax.f32 %v5508_v37, %v13162_v15  ;;  %v16319_v49 = vpop.permute.xlu0 %6634 }
 0x394   : > { %13285 = vmatmul.mubr.bf16.gmra.mrb[16].mxu1 %v18092_v47 }
 0x395   : > { %v16312_v4 = vmax.f32 %v6056_v42, %v13163_v33  ;;  %13288 = vmatprep.mubr.msk.bf16.mxu1 %vm16059_vm2, %v17814_v8  ;;  %v11896_v42 = vsel %vm6991_vm1, 1.0, %v17816_v16  ;;  %vm6992_vm2 = vcmp.eq.s32.totalorder %v16163_v7, %v13878_v43  ;;  %vm7000_vm1 = vcmp.eq.s32.totalorder %v16219_v2, %v13878_v43 }
 0x396   : > { %v7535_v6 = vpack.c.bf16 %v11896_v42, %v11896_v42  ;;  %v7538_v42 = vpack.c.bf16 %v11901_v32, %v11900_v12 }
 0x397   : > { %18093 = vst [vmem:[#allocation113_spill] sm:$0xff] %v16312_v4  ;;  %v13166_v27 = vpop.f32.mrb[168].mxu1  ;;  %v16334_v47 = vpop.permute.xlu0 %6646 }
 0x398   : > { %v5521_v36 = vpop.f32.mrb[169].mxu1  ;;  %v7823_v54 = vunpack.c.l.b16 %v7535_v6 }
 0x399   : > { %v13167_v20 = vpop.f32.mrb[170].mxu1 }
 0x39a   : > { %v5524_v15 = vpop.f32.mrb[171].mxu1 }
 0x39b   : > { %v6064_v37 = vmax.f32 %v5521_v36, %v5524_v15  ;;  %v16358_v26 = vpop.permute.xlu0 %6654 }
 0x39c   : > { %13289 = vmatmul.mubr.msk.bf16.gmra.mrb[20].mxu1 %vm16073_vm0, %v17814_v8  ;;  %vm12057_vm0 = vmpackc.low %vm6993_vm6, %vm6992_vm2  ;;  %vm7005_vm6 = vcmp.eq.s32.totalorder %v16233_v29, %v13878_v43  ;;  %vm7004_vm2 = vcmp.eq.s32.totalorder %v16223_v9, %v13878_v43 }
 0x39d   : > { %v16328_v53 = vmax.f32 %v6064_v37, %v13166_v27  ;;  %13292 = vmatprep.mubr.bf16.mxu1 %v18095_v51  ;;  %v16338_v27 = vpop.permute.xlu1 %6650 }
 0x39f   : > { %18094 = vst [vmem:[#allocation114_spill] sm:$0xff] %v16328_v53  ;;  %v13170_v33 = vpop.f32.mrb[172].mxu1  ;;  %v16374_v6 = vpop.permute.xlu0 %6658 }
 0x3a0   : > { %v5537_v36 = vpop.f32.mrb[173].mxu1 }
 0x3a1   : > { %v6072_v1 = vmax.f32 %v13167_v20, %v5537_v36  ;;  %v13171_v15 = vpop.f32.mrb[174].mxu1  ;;  %v16368_v60 = vpop.permute.xlu1 %6642  ;;  %v7967_v36 = vpack.c.b16 %v7823_v54, %v7822_v58 }
 0x3a2   : > { %v6080_v4 = vmax.f32 %v13170_v33, %v13171_v15  ;;  %v5540_v56 = vpop.f32.mrb[175].mxu1  ;;  %v7539_v33 = vpack.c.bf16 %v11902_v45, %v11902_v45 }
 0x3a3   : > { %v16340_v37 = vmax.f32 %v6072_v1, %v5540_v56  ;;  %v16383_v12 = vpop.permute.xlu0 %6666 }
 0x3a4   : > { %13293 = vmatmul.mubr.msk.bf16.gmra.mrb[24].mxu1 %vm16102_vm11, %v17814_v8  ;;  %v7829_v5 = vunpack.c.l.b16 %v7539_v33  ;;  %vm6994_vm11 = vcmp.eq.s32.totalorder %v16175_v40, %v13878_v43  ;;  %v7542_v33 = vpack.c.bf16 %v11907_v34, %v11906_v0  ;;  %v7547_v0 = vpack.c.bf16 %v11914_v10, %v11914_v10 }
 0x3a5   : > { %18096 = vst [vmem:[#allocation115_spill] sm:$0xff] %v16340_v37  ;;  %13296 = vmatprep.mubr.msk.bf16.mxu1 %vm12346_vm13, %v17814_v8  ;;  %v7828_v37 = vunpack.c.h.b16 %v7538_v42  ;;  %v16379_v53 = vpop.permute.xlu1 %6662  ;;  %vm12348_vm8 = vmpackc.low %vm6995_vm3, %vm6994_vm11  ;;  %vm7007_vm3 = vcmp.eq.s32.totalorder %v16240_v48, %v13878_v43  ;;  %vm7006_vm11 = vcmp.eq.s32.totalorder %v16235_v14, %v13878_v43  ;;  %v11918_v48 = vsel %vm7013_vm15, 1.0, %v17816_v16 }
 0x3a6   : > { %vm12350_vm13 = vmpackc.low %vm7001_vm14, %vm7000_vm1  ;;  %v7834_v55 = vunpack.c.h.b16 %v7542_v33  ;;  %v11912_v41 = vsel %vm7007_vm3, 1.0, %v17816_v16  ;;  %v7841_v29 = vunpack.c.l.b16 %v7547_v0  ;;  %vm7012_vm1 = vcmp.eq.s32.totalorder %v16282_v22, %v13878_v43 }
 0x3a7   : > { %v13174_v56 = vpop.f32.mrb[176].mxu1  ;;  %v7970_v54 = vpack.c.b16 %v7829_v5, %v7828_v37  ;;  %vm12352_vm14 = vmpackc.low %vm7007_vm3, %vm7006_vm11  ;;  %vm7020_vm3 = vcmp.eq.s32.totalorder %v16307_v3, %v13878_v43  ;;  %vm7016_vm11 = vcmp.eq.s32.totalorder %v16289_v61, %v13878_v43 }
 0x3a8   : > { %v5553_v52 = vpop.f32.mrb[177].mxu1 }
 0x3a9   : > { %v16372_v20 = vmax.f32 %v6080_v4, %v5553_v52  ;;  %v13175_v51 = vpop.f32.mrb[178].mxu1  ;;  %v16395_v40 = vpop.permute.xlu1 %6670  ;;  %v11908_v52 = vsel %vm7003_vm10, 1.0, %v17816_v16  ;;  %vm7015_vm10 = vcmp.eq.s32.totalorder %v16277_v18, %v13878_v43 }
 0x3aa   : > { %v5556_v1 = vpop.f32.mrb[179].mxu1 }
 0x3ab   : > { %v6088_v15 = vmax.f32 %v5556_v1, %v13174_v56  ;;  %v7543_v1 = vpack.c.bf16 %v11908_v52, %v11908_v52 }
 0x3ac   : > { %13297 = vmatmul.mubr.bf16.gmra.mrb[28].mxu1 %v7967_v36 }
 0x3ad   : > { %v16376_v50 = vmax.f32 %v6088_v15, %v13175_v51  ;;  %13300 = vmatprep.mubr.msk.bf16.mxu1 %vm12057_vm0, %v17814_v8  ;;  %v16405_v51 = vpop.permute.xlu0 %6674  ;;  %v7835_v2 = vunpack.c.l.b16 %v7543_v1  ;;  %vm12061_vm0 = vmpackc.low %vm7005_vm6, %vm7004_vm2  ;;  %vm7019_vm2 = vcmp.eq.s32.totalorder %v16303_v38, %v13878_v43 }
 0x3ae   : > { %vm12354_vm6 = vmpackc.low %vm7013_vm15, %vm7012_vm1  ;;  %v11924_v39 = vsel %vm7019_vm2, 1.0, %v17816_v16  ;;  %vm7026_vm1 = vcmp.eq.s32.totalorder %v16338_v27, %v13878_v43 }
 0x3af   : > { %v13178_v7 = vpop.f32.mrb[180].mxu1  ;;  %v7973_v52 = vpack.c.b16 %v7835_v2, %v7834_v55 }
 0x3b0   : > { %v5569_v4 = vpop.f32.mrb[181].mxu1 }
 0x3b1   : > { %v13179_v58 = vpop.f32.mrb[182].mxu1  ;;  %v16428_v31 = vpop.permute.xlu0 %6682 }
 0x3b2   : > { %v5572_v45 = vpop.f32.mrb[183].mxu1 }
 0x3b3   : > { %v6096_v32 = vmax.f32 %v5569_v4, %v5572_v45 }
 0x3b4   : > { %13301 = vmatmul.mubr.msk.bf16.gmra.mrb[32].mxu1 %vm12348_vm8, %v17814_v8  ;;  %vm7014_vm8 = vcmp.eq.s32.totalorder %v16275_v17, %v13878_v43 }
 0x3b5   : > { %v16397_v37 = vmax.f32 %v6096_v32, %v13178_v7  ;;  %13304 = vmatprep.mubr.bf16.mxu1 %v7970_v54  ;;  %v16413_v7 = vpop.permute.xlu1 %6678 }
 0x3b7   : > { %v13182_v56 = vpop.f32.mrb[184].mxu1 }
 0x3b8   : > { %v5585_v57 = vpop.f32.mrb[185].mxu1 }
 0x3b9   : > { %v6104_v42 = vmax.f32 %v13179_v58, %v5585_v57  ;;  %v13183_v36 = vpop.f32.mrb[186].mxu1  ;;  %v16438_v45 = vpop.permute.xlu1 %6686 }
 0x3ba   : > { %v6112_v15 = vmax.f32 %v13182_v56, %v13183_v36  ;;  %v5588_v5 = vpop.f32.mrb[187].mxu1  ;;  %v7546_v56 = vpack.c.bf16 %v11913_v21, %v11912_v41 }
 0x3bb   : > { %v16415_v4 = vmax.f32 %v6104_v42, %v5588_v5  ;;  %v16444_v42 = vpop.permute.xlu0 %6694 }
 0x3bc   : > { %13305 = vmatmul.mubr.msk.bf16.gmra.mrb[36].mxu1 %vm12059_vm4, %v17814_v8  ;;  %v7840_v1 = vunpack.c.h.b16 %v7546_v56  ;;  %vm18101_vm4 = vcmask 261120  }
 0x3bd   : > { %13308 = vmatprep.mubr.msk.bf16.mxu1 %vm12350_vm13, %v17814_v8  ;;  %v16449_v5 = vpop.permute.xlu1 %6698  ;;  %vm18102_vm9 = vmmov %vm18101_vm4  ;;  %vm7021_vm13 = vcmp.eq.s32.totalorder %v16317_v59, %v13878_v43 }
 0x3be   : > { %v7976_v21 = vpack.c.b16 %v7841_v29, %v7840_v1  ;;  %v11919_v29 = vsel %vm7014_vm8, 1.0, %v17816_v16  ;;  %vm18104_vm8 = vmmov %vm18101_vm4 }
 0x3bf   : > { %v13186_v58 = vpop.f32.mrb[188].mxu1  ;;  %vm18105_vm15 = vmmov %vm18101_vm4 }
 0x3c0   : > { %v5601_v54 = vpop.f32.mrb[189].mxu1  ;;  %vm18107_vm5 = vmmov %vm18101_vm4 }
 0x3c1   : > { %v16442_v32 = vmax.f32 %v6112_v15, %v5601_v54  ;;  %v13187_v34 = vpop.f32.mrb[190].mxu1  ;;  %v18098_v15 = vld [vmem:[#allocation31_spill] sm:$0xff]  ;;  %v18099_v54 = vld [vmem:[#allocation32_spill] sm:$0xff]  ;;  %vm18109_vm12 = vmmov %vm18101_vm4 }
 0x3c2   : > { %v5604_v57 = vpop.f32.mrb[191].mxu1 }
 0x3c3   : > { %v6120_v33 = vmax.f32 %v5604_v57, %v13186_v58  ;;  %v16455_v58 = vpop.permute.xlu0 %6702  ;;  %v16469_v57 = vpop.permute.xlu1 %6690 }
 0x3c4   : > { %13309 = vmatmul.mubr.bf16.gmra.mrb[40].mxu1 %v7973_v52 }
 0x3c5   : > { %v16446_v36 = vmax.f32 %v6120_v33, %v13187_v34  ;;  %13312 = vmatprep.mubr.msk.bf16.mxu1 %vm12061_vm0, %v17814_v8  ;;  %vm7017_vm0 = vcmp.eq.s32.totalorder %v16291_v11, %v13878_v43 }
 0x3c7   : > { %v13206_v9 = vpop.f32.mrb[192].mxu1  ;;  %v16490_v13 = vpop.permute.xlu1 %6710 }
 0x3c8   : > { %v8915_v55 = vadd.f32 %v13206_v9, %v18098_v15  ;;  %v8146_v2 = vpop.f32.mrb[193].mxu1  ;;  %v11920_v9 = vsel %vm7015_vm10, 1.0, %v17816_v16  ;;  %vm7018_vm10 = vcmp.eq.s32.totalorder %v16301_v28, %v13878_v43 }
 0x3c9   : > { %v8913_v41 = vadd.f32 %v8146_v2, %v18098_v15  ;;  %v13207_v10 = vpop.f32.mrb[194].mxu1  ;;  %v7550_v2 = vpack.c.bf16 %v11919_v29, %v11918_v48 }
 0x3ca   : > { %v8916_v34 = vadd.f32 %v13207_v10, %v18099_v54  ;;  %v8149_v0 = vpop.f32.mrb[195].mxu1  ;;  %v9107_v56 = vmax.f32 %v8915_v55, 0.0  ;;  %v16477_v55 = vpop.permute.xlu0 %6706 }
 0x3cb   : > { %v8914_v14 = vadd.f32 %v8149_v0, %v18098_v15  ;;  %v9105_v33 = vmax.f32 %v8913_v41, 0.0  ;;  %v18100_v41 = vld [vmem:[#allocation33_spill] sm:$0xff]  ;;  %v7846_v22 = vunpack.c.h.b16 %v7550_v2  ;;  %v18103_v2 = vld [vmem:[#allocation34_spill] sm:$0xff] }
 0x3cc   : > { %v9108_v52 = vmax.f32 %v8916_v34, 0.0  ;;  %13313 = vmatmul.mubr.msk.bf16.gmra.mrb[44].mxu1 %vm12352_vm14, %v17814_v8  ;;  %vm12065_vm14 = vmpackc.low %vm7017_vm0, %vm7016_vm11 }
 0x3cd   : > { %v9106_v17 = vmax.f32 %v8914_v14, 0.0  ;;  %13316 = vmatprep.mubr.bf16.mxu1 %v7976_v21  ;;  %v7551_v21 = vpack.c.bf16 %v11920_v9, %v11920_v9  ;;  %v11925_v9 = vsel %vm7020_vm3, 1.0, %v17816_v16  ;;  %vm7022_vm3 = vcmp.eq.s32.totalorder %v16319_v49, %v13878_v43 }
 0x3ce   : > { %v9298_v1 = vpack.c.bf16 %v9108_v52, %v9107_v56  ;;  %v16504_v59 = vpop.permute.xlu0 %6714 }
 0x3cf   : > { %v9297_v18 = vpack.c.bf16 %v9106_v17, %v9105_v33  ;;  %v13210_v15 = vpop.f32.mrb[196].mxu1  ;;  %v7847_v29 = vunpack.c.l.b16 %v7551_v21  ;;  %v16515_v21 = vpop.permute.xlu1 %6718 }
 0x3d0   : > { %v8919_v10 = vadd.f32 %v13210_v15, %v18100_v41  ;;  %v8162_v34 = vpop.f32.mrb[197].mxu1 }
 0x3d1   : > { %v8917_v0 = vadd.f32 %v8162_v34, %v18099_v54  ;;  %v13211_v14 = vpop.f32.mrb[198].mxu1  ;;  %13400 = vmatprep.mubr.msk.bf16.mxu0 %vm18101_vm4, %v9297_v18  ;;  %vm7025_vm4 = vcmp.eq.s32.totalorder %v16334_v47, %v13878_v43 }
 0x3d2   : > { %v8920_v56 = vadd.f32 %v13211_v14, %v18100_v41  ;;  %v8165_v52 = vpop.f32.mrb[199].mxu1  ;;  %13401 = vmatmul.mubr.msk.bf16.vlgmr.msra.gmra.mrb[192].mxu0 %vm18102_vm9, %v9298_v1  ;;  %v9111_v33 = vmax.f32 %v8919_v10, 0.0  ;;  %vm12356_vm9 = vmpackc.low %vm7019_vm2, %vm7018_vm10  ;;  %v11930_v38 = vsel %vm7025_vm4, 1.0, %v17816_v16  ;;  %vm7031_vm10 = vcmp.eq.s32.totalorder %v16395_v40, %v13878_v43 }
 0x3d3   : > { %v8918_v25 = vadd.f32 %v8165_v52, %v18099_v54  ;;  %v9109_v48 = vmax.f32 %v8917_v0, 0.0  ;;  %v11926_v54 = vsel %vm7021_vm13, 1.0, %v17816_v16  ;;  %v7554_v52 = vpack.c.bf16 %v11925_v9, %v11924_v39  ;;  %v16530_v9 = vpop.permute.xlu1 %6726  ;;  %vm18111_vm2 = vmmov %vm18107_vm5 }
 0x3d4   : > { %v9112_v17 = vmax.f32 %v8920_v56, 0.0  ;;  %13317 = vmatmul.mubr.msk.bf16.gmra.mrb[48].mxu1 %vm12063_vm7, %v17814_v8  ;;  %v7555_v56 = vpack.c.bf16 %v11926_v54, %v11926_v54  ;;  %vm7027_vm7 = vcmp.eq.s32.totalorder %v16358_v26, %v13878_v43  ;;  %vm7023_vm13 = vcmp.eq.s32.totalorder %v16326_v30, %v13878_v43  ;;  %vm18112_vm0 = vmmov %vm18111_vm2 }
 0x3d5   : > { %v9110_v1 = vmax.f32 %v8918_v25, 0.0  ;;  %13320 = vmatprep.mubr.msk.bf16.mxu1 %vm12354_vm6, %v17814_v8  ;;  %v7979_v25 = vpack.c.b16 %v7847_v29, %v7846_v22  ;;  %v7852_v22 = vunpack.c.h.b16 %v7554_v52  ;;  %v18108_v52 = vld [vmem:[#allocation36_spill] sm:$0xff]  ;;  %vm7024_vm6 = vcmp.eq.s32.totalorder %v16368_v60, %v13878_v43  ;;  %vm12067_vm11 = vmpackc.low %vm7023_vm13, %vm7022_vm3 }
 0x3d6   : > { %v9300_v3 = vpack.c.bf16 %v9112_v17, %v9111_v33  ;;  %v7853_v39 = vunpack.c.l.b16 %v7555_v56  ;;  %v11936_v47 = vsel %vm7031_vm10, 1.0, %v17816_v16  ;;  %vm18117_vm13 = vmmov %vm18112_vm0 }
 0x3d7   : > { %v9299_v18 = vpack.c.bf16 %v9110_v1, %v9109_v48  ;;  %v13214_v15 = vpop.f32.mrb[200].mxu1  ;;  %v16524_v1 = vpop.permute.xlu0 %6722  ;;  %vm18119_vm3 = vmmov %vm18112_vm0 }
 0x3d8   : > { %v8923_v10 = vadd.f32 %v13214_v15, %v18103_v2  ;;  %v8178_v34 = vpop.f32.mrb[201].mxu1 }
 0x3d9   : > { %v8921_v0 = vadd.f32 %v8178_v34, %v18100_v41  ;;  %v13215_v14 = vpop.f32.mrb[202].mxu1  ;;  %13404 = vmatprep.mubr.msk.bf16.mxu0 %vm18104_vm8, %v9299_v18  ;;  %vm7033_vm8 = vcmp.eq.s32.totalorder %v16413_v7, %v13878_v43 }
 0x3da   : > { %v8924_v33 = vadd.f32 %v13215_v14, %v18103_v2  ;;  %v8181_v17 = vpop.f32.mrb[203].mxu1  ;;  %13405 = vmatmul.mubr.msk.bf16.gmra.mrb[196].mxu0 %vm18105_vm15, %v9300_v3  ;;  %v9115_v61 = vmax.f32 %v8923_v10, 0.0  ;;  %vm7032_vm15 = vcmp.eq.s32.totalorder %v16405_v51, %v13878_v43 }
 0x3db   : > { %v8922_v48 = vadd.f32 %v8181_v17, %v18103_v2  ;;  %v9113_v18 = vmax.f32 %v8921_v0, 0.0  ;;  %v18106_v2 = vld [vmem:[#allocation35_spill] sm:$0xff]  ;;  %v7982_v0 = vpack.c.b16 %v7853_v39, %v7852_v22  ;;  %v16537_v56 = vpop.permute.xlu0 %6730  ;;  %v11932_v39 = vsel %vm7027_vm7, 1.0, %v17816_v16 }
 0x3dc   : > { %v9116_v41 = vmax.f32 %v8924_v33, 0.0  ;;  %13321 = vmatmul.mubr.bf16.gmra.mrb[52].mxu1 %v7979_v25  ;;  %vm7030_vm7 = vcmp.eq.s32.totalorder %v16383_v12, %v13878_v43 }
 0x3dd   : > { %v9114_v54 = vmax.f32 %v8922_v48, 0.0  ;;  %13324 = vmatprep.mubr.msk.bf16.mxu1 %vm12065_vm14, %v17814_v8  ;;  %vm12358_vm14 = vmpackc.low %vm7025_vm4, %vm7024_vm6  ;;  %vm7038_vm6 = vcmp.eq.s32.totalorder %v16449_v5, %v13878_v43 }
 0x3de   : > { %v9302_v29 = vpack.c.bf16 %v9116_v41, %v9115_v61  ;;  %v16552_v61 = vpop.permute.xlu1 %6734  ;;  %vm18115_vm4 = vmmov %vm18112_vm0 }
 0x3df   : > { %v9301_v3 = vpack.c.bf16 %v9114_v54, %v9113_v18  ;;  %v13218_v15 = vpop.f32.mrb[204].mxu1  ;;  %v11931_v18 = vsel %vm7026_vm1, 1.0, %v17816_v16  ;;  %vm18114_vm1 = vmmov %vm18112_vm0 }
 0x3e0   : > { %v8927_v11 = vadd.f32 %v13218_v15, %v18106_v2  ;;  %v8194_v34 = vpop.f32.mrb[205].mxu1  ;;  %v18110_v15 = vld [vmem:[#allocation37_spill] sm:$0xff] }
 0x3e1   : > { %v8925_v10 = vadd.f32 %v8194_v34, %v18106_v2  ;;  %v13219_v14 = vpop.f32.mrb[206].mxu1  ;;  %13408 = vmatprep.mubr.msk.bf16.mxu0 %vm18107_vm5, %v9301_v3  ;;  %v7558_v3 = vpack.c.bf16 %v11931_v18, %v11930_v38  ;;  %v7559_v34 = vpack.c.bf16 %v11932_v39, %v11932_v39  ;;  %vm7029_vm5 = vcmp.eq.s32.totalorder %v16379_v53, %v13878_v43 }
 0x3e2   : > { %v8928_v25 = vadd.f32 %v13219_v14, %v18108_v52  ;;  %v8197_v33 = vpop.f32.mrb[207].mxu1  ;;  %13409 = vmatmul.mubr.msk.bf16.gmra.mrb[200].mxu0 %vm18109_vm12, %v9302_v29  ;;  %v9119_v17 = vmax.f32 %v8927_v11, 0.0  ;;  %v16560_v29 = vpop.permute.xlu0 %6742  ;;  %vm7028_vm12 = vcmp.eq.s32.totalorder %v16374_v6, %v13878_v43 }
 0x3e3   : > { %v8926_v28 = vadd.f32 %v8197_v33, %v18106_v2  ;;  %v9117_v41 = vmax.f32 %v8925_v10, 0.0  ;;  %v16573_v30 = vpop.permute.xlu1 %6746  ;;  %v7858_v60 = vunpack.c.h.b16 %v7558_v3 }
 0x3e4   : > { %v9120_v48 = vmax.f32 %v8928_v25, 0.0  ;;  %13325 = vmatmul.mubr.msk.bf16.gmra.mrb[56].mxu1 %vm12356_vm9, %v17814_v8  ;;  %vm12069_vm9 = vmpackc.low %vm7029_vm5, %vm7028_vm12 }
 0x3e5   : > { %v9118_v27 = vmax.f32 %v8926_v28, 0.0  ;;  %13328 = vmatprep.mubr.bf16.mxu1 %v7982_v0  ;;  %vm18122_vm5 = vmmov %vm18114_vm1 }
 0x3e6   : > { %v9304_v54 = vpack.c.bf16 %v9120_v48, %v9119_v17  ;;  %v7859_v17 = vunpack.c.l.b16 %v7559_v34  ;;  %v16587_v7 = vpop.permute.xlu0 %6750 }
 0x3e7   : > { %v9303_v26 = vpack.c.bf16 %v9118_v27, %v9117_v41  ;;  %v13222_v22 = vpop.f32.mrb[208].mxu1  ;;  %v11937_v27 = vsel %vm7032_vm15, 1.0, %v17816_v16  ;;  %vm7034_vm15 = vcmp.eq.s32.totalorder %v16428_v31, %v13878_v43 }
 0x3e8   : > { %v8931_v2 = vadd.f32 %v13222_v22, %v18110_v15  ;;  %v8210_v11 = vpop.f32.mrb[209].mxu1  ;;  %v16598_v22 = vpop.permute.xlu1 %6738  ;;  %v7562_v34 = vpack.c.bf16 %v11937_v27, %v11936_v47 }
 0x3e9   : > { %v8929_v10 = vadd.f32 %v8210_v11, %v18108_v52  ;;  %v13223_v14 = vpop.f32.mrb[210].mxu1  ;;  %13412 = vmatprep.mubr.msk.bf16.mxu0 %vm18111_vm2, %v9303_v26  ;;  %vm7037_vm2 = vcmp.eq.s32.totalorder %v16444_v42, %v13878_v43 }
 0x3ea   : > { %v8932_v0 = vadd.f32 %v13223_v14, %v18110_v15  ;;  %v8213_v25 = vpop.f32.mrb[211].mxu1  ;;  %13413 = vmatmul.mubr.msk.bf16.gmra.mrb[204].mxu0 %vm18112_vm0, %v9304_v54  ;;  %v9123_v33 = vmax.f32 %v8931_v2, 0.0  ;;  %v18113_v54 = vld [vmem:[#allocation38_spill] sm:$0xff]  ;;  %vm12360_vm0 = vmpackc.low %vm7031_vm10, %vm7030_vm7  ;;  %v11942_v40 = vsel %vm7037_vm2, 1.0, %v17816_v16  ;;  %vm7043_vm7 = vcmp.eq.s32.totalorder %v16515_v21, %v13878_v43 }
 0x3eb   : > { %v8930_v49 = vadd.f32 %v8213_v25, %v18108_v52  ;;  %v9121_v48 = vmax.f32 %v8929_v10, 0.0  ;;  %v11938_v52 = vsel %vm7033_vm8, 1.0, %v17816_v16  ;;  %v7985_v10 = vpack.c.b16 %v7859_v17, %v7858_v60  ;;  %vm18121_vm10 = vmmov %vm18114_vm1 }
 0x3ec   : > { %v9124_v28 = vmax.f32 %v8932_v0, 0.0  ;;  %13329 = vmatmul.mubr.msk.bf16.gmra.mrb[60].mxu1 %vm12067_vm11, %v17814_v8  ;;  %v7563_v11 = vpack.c.bf16 %v11938_v52, %v11938_v52  ;;  %v7864_v60 = vunpack.c.h.b16 %v7562_v34  ;;  %v18116_v52 = vld [vmem:[#allocation39_spill] sm:$0xff]  ;;  %vm7039_vm11 = vcmp.eq.s32.totalorder %v16455_v58, %v13878_v43 }
 0x3ed   : > { %v9122_v41 = vmax.f32 %v8930_v49, 0.0  ;;  %13332 = vmatprep.mubr.msk.bf16.mxu1 %vm12358_vm14, %v17814_v8  ;;  %v16607_v49 = vpop.permute.xlu0 %6754  ;;  %vm7035_vm8 = vcmp.eq.s32.totalorder %v16438_v45, %v13878_v43  ;;  %vm7036_vm14 = vcmp.eq.s32.totalorder %v16469_v57, %v13878_v43  ;;  %v11948_v42 = vsel %vm7043_vm7, 1.0, %v17816_v16 }
 0x3ee   : > { %v9306_v51 = vpack.c.bf16 %v9124_v28, %v9123_v33  ;;  %vm12071_vm12 = vmpackc.low %vm7035_vm8, %vm7034_vm15 }
 0x3ef   : > { %v9305_v18 = vpack.c.bf16 %v9122_v41, %v9121_v48  ;;  %v13226_v38 = vpop.f32.mrb[212].mxu1  ;;  %v7865_v48 = vunpack.c.l.b16 %v7563_v11  ;;  %v16613_v41 = vpop.permute.xlu1 %6758 }
 0x3f0   : > { %v8935_v39 = vadd.f32 %v13226_v38, %v18113_v54  ;;  %v8226_v26 = vpop.f32.mrb[213].mxu1 }
 0x3f1   : > { %v8933_v3 = vadd.f32 %v8226_v26, %v18110_v15  ;;  %v13227_v2 = vpop.f32.mrb[214].mxu1  ;;  %13416 = vmatprep.mubr.msk.bf16.mxu0 %vm18114_vm1, %v9305_v18  ;;  %v18118_v26 = vld [vmem:[#allocation40_spill] sm:$0xff]  ;;  %vm7045_vm1 = vcmp.eq.s32.totalorder %v16530_v9, %v13878_v43 }
 0x3f2   : > { %v8936_v14 = vadd.f32 %v13227_v2, %v18113_v54  ;;  %v8229_v0 = vpop.f32.mrb[215].mxu1  ;;  %13417 = vmatmul.mubr.msk.bf16.gmra.mrb[208].mxu0 %vm18115_vm4, %v9306_v51  ;;  %v9127_v6 = vmax.f32 %v8935_v39, 0.0  ;;  %v16620_v39 = vpop.permute.xlu0 %6762  ;;  %vm7044_vm4 = vcmp.eq.s32.totalorder %v16524_v1, %v13878_v43 }
 0x3f3   : > { %v8934_v25 = vadd.f32 %v8229_v0, %v18113_v54  ;;  %v9125_v33 = vmax.f32 %v8933_v3, 0.0  ;;  %v7988_v54 = vpack.c.b16 %v7865_v48, %v7864_v60  ;;  %v11943_v0 = vsel %vm7038_vm6, 1.0, %v17816_v16  ;;  %v18120_v48 = vld [vmem:[#allocation41_spill] sm:$0xff]  ;;  %vm18124_vm6 = vmmov %vm18122_vm5 }
 0x3f4   : > { %v9128_v15 = vmax.f32 %v8936_v14, 0.0  ;;  %13333 = vmatmul.mubr.bf16.gmra.mrb[64].mxu1 %v7985_v10  ;;  %v16635_v10 = vpop.permute.xlu1 %6766 }
 0x3f5   : > { %v9126_v28 = vmax.f32 %v8934_v25, 0.0  ;;  %13336 = vmatprep.mubr.msk.bf16.mxu1 %vm12069_vm9, %v17814_v8  ;;  %vm12362_vm9 = vmpackc.low %vm7037_vm2, %vm7036_vm14  ;;  %vm7050_vm14 = vcmp.eq.s32.totalorder %v16573_v30, %v13878_v43 }
 0x3f6   : > { %v9308_v17 = vpack.c.bf16 %v9128_v15, %v9127_v6  ;;  %v11944_v6 = vsel %vm7039_vm11, 1.0, %v17816_v16  ;;  %vm18125_vm2 = vmmov %vm18122_vm5  ;;  %vm7042_vm11 = vcmp.eq.s32.totalorder %v16504_v59, %v13878_v43 }
 0x3f7   : > { %v9307_v51 = vpack.c.bf16 %v9126_v28, %v9125_v33  ;;  %v13230_v47 = vpop.f32.mrb[216].mxu1  ;;  %v16643_v33 = vpop.permute.xlu0 %6770  ;;  %v7566_v28 = vpack.c.bf16 %v11943_v0, %v11942_v40  ;;  %vm18127_vm8 = vmmov %vm18125_vm2 }
 0x3f8   : > { %v8939_v53 = vadd.f32 %v13230_v47, %v18116_v52  ;;  %v8242_v27 = vpop.f32.mrb[217].mxu1  ;;  %v16656_v45 = vpop.permute.xlu1 %6774  ;;  %vm18129_vm15 = vmmov %vm18125_vm2 }
 0x3f9   : > { %v8937_v18 = vadd.f32 %v8242_v27, %v18116_v52  ;;  %v13231_v38 = vpop.f32.mrb[218].mxu1  ;;  %13420 = vmatprep.mubr.msk.bf16.mxu0 %vm18117_vm13, %v9307_v51  ;;  %v7567_v51 = vpack.c.bf16 %v11944_v6, %v11944_v6  ;;  %v7870_v57 = vunpack.c.h.b16 %v7566_v28  ;;  %vm7041_vm13 = vcmp.eq.s32.totalorder %v16490_v13, %v13878_v43 }
 0x3fa   : > { %v8940_v3 = vadd.f32 %v13231_v38, %v18118_v26  ;;  %v8245_v2 = vpop.f32.mrb[219].mxu1  ;;  %13421 = vmatmul.mubr.msk.bf16.gmra.mrb[212].mxu0 %vm18119_vm3, %v9308_v17  ;;  %v9131_v11 = vmax.f32 %v8939_v53, 0.0  ;;  %vm7040_vm3 = vcmp.eq.s32.totalorder %v16477_v55, %v13878_v43 }
 0x3fb   : > { %v8938_v12 = vadd.f32 %v8245_v2, %v18116_v52  ;;  %v9129_v14 = vmax.f32 %v8937_v18, 0.0  ;;  %v16670_v9 = vpop.permute.xlu0 %6778 }
 0x3fc   : > { %v9132_v34 = vmax.f32 %v8940_v3, 0.0  ;;  %13337 = vmatmul.mubr.msk.bf16.gmra.mrb[68].mxu1 %vm12360_vm0, %v17814_v8  ;;  %v16681_v40 = vpop.permute.xlu1 %6782  ;;  %vm12073_vm0 = vmpackc.low %vm7041_vm13, %vm7040_vm3 }
 0x3fd   : > { %v9130_v5 = vmax.f32 %v8938_v12, 0.0  ;;  %13340 = vmatprep.mubr.bf16.mxu1 %v7988_v54  ;;  %v7871_v54 = vunpack.c.l.b16 %v7567_v51  ;;  %v11949_v12 = vsel %vm7044_vm4, 1.0, %v17816_v16  ;;  %vm7046_vm4 = vcmp.eq.s32.totalorder %v16537_v56, %v13878_v43  ;;  %vm18132_vm13 = vmmov %vm18125_vm2 }
 0x3fe   : > { %v9310_v25 = vpack.c.bf16 %v9132_v34, %v9131_v11 }
 0x3ff   : > { %v9309_v58 = vpack.c.bf16 %v9130_v5, %v9129_v14  ;;  %v13234_v15 = vpop.f32.mrb[220].mxu1  ;;  %v18123_v14 = vld [vmem:[#allocation42_spill] sm:$0xff]  ;;  %v7991_v28 = vpack.c.b16 %v7871_v54, %v7870_v57 }
 0x400   : > { %v8943_v60 = vadd.f32 %v13234_v15, %v18120_v48  ;;  %v8258_v17 = vpop.f32.mrb[221].mxu1  ;;  %v7570_v15 = vpack.c.bf16 %v11949_v12, %v11948_v42 }
 0x401   : > { %v8941_v47 = vadd.f32 %v8258_v17, %v18118_v26  ;;  %v13235_v52 = vpop.f32.mrb[222].mxu1  ;;  %13424 = vmatprep.mubr.msk.bf16.mxu0 %vm18121_vm10, %v9309_v58  ;;  %vm7049_vm10 = vcmp.eq.s32.totalorder %v16560_v29, %v13878_v43 }
 0x402   : > { %v8944_v53 = vadd.f32 %v13235_v52, %v18120_v48  ;;  %v8261_v27 = vpop.f32.mrb[223].mxu1  ;;  %13425 = vmatmul.mubr.msk.bf16.gmra.mrb[216].mxu0 %vm18122_vm5, %v9310_v25  ;;  %v9135_v18 = vmax.f32 %v8943_v60, 0.0  ;;  %vm12364_vm5 = vmpackc.low %vm7043_vm7, %vm7042_vm11  ;;  %v11954_v21 = vsel %vm7049_vm10, 1.0, %v17816_v16  ;;  %vm7055_vm11 = vcmp.eq.s32.totalorder %v16635_v10, %v13878_v43 }
 0x403   : > { %v8942_v31 = vadd.f32 %v8261_v27, %v18118_v26  ;;  %v9133_v3 = vmax.f32 %v8941_v47, 0.0  ;;  %v11950_v26 = vsel %vm7045_vm1, 1.0, %v17816_v16  ;;  %v16690_v47 = vpop.permute.xlu0 %6790  ;;  %vm7047_vm1 = vcmp.eq.s32.totalorder %v16552_v61, %v13878_v43  ;;  %vm18131_vm7 = vmmov %vm18125_vm2 }
 0x404   : > { %v9136_v38 = vmax.f32 %v8944_v53, 0.0  ;;  %13341 = vmatmul.mubr.msk.bf16.gmra.mrb[72].mxu1 %vm12071_vm12, %v17814_v8  ;;  %v7571_v58 = vpack.c.bf16 %v11950_v26, %v11950_v26  ;;  %vm7051_vm12 = vcmp.eq.s32.totalorder %v16587_v7, %v13878_v43  ;;  %vm12075_vm3 = vmpackc.low %vm7047_vm1, %vm7046_vm4  ;;  %v11960_v29 = vsel %vm7055_vm11, 1.0, %v17816_v16 }
 0x405   : > { %v9134_v2 = vmax.f32 %v8942_v31, 0.0  ;;  %13344 = vmatprep.mubr.msk.bf16.mxu1 %vm12362_vm9, %v17814_v8  ;;  %v7876_v31 = vunpack.c.h.b16 %v7570_v15  ;;  %vm7048_vm9 = vcmp.eq.s32.totalorder %v16598_v22, %v13878_v43  ;;  %vm18137_vm1 = vmmov %vm18131_vm7 }
 0x406   : > { %v9312_v1 = vpack.c.bf16 %v9136_v38, %v9135_v18  ;;  %v7877_v27 = vunpack.c.l.b16 %v7571_v58  ;;  %v16696_v18 = vpop.permute.xlu1 %6794  ;;  %v11955_v58 = vsel %vm7050_vm14, 1.0, %v17816_v16  ;;  %vm18134_vm14 = vmmov %vm18131_vm7 }
 0x407   : > { %v9311_v11 = vpack.c.bf16 %v9134_v2, %v9133_v3  ;;  %v13238_v34 = vpop.f32.mrb[224].mxu1  ;;  %v18126_v3 = vld [vmem:[#allocation43_spill] sm:$0xff]  ;;  %v16703_v12 = vpop.permute.xlu0 %6798  ;;  %vm18139_vm4 = vmmov %vm18137_vm1 }
 0x408   : > { %v8947_v5 = vadd.f32 %v13238_v34, %v18123_v14  ;;  %v8274_v0 = vpop.f32.mrb[225].mxu1  ;;  %v7994_v26 = vpack.c.b16 %v7877_v27, %v7876_v31 }
 0x409   : > { %v8945_v25 = vadd.f32 %v8274_v0, %v18120_v48  ;;  %v13239_v6 = vpop.f32.mrb[226].mxu1  ;;  %13428 = vmatprep.mubr.msk.bf16.mxu0 %vm18124_vm6, %v9311_v11  ;;  %v18128_v11 = vld [vmem:[#allocation44_spill] sm:$0xff]  ;;  %vm7057_vm6 = vcmp.eq.s32.totalorder %v16656_v45, %v13878_v43 }
 0x40a   : > { %v8948_v60 = vadd.f32 %v13239_v6, %v18123_v14  ;;  %v8277_v17 = vpop.f32.mrb[227].mxu1  ;;  %13429 = vmatmul.mubr.msk.bf16.gmra.mrb[220].mxu0 %vm18125_vm2, %v9312_v1  ;;  %v9139_v55 = vmax.f32 %v8947_v5, 0.0  ;;  %vm7056_vm2 = vcmp.eq.s32.totalorder %v16643_v33, %v13878_v43 }
 0x40b   : > { %v8946_v51 = vadd.f32 %v8277_v17, %v18123_v14  ;;  %v9137_v52 = vmax.f32 %v8945_v25, 0.0  ;;  %v16718_v25 = vpop.permute.xlu1 %6786  ;;  %v16726_v17 = vpop.permute.xlu0 %6802 }
 0x40c   : > { %v9140_v48 = vmax.f32 %v8948_v60, 0.0  ;;  %13345 = vmatmul.mubr.bf16.gmra.mrb[76].mxu1 %v7991_v28  ;;  %v11956_v28 = vsel %vm7051_vm12, 1.0, %v17816_v16  ;;  %vm7054_vm12 = vcmp.eq.s32.totalorder %v16620_v39, %v13878_v43 }
 0x40d   : > { %v9138_v53 = vmax.f32 %v8946_v51, 0.0  ;;  %13348 = vmatprep.mubr.msk.bf16.mxu1 %vm12073_vm0, %v17814_v8  ;;  %v7574_v51 = vpack.c.bf16 %v11955_v58, %v11954_v21  ;;  %vm12366_vm0 = vmpackc.low %vm7049_vm10, %vm7048_vm9  ;;  %vm7062_vm9 = vcmp.eq.s32.totalorder %v16696_v18, %v13878_v43 }
 0x40e   : > { %v9314_v57 = vpack.c.bf16 %v9140_v48, %v9139_v55  ;;  %v18130_v55 = vld [vmem:[#allocation45_spill] sm:$0xff]  ;;  %vm18135_vm10 = vmmov %vm18131_vm7 }
 0x40f   : > { %v9313_v38 = vpack.c.bf16 %v9138_v53, %v9137_v52  ;;  %v13242_v54 = vpop.f32.mrb[228].mxu1  ;;  %v7575_v53 = vpack.c.bf16 %v11956_v28, %v11956_v28  ;;  %v16739_v61 = vpop.permute.xlu1 %6806  ;;  %v7882_v22 = vunpack.c.h.b16 %v7574_v51 }
 0x410   : > { %v8951_v13 = vadd.f32 %v13242_v54, %v18126_v3  ;;  %v8290_v2 = vpop.f32.mrb[229].mxu1  ;;  %v16753_v45 = vpop.permute.xlu0 %6810 }
 0x411   : > { %v8949_v1 = vadd.f32 %v8290_v2, %v18126_v3  ;;  %v13243_v42 = vpop.f32.mrb[230].mxu1  ;;  %13432 = vmatprep.mubr.msk.bf16.mxu0 %vm18127_vm8, %v9313_v38  ;;  %vm7053_vm8 = vcmp.eq.s32.totalorder %v16613_v41, %v13878_v43 }
 0x412   : > { %v8952_v34 = vadd.f32 %v13243_v42, %v18128_v11  ;;  %v8293_v14 = vpop.f32.mrb[231].mxu1  ;;  %13433 = vmatmul.mubr.msk.bf16.gmra.mrb[224].mxu0 %vm18129_vm15, %v9314_v57  ;;  %v9143_v5 = vmax.f32 %v8951_v13, 0.0  ;;  %v7883_v13 = vunpack.c.l.b16 %v7575_v53  ;;  %v11962_v42 = vsel %vm7057_vm6, 1.0, %v17816_v16 }
 0x413   : > { %v8950_v59 = vadd.f32 %v8293_v14, %v18126_v3  ;;  %v9141_v6 = vmax.f32 %v8949_v1, 0.0  ;;  %v18133_v14 = vld [vmem:[#allocation46_spill] sm:$0xff]  ;;  %vm7052_vm15 = vcmp.eq.s32.totalorder %v16607_v49, %v13878_v43  ;;  %v7579_v58 = vpack.c.bf16 %v11962_v42, %v11962_v42 }
 0x414   : > { %v9144_v0 = vmax.f32 %v8952_v34, 0.0  ;;  %13349 = vmatmul.mubr.msk.bf16.gmra.mrb[80].mxu1 %vm12364_vm5, %v17814_v8  ;;  %v16773_v51 = vpop.permute.xlu0 %6818  ;;  %vm12077_vm5 = vmpackc.low %vm7053_vm8, %vm7052_vm15  ;;  %vm7059_vm6 = vcmp.eq.s32.totalorder %v16681_v40, %v13878_v43 }
 0x415   : > { %v9142_v30 = vmax.f32 %v8950_v59, 0.0  ;;  %13352 = vmatprep.mubr.bf16.mxu1 %v7994_v26  ;;  %v11961_v26 = vsel %vm7056_vm2, 1.0, %v17816_v16  ;;  %v7889_v53 = vunpack.c.l.b16 %v7579_v58  ;;  %vm7058_vm2 = vcmp.eq.s32.totalorder %v16670_v9, %v13878_v43  ;;  %vm18142_vm8 = vmmov %vm18137_vm1 }
 0x416   : > { %v9316_v15 = vpack.c.bf16 %v9144_v0, %v9143_v5  ;;  %v16764_v0 = vpop.permute.xlu1 %6814  ;;  %v7578_v21 = vpack.c.bf16 %v11961_v26, %v11960_v29  ;;  %vm12079_vm15 = vmpackc.low %vm7059_vm6, %vm7058_vm2 }
 0x417   : > { %v9315_v7 = vpack.c.bf16 %v9142_v30, %v9141_v6  ;;  %v13246_v60 = vpop.f32.mrb[232].mxu1 }
 0x418   : > { %v8955_v48 = vadd.f32 %v13246_v60, %v18130_v55  ;;  %v8306_v52 = vpop.f32.mrb[233].mxu1 }
 0x419   : > { %v8953_v27 = vadd.f32 %v8306_v52, %v18128_v11  ;;  %v13247_v31 = vpop.f32.mrb[234].mxu1  ;;  %13436 = vmatprep.mubr.msk.bf16.mxu0 %vm18131_vm7, %v9315_v7  ;;  %vm7061_vm7 = vcmp.eq.s32.totalorder %v16690_v47, %v13878_v43 }
 0x41a   : > { %v8956_v57 = vadd.f32 %v13247_v31, %v18130_v55  ;;  %v8309_v38 = vpop.f32.mrb[235].mxu1  ;;  %13437 = vmatmul.mubr.msk.bf16.gmra.mrb[228].mxu0 %vm18132_vm13, %v9316_v15  ;;  %v9147_v54 = vmax.f32 %v8955_v48, 0.0  ;;  %v7997_v15 = vpack.c.b16 %v7883_v13, %v7882_v22  ;;  %v18136_v22 = vld [vmem:[#allocation47_spill] sm:$0xff]  ;;  %vm12368_vm13 = vmpackc.low %vm7055_vm11, %vm7054_vm12  ;;  %v11966_v10 = vsel %vm7061_vm7, 1.0, %v17816_v16 }
 0x41b   : > { %v8954_v56 = vadd.f32 %v8309_v38, %v18128_v11  ;;  %v9145_v2 = vmax.f32 %v8953_v27, 0.0  ;;  %v7888_v27 = vunpack.c.h.b16 %v7578_v21  ;;  %vm18141_vm11 = vmmov %vm18137_vm1  ;;  %vm7067_vm12 = vcmp.eq.s32.totalorder %v16764_v0, %v13878_v43 }
 0x41c   : > { %v9148_v3 = vmax.f32 %v8956_v57, 0.0  ;;  %13353 = vmatmul.mubr.msk.bf16.gmra.mrb[84].mxu1 %vm12075_vm3, %v17814_v8  ;;  %v16779_v57 = vpop.permute.xlu1 %6822  ;;  %vm7063_vm3 = vcmp.eq.s32.totalorder %v16703_v12, %v13878_v43  ;;  %v11972_v47 = vsel %vm7067_vm12, 1.0, %v17816_v16 }
 0x41d   : > { %v9146_v1 = vmax.f32 %v8954_v56, 0.0  ;;  %13356 = vmatprep.mubr.msk.bf16.mxu1 %vm12366_vm0, %v17814_v8  ;;  %vm7060_vm0 = vcmp.eq.s32.totalorder %v16718_v25, %v13878_v43 }
 0x41e   : > { %v9318_v33 = vpack.c.bf16 %v9148_v3, %v9147_v54 }
 0x41f   : > { %v9317_v11 = vpack.c.bf16 %v9146_v1, %v9145_v2  ;;  %v13250_v34 = vpop.f32.mrb[236].mxu1  ;;  %v8000_v2 = vpack.c.b16 %v7889_v53, %v7888_v27  ;;  %v16786_v1 = vpop.permute.xlu0 %6826 }
 0x420   : > { %v8959_v59 = vadd.f32 %v13250_v34, %v18133_v14  ;;  %v8322_v5 = vpop.f32.mrb[237].mxu1  ;;  %v16801_v34 = vpop.permute.xlu1 %6830 }
 0x421   : > { %v8957_v6 = vadd.f32 %v8322_v5, %v18130_v55  ;;  %v13251_v30 = vpop.f32.mrb[238].mxu1  ;;  %13440 = vmatprep.mubr.msk.bf16.mxu0 %vm18134_vm14, %v9317_v11  ;;  %vm7069_vm14 = vcmp.eq.s32.totalorder %v16779_v57, %v13878_v43 }
 0x422   : > { %v8960_v28 = vadd.f32 %v13251_v30, %v18133_v14  ;;  %v8325_v7 = vpop.f32.mrb[239].mxu1  ;;  %13441 = vmatmul.mubr.msk.bf16.gmra.mrb[232].mxu0 %vm18135_vm10, %v9318_v33  ;;  %v9151_v49 = vmax.f32 %v8959_v59, 0.0  ;;  %v18138_v33 = vld [vmem:[#allocation48_spill] sm:$0xff]  ;;  %v11967_v59 = vsel %vm7062_vm9, 1.0, %v17816_v16  ;;  %vm7068_vm10 = vcmp.eq.s32.totalorder %v16773_v51, %v13878_v43  ;;  %vm18144_vm9 = vmmov %vm18142_vm8 }
 0x423   : > { %v8958_v60 = vadd.f32 %v8325_v7, %v18133_v14  ;;  %v9149_v48 = vmax.f32 %v8957_v6, 0.0  ;;  %v11968_v6 = vsel %vm7063_vm3, 1.0, %v17816_v16  ;;  %v16809_v58 = vpop.permute.xlu0 %6838  ;;  %v7582_v21 = vpack.c.bf16 %v11967_v59, %v11966_v10 }
 0x424   : > { %v9152_v55 = vmax.f32 %v8960_v28, 0.0  ;;  %13357 = vmatmul.mubr.bf16.gmra.mrb[88].mxu1 %v7997_v15  ;;  %v18140_v15 = vld [vmem:[#allocation49_spill] sm:$0xff]  ;;  %v16822_v40 = vpop.permute.xlu1 %6842  ;;  %vm7066_vm3 = vcmp.eq.s32.totalorder %v16753_v45, %v13878_v43 }
 0x425   : > { %v9150_v52 = vmax.f32 %v8958_v60, 0.0  ;;  %13360 = vmatprep.mubr.msk.bf16.mxu1 %vm12077_vm5, %v17814_v8  ;;  %v7583_v60 = vpack.c.bf16 %v11968_v6, %v11968_v6  ;;  %v7894_v25 = vunpack.c.h.b16 %v7582_v21  ;;  %vm12370_vm5 = vmpackc.low %vm7061_vm7, %vm7060_vm0  ;;  %vm7074_vm0 = vcmp.eq.s32.totalorder %v16822_v40, %v13878_v43 }
 0x426   : > { %v9320_v31 = vpack.c.bf16 %v9152_v55, %v9151_v49  ;;  %vm18145_vm7 = vmmov %vm18142_vm8 }
 0x427   : > { %v9319_v38 = vpack.c.bf16 %v9150_v52, %v9149_v48  ;;  %v13254_v56 = vpop.f32.mrb[240].mxu1  ;;  %v16836_v57 = vpop.permute.xlu0 %6846  ;;  %vm18147_vm6 = vmmov %vm18145_vm7 }
 0x428   : > { %v8963_v41 = vadd.f32 %v13254_v56, %v18136_v22  ;;  %v8338_v54 = vpop.f32.mrb[241].mxu1  ;;  %vm18149_vm2 = vmmov %vm18147_vm6 }
 0x429   : > { %v8961_v3 = vadd.f32 %v8338_v54, %v18136_v22  ;;  %v13255_v13 = vpop.f32.mrb[242].mxu1  ;;  %13444 = vmatprep.mubr.msk.bf16.mxu0 %vm18137_vm1, %v9319_v38  ;;  %vm7065_vm1 = vcmp.eq.s32.totalorder %v16739_v61, %v13878_v43 }
 0x42a   : > { %v8964_v29 = vadd.f32 %v13255_v13, %v18138_v33  ;;  %v8341_v42 = vpop.f32.mrb[243].mxu1  ;;  %13445 = vmatmul.mubr.msk.bf16.gmra.mrb[236].mxu0 %vm18139_vm4, %v9320_v31  ;;  %v9155_v26 = vmax.f32 %v8963_v41, 0.0  ;;  %v7895_v31 = vunpack.c.l.b16 %v7583_v60  ;;  %v11973_v41 = vsel %vm7068_vm10, 1.0, %v17816_v16  ;;  %v18143_v13 = vld [vmem:[#allocation50_spill] sm:$0xff] }
 0x42b   : > { %v8962_v39 = vadd.f32 %v8341_v42, %v18136_v22  ;;  %v9153_v14 = vmax.f32 %v8961_v3, 0.0  ;;  %v11974_v22 = vsel %vm7069_vm14, 1.0, %v17816_v16  ;;  %vm7064_vm4 = vcmp.eq.s32.totalorder %v16726_v17, %v13878_v43 }
 0x42c   : > { %v9156_v11 = vmax.f32 %v8964_v29, 0.0  ;;  %13361 = vmatmul.mubr.msk.bf16.gmra.mrb[92].mxu1 %vm12368_vm13, %v17814_v8  ;;  %v16847_v29 = vpop.permute.xlu1 %6834  ;;  %vm12081_vm13 = vmpackc.low %vm7065_vm1, %vm7064_vm4  ;;  %vm7071_vm14 = vcmp.eq.s32.totalorder %v16801_v34, %v13878_v43  ;;  %vm7070_vm10 = vcmp.eq.s32.totalorder %v16786_v1, %v13878_v43 }
 0x42d   : > { %v9154_v18 = vmax.f32 %v8962_v39, 0.0  ;;  %13364 = vmatprep.mubr.bf16.mxu1 %v8000_v2  ;;  %vm18152_vm1 = vmmov %vm18149_vm2 }
 0x42e   : > { %v9322_v5 = vpack.c.bf16 %v9156_v11, %v9155_v26  ;;  %v7587_v26 = vpack.c.bf16 %v11974_v22, %v11974_v22  ;;  %v7586_v11 = vpack.c.bf16 %v11973_v41, %v11972_v47  ;;  %v11979_v41 = vsel %vm7074_vm0, 1.0, %v17816_v16  ;;  %vm12083_vm4 = vmpackc.low %vm7071_vm14, %vm7070_vm10 }
 0x42f   : > { %v9321_v12 = vpack.c.bf16 %v9154_v18, %v9153_v14  ;;  %v13258_v30 = vpop.f32.mrb[244].mxu1  ;;  %v8003_v14 = vpack.c.b16 %v7895_v31, %v7894_v25  ;;  %vm18154_vm0 = vmmov %vm18152_vm1 }
 0x430   : > { %v8967_v28 = vadd.f32 %v13258_v30, %v18140_v15  ;;  %v8354_v7 = vpop.f32.mrb[245].mxu1  ;;  %v7901_v21 = vunpack.c.l.b16 %v7587_v26  ;;  %vm18157_vm14 = vmmov %vm18154_vm0 }
 0x431   : > { %v8965_v49 = vadd.f32 %v8354_v7, %v18138_v33  ;;  %v13259_v55 = vpop.f32.mrb[246].mxu1  ;;  %13448 = vmatprep.mubr.msk.bf16.mxu0 %vm18141_vm11, %v9321_v12  ;;  %v16862_v7 = vpop.permute.xlu1 %6854  ;;  %vm7073_vm11 = vcmp.eq.s32.totalorder %v16809_v58, %v13878_v43  ;;  %vm18159_vm10 = vmmov %vm18154_vm0 }
 0x432   : > { %v8968_v48 = vadd.f32 %v13259_v55, %v18140_v15  ;;  %v8357_v52 = vpop.f32.mrb[247].mxu1  ;;  %13449 = vmatmul.mubr.msk.bf16.gmra.mrb[240].mxu0 %vm18142_vm8, %v9322_v5  ;;  %v9159_v53 = vmax.f32 %v8967_v28, 0.0  ;;  %v16856_v5 = vpop.permute.xlu0 %6850  ;;  %v18146_v55 = vld [vmem:[#allocation51_spill] sm:$0xff]  ;;  %vm12372_vm8 = vmpackc.low %vm7067_vm12, %vm7066_vm3  ;;  %v11978_v0 = vsel %vm7073_vm11, 1.0, %v17816_v16 }
 0x433   : > { %v8966_v9 = vadd.f32 %v8357_v52, %v18138_v33  ;;  %v9157_v38 = vmax.f32 %v8965_v49, 0.0  ;;  %vm18151_vm12 = vmmov %vm18149_vm2 }
 0x434   : > { %v9160_v27 = vmax.f32 %v8968_v48, 0.0  ;;  %13365 = vmatmul.mubr.msk.bf16.gmra.mrb[96].mxu1 %vm12079_vm15, %v17814_v8  ;;  %vm7075_vm15 = vcmp.eq.s32.totalorder %v16836_v57, %v13878_v43 }
 0x435   : > { %v9158_v56 = vmax.f32 %v8966_v9, 0.0  ;;  %13368 = vmatprep.mubr.msk.bf16.mxu1 %vm12370_vm5, %v17814_v8  ;;  %v16884_v47 = vpop.permute.xlu1 %6862  ;;  %vm7072_vm5 = vcmp.eq.s32.totalorder %v16847_v29, %v13878_v43 }
 0x436   : > { %v9324_v51 = vpack.c.bf16 %v9160_v27, %v9159_v53  ;;  %v16869_v53 = vpop.permute.xlu0 %6858  ;;  %v18148_v27 = vld [vmem:[#allocation52_spill] sm:$0xff]  ;;  %vm7079_vm3 = vcmp.eq.s32.totalorder %v16884_v47, %v13878_v43 }
 0x437   : > { %v9323_v54 = vpack.c.bf16 %v9158_v56, %v9157_v38  ;;  %v13262_v3 = vpop.f32.mrb[248].mxu1  ;;  %v11984_v58 = vsel %vm7079_vm3, 1.0, %v17816_v16 }
 0x438   : > { %v8971_v2 = vadd.f32 %v13262_v3, %v18143_v13  ;;  %v8370_v33 = vpop.f32.mrb[249].mxu1  ;;  %v11980_v3 = vsel %vm7075_vm15, 1.0, %v17816_v16  ;;  %vm7078_vm15 = vcmp.eq.s32.totalorder %v16869_v53, %v13878_v43 }
 0x439   : > { %v8969_v42 = vadd.f32 %v8370_v33, %v18140_v15  ;;  %v13263_v39 = vpop.f32.mrb[250].mxu1  ;;  %13452 = vmatprep.mubr.msk.bf16.mxu0 %vm18144_vm9, %v9323_v54  ;;  %v7900_v15 = vunpack.c.h.b16 %v7586_v11  ;;  %v7590_v33 = vpack.c.bf16 %v11979_v41, %v11978_v0  ;;  %v7591_v11 = vpack.c.bf16 %v11980_v3, %v11980_v3  ;;  %v6871_v34 = vpop.permute.xlu1 %6870 }
 0x43a   : > { %v8972_v18 = vadd.f32 %v13263_v39, %v18143_v13  ;;  %v8373_v59 = vpop.f32.mrb[251].mxu1  ;;  %13453 = vmatmul.mubr.msk.bf16.gmra.mrb[244].mxu0 %vm18145_vm7, %v9324_v51  ;;  %v9163_v17 = vmax.f32 %v8971_v2, 0.0  ;;  %v6867_v2 = vpop.permute.xlu0 %6866  ;;  %vm7081_vm9 = vcmp.eq.s32.totalorder %v6871_v34, %v13878_v43  ;;  %v18158_v34 = vld [vmem:[#allocation56_spill] sm:$0xff] }
 0x43b   : > { %v8970_v10 = vadd.f32 %v8373_v59, %v18143_v13  ;;  %v9161_v12 = vmax.f32 %v8969_v42, 0.0  ;;  %v8006_v25 = vpack.c.b16 %v7901_v21, %v7900_v15  ;;  %v18150_v42 = vld [vmem:[#allocation53_spill] sm:$0xff]  ;;  %vm7080_vm7 = vcmp.eq.s32.totalorder %v6867_v2, %v13878_v43 }
 0x43c   : > { %v9164_v6 = vmax.f32 %v8972_v18, 0.0  ;;  %13369 = vmatmul.mubr.bf16.gmra.mrb[100].mxu1 %v8003_v14  ;;  %v7906_v29 = vunpack.c.h.b16 %v7590_v33 }
 0x43d   : > { %v9162_v30 = vmax.f32 %v8970_v10, 0.0  ;;  %13372 = vmatprep.mubr.msk.bf16.mxu1 %vm12081_vm13, %v17814_v8  ;;  %vm12374_vm13 = vmpackc.low %vm7073_vm11, %vm7072_vm5 }
 0x43e   : > { %v9326_v28 = vpack.c.bf16 %v9164_v6, %v9163_v17  ;;  %v16913_v15 = vpop.permute.xlu0 %6874  ;;  %vm18155_vm11 = vmmov %vm18154_vm0 }
 0x43f   : > { %v9325_v60 = vpack.c.bf16 %v9162_v30, %v9161_v12  ;;  %v13266_v49 = vpop.f32.mrb[252].mxu1  ;;  %v7907_v12 = vunpack.c.l.b16 %v7591_v11  ;;  %vm12376_vm5 = vmpackc.low %vm7079_vm3, %vm7078_vm15 }
 0x440   : > { %v8975_v61 = vadd.f32 %v13266_v49, %v18146_v55  ;;  %v8386_v48 = vpop.f32.mrb[253].mxu1  ;;  %v11985_v49 = vsel %vm7080_vm7, 1.0, %v17816_v16  ;;  %vm7082_vm7 = vcmp.eq.s32.totalorder %v16913_v15, %v13878_v43  ;;  %vm18161_vm3 = vmmov %vm18154_vm0 }
 0x441   : > { %v8973_v52 = vadd.f32 %v8386_v48, %v18146_v55  ;;  %v13267_v9 = vpop.f32.mrb[254].mxu1  ;;  %13456 = vmatprep.mubr.msk.bf16.mxu0 %vm18147_vm6, %v9325_v60  ;;  %v11986_v60 = vsel %vm7081_vm9, 1.0, %v17816_v16  ;;  %vm7077_vm6 = vcmp.eq.s32.totalorder %v16862_v7, %v13878_v43  ;;  %v18153_v48 = vld [vmem:[#allocation54_spill] sm:$0xff]  ;;  %vm18167_vm15 = vmmov %vm18161_vm3 }
 0x442   : > { %v8976_v31 = vadd.f32 %v13267_v9, %v18148_v27  ;;  %v8389_v38 = vpop.f32.mrb[255].mxu1  ;;  %13457 = vmatmul.mubr.msk.bf16.gmra.mrb[248].mxu0 %vm18149_vm2, %v9326_v28  ;;  %v9167_v56 = vmax.f32 %v8975_v61, 0.0  ;;  %vm7076_vm2 = vcmp.eq.s32.totalorder %v16856_v5, %v13878_v43  ;;  %v6887_v41 = vpop.permute.xlu0 %6886 }
 0x443   : > { %v8974_v45 = vadd.f32 %v8389_v38, %v18146_v55  ;;  %v9165_v22 = vmax.f32 %v8973_v52, 0.0  ;;  %v7594_v38 = vpack.c.bf16 %v11985_v49, %v11984_v58 }
 0x444   : > { %v9168_v51 = vmax.f32 %v8976_v31, 0.0  ;;  %13373 = vmatmul.mubr.msk.bf16.gmra.mrb[104].mxu1 %vm12372_vm8, %v17814_v8  ;;  %v7595_v31 = vpack.c.bf16 %v11986_v60, %v11986_v60  ;;  %vm12085_vm8 = vmpackc.low %vm7077_vm6, %vm7076_vm2 }
 0x445   : > { %v9166_v40 = vmax.f32 %v8974_v45, 0.0  ;;  %13376 = vmatprep.mubr.bf16.mxu1 %v8006_v25  ;;  %v8009_v45 = vpack.c.b16 %v7907_v12, %v7906_v29  ;;  %vm18162_vm6 = vmmov %vm18154_vm0 }
 0x446   : > { %v9328_v54 = vpack.c.bf16 %v9168_v51, %v9167_v56 }
 0x447   : > { %v9327_v57 = vpack.c.bf16 %v9166_v40, %v9165_v22  ;;  %v13270_v13 = vpop.f32.mrb[0].mxu1  ;;  %v6879_v22 = vpop.permute.xlu1 %6878 }
 0x448   : > { %v8979_v39 = vadd.f32 %v13270_v13, %v18150_v42  ;;  %v8402_v26 = vpop.f32.mrb[1].mxu1  ;;  %v7912_v13 = vunpack.c.h.b16 %v7594_v38  ;;  %vm7083_vm9 = vcmp.eq.s32.totalorder %v6879_v22, %v13878_v43 }
 0x449   : > { %v8977_v14 = vadd.f32 %v8402_v26, %v18148_v27  ;;  %v13271_v18 = vpop.f32.mrb[2].mxu1  ;;  %13460 = vmatprep.mubr.msk.bf16.mxu0 %vm18151_vm12, %v9327_v57  ;;  %v7913_v57 = vunpack.c.l.b16 %v7595_v31  ;;  %vm12087_vm2 = vmpackc.low %vm7083_vm9, %vm7082_vm7 }
 0x44a   : > { %v8980_v59 = vadd.f32 %v13271_v18, %v18150_v42  ;;  %v8405_v10 = vpop.f32.mrb[3].mxu1  ;;  %13461 = vmatmul.mubr.msk.bf16.gmra.mrb[252].mxu0 %vm18152_vm1, %v9328_v54  ;;  %v9171_v17 = vmax.f32 %v8979_v39, 0.0  ;;  %v18156_v39 = vld [vmem:[#allocation55_spill] sm:$0xff]  ;;  %vm7085_vm1 = vcmp.eq.s32.totalorder %v6887_v41, %v13878_v43 }
 0x44b   : > { %v8978_v1 = vadd.f32 %v8405_v10, %v18148_v27  ;;  %v9169_v30 = vmax.f32 %v8977_v14, 0.0  ;;  %v6891_v7 = vpop.permute.xlu1 %6890  ;;  %v6895_v10 = vpop.permute.xlu0 %6894  ;;  %v11990_v60 = vsel %vm7085_vm1, 1.0, %v17816_v16 }
 0x44c   : > { %v9172_v6 = vmax.f32 %v8980_v59, 0.0  ;;  %13377 = vmatmul.mubr.msk.bf16.gmra.mrb[108].mxu1 %vm12083_vm4, %v17814_v8  ;;  %v8012_v59 = vpack.c.b16 %v7913_v57, %v7912_v13  ;;  %vm7086_vm12 = vcmp.eq.s32.totalorder %v6891_v7, %v13878_v43  ;;  %vm7087_vm4 = vcmp.eq.s32.totalorder %v6895_v10, %v13878_v43  ;;  %v18163_v57 = vld [vmem:[#allocation58_spill] sm:$0xff] }
 0x44d   : > { %v9170_v21 = vmax.f32 %v8978_v1, 0.0  ;;  %13380 = vmatprep.mubr.msk.bf16.mxu1 %vm12374_vm13, %v17814_v8  ;;  %v11991_v47 = vsel %vm7086_vm12, 1.0, %v17816_v16  ;;  %vm18174_vm12 = vmmov %vm18161_vm3 }
 0x44e   : > { %v9330_v28 = vpack.c.bf16 %v9172_v6, %v9171_v17 }
 0x44f   : > { %v9329_v55 = vpack.c.bf16 %v9170_v21, %v9169_v30  ;;  %v13274_v61 = vpop.f32.mrb[4].mxu1 }
 0x450   : > { %v8983_v52 = vadd.f32 %v13274_v61, %v18153_v48  ;;  %v8418_v9 = vpop.f32.mrb[5].mxu1  ;;  %v18160_v61 = vld [vmem:[#allocation57_spill] sm:$0xff] }
 0x451   : > { %v8981_v25 = vadd.f32 %v8418_v9, %v18150_v42  ;;  %v13275_v27 = vpop.f32.mrb[6].mxu1  ;;  %13464 = vmatprep.mubr.msk.bf16.mxu0 %vm18154_vm0, %v9329_v55  ;;  %v11992_v55 = vsel %vm7087_vm4, 1.0, %v17816_v16 }
 0x452   : > { %v8984_v56 = vadd.f32 %v13275_v27, %v18153_v48  ;;  %v8421_v51 = vpop.f32.mrb[7].mxu1  ;;  %13465 = vmatmul.mubr.msk.bf16.gmra.mrb[0].mxu0 %vm18155_vm11, %v9330_v28  ;;  %v9175_v5 = vmax.f32 %v8983_v52, 0.0  ;;  %v6883_v28 = vpop.permute.xlu1 %6882  ;;  %v7598_v27 = vpack.c.bf16 %v11991_v47, %v11990_v60  ;;  %v7599_v31 = vpack.c.bf16 %v11992_v55, %v11992_v55  ;;  %vm18164_vm11 = vmmov %vm18161_vm3 }
 0x453   : > { %v8982_v40 = vadd.f32 %v8421_v51, %v18153_v48  ;;  %v9173_v54 = vmax.f32 %v8981_v25, 0.0  ;;  %vm7084_vm13 = vcmp.eq.s32.totalorder %v6883_v28, %v13878_v43 }
 0x454   : > { %v9176_v0 = vmax.f32 %v8984_v56, 0.0  ;;  %13381 = vmatmul.mubr.bf16.gmra.mrb[112].mxu1 %v8009_v45  ;;  %vm12378_vm0 = vmpackc.low %vm7085_vm1, %vm7084_vm13 }
 0x455   : > { %v9174_v3 = vmax.f32 %v8982_v40, 0.0  ;;  %13384 = vmatprep.mubr.msk.bf16.mxu1 %vm12085_vm8, %v17814_v8  ;;  %v7918_v40 = vunpack.c.h.b16 %v7598_v27  ;;  %vm18165_vm8 = vmmov %vm18161_vm3 }
 0x456   : > { %v9332_v2 = vpack.c.bf16 %v9176_v0, %v9175_v5  ;;  %v7919_v5 = vunpack.c.l.b16 %v7599_v31  ;;  %vm18175_vm1 = vmmov %vm18161_vm3 }
 0x457   : > { %v9331_v33 = vpack.c.bf16 %v9174_v3, %v9173_v54  ;;  %v13278_v42 = vpop.f32.mrb[8].mxu1  ;;  %vm18177_vm4 = vmmov %vm18175_vm1 }
 0x458   : > { %v8987_v26 = vadd.f32 %v13278_v42, %v18156_v39  ;;  %v8434_v11 = vpop.f32.mrb[9].mxu1  ;;  %v8015_v41 = vpack.c.b16 %v7919_v5, %v7918_v40  ;;  %vm18179_vm9 = vmmov %vm18175_vm1 }
 0x459   : > { %v8985_v14 = vadd.f32 %v8434_v11, %v18156_v39  ;;  %v13279_v18 = vpop.f32.mrb[10].mxu1  ;;  %13468 = vmatprep.mubr.msk.bf16.mxu0 %vm18157_vm14, %v9331_v33  ;;  %vm18169_vm14 = vmmov %vm18161_vm3 }
 0x45a   : > { %v8988_v1 = vadd.f32 %v13279_v18, %v18158_v34  ;;  %v8437_v29 = vpop.f32.mrb[11].mxu1  ;;  %13469 = vmatmul.mubr.msk.bf16.gmra.mrb[4].mxu0 %vm18159_vm10, %v9332_v2  ;;  %v9179_v17 = vmax.f32 %v8987_v26, 0.0  ;;  %vm18171_vm10 = vmmov %vm18161_vm3 }
 0x45b   : > { %v8986_v53 = vadd.f32 %v8437_v29, %v18156_v39  ;;  %v9177_v12 = vmax.f32 %v8985_v14, 0.0  ;;  %vm18181_vm7 = vmmov %vm18175_vm1 }
 0x45c   : > { %v9180_v6 = vmax.f32 %v8988_v1, 0.0  ;;  %13385 = vmatmul.mubr.msk.bf16.gmra.mrb[116].mxu1 %vm12376_vm5, %v17814_v8  ;;  %vm18172_vm5 = vmmov %vm18161_vm3 }
 0x45d   : > { %v9178_v30 = vmax.f32 %v8986_v53, 0.0  ;;  %13388 = vmatprep.mubr.bf16.mxu1 %v8012_v59  ;;  %vm18182_vm13 = vmmov %vm18175_vm1 }
 0x45e   : > { %v9334_v21 = vpack.c.bf16 %v9180_v6, %v9179_v17  ;;  %v18168_v6 = vld [vmem:[#allocation60_spill] sm:$0xff] }
 0x45f   : > { %v9333_v58 = vpack.c.bf16 %v9178_v30, %v9177_v12  ;;  %v13282_v49 = vpop.f32.mrb[12].mxu1 }
 0x460   : > { %v8991_v48 = vadd.f32 %v13282_v49, %v18160_v61  ;;  %v8450_v52 = vpop.f32.mrb[13].mxu1 }
 0x461   : > { %v8989_v9 = vadd.f32 %v8450_v52, %v18158_v34  ;;  %v13283_v25 = vpop.f32.mrb[14].mxu1  ;;  %13472 = vmatprep.mubr.msk.bf16.mxu0 %vm18161_vm3, %v9333_v58  ;;  %vm18186_vm3 = vmmov %vm18175_vm1 }
 0x462   : > { %v8992_v38 = vadd.f32 %v13283_v25, %v18160_v61  ;;  %v8453_v16 = vpop.f32.mrb[15].mxu1  ;;  %13473 = vmatmul.mubr.msk.bf16.gmra.mrb[8].mxu0 %vm18162_vm6, %v9334_v21  ;;  %v9183_v45 = vmax.f32 %v8991_v48, 0.0  ;;  %v18170_v48 = vld [vmem:[#allocation61_spill] sm:$0xff]  ;;  %vm18188_vm6 = vmmov %vm18175_vm1 }
 0x463   : > { %v8990_v15 = vadd.f32 %v8453_v16, %v18158_v34  ;;  %v9181_v51 = vmax.f32 %v8989_v9, 0.0  ;;  %v18166_v34 = vld [vmem:[#allocation59_spill] sm:$0xff] }
 0x464   : > { %v9184_v56 = vmax.f32 %v8992_v38, 0.0  ;;  %13389 = vmatmul.mubr.msk.bf16.gmra.mrb[120].mxu1 %vm12087_vm2, %v17814_v8  ;;  %vm18192_vm2 = vmmov %vm18175_vm1 }
 0x465   : > { %v9182_v22 = vmax.f32 %v8990_v15, 0.0  ;;  %13392 = vmatprep.mubr.msk.bf16.mxu1 %vm12378_vm0, %v17814_v8  ;;  %vm18194_vm0 = vmmov %vm18175_vm1 }
 0x466   : > { %v9336_v0 = vpack.c.bf16 %v9184_v56, %v9183_v45 }
 0x467   : > { %v9335_v54 = vpack.c.bf16 %v9182_v22, %v9181_v51  ;;  %v13286_v3 = vpop.f32.mrb[16].mxu1 }
 0x468   : > { %v8995_v13 = vadd.f32 %v13286_v3, %v18163_v57  ;;  %v8466_v2 = vpop.f32.mrb[17].mxu1 }
 0x469   : > { %v8993_v33 = vadd.f32 %v8466_v2, %v18160_v61  ;;  %v13287_v43 = vpop.f32.mrb[18].mxu1  ;;  %13476 = vmatprep.mubr.msk.bf16.mxu0 %vm18164_vm11, %v9335_v54  ;;  %vm18199_vm11 = vmmov %vm18194_vm0 }
 0x46a   : > { %v8996_v42 = vadd.f32 %v13287_v43, %v18163_v57  ;;  %v8469_v39 = vpop.f32.mrb[19].mxu1  ;;  %13477 = vmatmul.mubr.msk.bf16.gmra.mrb[12].mxu0 %vm18165_vm8, %v9336_v0  ;;  %v9187_v26 = vmax.f32 %v8995_v13, 0.0  ;;  %v18173_v0 = vld [vmem:[#allocation62_spill] sm:$0xff]  ;;  %vm18201_vm8 = vmmov %vm18194_vm0 }
 0x46b   : > { %v8994_v8 = vadd.f32 %v8469_v39, %v18163_v57  ;;  %v9185_v7 = vmax.f32 %v8993_v33, 0.0 }
 0x46c   : > { %v9188_v11 = vmax.f32 %v8996_v42, 0.0  ;;  %13393 = vmatmul.mubr.bf16.gmra.mrb[124].mxu1 %v8015_v41 }
 0x46d   : > { %v9186_v14 = vmax.f32 %v8994_v8, 0.0 }
 0x46e   : > { %v9338_v18 = vpack.c.bf16 %v9188_v11, %v9187_v26 }
 0x46f   : > { %v9337_v59 = vpack.c.bf16 %v9186_v14, %v9185_v7  ;;  %v13290_v10 = vpop.f32.mrb[20].mxu1  ;;  %v18176_v14 = vld [vmem:[#allocation63_spill] sm:$0xff] }
 0x470   : > { %v8999_v1 = vadd.f32 %v13290_v10, %v18166_v34  ;;  %v8482_v29 = vpop.f32.mrb[21].mxu1 }
 0x471   : > { %v8997_v53 = vadd.f32 %v8482_v29, %v18166_v34  ;;  %v13291_v17 = vpop.f32.mrb[22].mxu1  ;;  %13480 = vmatprep.mubr.msk.bf16.mxu0 %vm18167_vm15, %v9337_v59  ;;  %vm18203_vm15 = vmmov %vm18194_vm0 }
 0x472   : > { %v9000_v12 = vadd.f32 %v13291_v17, %v18168_v6  ;;  %v8485_v30 = vpop.f32.mrb[23].mxu1  ;;  %13481 = vmatmul.mubr.msk.bf16.gmra.mrb[16].mxu0 %vm18169_vm14, %v9338_v18  ;;  %v9191_v28 = vmax.f32 %v8999_v1, 0.0  ;;  %v18178_v1 = vld [vmem:[#allocation64_spill] sm:$0xff]  ;;  %vm18205_vm14 = vmmov %vm18194_vm0 }
 0x473   : > { %v8998_v21 = vadd.f32 %v8485_v30, %v18166_v34  ;;  %v9189_v47 = vmax.f32 %v8997_v53, 0.0 }
 0x474   : > { %v9192_v58 = vmax.f32 %v9000_v12, 0.0 }
 0x475   : > { %v9190_v60 = vmax.f32 %v8998_v21, 0.0 }
 0x476   : > { %v9340_v49 = vpack.c.bf16 %v9192_v58, %v9191_v28 }
 0x477   : > { %v9339_v55 = vpack.c.bf16 %v9190_v60, %v9189_v47  ;;  %v13294_v61 = vpop.f32.mrb[24].mxu1  ;;  %v18180_v60 = vld [vmem:[#allocation65_spill] sm:$0xff] }
 0x478   : > { %v9003_v52 = vadd.f32 %v13294_v61, %v18170_v48  ;;  %v8498_v9 = vpop.f32.mrb[25].mxu1 }
 0x479   : > { %v9001_v25 = vadd.f32 %v8498_v9, %v18168_v6  ;;  %v13295_v27 = vpop.f32.mrb[26].mxu1  ;;  %13484 = vmatprep.mubr.msk.bf16.mxu0 %vm18171_vm10, %v9339_v55  ;;  %vm18208_vm10 = vmmov %vm18194_vm0 }
 0x47a   : > { %v9004_v31 = vadd.f32 %v13295_v27, %v18170_v48  ;;  %v8501_v38 = vpop.f32.mrb[27].mxu1  ;;  %13485 = vmatmul.mubr.msk.bf16.gmra.mrb[20].mxu0 %vm18172_vm5, %v9340_v49  ;;  %v9195_v15 = vmax.f32 %v9003_v52, 0.0  ;;  %vm18210_vm5 = vmmov %vm18194_vm0 }
 0x47b   : > { %v9002_v16 = vadd.f32 %v8501_v38, %v18168_v6  ;;  %v9193_v56 = vmax.f32 %v9001_v25, 0.0  ;;  %v18183_v38 = vld [vmem:[#allocation4_spill] sm:$0xff] }
 0x47c   : > { %v9196_v45 = vmax.f32 %v9004_v31, 0.0 }
 0x47d   : > { %v9194_v51 = vmax.f32 %v9002_v16, 0.0  ;;  %v5618_v16 = vrot.slane %v18183_v38, 4 }
 0x47e   : > { %v9342_v22 = vpack.c.bf16 %v9196_v45, %v9195_v15 }
 0x47f   : > { %v9341_v40 = vpack.c.bf16 %v9194_v51, %v9193_v56  ;;  %v13298_v5 = vpop.f32.mrb[28].mxu1  ;;  %v18184_v51 = vld [vmem:[#allocation6_spill] sm:$0xff] }
 0x480   : > { %v9007_v54 = vadd.f32 %v13298_v5, %v18173_v0  ;;  %v8514_v3 = vpop.f32.mrb[29].mxu1 }
 0x481   : > { %v9005_v57 = vadd.f32 %v8514_v3, %v18170_v48  ;;  %v13299_v13 = vpop.f32.mrb[30].mxu1  ;;  %13488 = vmatprep.mubr.msk.bf16.mxu0 %vm18174_vm12, %v9341_v40  ;;  %vm11194_vm12 = vcmask 1041409  }
 0x482   : > { %v9008_v2 = vadd.f32 %v13299_v13, %v18173_v0  ;;  %v8517_v33 = vpop.f32.mrb[31].mxu1  ;;  %13489 = vmatmul.mubr.msk.bf16.gmra.mrb[24].mxu0 %vm18175_vm1, %v9342_v22  ;;  %v9199_v41 = vmax.f32 %v9007_v54, 0.0  ;;  %v5626_v22 = vrot.slane %v18184_v51, 4  ;;  %vm18213_vm1 = vmmov %vm18194_vm0 }
 0x483   : > { %v9006_v43 = vadd.f32 %v8517_v33, %v18173_v0  ;;  %v9197_v39 = vmax.f32 %v9005_v57, 0.0  ;;  %v18185_v0 = vld [vmem:[#allocation66_spill] sm:$0xff]  ;;  %v5619_v57 = vmax.f32 %v18183_v38, %v5618_v16  ;;  %v18187_v33 = vld [vmem:[#allocation7_spill] sm:$0xff] }
 0x484   : > { %v9200_v42 = vmax.f32 %v9008_v2, 0.0 }
 0x485   : > { %v9198_v8 = vmax.f32 %v9006_v43, 0.0  ;;  %v5634_v43 = vrot.slane %v18187_v33, 4 }
 0x486   : > { %v9344_v26 = vpack.c.bf16 %v9200_v42, %v9199_v41 }
 0x487   : > { %v9343_v11 = vpack.c.bf16 %v9198_v8, %v9197_v39  ;;  %v13302_v7 = vpop.f32.mrb[32].mxu1  ;;  %v5627_v39 = vmax.f32 %v18184_v51, %v5626_v22 }
 0x488   : > { %v9011_v18 = vadd.f32 %v13302_v7, %v18176_v14  ;;  %v8530_v59 = vpop.f32.mrb[33].mxu1 }
 0x489   : > { %v9009_v10 = vadd.f32 %v8530_v59, %v18176_v14  ;;  %v13303_v34 = vpop.f32.mrb[34].mxu1  ;;  %13492 = vmatprep.mubr.msk.bf16.mxu0 %vm18177_vm4, %v9343_v11  ;;  %vm18214_vm4 = vmmov %vm18194_vm0 }
 0x48a   : > { %v9012_v29 = vadd.f32 %v13303_v34, %v18178_v1  ;;  %v8533_v53 = vpop.f32.mrb[35].mxu1  ;;  %13493 = vmatmul.mubr.msk.bf16.gmra.mrb[28].mxu0 %vm18179_vm9, %v9344_v26  ;;  %v9203_v6 = vmax.f32 %v9011_v18, 0.0  ;;  %v18189_v26 = vld [vmem:[#allocation70_spill] sm:$0xff]  ;;  %v5620_v18 = vrot.slane %v5619_v57, 2  ;;  %v5635_v34 = vmax.f32 %v18187_v33, %v5634_v43 }
 0x48b   : > { %v9010_v17 = vadd.f32 %v8533_v53, %v18176_v14  ;;  %v9201_v30 = vmax.f32 %v9009_v10, 0.0  ;;  %v5642_v11 = vrot.slane %v18189_v26, 4  ;;  %vm11197_vm9 = vcmask 1042434  }
 0x48c   : > { %v9204_v12 = vmax.f32 %v9012_v29, 0.0  ;;  %v5628_v29 = vrot.slane %v5627_v39, 2 }
 0x48d   : > { %v9202_v21 = vmax.f32 %v9010_v17, 0.0 }
 0x48e   : > { %v9346_v28 = vpack.c.bf16 %v9204_v12, %v9203_v6  ;;  %v5643_v6 = vmax.f32 %v18189_v26, %v5642_v11  ;;  %v18190_v12 = vld [vmem:[#allocation2_spill] sm:$0xff]  ;;  %v18198_v26 = vld [vmem:[#allocation3_spill] sm:$0xff] }
 0x48f   : > { %v9345_v58 = vpack.c.bf16 %v9202_v21, %v9201_v30  ;;  %v13306_v47 = vpop.f32.mrb[36].mxu1 }
 0x490   : > { %v9015_v49 = vadd.f32 %v13306_v47, %v18180_v60  ;;  %v8546_v55 = vpop.f32.mrb[37].mxu1  ;;  %v5644_v38 = vrot.slane %v5643_v6, 2 }
 0x491   : > { %v9013_v61 = vadd.f32 %v8546_v55, %v18178_v1  ;;  %v13307_v48 = vpop.f32.mrb[38].mxu1  ;;  %13496 = vmatprep.mubr.msk.bf16.mxu0 %vm18181_vm7, %v9345_v58  ;;  %v18191_v58 = vld [vmem:[#allocation8_spill] sm:$0xff]  ;;  %v5636_v55 = vrot.slane %v5635_v34, 2  ;;  %vm18216_vm7 = vmmov %vm18194_vm0 }
 0x492   : > { %v9016_v52 = vadd.f32 %v13307_v48, %v18180_v60  ;;  %v8549_v9 = vpop.f32.mrb[39].mxu1  ;;  %13497 = vmatmul.mubr.msk.bf16.gmra.mrb[32].mxu0 %vm18182_vm13, %v9346_v28  ;;  %v9207_v27 = vmax.f32 %v9015_v49, 0.0  ;;  %v5621_v28 = vmax.f32 %v5619_v57, %v5620_v18  ;;  %v5650_v47 = vrot.slane %v18191_v58, 4  ;;  %vm18217_vm13 = vmmov %vm18194_vm0 }
 0x493   : > { %v9014_v25 = vadd.f32 %v8549_v9, %v18178_v1  ;;  %v9205_v15 = vmax.f32 %v9013_v61, 0.0  ;;  %v18193_v61 = vld [vmem:[#allocation67_spill] sm:$0xff]  ;;  %v5629_v9 = vmax.f32 %v5627_v39, %v5628_v29 }
 0x494   : > { %v9208_v31 = vmax.f32 %v9016_v52, 0.0  ;;  %v18197_v39 = vld [vmem:[#allocation75_spill] sm:$0xff] }
 0x495   : > { %v9206_v45 = vmax.f32 %v9014_v25, 0.0  ;;  %v18195_v25 = vld [vmem:[#allocation73_spill] sm:$0xff] }
 0x496   : > { %v9348_v56 = vpack.c.bf16 %v9208_v31, %v9207_v27  ;;  %v5658_v27 = vrot.slane %v18195_v25, 4 }
 0x497   : > { %v9347_v40 = vpack.c.bf16 %v9206_v45, %v9205_v15  ;;  %v13310_v5 = vpop.f32.mrb[40].mxu1  ;;  %v5622_v45 = vrot.slane %v5621_v28, 1 }
 0x498   : > { %v9019_v54 = vadd.f32 %v13310_v5, %v18185_v0  ;;  %v8562_v3 = vpop.f32.mrb[41].mxu1  ;;  %v5637_v5 = vmax.f32 %v5635_v34, %v5636_v55 }
 0x499   : > { %v9017_v13 = vadd.f32 %v8562_v3, %v18180_v60  ;;  %v13311_v2 = vpop.f32.mrb[42].mxu1  ;;  %13500 = vmatprep.mubr.msk.bf16.mxu0 %vm18186_vm3, %v9347_v40  ;;  %v17032_v18 = vmax.f32 %v5621_v28, %v5622_v45  ;;  %vm11200_vm3 = vcmask 1043459  }
 0x49a   : > { %v9020_v41 = vadd.f32 %v13311_v2, %v18185_v0  ;;  %v8565_v42 = vpop.f32.mrb[43].mxu1  ;;  %13501 = vmatmul.mubr.msk.bf16.gmra.mrb[36].mxu0 %vm18188_vm6, %v9348_v56  ;;  %v9211_v7 = vmax.f32 %v9019_v54, 0.0  ;;  %v5651_v56 = vmax.f32 %v18191_v58, %v5650_v47  ;;  %v5659_v2 = vmax.f32 %v18195_v25, %v5658_v27  ;;  %vm18222_vm6 = vmmov %vm18194_vm0 }
 0x49b   : > { %v9018_v8 = vadd.f32 %v8565_v42, %v18185_v0  ;;  %v9209_v59 = vmax.f32 %v9017_v13, 0.0  ;;  %v18196_v0 = vld [vmem:[#allocation10_spill] sm:$0xff]  ;;  %v5630_v13 = vrot.slane %v5629_v9, 1  ;;  %v5645_v42 = vmax.f32 %v5643_v6, %v5644_v38 }
 0x49c   : > { %v9212_v14 = vmax.f32 %v9020_v41, 0.0  ;;  %v5666_v54 = vrot.slane %v18196_v0, 4  ;;  %v5638_v29 = vrot.slane %v5637_v5, 1  ;;  %v5660_v28 = vrot.slane %v5659_v2, 2 }
 0x49d   : > { %v9210_v10 = vmax.f32 %v9018_v8, 0.0  ;;  %v5674_v8 = vrot.slane %v18197_v39, 4 }
 0x49e   : > { %v9350_v1 = vpack.c.bf16 %v9212_v14, %v9211_v7 }
 0x49f   : > { %v9349_v53 = vpack.c.bf16 %v9210_v10, %v9209_v59  ;;  %v13314_v17 = vpop.f32.mrb[44].mxu1  ;;  %v5652_v59 = vrot.slane %v5651_v56, 2 }
 0x4a0   : > { %v9023_v30 = vadd.f32 %v13314_v17, %v18190_v12  ;;  %v8578_v21 = vpop.f32.mrb[45].mxu1  ;;  %v18200_v17 = vld [vmem:[#allocation11_spill] sm:$0xff] }
 0x4a1   : > { %v9021_v60 = vadd.f32 %v8578_v21, %v18190_v12  ;;  %v13315_v49 = vpop.f32.mrb[46].mxu1  ;;  %13504 = vmatprep.mubr.msk.bf16.mxu0 %vm18192_vm2, %v9349_v53  ;;  %v5667_v53 = vmax.f32 %v18196_v0, %v5666_v54  ;;  %v5682_v6 = vrot.slane %v18200_v17, 4  ;;  %v17040_v21 = vmax.f32 %v5629_v9, %v5630_v13  ;;  %v18202_v13 = vld [vmem:[#allocation5_spill] sm:$0xff] }
 0x4a2   : > { %v9024_v48 = vadd.f32 %v13315_v49, %v18193_v61  ;;  %v8581_v52 = vpop.f32.mrb[47].mxu1  ;;  %13505 = vmatmul.mubr.msk.bf16.gmra.mrb[40].mxu0 %vm18194_vm0, %v9350_v1  ;;  %v9215_v16 = vmax.f32 %v9023_v30, 0.0  ;;  %v5675_v49 = vmax.f32 %v18197_v39, %v5674_v8  ;;  %vm11203_vm2 = vcmask 1044484  }
 0x4a3   : > { %v9022_v31 = vadd.f32 %v8581_v52, %v18190_v12  ;;  %v9213_v51 = vmax.f32 %v9021_v60, 0.0  ;;  %v5646_v60 = vrot.slane %v5645_v42, 1  ;;  %v5653_v52 = vmax.f32 %v5651_v56, %v5652_v59 }
 0x4a4   : > { %v9216_v15 = vmax.f32 %v9024_v48, 0.0  ;;  %v5683_v9 = vmax.f32 %v18200_v17, %v5682_v6  ;;  %v5676_v56 = vrot.slane %v5675_v49, 2 }
 0x4a5   : > { %v9214_v22 = vmax.f32 %v9022_v31, 0.0  ;;  %v13402_v40 = vpop.f32.mrb[192].mxu0  ;;  %v5654_v8 = vrot.slane %v5653_v52, 1 }
 0x4a6   : > { %v9352_v3 = vpack.c.bf16 %v9216_v15, %v9215_v16  ;;  %v9715_v57 = vpop.f32.mrb[193].mxu0  ;;  %v17044_v16 = vmax.f32 %v5637_v5, %v5638_v29  ;;  %v5668_v15 = vrot.slane %v5667_v53, 2 }
 0x4a7   : > { %v9351_v33 = vpack.c.bf16 %v9214_v22, %v9213_v51  ;;  %v13318_v43 = vpop.f32.mrb[48].mxu1  ;;  %v13403_v41 = vpop.f32.mrb[194].mxu0  ;;  %v5661_v22 = vmax.f32 %v5659_v2, %v5660_v28 }
 0x4a8   : > { %v9027_v11 = vadd.f32 %v13318_v43, %v18198_v26  ;;  %v8594_v7 = vpop.f32.mrb[49].mxu1  ;;  %v9718_v14 = vpop.f32.mrb[195].mxu0  ;;  %v5669_v2 = vmax.f32 %v5667_v53, %v5668_v15 }
 0x4a9   : > { %v9025_v10 = vadd.f32 %v8594_v7, %v18193_v61  ;;  %v10482_v34 = vmax.f32 %v9715_v57, %v9718_v14  ;;  %v13319_v1 = vpop.f32.mrb[50].mxu1  ;;  %13508 = vmatprep.mubr.msk.bf16.mxu0 %vm18199_vm11, %v9351_v33  ;;  %v17047_v57 = vmax.f32 %v5645_v42, %v5646_v60  ;;  %v5662_v29 = vrot.slane %v5661_v22, 1 }
 0x4aa   : > { %v9028_v12 = vadd.f32 %v13319_v1, %v18198_v26  ;;  %v8597_v30 = vpop.f32.mrb[51].mxu1  ;;  %13509 = vmatmul.mubr.msk.bf16.gmra.mrb[44].mxu0 %vm18201_vm8, %v9352_v3  ;;  %v9219_v55 = vmax.f32 %v9027_v11, 0.0  ;;  %vm11206_vm11 = vcmask 1045509   ;;  %vm18224_vm8 = vmmov %vm18194_vm0 }
 0x4ab   : > { %v10483_v58 = vmax.f32 %v10482_v34, %v13402_v40  ;;  %v9026_v47 = vadd.f32 %v8597_v30, %v18193_v61  ;;  %v9217_v25 = vmax.f32 %v9025_v10, 0.0  ;;  %v18204_v10 = vld [vmem:[#allocation77_spill] sm:$0xff]  ;;  %v5677_v30 = vmax.f32 %v5675_v49, %v5676_v56 }
 0x4ac   : > { %v9220_v48 = vmax.f32 %v9028_v12, 0.0  ;;  %v5690_v34 = vrot.slane %v18204_v10, 4  ;;  %v17062_v56 = vmax.f32 %v5661_v22, %v5662_v29 }
 0x4ad   : > { %v10484_v27 = vrot.slane %v10483_v58, 4  ;;  %v9218_v31 = vmax.f32 %v9026_v47, 0.0  ;;  %v13406_v38 = vpop.f32.mrb[196].mxu0 }
 0x4ae   : > { %v9354_v45 = vpack.c.bf16 %v9220_v48, %v9219_v55  ;;  %v9731_v51 = vpop.f32.mrb[197].mxu0 }
 0x4af   : > { %v10485_v40 = vmax.f32 %v10483_v58, %v10484_v27  ;;  %v9353_v61 = vpack.c.bf16 %v9218_v31, %v9217_v25  ;;  %v10490_v0 = vmax.f32 %v13403_v41, %v9731_v51  ;;  %v13322_v54 = vpop.f32.mrb[52].mxu1  ;;  %v13407_v3 = vpop.f32.mrb[198].mxu0  ;;  %v5684_v41 = vrot.slane %v5683_v9, 2 }
 0x4b0   : > { %v9031_v33 = vadd.f32 %v13322_v54, %v18202_v13  ;;  %v10498_v43 = vmax.f32 %v13406_v38, %v13407_v3  ;;  %v8610_v39 = vpop.f32.mrb[53].mxu1  ;;  %v9734_v5 = vpop.f32.mrb[199].mxu0  ;;  %v5670_v27 = vrot.slane %v5669_v2, 1  ;;  %v5691_v38 = vmax.f32 %v18204_v10, %v5690_v34 }
 0x4b1   : > { %v10486_v11 = vrot.slane %v10485_v40, 2  ;;  %v9029_v7 = vadd.f32 %v8610_v39, %v18198_v26  ;;  %v10491_v14 = vmax.f32 %v10490_v0, %v9734_v5  ;;  %v13323_v59 = vpop.f32.mrb[54].mxu1  ;;  %13512 = vmatprep.mubr.msk.bf16.mxu0 %vm18203_vm15, %v9353_v61  ;;  %v18206_v26 = vld [vmem:[#allocation14_spill] sm:$0xff]  ;;  %v5685_v31 = vmax.f32 %v5683_v9, %v5684_v41  ;;  %vm18225_vm15 = vmmov %vm18194_vm0 }
 0x4b2   : > { %v9032_v42 = vadd.f32 %v13323_v59, %v18202_v13  ;;  %v8613_v1 = vpop.f32.mrb[55].mxu1  ;;  %13513 = vmatmul.mubr.msk.bf16.gmra.mrb[48].mxu0 %vm18205_vm14, %v9354_v45  ;;  %v5698_v28 = vrot.slane %v18206_v26, 4  ;;  %v9223_v58 = vmax.f32 %v9031_v33, 0.0  ;;  %v17060_v3 = vmax.f32 %v5653_v52, %v5654_v8  ;;  %v18207_v33 = vld [vmem:[#allocation68_spill] sm:$0xff]  ;;  %v18209_v8 = vld [vmem:[#allocation69_spill] sm:$0xff] }
 0x4b3   : > { %v10487_v17 = vmax.f32 %v10485_v40, %v10486_v11  ;;  %v10492_v6 = vrot.slane %v10491_v14, 4  ;;  %v9030_v12 = vadd.f32 %v8613_v1, %v18202_v13  ;;  %v9221_v53 = vmax.f32 %v9029_v7, 0.0 }
 0x4b4   : > { %v9224_v47 = vmax.f32 %v9032_v42, 0.0  ;;  %v5678_v13 = vrot.slane %v5677_v30, 1  ;;  %v5699_v11 = vmax.f32 %v18206_v26, %v5698_v28  ;;  %v5686_v42 = vrot.slane %v5685_v31, 1 }
 0x4b5   : > { %v10488_v60 = vrot.slane %v10487_v17, 1  ;;  %v10493_v55 = vmax.f32 %v10491_v14, %v10492_v6  ;;  %v9222_v48 = vmax.f32 %v9030_v12, 0.0  ;;  %v13410_v25 = vpop.f32.mrb[200].mxu0  ;;  %v5692_v1 = vrot.slane %v5691_v38, 2 }
 0x4b6   : > { %v9356_v15 = vpack.c.bf16 %v9224_v47, %v9223_v58  ;;  %v9747_v45 = vpop.f32.mrb[201].mxu0  ;;  %v17075_v28 = vmax.f32 %v5677_v30, %v5678_v13  ;;  %v18211_v30 = vld [vmem:[#allocation79_spill] sm:$0xff]  ;;  %vm11209_vm14 = vcmask 1046534  }
 0x4b7   : > { %v17058_v51 = vmax.f32 %v10487_v17, %v10488_v60  ;;  %v10494_v40 = vrot.slane %v10493_v55, 2  ;;  %v9355_v61 = vpack.c.bf16 %v9222_v48, %v9221_v53  ;;  %v10499_v49 = vmax.f32 %v10498_v43, %v9747_v45  ;;  %v13326_v0 = vpop.f32.mrb[56].mxu1  ;;  %v13411_v54 = vpop.f32.mrb[202].mxu0 }
 0x4b8   : > { %v9035_v39 = vadd.f32 %v13326_v0, %v18207_v33  ;;  %v8626_v5 = vpop.f32.mrb[57].mxu1  ;;  %v9750_v9 = vpop.f32.mrb[203].mxu0  ;;  %v17069_v43 = vmax.f32 %v5669_v2, %v5670_v27  ;;  %v5700_v2 = vrot.slane %v5699_v11, 2  ;;  %v17079_v45 = vmax.f32 %v5691_v38, %v5692_v1 }
 0x4b9   : > { %v10994_v7 = vmax.f32 %v17032_v18, %v17058_v51  ;;  %v10495_v14 = vmax.f32 %v10493_v55, %v10494_v40  ;;  %v10500_v59 = vrot.slane %v10499_v49, 4  ;;  %v13327_v41 = vpop.f32.mrb[58].mxu1  ;;  %13516 = vmatprep.mubr.msk.bf16.mxu0 %vm18208_vm10, %v9355_v61  ;;  %v9033_v52 = vadd.f32 %v8626_v5, %v18207_v33  ;;  %vm18228_vm10 = vmmov %vm18194_vm0 }
 0x4ba   : > { %v10506_v22 = vmax.f32 %v9750_v9, %v13410_v25  ;;  %v9036_v10 = vadd.f32 %v13327_v41, %v18209_v8  ;;  %v8629_v34 = vpop.f32.mrb[59].mxu1  ;;  %13517 = vmatmul.mubr.msk.bf16.gmra.mrb[52].mxu0 %vm18210_vm5, %v9356_v15  ;;  %v9227_v18 = vmax.f32 %v9035_v39, 0.0  ;;  %v17077_v15 = vmax.f32 %v5685_v31, %v5686_v42  ;;  %v18212_v39 = vld [vmem:[#allocation71_spill] sm:$0xff]  ;;  %vm18229_vm5 = vmmov %vm18194_vm0 }
 0x4bb   : > { %v10496_v29 = vrot.slane %v10495_v14, 1  ;;  %v10501_v17 = vmax.f32 %v10499_v49, %v10500_v59  ;;  %v9034_v26 = vadd.f32 %v8629_v34, %v18207_v33  ;;  %v9225_v53 = vmax.f32 %v9033_v52, 0.0 }
 0x4bc   : > { %v10507_v6 = vmax.f32 %v10506_v22, %v13411_v54  ;;  %v9228_v12 = vmax.f32 %v9036_v10, 0.0  ;;  %v5706_v0 = vrot.slane %v18211_v30, 4  ;;  %v17086_v54 = vld [vmem:[%s17546_s4] ss:$0 sm:$0xff]  ;;  %v17089_v38 = vmax.f32 %v5699_v11, %v5700_v2 }
 0x4bd   : > { %v10497_v58 = vmax.f32 %v10495_v14, %v10496_v29  ;;  %v10502_v47 = vrot.slane %v10501_v17, 2  ;;  %v13414_v60 = vpop.f32.mrb[204].mxu0  ;;  %v9226_v25 = vmax.f32 %v9034_v26, 0.0  ;;  %v11065_v42 = vadd.f32 %v17086_v54, %v10994_v7 }
 0x4be   : > { %v10508_v55 = vrot.slane %v10507_v6, 4  ;;  %v9358_v48 = vpack.c.bf16 %v9228_v12, %v9227_v18  ;;  %v9763_v27 = vpop.f32.mrb[205].mxu0  ;;  %v5707_v26 = vmax.f32 %v18211_v30, %v5706_v0  ;;  %v18215_v0 = vld [vmem:[#allocation72_spill] sm:$0xff] }
 0x4bf   : > { %v10995_v51 = vmax.f32 %v17040_v21, %v10497_v58  ;;  %v10503_v40 = vmax.f32 %v10501_v17, %v10502_v47  ;;  %v13330_v61 = vpop.f32.mrb[60].mxu1  ;;  %v13415_v49 = vpop.f32.mrb[206].mxu0  ;;  %v9357_v33 = vpack.c.bf16 %v9226_v25, %v9225_v53 }
 0x4c0   : > { %v10509_v13 = vmax.f32 %v10507_v6, %v10508_v55  ;;  %v9039_v5 = vadd.f32 %v13330_v61, %v18212_v39  ;;  %v8642_v31 = vpop.f32.mrb[61].mxu1  ;;  %v9766_v9 = vpop.f32.mrb[207].mxu0 }
 0x4c1   : > { %v11066_v21 = vadd.f32 %v17086_v54, %v10995_v51  ;;  %v10504_v14 = vrot.slane %v10503_v40, 1  ;;  %v10514_v59 = vmax.f32 %v9763_v27, %v9766_v9  ;;  %v13331_v41 = vpop.f32.mrb[62].mxu1  ;;  %v9037_v22 = vadd.f32 %v8642_v31, %v18209_v8  ;;  %13520 = vmatprep.mubr.msk.bf16.mxu0 %vm18213_vm1, %v9357_v33 }
 0x4c2   : > { %v10510_v52 = vrot.slane %v10509_v13, 2  ;;  %v9040_v10 = vadd.f32 %v13331_v41, %v18212_v39  ;;  %v8645_v34 = vpop.f32.mrb[63].mxu1  ;;  %13521 = vmatmul.mubr.msk.bf16.gmra.mrb[56].mxu0 %vm18214_vm4, %v9358_v48  ;;  %v9231_v18 = vmax.f32 %v9039_v5, 0.0  ;;  %v5694_v9 = vrot.slane %v17079_v45, 1  ;;  %vm18233_vm4 = vmmov %vm18194_vm0 }
 0x4c3   : > { %v11193_v1 = vrot.slane %v11066_v21, 7  ;;  %v10505_v29 = vmax.f32 %v10503_v40, %v10504_v14  ;;  %v10515_v11 = vmax.f32 %v10514_v59, %v13414_v60  ;;  %v9038_v12 = vadd.f32 %v8645_v34, %v18209_v8 }
 0x4c4   : > { %v10511_v17 = vmax.f32 %v10509_v13, %v10510_v52  ;;  %v9232_v6 = vmax.f32 %v9040_v10, 0.0  ;;  %v9229_v7 = vmax.f32 %v9037_v22, 0.0  ;;  %v5702_v52 = vrot.slane %v17089_v38, 1 }
 0x4c5   : > { %v11195_v2 = vsel %vm11194_vm12, %v11193_v1, %v11065_v42  ;;  %v10996_v58 = vmax.f32 %v17044_v16, %v10505_v29  ;;  %v10516_v47 = vrot.slane %v10515_v11, 4  ;;  %v13418_v53 = vpop.f32.mrb[208].mxu0  ;;  %v9230_v27 = vmax.f32 %v9038_v12, 0.0 }
 0x4c6   : > { %v10512_v55 = vrot.slane %v10511_v17, 1  ;;  %v9360_v25 = vpack.c.bf16 %v9232_v6, %v9231_v18  ;;  %v9779_v60 = vpop.f32.mrb[209].mxu0  ;;  %v5708_v42 = vrot.slane %v5707_v26, 2  ;;  %vm11212_vm1 = vcmask 1047559  }
 0x4c7   : > { %v11067_v48 = vadd.f32 %v17086_v54, %v10996_v58  ;;  %v10517_v51 = vmax.f32 %v10515_v11, %v10516_v47  ;;  %v10522_v40 = vmax.f32 %v13415_v49, %v9779_v60  ;;  %v13334_v61 = vpop.f32.mrb[64].mxu1  ;;  %v13419_v8 = vpop.f32.mrb[210].mxu0  ;;  %v9359_v30 = vpack.c.bf16 %v9230_v27, %v9229_v7 }
 0x4c8   : > { %v10513_v13 = vmax.f32 %v10511_v17, %v10512_v55  ;;  %v9043_v33 = vadd.f32 %v13334_v61, %v18215_v0  ;;  %v10530_v5 = vmax.f32 %v13418_v53, %v13419_v8  ;;  %v8658_v16 = vpop.f32.mrb[65].mxu1  ;;  %v9782_v31 = vpop.f32.mrb[211].mxu0  ;;  %v17119_v8 = vmax.f32 %v5707_v26, %v5708_v42 }
 0x4c9   : > { %v11196_v21 = vrot.slane %v11067_v48, 6  ;;  %v10518_v14 = vrot.slane %v10517_v51, 2  ;;  %v10523_v59 = vmax.f32 %v10522_v40, %v9782_v31  ;;  %v13335_v41 = vpop.f32.mrb[66].mxu1  ;;  %v9041_v49 = vadd.f32 %v8658_v16, %v18212_v39  ;;  %13524 = vmatprep.mubr.msk.bf16.mxu0 %vm18216_vm7, %v9359_v30  ;;  %v18218_v30 = vld [vmem:[#allocation9_spill] sm:$0xff]  ;;  %v18219_v31 = vld [vmem:[#allocation15_spill] sm:$0xff]  ;;  %vm18234_vm7 = vmmov %vm18194_vm0 }
 0x4ca   : > { %v10997_v22 = vmax.f32 %v17047_v57, %v10513_v13  ;;  %v9044_v10 = vadd.f32 %v13335_v41, %v18215_v0  ;;  %v8661_v34 = vpop.f32.mrb[67].mxu1  ;;  %13525 = vmatmul.mubr.msk.bf16.gmra.mrb[60].mxu0 %vm18217_vm13, %v9360_v25  ;;  %v9235_v18 = vmax.f32 %v9043_v33, 0.0  ;;  %v17114_v39 = vmax.f32 %v17079_v45, %v5694_v9  ;;  %v18220_v41 = vld [vmem:[#allocation81_spill] sm:$0xff]  ;;  %vm18237_vm13 = vmmov %vm18194_vm0 }
 0x4cb   : > { %v11198_v1 = vsel %vm11197_vm9, %v11196_v21, %v11195_v2  ;;  %v10519_v29 = vmax.f32 %v10517_v51, %v10518_v14  ;;  %v10524_v11 = vrot.slane %v10523_v59, 4  ;;  %v9042_v57 = vadd.f32 %v8661_v34, %v18215_v0 }
 0x4cc   : > { %v11068_v17 = vadd.f32 %v17086_v54, %v10997_v22  ;;  %v9236_v6 = vmax.f32 %v9044_v10, 0.0  ;;  %v9233_v55 = vmax.f32 %v9041_v49, 0.0  ;;  %v17117_v25 = vmax.f32 %v17089_v38, %v5702_v52  ;;  %v18221_v22 = vld [vmem:[#allocation74_spill] sm:$0xff] }
 0x4cd   : > { %v10520_v12 = vrot.slane %v10519_v29, 1  ;;  %v10525_v58 = vmax.f32 %v10523_v59, %v10524_v11  ;;  %v13422_v47 = vpop.f32.mrb[212].mxu0  ;;  %v9234_v7 = vmax.f32 %v9042_v57, 0.0  ;;  %v5714_v9 = vrot.slane %v18219_v31, 4 }
 0x4ce   : > { %v11199_v53 = vrot.slane %v11068_v17, 5  ;;  %v9362_v2 = vpack.c.bf16 %v9236_v6, %v9235_v18  ;;  %v9795_v27 = vpop.f32.mrb[213].mxu0 }
 0x4cf   : > { %v10521_v60 = vmax.f32 %v10519_v29, %v10520_v12  ;;  %v10526_v48 = vrot.slane %v10525_v58, 2  ;;  %v10531_v51 = vmax.f32 %v10530_v5, %v9795_v27  ;;  %v13338_v40 = vpop.f32.mrb[68].mxu1  ;;  %v13423_v61 = vpop.f32.mrb[214].mxu0  ;;  %v9361_v13 = vpack.c.bf16 %v9234_v7, %v9233_v55 }
 0x4d0   : > { %v11201_v45 = vsel %vm11200_vm3, %v11199_v53, %v11198_v1  ;;  %v9047_v0 = vadd.f32 %v13338_v40, %v18218_v30  ;;  %v8674_v33 = vpop.f32.mrb[69].mxu1  ;;  %v9798_v16 = vpop.f32.mrb[215].mxu0  ;;  %v5722_v5 = vrot.slane %v18220_v41, 4  ;;  %v17133_v18 = vmax.f32 %v18219_v31, %v5714_v9 }
 0x4d1   : > { %v10998_v21 = vmax.f32 %v17060_v3, %v10521_v60  ;;  %v10527_v38 = vmax.f32 %v10525_v58, %v10526_v48  ;;  %v10532_v14 = vrot.slane %v10531_v51, 4  ;;  %v13339_v59 = vpop.f32.mrb[70].mxu1  ;;  %v9045_v52 = vadd.f32 %v8674_v33, %v18218_v30  ;;  %13528 = vmatprep.mubr.msk.bf16.mxu0 %vm18222_vm6, %v9361_v13  ;;  %v18223_v33 = vld [vmem:[#allocation76_spill] sm:$0xff]  ;;  %vm18238_vm6 = vmmov %vm18194_vm0 }
 0x4d2   : > { %v10538_v26 = vmax.f32 %v9798_v16, %v13422_v47  ;;  %v9048_v49 = vadd.f32 %v13339_v59, %v18221_v22  ;;  %v8677_v10 = vpop.f32.mrb[71].mxu1  ;;  %13529 = vmatmul.mubr.msk.bf16.gmra.mrb[64].mxu0 %vm18194_vm0, %v9362_v2  ;;  %v9239_v3 = vmax.f32 %v9047_v0, 0.0  ;;  %v5723_v60 = vmax.f32 %v18220_v41, %v5722_v5 }
 0x4d3   : > { %v11069_v34 = vadd.f32 %v17086_v54, %v10998_v21  ;;  %v10528_v42 = vrot.slane %v10527_v38, 1  ;;  %v10533_v1 = vmax.f32 %v10531_v51, %v10532_v14  ;;  %v9046_v17 = vadd.f32 %v8677_v10, %v18218_v30 }
 0x4d4   : > { %v10539_v29 = vmax.f32 %v10538_v26, %v13423_v61  ;;  %v9240_v11 = vmax.f32 %v9048_v49, 0.0  ;;  %v9237_v47 = vmax.f32 %v9045_v52, 0.0  ;;  %v5710_v13 = vrot.slane %v17119_v8, 1 }
 0x4d5   : > { %v11202_v6 = vrot.slane %v11069_v34, 4  ;;  %v10529_v57 = vmax.f32 %v10527_v38, %v10528_v42  ;;  %v10534_v12 = vrot.slane %v10533_v1, 2  ;;  %v13426_v58 = vpop.f32.mrb[216].mxu0  ;;  %v9238_v7 = vmax.f32 %v9046_v17, 0.0 }
 0x4d6   : > { %v10540_v53 = vrot.slane %v10539_v29, 4  ;;  %v9364_v55 = vpack.c.bf16 %v9240_v11, %v9239_v3  ;;  %v9811_v27 = vpop.f32.mrb[217].mxu0  ;;  %v5716_v21 = vrot.slane %v17133_v18, 2  ;;  %v5724_v26 = vrot.slane %v5723_v60, 2  ;;  %v18226_v11 = vld [vmem:[#allocation18_spill] sm:$0xff] }
 0x4d7   : > { %v11204_v2 = vsel %vm11203_vm2, %v11202_v6, %v11201_v45  ;;  %v10999_v48 = vmax.f32 %v17062_v56, %v10529_v57  ;;  %v10535_v51 = vmax.f32 %v10533_v1, %v10534_v12  ;;  %v13342_v40 = vpop.f32.mrb[72].mxu1  ;;  %v13427_v61 = vpop.f32.mrb[218].mxu0  ;;  %v9363_v0 = vpack.c.bf16 %v9238_v7, %v9237_v47 }
 0x4d8   : > { %v10541_v30 = vmax.f32 %v10539_v29, %v10540_v53  ;;  %v9051_v16 = vadd.f32 %v13342_v40, %v18223_v33  ;;  %v8690_v31 = vpop.f32.mrb[73].mxu1  ;;  %v9814_v9 = vpop.f32.mrb[219].mxu0  ;;  %v5730_v17 = vrot.slane %v18226_v11, 4 }
 0x4d9   : > { %v11070_v38 = vadd.f32 %v17086_v54, %v10999_v48  ;;  %v10536_v14 = vrot.slane %v10535_v51, 1  ;;  %v10546_v59 = vmax.f32 %v9811_v27, %v9814_v9  ;;  %v13343_v45 = vpop.f32.mrb[74].mxu1  ;;  %v9049_v41 = vadd.f32 %v8690_v31, %v18221_v22  ;;  %13532 = vmatprep.mubr.msk.bf16.mxu0 %vm18224_vm8, %v9363_v0  ;;  %v18227_v31 = vld [vmem:[#allocation12_spill] sm:$0xff]  ;;  %vm18241_vm8 = vmmov %vm18194_vm0 }
 0x4da   : > { %v10542_v56 = vrot.slane %v10541_v30, 2  ;;  %v9052_v5 = vadd.f32 %v13343_v45, %v18223_v33  ;;  %v8693_v52 = vpop.f32.mrb[75].mxu1  ;;  %13533 = vmatmul.mubr.msk.bf16.gmra.mrb[68].mxu0 %vm18225_vm15, %v9364_v55  ;;  %v9243_v1 = vmax.f32 %v9051_v16, 0.0  ;;  %vm18245_vm15 = vmmov %vm18194_vm0 }
 0x4db   : > { %v11205_v49 = vrot.slane %v11070_v38, 3  ;;  %v10537_v10 = vmax.f32 %v10535_v51, %v10536_v14  ;;  %v10547_v34 = vmax.f32 %v10546_v59, %v13426_v58  ;;  %v9050_v29 = vadd.f32 %v8693_v52, %v18221_v22 }
 0x4dc   : > { %v10543_v42 = vmax.f32 %v10541_v30, %v10542_v56  ;;  %v9244_v3 = vmax.f32 %v9052_v5, 0.0  ;;  %v9241_v7 = vmax.f32 %v9049_v41, 0.0  ;;  %v17153_v14 = vmax.f32 %v17133_v18, %v5716_v21 }
 0x4dd   : > { %v11207_v6 = vsel %vm11206_vm11, %v11205_v49, %v11204_v2  ;;  %v11000_v57 = vmax.f32 %v17069_v43, %v10537_v10  ;;  %v10548_v12 = vrot.slane %v10547_v34, 4  ;;  %v13430_v47 = vpop.f32.mrb[220].mxu0  ;;  %v9242_v48 = vmax.f32 %v9050_v29, 0.0 }
 0x4de   : > { %v10544_v53 = vrot.slane %v10543_v42, 1  ;;  %v9366_v27 = vpack.c.bf16 %v9244_v3, %v9243_v1  ;;  %v9827_v58 = vpop.f32.mrb[221].mxu0  ;;  %v17155_v5 = vmax.f32 %v5723_v60, %v5724_v26  ;;  %v18230_v1 = vld [vmem:[#allocation83_spill] sm:$0xff] }
 0x4df   : > { %v11071_v55 = vadd.f32 %v17086_v54, %v11000_v57  ;;  %v10549_v51 = vmax.f32 %v10547_v34, %v10548_v12  ;;  %v10554_v40 = vmax.f32 %v13427_v61, %v9827_v58  ;;  %v13346_v30 = vpop.f32.mrb[76].mxu1  ;;  %v13431_v22 = vpop.f32.mrb[222].mxu0  ;;  %v9365_v16 = vpack.c.bf16 %v9242_v48, %v9241_v7 }
 0x4e0   : > { %v10545_v0 = vmax.f32 %v10543_v42, %v10544_v53  ;;  %v9055_v2 = vadd.f32 %v13346_v30, %v18227_v31  ;;  %v10562_v9 = vmax.f32 %v13430_v47, %v13431_v22  ;;  %v8706_v43 = vpop.f32.mrb[77].mxu1  ;;  %v9830_v38 = vpop.f32.mrb[223].mxu0  ;;  %v5731_v34 = vmax.f32 %v18226_v11, %v5730_v17 }
 0x4e1   : > { %v11208_v59 = vrot.slane %v11071_v55, 2  ;;  %v10550_v45 = vrot.slane %v10549_v51, 2  ;;  %v10555_v56 = vmax.f32 %v10554_v40, %v9830_v38  ;;  %v13347_v41 = vpop.f32.mrb[78].mxu1  ;;  %v9053_v52 = vadd.f32 %v8706_v43, %v18223_v33  ;;  %13536 = vmatprep.mubr.msk.bf16.mxu0 %vm18228_vm10, %v9365_v16  ;;  %vm18246_vm10 = vmmov %vm18194_vm0 }
 0x4e2   : > { %v11001_v61 = vmax.f32 %v17075_v28, %v10545_v0  ;;  %v9056_v49 = vadd.f32 %v13347_v41, %v18227_v31  ;;  %v8709_v10 = vpop.f32.mrb[79].mxu1  ;;  %13537 = vmatmul.mubr.msk.bf16.gmra.mrb[72].mxu0 %vm18229_vm5, %v9366_v27  ;;  %v9247_v26 = vmax.f32 %v9055_v2, 0.0  ;;  %v5738_v3 = vrot.slane %v18230_v1, 4  ;;  %v18231_v0 = vld [vmem:[#allocation13_spill] sm:$0xff]  ;;  %v18232_v41 = vld [vmem:[#allocation78_spill] sm:$0xff]  ;;  %vm18250_vm5 = vmmov %vm18194_vm0 }
 0x4e3   : > { %v11210_v18 = vsel %vm11209_vm14, %v11208_v59, %v11207_v6  ;;  %v10551_v21 = vmax.f32 %v10549_v51, %v10550_v45  ;;  %v10556_v42 = vrot.slane %v10555_v56, 4  ;;  %v9054_v33 = vadd.f32 %v8709_v10, %v18227_v31 }
 0x4e4   : > { %v11072_v60 = vadd.f32 %v17086_v54, %v11001_v61  ;;  %v9248_v28 = vmax.f32 %v9056_v49, 0.0  ;;  %v9245_v17 = vmax.f32 %v9053_v52, 0.0  ;;  %v5732_v7 = vrot.slane %v5731_v34, 2 }
 0x4e5   : > { %v10552_v29 = vrot.slane %v10551_v21, 1  ;;  %v10557_v57 = vmax.f32 %v10555_v56, %v10556_v42  ;;  %v13434_v12 = vpop.f32.mrb[224].mxu0  ;;  %v9246_v47 = vmax.f32 %v9054_v33, 0.0  ;;  %v17178_v40 = vmax.f32 %v17119_v8, %v5710_v13  ;;  %v18235_v33 = vld [vmem:[#allocation19_spill] sm:$0xff] }
 0x4e6   : > { %v11211_v11 = vrot.slane %v11072_v60, 1  ;;  %v9368_v6 = vpack.c.bf16 %v9248_v28, %v9247_v26  ;;  %v9843_v53 = vpop.f32.mrb[225].mxu0  ;;  %v5739_v43 = vmax.f32 %v18230_v1, %v5738_v3  ;;  %v5718_v56 = vrot.slane %v17153_v14, 1 }
 0x4e7   : > { %v17173_v27 = vmax.f32 %v10551_v21, %v10552_v29  ;;  %v10558_v48 = vrot.slane %v10557_v57, 2  ;;  %v10563_v58 = vmax.f32 %v10562_v9, %v9843_v53  ;;  %v13350_v55 = vpop.f32.mrb[80].mxu1  ;;  %v13435_v51 = vpop.f32.mrb[226].mxu0  ;;  %v9367_v22 = vpack.c.bf16 %v9246_v47, %v9245_v17 }
 0x4e8   : > { %v11213_v30 = vsel %vm11212_vm1, %v11211_v11, %v11210_v18  ;;  %v9059_v16 = vadd.f32 %v13350_v55, %v18231_v0  ;;  %v8722_v31 = vpop.f32.mrb[81].mxu1  ;;  %v9846_v2 = vpop.f32.mrb[227].mxu0  ;;  %v5726_v49 = vrot.slane %v17155_v5, 1  ;;  %v17191_v10 = vmax.f32 %v5731_v34, %v5732_v7 }
 0x4e9   : > { %11320 = vst [vmem:[%s17171_s28] sm:$0xff] %v11213_v30  ;;  %v11002_v9 = vmax.f32 %v17077_v15, %v17173_v27  ;;  %v10559_v38 = vmax.f32 %v10557_v57, %v10558_v48  ;;  %v10564_v59 = vrot.slane %v10563_v58, 4  ;;  %v13351_v45 = vpop.f32.mrb[82].mxu1  ;;  %v9057_v8 = vadd.f32 %v8722_v31, %v18231_v0  ;;  %13540 = vmatprep.mubr.msk.bf16.mxu0 %vm18233_vm4, %v9367_v22  ;;  %v18236_v22 = vld [vmem:[#allocation80_spill] sm:$0xff]  ;;  %vm18251_vm4 = vmmov %vm18194_vm0 }
 0x4ea   : > { %v10570_v13 = vmax.f32 %v9846_v2, %v13434_v12  ;;  %v9060_v61 = vadd.f32 %v13351_v45, %v18232_v41  ;;  %v8725_v52 = vpop.f32.mrb[83].mxu1  ;;  %13541 = vmatmul.mubr.msk.bf16.gmra.mrb[76].mxu0 %vm18234_vm7, %v9368_v6  ;;  %v9251_v15 = vmax.f32 %v9059_v16, 0.0  ;;  %v5740_v28 = vrot.slane %v5739_v43, 2  ;;  %vm18253_vm7 = vmmov %vm18194_vm0 }
 0x4eb   : > { %v10560_v18 = vrot.slane %v10559_v38, 1  ;;  %v10565_v21 = vmax.f32 %v10563_v58, %v10564_v59  ;;  %v9058_v26 = vadd.f32 %v8725_v52, %v18231_v0  ;;  %v5746_v1 = vrot.slane %v18235_v33, 4 }
 0x4ec   : > { %v10571_v42 = vmax.f32 %v10570_v13, %v13435_v51  ;;  %v9252_v60 = vmax.f32 %v9060_v61, 0.0  ;;  %v9249_v12 = vmax.f32 %v9057_v8, 0.0  ;;  %v17197_v53 = vmax.f32 %v17153_v14, %v5718_v56 }
 0x4ed   : > { %v10561_v3 = vmax.f32 %v10559_v38, %v10560_v18  ;;  %v10566_v29 = vrot.slane %v10565_v21, 2  ;;  %v13438_v57 = vpop.f32.mrb[228].mxu0  ;;  %v9250_v34 = vmax.f32 %v9058_v26, 0.0  ;;  %v17200_v6 = vmax.f32 %v17155_v5, %v5726_v49 }
 0x4ee   : > { %v10572_v11 = vrot.slane %v10571_v42, 4  ;;  %v9370_v17 = vpack.c.bf16 %v9252_v60, %v9251_v15  ;;  %v9859_v47 = vpop.f32.mrb[229].mxu0  ;;  %v5734_v55 = vrot.slane %v17191_v10, 1  ;;  %v5747_v2 = vmax.f32 %v18235_v33, %v5746_v1 }
 0x4ef   : > { %v11003_v7 = vmax.f32 %v17114_v39, %v10561_v3  ;;  %v10567_v27 = vmax.f32 %v10565_v21, %v10566_v29  ;;  %v13354_v48 = vpop.f32.mrb[84].mxu1  ;;  %v13439_v58 = vpop.f32.mrb[230].mxu0  ;;  %v9369_v30 = vpack.c.bf16 %v9250_v34, %v9249_v12  ;;  %v17207_v45 = vmax.f32 %v5739_v43, %v5740_v28 }
 0x4f0   : > { %v10573_v51 = vmax.f32 %v10571_v42, %v10572_v11  ;;  %v9063_v0 = vadd.f32 %v13354_v48, %v18236_v22  ;;  %v8738_v16 = vpop.f32.mrb[85].mxu1  ;;  %v9862_v31 = vpop.f32.mrb[231].mxu0  ;;  %v11073_v61 = vadd.f32 %v17086_v54, %v11002_v9  ;;  %v5748_v60 = vrot.slane %v5747_v2, 2 }
 0x4f1   : > { %v11074_v14 = vadd.f32 %v17086_v54, %v11003_v7  ;;  %v10568_v38 = vrot.slane %v10567_v27, 1  ;;  %v10578_v5 = vmax.f32 %v9859_v47, %v9862_v31  ;;  %v13355_v59 = vpop.f32.mrb[86].mxu1  ;;  %v9061_v56 = vadd.f32 %v8738_v16, %v18232_v41  ;;  %13544 = vmatprep.mubr.msk.bf16.mxu0 %vm18237_vm13, %v9369_v30  ;;  %v18240_v30 = vld [vmem:[#allocation16_spill] sm:$0xff]  ;;  %vm18255_vm13 = vmmov %vm18194_vm0 }
 0x4f2   : > { %v10574_v39 = vrot.slane %v10573_v51, 2  ;;  %v9064_v8 = vadd.f32 %v13355_v59, %v18236_v22  ;;  %v8741_v13 = vpop.f32.mrb[87].mxu1  ;;  %13545 = vmatmul.mubr.msk.bf16.gmra.mrb[80].mxu0 %vm18238_vm6, %v9370_v17  ;;  %v9255_v15 = vmax.f32 %v9063_v0, 0.0  ;;  %vm18258_vm6 = vmmov %vm18194_vm0 }
 0x4f3   : > { %v11214_v52 = vrot.slane %v11074_v14, 7  ;;  %v10569_v49 = vmax.f32 %v10567_v27, %v10568_v38  ;;  %v10579_v18 = vmax.f32 %v10578_v5, %v13438_v57  ;;  %v9062_v43 = vadd.f32 %v8741_v13, %v18232_v41  ;;  %v18239_v57 = vld [vmem:[#allocation87_spill] sm:$0xff] }
 0x4f4   : > { %v10575_v21 = vmax.f32 %v10573_v51, %v10574_v39  ;;  %v9256_v42 = vmax.f32 %v9064_v8, 0.0  ;;  %v9253_v29 = vmax.f32 %v9061_v56, 0.0  ;;  %v5754_v34 = vrot.slane %v18239_v57, 4 }
 0x4f5   : > { %v11215_v26 = vsel %vm11194_vm12, %v11214_v52, %v11073_v61  ;;  %v11004_v28 = vmax.f32 %v17117_v25, %v10569_v49  ;;  %v10580_v33 = vrot.slane %v10579_v18, 4  ;;  %v13442_v1 = vpop.f32.mrb[232].mxu0  ;;  %v9254_v12 = vmax.f32 %v9062_v43, 0.0 }
 0x4f6   : > { %v10576_v3 = vrot.slane %v10575_v21, 1  ;;  %v9372_v9 = vpack.c.bf16 %v9256_v42, %v9255_v15  ;;  %v9875_v11 = vpop.f32.mrb[233].mxu0  ;;  %v5749_v14 = vmax.f32 %v5747_v2, %v5748_v60  ;;  %v5742_v56 = vrot.slane %v17207_v45, 1 }
 0x4f7   : > { %v11075_v17 = vadd.f32 %v17086_v54, %v11004_v28  ;;  %v10581_v47 = vmax.f32 %v10579_v18, %v10580_v33  ;;  %v10586_v7 = vmax.f32 %v13439_v58, %v9875_v11  ;;  %v13358_v27 = vpop.f32.mrb[88].mxu1  ;;  %v13443_v41 = vpop.f32.mrb[234].mxu0  ;;  %v9371_v51 = vpack.c.bf16 %v9254_v12, %v9253_v29 }
 0x4f8   : > { %v10577_v48 = vmax.f32 %v10575_v21, %v10576_v3  ;;  %v9067_v0 = vadd.f32 %v13358_v27, %v18240_v30  ;;  %v10594_v25 = vmax.f32 %v13442_v1, %v13443_v41  ;;  %v8754_v16 = vpop.f32.mrb[89].mxu1  ;;  %v9878_v31 = vpop.f32.mrb[235].mxu0  ;;  %v5755_v52 = vmax.f32 %v18239_v57, %v5754_v34  ;;  %v18242_v27 = vld [vmem:[#allocation17_spill] sm:$0xff] }
 0x4f9   : > { %v11216_v38 = vrot.slane %v11075_v17, 6  ;;  %v10582_v5 = vrot.slane %v10581_v47, 2  ;;  %v10587_v59 = vmax.f32 %v10586_v7, %v9878_v31  ;;  %v13359_v39 = vpop.f32.mrb[90].mxu1  ;;  %v9065_v58 = vadd.f32 %v8754_v16, %v18236_v22  ;;  %13548 = vmatprep.mubr.msk.bf16.mxu0 %vm18194_vm0, %v9371_v51 }
 0x4fa   : > { %v11005_v8 = vmax.f32 %v17178_v40, %v10577_v48  ;;  %v9068_v13 = vadd.f32 %v13359_v39, %v18240_v30  ;;  %v8757_v61 = vpop.f32.mrb[91].mxu1  ;;  %13549 = vmatmul.mubr.msk.bf16.gmra.mrb[84].mxu0 %vm18241_vm8, %v9372_v9  ;;  %v9259_v15 = vmax.f32 %v9067_v0, 0.0  ;;  %v17233_v22 = vmax.f32 %v17191_v10, %v5734_v55  ;;  %v18244_v39 = vld [vmem:[#allocation82_spill] sm:$0xff]  ;;  %vm18262_vm8 = vmmov %vm18194_vm0 }
 0x4fb   : > { %v11217_v49 = vsel %vm11197_vm9, %v11216_v38, %v11215_v26  ;;  %v10583_v2 = vmax.f32 %v10581_v47, %v10582_v5  ;;  %v10588_v18 = vrot.slane %v10587_v59, 4  ;;  %v9066_v40 = vadd.f32 %v8757_v61, %v18240_v30  ;;  %v18243_v30 = vld [vmem:[#allocation22_spill] sm:$0xff] }
 0x4fc   : > { %v11076_v21 = vadd.f32 %v17086_v54, %v11005_v8  ;;  %v9260_v42 = vmax.f32 %v9068_v13, 0.0  ;;  %v5750_v43 = vrot.slane %v5749_v14, 1  ;;  %v9257_v1 = vmax.f32 %v9065_v58, 0.0 }
 0x4fd   : > { %v10584_v60 = vrot.slane %v10583_v2, 1  ;;  %v10589_v28 = vmax.f32 %v10587_v59, %v10588_v18  ;;  %v13446_v33 = vpop.f32.mrb[236].mxu0  ;;  %v9258_v29 = vmax.f32 %v9066_v40, 0.0  ;;  %v5756_v12 = vrot.slane %v5755_v52, 2 }
 0x4fe   : > { %v11218_v26 = vrot.slane %v11076_v21, 5  ;;  %v9374_v3 = vpack.c.bf16 %v9260_v42, %v9259_v15  ;;  %v9891_v9 = vpop.f32.mrb[237].mxu0  ;;  %v17236_v7 = vmax.f32 %v17207_v45, %v5742_v56  ;;  %v5762_v0 = vrot.slane %v18243_v30, 4 }
 0x4ff   : > { %v10585_v11 = vmax.f32 %v10583_v2, %v10584_v60  ;;  %v10590_v57 = vrot.slane %v10589_v28, 2  ;;  %v10595_v34 = vmax.f32 %v10594_v25, %v9891_v9  ;;  %v13362_v17 = vpop.f32.mrb[92].mxu1  ;;  %v13447_v47 = vpop.f32.mrb[238].mxu0  ;;  %v9373_v55 = vpack.c.bf16 %v9258_v29, %v9257_v1  ;;  %v18247_v1 = vld [vmem:[#allocation91_spill] sm:$0xff] }
 0x500   : > { %v11219_v10 = vsel %vm11200_vm3, %v11218_v26, %v11217_v49  ;;  %v9071_v41 = vadd.f32 %v13362_v17, %v18242_v27  ;;  %v8770_v48 = vpop.f32.mrb[93].mxu1  ;;  %v9894_v51 = vpop.f32.mrb[239].mxu0  ;;  %v17242_v25 = vmax.f32 %v5749_v14, %v5750_v43  ;;  %v17247_v58 = vmax.f32 %v5755_v52, %v5756_v12 }
 0x501   : > { %v11006_v16 = vmax.f32 %v17197_v53, %v10585_v11  ;;  %v10591_v31 = vmax.f32 %v10589_v28, %v10590_v57  ;;  %v10596_v38 = vrot.slane %v10595_v34, 4  ;;  %v13363_v5 = vpop.f32.mrb[94].mxu1  ;;  %v9069_v59 = vadd.f32 %v8770_v48, %v18242_v27  ;;  %13552 = vmatprep.mubr.msk.bf16.mxu0 %vm18245_vm15, %v9373_v55  ;;  %v18248_v55 = vld [vmem:[#allocation84_spill] sm:$0xff]  ;;  %vm18263_vm15 = vmmov %vm18194_vm0 }
 0x502   : > { %v10602_v45 = vmax.f32 %v9894_v51, %v13446_v33  ;;  %v9072_v56 = vadd.f32 %v13363_v5, %v18244_v39  ;;  %v8773_v8 = vpop.f32.mrb[95].mxu1  ;;  %13553 = vmatmul.mubr.msk.bf16.gmra.mrb[88].mxu0 %vm18246_vm10, %v9374_v3  ;;  %v9263_v53 = vmax.f32 %v9071_v41, 0.0  ;;  %v17253_v21 = vmax.f32 %v18243_v30, %v5762_v0  ;;  %v18249_v51 = vld [vmem:[#allocation24_spill] sm:$0xff]  ;;  %vm18265_vm10 = vmmov %vm18194_vm0 }
 0x503   : > { %v11077_v13 = vadd.f32 %v17086_v54, %v11006_v16  ;;  %v10592_v61 = vrot.slane %v10591_v31, 1  ;;  %v10597_v49 = vmax.f32 %v10595_v34, %v10596_v38  ;;  %v9070_v18 = vadd.f32 %v8773_v8, %v18242_v27 }
 0x504   : > { %v10603_v2 = vmax.f32 %v10602_v45, %v13447_v47  ;;  %v9264_v14 = vmax.f32 %v9072_v56, 0.0  ;;  %v9261_v52 = vmax.f32 %v9069_v59, 0.0  ;;  %v5770_v29 = vrot.slane %v18247_v1, 4 }
 0x505   : > { %v11220_v15 = vrot.slane %v11077_v13, 4  ;;  %v10593_v42 = vmax.f32 %v10591_v31, %v10592_v61  ;;  %v10598_v40 = vrot.slane %v10597_v49, 2  ;;  %v13450_v43 = vpop.f32.mrb[240].mxu0  ;;  %v9262_v33 = vmax.f32 %v9070_v18, 0.0 }
 0x506   : > { %v10604_v60 = vrot.slane %v10603_v2, 4  ;;  %v9376_v28 = vpack.c.bf16 %v9264_v14, %v9263_v53  ;;  %v9907_v26 = vpop.f32.mrb[241].mxu0  ;;  %v5758_v34 = vrot.slane %v17247_v58, 1  ;;  %v5778_v30 = vrot.slane %v18249_v51, 4 }
 0x507   : > { %v11221_v3 = vsel %vm11203_vm2, %v11220_v15, %v11219_v10  ;;  %v11007_v9 = vmax.f32 %v17200_v6, %v10593_v42  ;;  %v10599_v12 = vmax.f32 %v10597_v49, %v10598_v40  ;;  %v13366_v11 = vpop.f32.mrb[96].mxu1  ;;  %v13451_v57 = vpop.f32.mrb[242].mxu0  ;;  %v9375_v47 = vpack.c.bf16 %v9262_v33, %v9261_v52 }
 0x508   : > { %v10605_v17 = vmax.f32 %v10603_v2, %v10604_v60  ;;  %v9075_v27 = vadd.f32 %v13366_v11, %v18248_v55  ;;  %v8786_v41 = vpop.f32.mrb[97].mxu1  ;;  %v9910_v48 = vpop.f32.mrb[243].mxu0  ;;  %v5764_v6 = vrot.slane %v17253_v21, 2  ;;  %v5771_v56 = vmax.f32 %v18247_v1, %v5770_v29 }
 0x509   : > { %v11078_v0 = vadd.f32 %v17086_v54, %v11007_v9  ;;  %v10600_v16 = vrot.slane %v10599_v12, 1  ;;  %v10610_v31 = vmax.f32 %v9907_v26, %v9910_v48  ;;  %v13367_v10 = vpop.f32.mrb[98].mxu1  ;;  %v9073_v5 = vadd.f32 %v8786_v41, %v18244_v39  ;;  %13556 = vmatprep.mubr.msk.bf16.mxu0 %vm18250_vm5, %v9375_v47  ;;  %vm18267_vm5 = vmmov %vm18194_vm0 }
 0x50a   : > { %v10606_v38 = vrot.slane %v10605_v17, 2  ;;  %v9076_v59 = vadd.f32 %v13367_v10, %v18248_v55  ;;  %v8789_v45 = vpop.f32.mrb[99].mxu1  ;;  %13557 = vmatmul.mubr.msk.bf16.gmra.mrb[92].mxu0 %vm18251_vm4, %v9376_v28  ;;  %v9267_v53 = vmax.f32 %v9075_v27, 0.0  ;;  %v5779_v18 = vmax.f32 %v18249_v51, %v5778_v30  ;;  %v18252_v27 = vld [vmem:[#allocation20_spill] sm:$0xff]  ;;  %vm18270_vm4 = vmmov %vm18194_vm0 }
 0x50b   : > { %v11222_v8 = vrot.slane %v11078_v0, 3  ;;  %v10601_v13 = vmax.f32 %v10599_v12, %v10600_v16  ;;  %v10611_v61 = vmax.f32 %v10610_v31, %v13450_v43  ;;  %v9074_v14 = vadd.f32 %v8789_v45, %v18244_v39  ;;  %v18254_v45 = vld [vmem:[#allocation97_spill] sm:$0xff] }
 0x50c   : > { %v10607_v49 = vmax.f32 %v10605_v17, %v10606_v38  ;;  %v9268_v2 = vmax.f32 %v9076_v59, 0.0  ;;  %v9265_v33 = vmax.f32 %v9073_v5, 0.0  ;;  %v5772_v29 = vrot.slane %v5771_v56, 2 }
 0x50d   : > { %v11223_v15 = vsel %vm11206_vm11, %v11222_v8, %v11221_v3  ;;  %v11008_v42 = vmax.f32 %v17233_v22, %v10601_v13  ;;  %v10612_v40 = vrot.slane %v10611_v61, 4  ;;  %v13454_v52 = vpop.f32.mrb[244].mxu0  ;;  %v9266_v1 = vmax.f32 %v9074_v14, 0.0 }
 0x50e   : > { %v10608_v60 = vrot.slane %v10607_v49, 1  ;;  %v9378_v26 = vpack.c.bf16 %v9268_v2, %v9267_v53  ;;  %v9923_v43 = vpop.f32.mrb[245].mxu0  ;;  %v5780_v51 = vrot.slane %v5779_v18, 2  ;;  %v5765_v10 = vmax.f32 %v17253_v21, %v5764_v6 }
 0x50f   : > { %v11079_v28 = vadd.f32 %v17086_v54, %v11008_v42  ;;  %v10613_v9 = vmax.f32 %v10611_v61, %v10612_v40  ;;  %v10618_v12 = vmax.f32 %v13451_v57, %v9923_v43  ;;  %v13370_v11 = vpop.f32.mrb[100].mxu1  ;;  %v13455_v39 = vpop.f32.mrb[246].mxu0  ;;  %v9377_v47 = vpack.c.bf16 %v9266_v1, %v9265_v33 }
 0x510   : > { %v10609_v17 = vmax.f32 %v10607_v49, %v10608_v60  ;;  %v9079_v3 = vadd.f32 %v13370_v11, %v18252_v27  ;;  %v10626_v41 = vmax.f32 %v13454_v52, %v13455_v39  ;;  %v8802_v22 = vpop.f32.mrb[101].mxu1  ;;  %v9926_v48 = vpop.f32.mrb[247].mxu0  ;;  %v5786_v8 = vrot.slane %v18254_v45, 4  ;;  %v18256_v11 = vld [vmem:[#allocation21_spill] sm:$0xff] }
 0x511   : > { %v11224_v30 = vrot.slane %v11079_v28, 2  ;;  %v10614_v0 = vrot.slane %v10613_v9, 2  ;;  %v10619_v16 = vmax.f32 %v10618_v12, %v9926_v48  ;;  %v13371_v31 = vpop.f32.mrb[102].mxu1  ;;  %v9077_v57 = vadd.f32 %v8802_v22, %v18248_v55  ;;  %13560 = vmatprep.mubr.msk.bf16.mxu0 %vm18253_vm7, %v9377_v47  ;;  %vm18271_vm7 = vmmov %vm18194_vm0 }
 0x512   : > { %v11009_v38 = vmax.f32 %v17236_v7, %v10609_v17  ;;  %v9080_v5 = vadd.f32 %v13371_v31, %v18252_v27  ;;  %v8805_v59 = vpop.f32.mrb[103].mxu1  ;;  %13561 = vmatmul.mubr.msk.bf16.gmra.mrb[96].mxu0 %vm18255_vm13, %v9378_v26  ;;  %v9271_v21 = vmax.f32 %v9079_v3, 0.0  ;;  %v5773_v55 = vmax.f32 %v5771_v56, %v5772_v29  ;;  %vm18272_vm13 = vmmov %vm18194_vm0 }
 0x513   : > { %v11225_v13 = vsel %vm11209_vm14, %v11224_v30, %v11223_v15  ;;  %v10615_v61 = vmax.f32 %v10613_v9, %v10614_v0  ;;  %v10620_v49 = vrot.slane %v10619_v16, 4  ;;  %v9078_v7 = vadd.f32 %v8805_v59, %v18252_v27 }
 0x514   : > { %v11080_v53 = vadd.f32 %v17086_v54, %v11009_v38  ;;  %v9272_v6 = vmax.f32 %v9080_v5, 0.0  ;;  %v5781_v2 = vmax.f32 %v5779_v18, %v5780_v51  ;;  %v9269_v60 = vmax.f32 %v9077_v57, 0.0 }
 0x515   : > { %v10616_v14 = vrot.slane %v10615_v61, 1  ;;  %v10621_v42 = vmax.f32 %v10619_v16, %v10620_v49  ;;  %v13458_v40 = vpop.f32.mrb[248].mxu0  ;;  %v9270_v15 = vmax.f32 %v9078_v7, 0.0  ;;  %v5787_v43 = vmax.f32 %v18254_v45, %v5786_v8 }
 0x516   : > { %v11226_v52 = vrot.slane %v11080_v53, 1  ;;  %v9380_v33 = vpack.c.bf16 %v9272_v6, %v9271_v21  ;;  %v9939_v1 = vpop.f32.mrb[249].mxu0  ;;  %v5759_v56 = vmax.f32 %v17247_v58, %v5758_v34  ;;  %v5766_v27 = vrot.slane %v5765_v10, 1  ;;  %v18257_v58 = vld [vmem:[#allocation90_spill] sm:$0xff] }
 0x517   : > { %v17285_v26 = vmax.f32 %v10615_v61, %v10616_v14  ;;  %v10622_v54 = vrot.slane %v10621_v42, 2  ;;  %v10627_v28 = vmax.f32 %v10626_v41, %v9939_v1  ;;  %v13374_v9 = vpop.f32.mrb[104].mxu1  ;;  %v13459_v12 = vpop.f32.mrb[250].mxu0  ;;  %v9379_v29 = vpack.c.bf16 %v9270_v15, %v9269_v60  ;;  %v18259_v61 = vld [vmem:[#allocation26_spill] sm:$0xff] }
 0x518   : > { %v11227_v18 = vsel %vm11212_vm1, %v11226_v52, %v11225_v13  ;;  %v9083_v39 = vadd.f32 %v13374_v9, %v18256_v11  ;;  %v8818_v17 = vpop.f32.mrb[105].mxu1  ;;  %v9942_v47 = vpop.f32.mrb[251].mxu0  ;;  %v5774_v51 = vrot.slane %v5773_v55, 1  ;;  %v5782_v31 = vrot.slane %v5781_v2, 1 }
 0x519   : > { %11321 = vst [vmem:[%s17171_s28 + $0x8] sm:$0xff] %v11227_v18  ;;  %v11010_v3 = vmax.f32 %v17242_v25, %v17285_v26  ;;  %v10623_v22 = vmax.f32 %v10621_v42, %v10622_v54  ;;  %v10628_v41 = vrot.slane %v10627_v28, 4  ;;  %v13375_v48 = vpop.f32.mrb[106].mxu1  ;;  %v9081_v30 = vadd.f32 %v8818_v17, %v18256_v11  ;;  %13564 = vmatprep.mubr.msk.bf16.mxu0 %vm18258_vm6, %v9379_v29  ;;  %vm18273_vm6 = vmmov %vm18194_vm0 }
 0x51a   : > { %v10634_v0 = vmax.f32 %v9942_v47, %v13458_v40  ;;  %v9084_v34 = vadd.f32 %v13375_v48, %v18257_v58  ;;  %v8821_v16 = vpop.f32.mrb[107].mxu1  ;;  %v5788_v38 = vrot.slane %v5787_v43, 2  ;;  %13565 = vmatmul.mubr.msk.bf16.gmra.mrb[100].mxu0 %vm18194_vm0, %v9380_v33  ;;  %v9275_v59 = vmax.f32 %v9083_v39, 0.0  ;;  %v18261_v39 = vld [vmem:[#allocation101_spill] sm:$0xff] }
 0x51b   : > { %v10624_v57 = vrot.slane %v10623_v22, 1  ;;  %v10629_v5 = vmax.f32 %v10627_v28, %v10628_v41  ;;  %v9082_v8 = vadd.f32 %v8821_v16, %v18256_v11  ;;  %v5767_v13 = vmax.f32 %v5765_v10, %v5766_v27 }
 0x51c   : > { %v10635_v25 = vmax.f32 %v10634_v0, %v13459_v12  ;;  %v9276_v45 = vmax.f32 %v9084_v34, 0.0  ;;  %v5794_v49 = vrot.slane %v18259_v61, 4  ;;  %v9273_v7 = vmax.f32 %v9081_v30, 0.0  ;;  %v18260_v12 = vld [vmem:[#allocation92_spill] sm:$0xff] }
 0x51d   : > { %v10625_v53 = vmax.f32 %v10623_v22, %v10624_v57  ;;  %v10630_v21 = vrot.slane %v10629_v5, 2  ;;  %v13462_v6 = vpop.f32.mrb[252].mxu0  ;;  %v9274_v40 = vmax.f32 %v9082_v8, 0.0  ;;  %v17301_v60 = vmax.f32 %v5773_v55, %v5774_v51  ;;  %v17312_v55 = vld [vmem:[%s17546_s4] ss:$0 sm:$0xff] }
 0x51e   : > { %v10636_v14 = vrot.slane %v10635_v25, 4  ;;  %v9382_v42 = vpack.c.bf16 %v9276_v45, %v9275_v59  ;;  %v9955_v52 = vpop.f32.mrb[253].mxu0  ;;  %v17303_v15 = vmax.f32 %v5781_v2, %v5782_v31  ;;  %v17305_v28 = vmax.f32 %v5787_v43, %v5788_v38 }
 0x51f   : > { %v11011_v33 = vmax.f32 %v5759_v56, %v10625_v53  ;;  %v10631_v1 = vmax.f32 %v10629_v5, %v10630_v21  ;;  %v13378_v26 = vpop.f32.mrb[108].mxu1  ;;  %v13463_v54 = vpop.f32.mrb[254].mxu0  ;;  %v9381_v9 = vpack.c.bf16 %v9274_v40, %v9273_v7  ;;  %v5802_v17 = vrot.slane %v18261_v39, 4 }
 0x520   : > { %v10637_v10 = vmax.f32 %v10635_v25, %v10636_v14  ;;  %v9087_v18 = vadd.f32 %v13378_v26, %v18260_v12  ;;  %v8834_v29 = vpop.f32.mrb[109].mxu1  ;;  %v9958_v11 = vpop.f32.mrb[255].mxu0  ;;  %v5795_v43 = vmax.f32 %v18259_v61, %v5794_v49  ;;  %v11081_v30 = vadd.f32 %v17312_v55, %v11010_v3  ;;  %v18264_v26 = vld [vmem:[#allocation94_spill] sm:$0xff] }
 0x521   : > { %v11082_v2 = vadd.f32 %v17312_v55, %v11011_v33  ;;  %v10632_v56 = vrot.slane %v10631_v1, 1  ;;  %v10642_v47 = vmax.f32 %v9955_v52, %v9958_v11  ;;  %v13379_v27 = vpop.f32.mrb[110].mxu1  ;;  %v9085_v41 = vadd.f32 %v8834_v29, %v18257_v58  ;;  %13568 = vmatprep.mubr.msk.bf16.mxu0 %vm18262_vm8, %v9381_v9  ;;  %vm18274_vm8 = vmmov %vm18194_vm0 }
 0x522   : > { %v10638_v22 = vrot.slane %v10637_v10, 2  ;;  %v9088_v48 = vadd.f32 %v13379_v27, %v18260_v12  ;;  %v8837_v51 = vpop.f32.mrb[111].mxu1  ;;  %13569 = vmatmul.mubr.msk.bf16.gmra.mrb[104].mxu0 %vm18263_vm15, %v9382_v42  ;;  %v9279_v38 = vmax.f32 %v9087_v18, 0.0  ;;  %v5803_v59 = vmax.f32 %v18261_v39, %v5802_v17  ;;  %vm18275_vm15 = vmmov %vm18194_vm0 }
 0x523   : > { %v11228_v0 = vrot.slane %v11082_v2, 7  ;;  %v10633_v34 = vmax.f32 %v10631_v1, %v10632_v56  ;;  %v10643_v16 = vmax.f32 %v10642_v47, %v13462_v6  ;;  %v9086_v5 = vadd.f32 %v8837_v51, %v18257_v58 }
 0x524   : > { %v10639_v31 = vmax.f32 %v10637_v10, %v10638_v22  ;;  %v9280_v57 = vmax.f32 %v9088_v48, 0.0  ;;  %v9277_v53 = vmax.f32 %v9085_v41, 0.0  ;;  %v5796_v6 = vrot.slane %v5795_v43, 2  ;;  %v18266_v41 = vld [vmem:[#allocation28_spill] sm:$0xff] }
 0x525   : > { %v11229_v25 = vsel %vm11194_vm12, %v11228_v0, %v11081_v30  ;;  %v11012_v45 = vmax.f32 %v5767_v13, %v10633_v34  ;;  %v10644_v8 = vrot.slane %v10643_v16, 4  ;;  %v13466_v61 = vpop.f32.mrb[0].mxu0  ;;  %v9278_v21 = vmax.f32 %v9086_v5, 0.0 }
 0x526   : > { %v10640_v49 = vrot.slane %v10639_v31, 1  ;;  %v9384_v3 = vpack.c.bf16 %v9280_v57, %v9279_v38  ;;  %v9971_v7 = vpop.f32.mrb[1].mxu0  ;;  %v5804_v29 = vrot.slane %v5803_v59, 2  ;;  %v5790_v56 = vrot.slane %v17305_v28, 1 }
 0x527   : > { %v11083_v14 = vadd.f32 %v17312_v55, %v11012_v45  ;;  %v10645_v42 = vmax.f32 %v10643_v16, %v10644_v8  ;;  %v10650_v40 = vmax.f32 %v13463_v54, %v9971_v7  ;;  %v13382_v52 = vpop.f32.mrb[112].mxu1  ;;  %v13467_v33 = vpop.f32.mrb[2].mxu0  ;;  %v9383_v1 = vpack.c.bf16 %v9278_v21, %v9277_v53 }
 0x528   : > { %v10641_v58 = vmax.f32 %v10639_v31, %v10640_v49  ;;  %v9091_v10 = vadd.f32 %v13382_v52, %v18264_v26  ;;  %v10658_v9 = vmax.f32 %v13466_v61, %v13467_v33  ;;  %v8850_v13 = vpop.f32.mrb[113].mxu1  ;;  %v9974_v18 = vpop.f32.mrb[3].mxu0  ;;  %v5810_v48 = vrot.slane %v18266_v41, 4 }
 0x529   : > { %v11230_v11 = vrot.slane %v11083_v14, 6  ;;  %v10646_v39 = vrot.slane %v10645_v42, 2  ;;  %v10651_v17 = vmax.f32 %v10650_v40, %v9974_v18  ;;  %v13383_v2 = vpop.f32.mrb[114].mxu1  ;;  %v9089_v54 = vadd.f32 %v8850_v13, %v18260_v12  ;;  %13572 = vmatprep.mubr.msk.bf16.mxu0 %vm18265_vm10, %v9383_v1  ;;  %vm18276_vm10 = vmmov %vm18194_vm0 }
 0x52a   : > { %v11013_v47 = vmax.f32 %v17301_v60, %v10641_v58  ;;  %v9092_v27 = vadd.f32 %v13383_v2, %v18264_v26  ;;  %v8853_v22 = vpop.f32.mrb[115].mxu1  ;;  %13573 = vmatmul.mubr.msk.bf16.gmra.mrb[108].mxu0 %vm18267_vm5, %v9384_v3  ;;  %v9283_v16 = vmax.f32 %v9091_v10, 0.0  ;;  %v5797_v12 = vmax.f32 %v5795_v43, %v5796_v6  ;;  %v18268_v6 = vld [vmem:[#allocation25_spill] sm:$0xff] }
 0x52b   : > { %v11231_v51 = vsel %vm11197_vm9, %v11230_v11, %v11229_v25  ;;  %v10647_v30 = vmax.f32 %v10645_v42, %v10646_v39  ;;  %v10652_v0 = vrot.slane %v10651_v17, 4  ;;  %v9090_v60 = vadd.f32 %v8853_v22, %v18264_v26 }
 0x52c   : > { %v11084_v34 = vadd.f32 %v17312_v55, %v11013_v47  ;;  %v9284_v31 = vmax.f32 %v9092_v27, 0.0  ;;  %v5805_v38 = vmax.f32 %v5803_v59, %v5804_v29  ;;  %v9281_v61 = vmax.f32 %v9089_v54, 0.0 }
 0x52d   : > { %v10648_v57 = vrot.slane %v10647_v30, 1  ;;  %v10653_v5 = vmax.f32 %v10651_v17, %v10652_v0  ;;  %v13470_v45 = vpop.f32.mrb[4].mxu0  ;;  %v9282_v53 = vmax.f32 %v9090_v60, 0.0  ;;  %v5811_v21 = vmax.f32 %v18266_v41, %v5810_v48  ;;  %v18269_v17 = vld [vmem:[#allocation100_spill] sm:$0xff] }
 0x52e   : > { %v11232_v8 = vrot.slane %v11084_v34, 5  ;;  %v9386_v49 = vpack.c.bf16 %v9284_v31, %v9283_v16  ;;  %v9987_v25 = vpop.f32.mrb[5].mxu0  ;;  %v5791_v52 = vmax.f32 %v17305_v28, %v5790_v56  ;;  %v5798_v26 = vrot.slane %v5797_v12, 1 }
 0x52f   : > { %v10649_v7 = vmax.f32 %v10647_v30, %v10648_v57  ;;  %v10654_v3 = vrot.slane %v10653_v5, 2  ;;  %v10659_v14 = vmax.f32 %v10658_v9, %v9987_v25  ;;  %v13386_v42 = vpop.f32.mrb[116].mxu1  ;;  %v13471_v40 = vpop.f32.mrb[6].mxu0  ;;  %v9385_v59 = vpack.c.bf16 %v9282_v53, %v9281_v61 }
 0x530   : > { %v11233_v43 = vsel %vm11200_vm3, %v11232_v8, %v11231_v51  ;;  %v9095_v33 = vadd.f32 %v13386_v42, %v18268_v6  ;;  %v8866_v58 = vpop.f32.mrb[117].mxu1  ;;  %v9990_v1 = vpop.f32.mrb[7].mxu0  ;;  %v5806_v11 = vrot.slane %v5805_v38, 1  ;;  %v5812_v56 = vrot.slane %v5811_v21, 2 }
 0x531   : > { %v11014_v10 = vmax.f32 %v17303_v15, %v10649_v7  ;;  %v10655_v13 = vmax.f32 %v10653_v5, %v10654_v3  ;;  %v10660_v18 = vrot.slane %v10659_v14, 4  ;;  %v13387_v29 = vpop.f32.mrb[118].mxu1  ;;  %v9093_v9 = vadd.f32 %v8866_v58, %v18268_v6  ;;  %13576 = vmatprep.mubr.msk.bf16.mxu0 %vm18270_vm4, %v9385_v59 }
 0x532   : > { %v10666_v39 = vmax.f32 %v9990_v1, %v13470_v45  ;;  %v9096_v2 = vadd.f32 %v13387_v29, %v18269_v17  ;;  %v8869_v28 = vpop.f32.mrb[119].mxu1  ;;  %13577 = vmatmul.mubr.msk.bf16.gmra.mrb[112].mxu0 %vm18271_vm7, %v9386_v49  ;;  %v9287_v15 = vmax.f32 %v9095_v33, 0.0  ;;  %v5818_v51 = vrot.slane %v15877_v62, 4 }
 0x533   : > { %v11085_v47 = vadd.f32 %v17312_v55, %v11014_v10  ;;  %v10656_v54 = vrot.slane %v10655_v13, 1  ;;  %v10661_v27 = vmax.f32 %v10659_v14, %v10660_v18  ;;  %v9094_v48 = vadd.f32 %v8869_v28, %v18268_v6 }
 0x534   : > { %v10667_v22 = vmax.f32 %v10666_v39, %v13471_v40  ;;  %v9288_v41 = vmax.f32 %v9096_v2, 0.0  ;;  %v9285_v31 = vmax.f32 %v9093_v9, 0.0  ;;  %v5799_v8 = vmax.f32 %v5797_v12, %v5798_v26 }
 0x535   : > { %v11234_v30 = vrot.slane %v11085_v47, 4  ;;  %v10657_v0 = vmax.f32 %v10655_v13, %v10656_v54  ;;  %v10662_v34 = vrot.slane %v10661_v27, 2  ;;  %v13474_v16 = vpop.f32.mrb[8].mxu0  ;;  %v9286_v5 = vmax.f32 %v9094_v48, 0.0 }
 0x536   : > { %v10668_v60 = vrot.slane %v10667_v22, 4  ;;  %v9388_v57 = vpack.c.bf16 %v9288_v41, %v9287_v15  ;;  %v10003_v45 = vpop.f32.mrb[9].mxu0  ;;  %v17349_v3 = vmax.f32 %v5805_v38, %v5806_v11  ;;  %v5819_v33 = vmax.f32 %v15877_v62, %v5818_v51 }
 0x537   : > { %v11235_v61 = vsel %vm11203_vm2, %v11234_v30, %v11233_v43  ;;  %v11015_v49 = vmax.f32 %v5791_v52, %v10657_v0  ;;  %v10663_v53 = vmax.f32 %v10661_v27, %v10662_v34  ;;  %v13390_v25 = vpop.f32.mrb[120].mxu1  ;;  %v13475_v7 = vpop.f32.mrb[10].mxu0  ;;  %v9387_v42 = vpack.c.bf16 %v9286_v5, %v9285_v31 }
 0x538   : > { %v10669_v14 = vmax.f32 %v10667_v22, %v10668_v60  ;;  %v9099_v40 = vadd.f32 %v13390_v25, %v15821_v46  ;;  %v8882_v59 = vpop.f32.mrb[121].mxu1  ;;  %v10006_v6 = vpop.f32.mrb[11].mxu0  ;;  %v17354_v43 = vmax.f32 %v5811_v21, %v5812_v56  ;;  %v5826_v18 = vrot.slane %v15906_v63, 4 }
 0x539   : > { %v11086_v58 = vadd.f32 %v17312_v55, %v11015_v49  ;;  %v10664_v1 = vrot.slane %v10663_v53, 1  ;;  %v10674_v12 = vmax.f32 %v10003_v45, %v10006_v6  ;;  %v13391_v26 = vpop.f32.mrb[122].mxu1  ;;  %v9097_v10 = vadd.f32 %v8882_v59, %v18269_v17  ;;  %13580 = vmatprep.mubr.msk.bf16.mxu0 %vm18272_vm13, %v9387_v42 }
 0x53a   : > { %v10670_v52 = vrot.slane %v10669_v14, 2  ;;  %v9100_v38 = vadd.f32 %v13391_v26, %v15821_v46  ;;  %v8885_v13 = vpop.f32.mrb[123].mxu1  ;;  %13581 = vmatmul.mubr.msk.bf16.gmra.mrb[116].mxu0 %vm18273_vm6, %v9388_v57  ;;  %v9291_v39 = vmax.f32 %v9099_v40, 0.0  ;;  %v5820_v28 = vrot.slane %v5819_v33, 2 }
 0x53b   : > { %v11236_v29 = vrot.slane %v11086_v58, 3  ;;  %v10665_v11 = vmax.f32 %v10663_v53, %v10664_v1  ;;  %v10675_v62 = vmax.f32 %v10674_v12, %v13474_v16  ;;  %v9098_v21 = vadd.f32 %v8885_v13, %v18269_v17 }
 0x53c   : > { %v10671_v9 = vmax.f32 %v10669_v14, %v10670_v52  ;;  %v9292_v2 = vmax.f32 %v9100_v38, 0.0  ;;  %v9289_v22 = vmax.f32 %v9097_v10, 0.0  ;;  %v5827_v30 = vmax.f32 %v15906_v63, %v5826_v18 }
 0x53d   : > { %v11237_v56 = vsel %vm11206_vm11, %v11236_v29, %v11235_v61  ;;  %v11016_v47 = vmax.f32 %v5799_v8, %v10665_v11  ;;  %v10676_v54 = vrot.slane %v10675_v62, 4  ;;  %v13478_v27 = vpop.f32.mrb[12].mxu0  ;;  %v9290_v48 = vmax.f32 %v9098_v21, 0.0 }
 0x53e   : > { %v10672_v15 = vrot.slane %v10671_v9, 1  ;;  %v9390_v41 = vpack.c.bf16 %v9292_v2, %v9291_v39  ;;  %v10019_v51 = vpop.f32.mrb[13].mxu0  ;;  %v5834_v49 = vrot.slane %v15916_v19, 4  ;;  %v5814_v63 = vrot.slane %v17354_v43, 1 }
 0x53f   : > { %v11087_v0 = vadd.f32 %v17312_v55, %v11016_v47  ;;  %v10677_v34 = vmax.f32 %v10675_v62, %v10676_v54  ;;  %v10682_v16 = vmax.f32 %v13475_v7, %v10019_v51  ;;  %v13394_v31 = vpop.f32.mrb[124].mxu1  ;;  %v13479_v60 = vpop.f32.mrb[14].mxu0  ;;  %v9389_v57 = vpack.c.bf16 %v9290_v48, %v9289_v22 }
 0x540   : > { %v10673_v17 = vmax.f32 %v10671_v9, %v10672_v15  ;;  %v9103_v5 = vadd.f32 %v13394_v31, %v15857_v23  ;;  %v10690_v45 = vmax.f32 %v13478_v27, %v13479_v60  ;;  %v8898_v8 = vpop.f32.mrb[125].mxu1  ;;  %v10022_v61 = vpop.f32.mrb[15].mxu0  ;;  %v5821_v58 = vmax.f32 %v5819_v33, %v5820_v28 }
 0x541   : > { %v11238_v53 = vrot.slane %v11087_v0, 2  ;;  %v10678_v25 = vrot.slane %v10677_v34, 2  ;;  %v10683_v14 = vmax.f32 %v10682_v16, %v10022_v61  ;;  %v13395_v42 = vpop.f32.mrb[126].mxu1  ;;  %v9101_v7 = vadd.f32 %v8898_v8, %v15821_v46  ;;  %13584 = vmatprep.mubr.msk.bf16.mxu0 %vm18194_vm0, %v9389_v57 }
 0x542   : > { %v11017_v40 = vmax.f32 %v17349_v3, %v10673_v17  ;;  %v9104_v59 = vadd.f32 %v13395_v42, %v15857_v23  ;;  %v8901_v6 = vpop.f32.mrb[127].mxu1  ;;  %13585 = vmatmul.mubr.msk.bf16.gmra.mrb[120].mxu0 %vm18274_vm8, %v9390_v41  ;;  %v9295_v10 = vmax.f32 %v9103_v5, 0.0  ;;  %v5828_v13 = vrot.slane %v5827_v30, 2 }
 0x543   : > { %v11239_v1 = vsel %vm11209_vm14, %v11238_v53, %v11237_v56  ;;  %v10679_v12 = vmax.f32 %v10677_v34, %v10678_v25  ;;  %v10684_v26 = vrot.slane %v10683_v14, 4  ;;  %v9102_v3 = vadd.f32 %v8901_v6, %v15857_v23 }
 0x544   : > { %v11088_v52 = vadd.f32 %v17312_v55, %v11017_v40  ;;  %v9296_v38 = vmax.f32 %v9104_v59, 0.0  ;;  %v5835_v46 = vmax.f32 %v15916_v19, %v5834_v49  ;;  %v9293_v62 = vmax.f32 %v9101_v7, 0.0  ;;  %v18277_v40 = vld [vmem:[#allocation29_spill] sm:$0xff] }
 0x545   : > { %v10680_v18 = vrot.slane %v10679_v12, 1  ;;  %v10685_v29 = vmax.f32 %v10683_v14, %v10684_v26  ;;  %v13482_v11 = vpop.f32.mrb[16].mxu0  ;;  %v9294_v39 = vmax.f32 %v9102_v3, 0.0  ;;  %v5815_v21 = vmax.f32 %v17354_v43, %v5814_v63 }
 0x546   : > { %v11240_v33 = vrot.slane %v11088_v52, 1  ;;  %v9392_v9 = vpack.c.bf16 %v9296_v38, %v9295_v10  ;;  %v10035_v2 = vpop.f32.mrb[17].mxu0  ;;  %v5822_v27 = vrot.slane %v5821_v58, 1  ;;  %v5829_v0 = vmax.f32 %v5827_v30, %v5828_v13 }
 0x547   : > { %v10681_v28 = vmax.f32 %v10679_v12, %v10680_v18  ;;  %v10686_v56 = vrot.slane %v10685_v29, 2  ;;  %v10691_v47 = vmax.f32 %v10690_v45, %v10035_v2  ;;  %v13483_v54 = vpop.f32.mrb[18].mxu0  ;;  %v9391_v15 = vpack.c.bf16 %v9294_v39, %v9293_v62 }
 0x548   : > { %v11241_v23 = vsel %vm11212_vm1, %v11240_v33, %v11239_v1  ;;  %v10038_v19 = vpop.f32.mrb[19].mxu0  ;;  %v5836_v34 = vrot.slane %v5835_v46, 2  ;;  %v5842_v16 = vrot.slane %v15948_v24, 4  ;;  %v5823_v17 = vmax.f32 %v5821_v58, %v5822_v27 }
 0x549   : > { %11322 = vst [vmem:[%s17171_s28 + $0x10] sm:$0xff] %v11241_v23  ;;  %v11018_v22 = vmax.f32 %v5815_v21, %v10681_v28  ;;  %v10687_v41 = vmax.f32 %v10685_v29, %v10686_v56  ;;  %v10692_v48 = vrot.slane %v10691_v47, 4  ;;  %v10698_v51 = vmax.f32 %v10038_v19, %v13482_v11  ;;  %13588 = vmatprep.mubr.msk.bf16.mxu1 %vm18275_vm15, %v9391_v15 }
 0x54a   : > { %13589 = vmatmul.mubr.msk.bf16.vlgmr.msra.gmra.mrb[128].mxu1 %vm18276_vm10, %v9392_v9  ;;  %v5830_v61 = vrot.slane %v5829_v0, 1  ;;  %v5837_v49 = vmax.f32 %v5835_v46, %v5836_v34  ;;  %v5843_v53 = vmax.f32 %v15948_v24, %v5842_v16  ;;  %v5850_v7 = vrot.slane %v18277_v40, 4 }
 0x54b   : > { %v10688_v43 = vrot.slane %v10687_v41, 1  ;;  %v10693_v31 = vmax.f32 %v10691_v47, %v10692_v48  ;;  %v10699_v60 = vmax.f32 %v10698_v51, %v13483_v54  ;;  %v11089_v38 = vadd.f32 %v17312_v55, %v11018_v22 }
 0x54c   : > { %v5831_v26 = vmax.f32 %v5829_v0, %v5830_v61  ;;  %v5838_v52 = vrot.slane %v5837_v49, 1  ;;  %v5844_v10 = vrot.slane %v5843_v53, 2  ;;  %v5851_v18 = vmax.f32 %v18277_v40, %v5850_v7 }
 0x54d   : > { %v10689_v57 = vmax.f32 %v10687_v41, %v10688_v43  ;;  %v10694_v5 = vrot.slane %v10693_v31, 2  ;;  %v10700_v45 = vrot.slane %v10699_v60, 4  ;;  %v13486_v8 = vpop.f32.mrb[20].mxu0  ;;  %v5858_v21 = vrot.slane %v15998_v44, 4  ;;  %v18278_v43 = vld [vmem:[#allocation30_spill] sm:$0xff] }
 0x54e   : > { %v10051_v30 = vpop.f32.mrb[21].mxu0  ;;  %v5839_v39 = vmax.f32 %v5837_v49, %v5838_v52  ;;  %v5845_v2 = vmax.f32 %v5843_v53, %v5844_v10  ;;  %v5852_v15 = vrot.slane %v5851_v18, 2 }
 0x54f   : > { %v11019_v25 = vmax.f32 %v5823_v17, %v10689_v57  ;;  %v10695_v14 = vmax.f32 %v10693_v31, %v10694_v5  ;;  %v10701_v42 = vmax.f32 %v10699_v60, %v10700_v45  ;;  %v13487_v63 = vpop.f32.mrb[22].mxu0  ;;  %v5859_v16 = vmax.f32 %v15998_v44, %v5858_v21 }
 0x550   : > { %v10054_v59 = vpop.f32.mrb[23].mxu0  ;;  %v5846_v34 = vrot.slane %v5845_v2, 1  ;;  %v5866_v31 = vrot.slane %v18278_v43, 4  ;;  %v5853_v45 = vmax.f32 %v5851_v18, %v5852_v15 }
 0x551   : > { %v11090_v6 = vadd.f32 %v17312_v55, %v11019_v25  ;;  %v10696_v1 = vrot.slane %v10695_v14, 1  ;;  %v10702_v58 = vrot.slane %v10701_v42, 2  ;;  %v10706_v12 = vmax.f32 %v10051_v30, %v10054_v59 }
 0x552   : > { %v5847_v30 = vmax.f32 %v5845_v2, %v5846_v34  ;;  %v5860_v25 = vrot.slane %v5859_v16, 2 }
 0x553   : > { %v11242_v3 = vrot.slane %v11090_v6, 7  ;;  %v10697_v24 = vmax.f32 %v10695_v14, %v10696_v1  ;;  %v10703_v13 = vmax.f32 %v10701_v42, %v10702_v58  ;;  %v10707_v46 = vmax.f32 %v10706_v12, %v13486_v8 }
 0x554   : > { %v5867_v14 = vmax.f32 %v18278_v43, %v5866_v31  ;;  %v5854_v6 = vrot.slane %v5853_v45, 1  ;;  %v5861_v10 = vmax.f32 %v5859_v16, %v5860_v25 }
 0x555   : > { %v11243_v29 = vsel %vm11194_vm12, %v11242_v3, %v11089_v38  ;;  %v11020_v11 = vmax.f32 %v5831_v26, %v10697_v24  ;;  %v10704_v33 = vrot.slane %v10703_v13, 1  ;;  %v10708_v62 = vrot.slane %v10707_v46, 4  ;;  %v13490_v9 = vpop.f32.mrb[24].mxu0  ;;  %v18279_v3 = vld [vmem:[#allocation103_spill] sm:$0xff] }
 0x556   : > { %v10067_v28 = vpop.f32.mrb[25].mxu0  ;;  %v5868_v38 = vrot.slane %v5867_v14, 2  ;;  %v5874_v24 = vrot.slane %v18279_v3, 4  ;;  %v5862_v21 = vrot.slane %v5861_v10, 1 }
 0x557   : > { %v11091_v56 = vadd.f32 %v17312_v55, %v11020_v11  ;;  %v10705_v47 = vmax.f32 %v10703_v13, %v10704_v33  ;;  %v10709_v54 = vmax.f32 %v10707_v46, %v10708_v62  ;;  %v10714_v27 = vmax.f32 %v13487_v63, %v10067_v28  ;;  %v13491_v23 = vpop.f32.mrb[26].mxu0 }
 0x558   : > { %v10722_v19 = vmax.f32 %v13490_v9, %v13491_v23  ;;  %v10070_v22 = vpop.f32.mrb[27].mxu0  ;;  %v5855_v11 = vmax.f32 %v5853_v45, %v5854_v6  ;;  %v5869_v28 = vmax.f32 %v5867_v14, %v5868_v38  ;;  %v5863_v43 = vmax.f32 %v5861_v10, %v5862_v21 }
 0x559   : > { %v11244_v41 = vrot.slane %v11091_v56, 6  ;;  %v11021_v48 = vmax.f32 %v5839_v39, %v10705_v47  ;;  %v10710_v51 = vrot.slane %v10709_v54, 2  ;;  %v10715_v0 = vmax.f32 %v10714_v27, %v10070_v22  ;;  %v18280_v22 = vld [vmem:[#allocation104_spill] sm:$0xff] }
 0x55a   : > { %v5875_v56 = vmax.f32 %v18279_v3, %v5874_v24  ;;  %v5870_v31 = vrot.slane %v5869_v28, 1 }
 0x55b   : > { %v11245_v60 = vsel %vm11197_vm9, %v11244_v41, %v11243_v29  ;;  %v11092_v17 = vadd.f32 %v17312_v55, %v11021_v48  ;;  %v10711_v57 = vmax.f32 %v10709_v54, %v10710_v51  ;;  %v10716_v5 = vrot.slane %v10715_v0, 4 }
 0x55c   : > { %v5882_v41 = vrot.slane %v18280_v22, 4  ;;  %v5871_v14 = vmax.f32 %v5869_v28, %v5870_v31 }
 0x55d   : > { %v11246_v8 = vrot.slane %v11092_v17, 5  ;;  %v10712_v61 = vrot.slane %v10711_v57, 1  ;;  %v10717_v49 = vmax.f32 %v10715_v0, %v10716_v5  ;;  %v13494_v53 = vpop.f32.mrb[28].mxu0 }
 0x55e   : > { %v10083_v42 = vpop.f32.mrb[29].mxu0 }
 0x55f   : > { %v11247_v44 = vsel %vm11200_vm3, %v11246_v8, %v11245_v60  ;;  %v10713_v63 = vmax.f32 %v10711_v57, %v10712_v61  ;;  %v10718_v40 = vrot.slane %v10717_v49, 2  ;;  %v10723_v7 = vmax.f32 %v10722_v19, %v10083_v42  ;;  %v13495_v59 = vpop.f32.mrb[30].mxu0 }
 0x560   : > { %v10086_v1 = vpop.f32.mrb[31].mxu0  ;;  %v5876_v60 = vrot.slane %v5875_v56, 2  ;;  %v5883_v8 = vmax.f32 %v18280_v22, %v5882_v41 }
 0x561   : > { %v11022_v58 = vmax.f32 %v5847_v30, %v10713_v63  ;;  %v10719_v12 = vmax.f32 %v10717_v49, %v10718_v40  ;;  %v10724_v26 = vrot.slane %v10723_v7, 4  ;;  %v10730_v52 = vmax.f32 %v10086_v1, %v13494_v53 }
 0x562   : > { %v5877_v42 = vmax.f32 %v5875_v56, %v5876_v60 }
 0x563   : > { %v11093_v13 = vadd.f32 %v17312_v55, %v11022_v58  ;;  %v10720_v46 = vrot.slane %v10719_v12, 1  ;;  %v10725_v18 = vmax.f32 %v10723_v7, %v10724_v26  ;;  %v10731_v29 = vmax.f32 %v10730_v52, %v13495_v59 }
 0x565   : > { %v11248_v33 = vrot.slane %v11093_v13, 4  ;;  %v10721_v62 = vmax.f32 %v10719_v12, %v10720_v46  ;;  %v10726_v9 = vrot.slane %v10725_v18, 2  ;;  %v10732_v39 = vrot.slane %v10731_v29, 4  ;;  %v13498_v2 = vpop.f32.mrb[32].mxu0 }
 0x566   : > { %v10099_v47 = vpop.f32.mrb[33].mxu0  ;;  %v5884_v12 = vrot.slane %v5883_v8, 2  ;;  %v5878_v13 = vrot.slane %v5877_v42, 1 }
 0x567   : > { %v11249_v54 = vsel %vm11203_vm2, %v11248_v33, %v11247_v44  ;;  %v11023_v27 = vmax.f32 %v5855_v11, %v10721_v62  ;;  %v10727_v23 = vmax.f32 %v10725_v18, %v10726_v9  ;;  %v10733_v15 = vmax.f32 %v10731_v29, %v10732_v39  ;;  %v13499_v19 = vpop.f32.mrb[34].mxu0  ;;  %v18281_v44 = vld [vmem:[#allocation105_spill] sm:$0xff]  ;;  %v18282_v18 = vld [vmem:[#allocation106_spill] sm:$0xff] }
 0x568   : > { %v10102_v48 = vpop.f32.mrb[35].mxu0  ;;  %v5890_v63 = vrot.slane %v18281_v44, 4  ;;  %v5898_v29 = vrot.slane %v18282_v18, 4  ;;  %v5885_v39 = vmax.f32 %v5883_v8, %v5884_v12 }
 0x569   : > { %v11094_v51 = vadd.f32 %v17312_v55, %v11023_v27  ;;  %v10728_v0 = vrot.slane %v10727_v23, 1  ;;  %v10734_v34 = vrot.slane %v10733_v15, 2  ;;  %v10738_v16 = vmax.f32 %v10099_v47, %v10102_v48 }
 0x56a   : > { %v5891_v46 = vmax.f32 %v18281_v44, %v5890_v63  ;;  %v5879_v47 = vmax.f32 %v5877_v42, %v5878_v13  ;;  %v5899_v27 = vmax.f32 %v18282_v18, %v5898_v29 }
 0x56b   : > { %v11250_v17 = vrot.slane %v11094_v51, 3  ;;  %v10729_v57 = vmax.f32 %v10727_v23, %v10728_v0  ;;  %v10735_v5 = vmax.f32 %v10733_v15, %v10734_v34  ;;  %v10739_v45 = vmax.f32 %v10738_v16, %v13498_v2 }
 0x56c   : > { %v5886_v51 = vrot.slane %v5885_v39, 1 }
 0x56d   : > { %v11251_v61 = vsel %vm11206_vm11, %v11250_v17, %v11249_v54  ;;  %v11024_v49 = vmax.f32 %v5863_v43, %v10729_v57  ;;  %v10736_v53 = vrot.slane %v10735_v5, 1  ;;  %v10740_v30 = vrot.slane %v10739_v45, 4  ;;  %v13502_v25 = vpop.f32.mrb[36].mxu0  ;;  %v18283_v57 = vld [vmem:[#allocation107_spill] sm:$0xff] }
 0x56e   : > { %v10115_v40 = vpop.f32.mrb[37].mxu0  ;;  %v5892_v54 = vrot.slane %v5891_v46, 2  ;;  %v5900_v17 = vrot.slane %v5899_v27, 2 }
 0x56f   : > { %v11095_v7 = vadd.f32 %v17312_v55, %v11024_v49  ;;  %v10737_v59 = vmax.f32 %v10735_v5, %v10736_v53  ;;  %v10741_v6 = vmax.f32 %v10739_v45, %v10740_v30  ;;  %v10746_v1 = vmax.f32 %v13499_v19, %v10115_v40  ;;  %v13503_v58 = vpop.f32.mrb[38].mxu0 }
 0x570   : > { %v10754_v26 = vmax.f32 %v13502_v25, %v13503_v58  ;;  %v10118_v52 = vpop.f32.mrb[39].mxu0  ;;  %v5893_v60 = vmax.f32 %v5891_v46, %v5892_v54  ;;  %v5906_v5 = vrot.slane %v18283_v57, 4  ;;  %v5887_v49 = vmax.f32 %v5885_v39, %v5886_v51  ;;  %v18284_v58 = vld [vmem:[#allocation108_spill] sm:$0xff] }
 0x571   : > { %v11252_v10 = vrot.slane %v11095_v7, 2  ;;  %v11025_v38 = vmax.f32 %v5871_v14, %v10737_v59  ;;  %v10742_v3 = vrot.slane %v10741_v6, 2  ;;  %v10747_v24 = vmax.f32 %v10746_v1, %v10118_v52 }
 0x572   : > { %v5894_v42 = vrot.slane %v5893_v60, 1  ;;  %v5901_v44 = vmax.f32 %v5899_v27, %v5900_v17  ;;  %v5907_v63 = vmax.f32 %v18283_v57, %v5906_v5  ;;  %v5914_v12 = vrot.slane %v18284_v58, 4  ;;  %v18285_v27 = vld [vmem:[#allocation109_spill] sm:$0xff] }
 0x573   : > { %v11253_v11 = vsel %vm11209_vm14, %v11252_v10, %v11251_v61  ;;  %v11096_v33 = vadd.f32 %v17312_v55, %v11025_v38  ;;  %v10743_v62 = vmax.f32 %v10741_v6, %v10742_v3  ;;  %v10748_v9 = vrot.slane %v10747_v24, 4 }
 0x574   : > { %v5902_v13 = vrot.slane %v5901_v44, 1  ;;  %v5908_v46 = vrot.slane %v5907_v63, 2 }
 0x575   : > { %v11254_v2 = vrot.slane %v11096_v33, 1  ;;  %v10744_v21 = vrot.slane %v10743_v62, 1  ;;  %v10749_v28 = vmax.f32 %v10747_v24, %v10748_v9  ;;  %v13506_v56 = vpop.f32.mrb[40].mxu0  ;;  %v5895_v24 = vmax.f32 %v5893_v60, %v5894_v42 }
 0x576   : > { %v10131_v23 = vpop.f32.mrb[41].mxu0  ;;  %v5915_v9 = vmax.f32 %v18284_v58, %v5914_v12  ;;  %v5909_v54 = vmax.f32 %v5907_v63, %v5908_v46 }
 0x577   : > { %v11255_v15 = vsel %vm11212_vm1, %v11254_v2, %v11253_v11  ;;  %v10745_v19 = vmax.f32 %v10743_v62, %v10744_v21  ;;  %v10750_v22 = vrot.slane %v10749_v28, 2  ;;  %v10755_v41 = vmax.f32 %v10754_v26, %v10131_v23  ;;  %v13507_v48 = vpop.f32.mrb[42].mxu0 }
 0x578   : > { %11323 = vst [vmem:[%s17171_s28 + $0x18] sm:$0xff] %v11255_v15  ;;  %v10134_v0 = vpop.f32.mrb[43].mxu0  ;;  %v5922_v23 = vrot.slane %v18285_v27, 4  ;;  %v5910_v57 = vrot.slane %v5909_v54, 1 }
 0x579   : > { %v11026_v34 = vmax.f32 %v5879_v47, %v10745_v19  ;;  %v10751_v16 = vmax.f32 %v10749_v28, %v10750_v22  ;;  %v10756_v43 = vrot.slane %v10755_v41, 4  ;;  %v10762_v31 = vmax.f32 %v10134_v0, %v13506_v56 }
 0x57a   : > { %v5903_v47 = vmax.f32 %v5901_v44, %v5902_v13  ;;  %v5916_v0 = vrot.slane %v5915_v9, 2  ;;  %v5923_v5 = vmax.f32 %v18285_v27, %v5922_v23 }
 0x57b   : > { %v10752_v45 = vrot.slane %v10751_v16, 1  ;;  %v10757_v8 = vmax.f32 %v10755_v41, %v10756_v43  ;;  %v10763_v61 = vmax.f32 %v10762_v31, %v13507_v48  ;;  %v11097_v18 = vadd.f32 %v17312_v55, %v11026_v34 }
 0x57d   : > { %v10753_v53 = vmax.f32 %v10751_v16, %v10752_v45  ;;  %v10758_v30 = vrot.slane %v10757_v8, 2  ;;  %v10764_v25 = vrot.slane %v10763_v61, 4  ;;  %v13510_v14 = vpop.f32.mrb[44].mxu0  ;;  %v18286_v45 = vld [vmem:[#allocation110_spill] sm:$0xff] }
 0x57e   : > { %v10147_v40 = vpop.f32.mrb[45].mxu0 }
 0x57f   : > { %v11027_v7 = vmax.f32 %v5887_v49, %v10753_v53  ;;  %v10759_v59 = vmax.f32 %v10757_v8, %v10758_v30  ;;  %v10765_v6 = vmax.f32 %v10763_v61, %v10764_v25  ;;  %v13511_v1 = vpop.f32.mrb[46].mxu0  ;;  %v5930_v8 = vrot.slane %v18286_v45, 4 }
 0x580   : > { %v10150_v26 = vpop.f32.mrb[47].mxu0  ;;  %v5917_v25 = vmax.f32 %v5915_v9, %v5916_v0 }
 0x581   : > { %v11098_v52 = vadd.f32 %v17312_v55, %v11027_v7  ;;  %v10760_v10 = vrot.slane %v10759_v59, 1  ;;  %v10766_v38 = vrot.slane %v10765_v6, 2  ;;  %v10770_v3 = vmax.f32 %v10147_v40, %v10150_v26 }
 0x582   : > { %v5911_v40 = vmax.f32 %v5909_v54, %v5910_v57  ;;  %v5924_v7 = vrot.slane %v5923_v5, 2 }
 0x583   : > { %v11256_v29 = vrot.slane %v11098_v52, 7  ;;  %v10761_v11 = vmax.f32 %v10759_v59, %v10760_v10  ;;  %v10767_v33 = vmax.f32 %v10765_v6, %v10766_v38  ;;  %v10771_v62 = vmax.f32 %v10770_v3, %v13510_v14 }
 0x584   : > { %v5931_v59 = vmax.f32 %v18286_v45, %v5930_v8  ;;  %v5918_v10 = vrot.slane %v5917_v25, 1 }
 0x585   : > { %v11257_v39 = vsel %vm11194_vm12, %v11256_v29, %v11097_v18  ;;  %v11028_v2 = vmax.f32 %v5895_v24, %v10761_v11  ;;  %v10768_v21 = vrot.slane %v10767_v33, 1  ;;  %v10772_v28 = vrot.slane %v10771_v62, 4  ;;  %v13514_v56 = vpop.f32.mrb[48].mxu0 }
 0x586   : > { %v10163_v15 = vpop.f32.mrb[49].mxu0  ;;  %v5925_v18 = vmax.f32 %v5923_v5, %v5924_v7  ;;  %v5932_v29 = vrot.slane %v5931_v59, 2 }
 0x587   : > { %v11099_v19 = vadd.f32 %v17312_v55, %v11028_v2  ;;  %v10769_v22 = vmax.f32 %v10767_v33, %v10768_v21  ;;  %v10773_v41 = vmax.f32 %v10771_v62, %v10772_v28  ;;  %v10778_v48 = vmax.f32 %v13511_v1, %v10163_v15  ;;  %v13515_v51 = vpop.f32.mrb[50].mxu0  ;;  %v18287_v2 = vld [vmem:[#allocation86_spill] sm:$0xff] }
 0x588   : > { %v10786_v34 = vmax.f32 %v13514_v56, %v13515_v51  ;;  %v10166_v16 = vpop.f32.mrb[51].mxu0  ;;  %v5938_v21 = vrot.slane %v18287_v2, 4  ;;  %v5926_v27 = vrot.slane %v5925_v18, 1  ;;  %v5933_v23 = vmax.f32 %v5931_v59, %v5932_v29 }
 0x589   : > { %v11258_v43 = vrot.slane %v11099_v19, 6  ;;  %v11029_v31 = vmax.f32 %v5903_v47, %v10769_v22  ;;  %v10774_v60 = vrot.slane %v10773_v41, 2  ;;  %v10779_v17 = vmax.f32 %v10778_v48, %v10166_v16  ;;  %v18288_v16 = vld [vmem:[#allocation85_spill] sm:$0xff] }
 0x58a   : > { %v5939_v0 = vmax.f32 %v18287_v2, %v5938_v21  ;;  %v5927_v5 = vmax.f32 %v5925_v18, %v5926_v27  ;;  %v5934_v8 = vrot.slane %v5933_v23, 1 }
 0x58b   : > { %v11259_v61 = vsel %vm11197_vm9, %v11258_v43, %v11257_v39  ;;  %v11100_v49 = vadd.f32 %v17312_v55, %v11029_v31  ;;  %v10775_v53 = vmax.f32 %v10773_v41, %v10774_v60  ;;  %v10780_v30 = vrot.slane %v10779_v17, 4 }
 0x58c   : > { %v5919_v39 = vmax.f32 %v5917_v25, %v5918_v10  ;;  %v5946_v43 = vrot.slane %v18288_v16, 4  ;;  %v5935_v59 = vmax.f32 %v5933_v23, %v5934_v8 }
 0x58d   : > { %v11260_v14 = vrot.slane %v11100_v49, 5  ;;  %v10776_v42 = vrot.slane %v10775_v53, 1  ;;  %v10781_v44 = vmax.f32 %v10779_v17, %v10780_v30  ;;  %v13518_v63 = vpop.f32.mrb[52].mxu0  ;;  %v5940_v30 = vrot.slane %v5939_v0, 2 }
 0x58e   : > { %v10179_v6 = vpop.f32.mrb[53].mxu0 }
 0x58f   : > { %v11261_v1 = vsel %vm11200_vm3, %v11260_v14, %v11259_v61  ;;  %v10777_v58 = vmax.f32 %v10775_v53, %v10776_v42  ;;  %v10782_v12 = vrot.slane %v10781_v44, 2  ;;  %v10787_v26 = vmax.f32 %v10786_v34, %v10179_v6  ;;  %v13519_v52 = vpop.f32.mrb[54].mxu0  ;;  %v18289_v6 = vld [vmem:[#allocation88_spill] sm:$0xff] }
 0x590   : > { %v10182_v38 = vpop.f32.mrb[55].mxu0  ;;  %v5947_v14 = vmax.f32 %v18288_v16, %v5946_v43 }
 0x591   : > { %v11030_v3 = vmax.f32 %v5911_v40, %v10777_v58  ;;  %v10783_v24 = vmax.f32 %v10781_v44, %v10782_v12  ;;  %v10788_v13 = vrot.slane %v10787_v26, 4  ;;  %v10794_v46 = vmax.f32 %v10182_v38, %v13518_v63 }
 0x593   : > { %v11101_v11 = vadd.f32 %v17312_v55, %v11030_v3  ;;  %v10784_v33 = vrot.slane %v10783_v24, 1  ;;  %v10789_v62 = vmax.f32 %v10787_v26, %v10788_v13  ;;  %v10795_v9 = vmax.f32 %v10794_v46, %v13519_v52 }
 0x594   : > { %v5941_v52 = vmax.f32 %v5939_v0, %v5940_v30 }
 0x595   : > { %v11262_v28 = vrot.slane %v11101_v11, 4  ;;  %v10785_v56 = vmax.f32 %v10783_v24, %v10784_v33  ;;  %v10790_v47 = vrot.slane %v10789_v62, 2  ;;  %v10796_v54 = vrot.slane %v10795_v9, 4  ;;  %v13522_v15 = vpop.f32.mrb[56].mxu0 }
 0x596   : > { %v10195_v51 = vpop.f32.mrb[57].mxu0  ;;  %v5948_v24 = vrot.slane %v5947_v14, 2 }
 0x597   : > { %v11263_v19 = vsel %vm11203_vm2, %v11262_v28, %v11261_v1  ;;  %v11031_v22 = vmax.f32 %v5919_v39, %v10785_v56  ;;  %v10791_v41 = vmax.f32 %v10789_v62, %v10790_v47  ;;  %v10797_v48 = vmax.f32 %v10795_v9, %v10796_v54  ;;  %v13523_v34 = vpop.f32.mrb[58].mxu0  ;;  %v18290_v9 = vld [vmem:[#allocation89_spill] sm:$0xff] }
 0x598   : > { %v10198_v57 = vpop.f32.mrb[59].mxu0  ;;  %v5954_v1 = vrot.slane %v18289_v6, 4  ;;  %v5962_v39 = vrot.slane %v18290_v9, 4  ;;  %v5942_v28 = vrot.slane %v5941_v52, 1  ;;  %v5949_v54 = vmax.f32 %v5947_v14, %v5948_v24 }
 0x599   : > { %v11102_v31 = vadd.f32 %v17312_v55, %v11031_v22  ;;  %v10792_v60 = vrot.slane %v10791_v41, 1  ;;  %v10798_v17 = vrot.slane %v10797_v48, 2  ;;  %v10802_v45 = vmax.f32 %v10195_v51, %v10198_v57 }
 0x59a   : > { %v5955_v62 = vmax.f32 %v18289_v6, %v5954_v1  ;;  %v5943_v0 = vmax.f32 %v5941_v52, %v5942_v28 }
 0x59b   : > { %v11264_v61 = vrot.slane %v11102_v31, 3  ;;  %v10793_v49 = vmax.f32 %v10791_v41, %v10792_v60  ;;  %v10799_v53 = vmax.f32 %v10797_v48, %v10798_v17  ;;  %v10803_v25 = vmax.f32 %v10802_v45, %v13522_v15 }
 0x59c   : > { %v5956_v22 = vrot.slane %v5955_v62, 2  ;;  %v5963_v41 = vmax.f32 %v18290_v9, %v5962_v39  ;;  %v5950_v60 = vrot.slane %v5949_v54, 1 }
 0x59d   : > { %v11265_v42 = vsel %vm11206_vm11, %v11264_v61, %v11263_v19  ;;  %v11032_v44 = vmax.f32 %v5927_v5, %v10793_v49  ;;  %v10800_v63 = vrot.slane %v10799_v53, 1  ;;  %v10804_v40 = vrot.slane %v10803_v25, 4  ;;  %v13526_v7 = vpop.f32.mrb[60].mxu0 }
 0x59e   : > { %v10211_v26 = vpop.f32.mrb[61].mxu0  ;;  %v5957_v61 = vmax.f32 %v5955_v62, %v5956_v22  ;;  %v5964_v49 = vrot.slane %v5963_v41, 2 }
 0x59f   : > { %v11103_v58 = vadd.f32 %v17312_v55, %v11032_v44  ;;  %v10801_v12 = vmax.f32 %v10799_v53, %v10800_v63  ;;  %v10805_v10 = vmax.f32 %v10803_v25, %v10804_v40  ;;  %v10810_v38 = vmax.f32 %v13523_v34, %v10211_v26  ;;  %v13527_v3 = vpop.f32.mrb[62].mxu0  ;;  %v17445_v55 = vld [vmem:[%s17546_s4] ss:$0 sm:$0xff]  ;;  %v18291_v53 = vld [vmem:[#allocation93_spill] sm:$0xff] }
 0x5a0   : > { %v10818_v18 = vmax.f32 %v13526_v7, %v13527_v3  ;;  %v10214_v29 = vpop.f32.mrb[63].mxu0  ;;  %v5970_v30 = vrot.slane %v18291_v53, 4  ;;  %v5951_v44 = vmax.f32 %v5949_v54, %v5950_v60  ;;  %v5958_v6 = vrot.slane %v5957_v61, 1  ;;  %v18292_v3 = vld [vmem:[#allocation23_spill] sm:$0xff] }
 0x5a1   : > { %v11266_v13 = vrot.slane %v11103_v58, 2  ;;  %v11033_v46 = vmax.f32 %v5935_v59, %v10801_v12  ;;  %v10806_v11 = vrot.slane %v10805_v10, 2  ;;  %v10811_v33 = vmax.f32 %v10810_v38, %v10214_v29 }
 0x5a2   : > { %v5965_v1 = vmax.f32 %v5963_v41, %v5964_v49  ;;  %v5971_v58 = vmax.f32 %v18291_v53, %v5970_v30  ;;  %v5978_v24 = vrot.slane %v18292_v3, 4 }
 0x5a3   : > { %v11267_v2 = vsel %vm11209_vm14, %v11266_v13, %v11265_v42  ;;  %v11104_v21 = vadd.f32 %v17445_v55, %v11033_v46  ;;  %v10807_v56 = vmax.f32 %v10805_v10, %v10806_v11  ;;  %v10812_v47 = vrot.slane %v10811_v33, 4 }
 0x5a4   : > { %v5966_v62 = vrot.slane %v5965_v1, 1  ;;  %v5972_v9 = vrot.slane %v5971_v58, 2 }
 0x5a5   : > { %v11268_v27 = vrot.slane %v11104_v21, 1  ;;  %v10808_v23 = vrot.slane %v10807_v56, 1  ;;  %v10813_v15 = vmax.f32 %v10811_v33, %v10812_v47  ;;  %v13530_v19 = vpop.f32.mrb[64].mxu0  ;;  %v5959_v33 = vmax.f32 %v5957_v61, %v5958_v6 }
 0x5a6   : > { %v10227_v51 = vpop.f32.mrb[65].mxu0  ;;  %v5979_v47 = vmax.f32 %v18292_v3, %v5978_v24  ;;  %v5967_v22 = vmax.f32 %v5965_v1, %v5966_v62  ;;  %v5973_v41 = vmax.f32 %v5971_v58, %v5972_v9 }
 0x5a7   : > { %v11269_v48 = vsel %vm11212_vm1, %v11268_v27, %v11267_v2  ;;  %v10809_v34 = vmax.f32 %v10807_v56, %v10808_v23  ;;  %v10814_v16 = vrot.slane %v10813_v15, 2  ;;  %v10819_v43 = vmax.f32 %v10818_v18, %v10227_v51  ;;  %v13531_v31 = vpop.f32.mrb[66].mxu0 }
 0x5a8   : > { %11324 = vst [vmem:[%s17171_s28 + $0x20] sm:$0xff] %v11269_v48  ;;  %v10230_v17 = vpop.f32.mrb[67].mxu0  ;;  %v18293_v48 = vld [vmem:[#allocation95_spill] sm:$0xff]  ;;  %v5974_v53 = vrot.slane %v5973_v41, 1 }
 0x5a9   : > { %v11034_v57 = vmax.f32 %v5943_v0, %v10809_v34  ;;  %v10815_v5 = vmax.f32 %v10813_v15, %v10814_v16  ;;  %v10820_v45 = vrot.slane %v10819_v43, 4  ;;  %v10826_v8 = vmax.f32 %v10230_v17, %v13530_v19 }
 0x5aa   : > { %v5986_v51 = vrot.slane %v18293_v48, 4  ;;  %v5980_v17 = vrot.slane %v5979_v47, 2 }
 0x5ab   : > { %v10816_v25 = vrot.slane %v10815_v5, 1  ;;  %v10821_v14 = vmax.f32 %v10819_v43, %v10820_v45  ;;  %v10827_v42 = vmax.f32 %v10826_v8, %v13531_v31  ;;  %v11105_v39 = vadd.f32 %v17445_v55, %v11034_v57 }
 0x5ac   : > { %v5987_v30 = vmax.f32 %v18293_v48, %v5986_v51 }
 0x5ad   : > { %v10817_v63 = vmax.f32 %v10815_v5, %v10816_v25  ;;  %v10822_v40 = vrot.slane %v10821_v14, 2  ;;  %v10828_v7 = vrot.slane %v10827_v42, 4  ;;  %v13534_v59 = vpop.f32.mrb[68].mxu0  ;;  %v18294_v25 = vld [vmem:[#allocation96_spill] sm:$0xff] }
 0x5ae   : > { %v10243_v12 = vpop.f32.mrb[69].mxu0 }
 0x5af   : > { %v11035_v26 = vmax.f32 %v5951_v44, %v10817_v63  ;;  %v10823_v52 = vmax.f32 %v10821_v14, %v10822_v40  ;;  %v10829_v10 = vmax.f32 %v10827_v42, %v10828_v7  ;;  %v13535_v38 = vpop.f32.mrb[70].mxu0  ;;  %v5994_v14 = vrot.slane %v18294_v25, 4 }
 0x5b0   : > { %v10246_v13 = vpop.f32.mrb[71].mxu0  ;;  %v5981_v7 = vmax.f32 %v5979_v47, %v5980_v17 }
 0x5b1   : > { %v11106_v46 = vadd.f32 %v17445_v55, %v11035_v26  ;;  %v10824_v18 = vrot.slane %v10823_v52, 1  ;;  %v10830_v29 = vrot.slane %v10829_v10, 2  ;;  %v10834_v11 = vmax.f32 %v10243_v12, %v10246_v13 }
 0x5b2   : > { %v5975_v12 = vmax.f32 %v5973_v41, %v5974_v53  ;;  %v5988_v26 = vrot.slane %v5987_v30, 2 }
 0x5b3   : > { %v11270_v2 = vrot.slane %v11106_v46, 7  ;;  %v10825_v21 = vmax.f32 %v10823_v52, %v10824_v18  ;;  %v10831_v28 = vmax.f32 %v10829_v10, %v10830_v29  ;;  %v10835_v56 = vmax.f32 %v10834_v11, %v13534_v59 }
 0x5b4   : > { %v5995_v52 = vmax.f32 %v18294_v25, %v5994_v14  ;;  %v5982_v18 = vrot.slane %v5981_v7, 1 }
 0x5b5   : > { %v11271_v54 = vsel %vm11194_vm12, %v11270_v2, %v11105_v39  ;;  %v11036_v27 = vmax.f32 %v5959_v33, %v10825_v21  ;;  %v10832_v23 = vrot.slane %v10831_v28, 1  ;;  %v10836_v15 = vrot.slane %v10835_v56, 4  ;;  %v13538_v19 = vpop.f32.mrb[72].mxu0  ;;  %v18295_v21 = vld [vmem:[#allocation98_spill] sm:$0xff] }
 0x5b6   : > { %v10259_v0 = vpop.f32.mrb[73].mxu0  ;;  %v5989_v39 = vmax.f32 %v5987_v30, %v5988_v26  ;;  %v5996_v2 = vrot.slane %v5995_v52, 2 }
 0x5b7   : > { %v11107_v34 = vadd.f32 %v17445_v55, %v11036_v27  ;;  %v10833_v16 = vmax.f32 %v10831_v28, %v10832_v23  ;;  %v10837_v43 = vmax.f32 %v10835_v56, %v10836_v15  ;;  %v10842_v31 = vmax.f32 %v13535_v38, %v10259_v0  ;;  %v13539_v60 = vpop.f32.mrb[74].mxu0 }
 0x5b8   : > { %v10850_v57 = vmax.f32 %v13538_v19, %v13539_v60  ;;  %v10262_v5 = vpop.f32.mrb[75].mxu0  ;;  %v6002_v28 = vrot.slane %v18295_v21, 4  ;;  %v5983_v23 = vmax.f32 %v5981_v7, %v5982_v18  ;;  %v5990_v51 = vrot.slane %v5989_v39, 1 }
 0x5b9   : > { %v11272_v45 = vrot.slane %v11107_v34, 6  ;;  %v11037_v8 = vmax.f32 %v5967_v22, %v10833_v16  ;;  %v10838_v61 = vrot.slane %v10837_v43, 2  ;;  %v10843_v49 = vmax.f32 %v10842_v31, %v10262_v5  ;;  %v18296_v5 = vld [vmem:[#allocation99_spill] sm:$0xff] }
 0x5ba   : > { %v5997_v0 = vmax.f32 %v5995_v52, %v5996_v2  ;;  %v6003_v34 = vmax.f32 %v18295_v21, %v6002_v28  ;;  %v5991_v25 = vmax.f32 %v5989_v39, %v5990_v51 }
 0x5bb   : > { %v11273_v42 = vsel %vm11197_vm9, %v11272_v45, %v11271_v54  ;;  %v11108_v44 = vadd.f32 %v17445_v55, %v11037_v8  ;;  %v10839_v63 = vmax.f32 %v10837_v43, %v10838_v61  ;;  %v10844_v40 = vrot.slane %v10843_v49, 4 }
 0x5bc   : > { %v6010_v45 = vrot.slane %v18296_v5, 4  ;;  %v5998_v14 = vrot.slane %v5997_v0, 1 }
 0x5bd   : > { %v11274_v59 = vrot.slane %v11108_v44, 5  ;;  %v10840_v6 = vrot.slane %v10839_v63, 1  ;;  %v10845_v1 = vmax.f32 %v10843_v49, %v10844_v40  ;;  %v13542_v58 = vpop.f32.mrb[76].mxu0 }
 0x5be   : > { %v10275_v10 = vpop.f32.mrb[77].mxu0  ;;  %v5999_v52 = vmax.f32 %v5997_v0, %v5998_v14 }
 0x5bf   : > { %v11275_v38 = vsel %vm11200_vm3, %v11274_v59, %v11273_v42  ;;  %v10841_v3 = vmax.f32 %v10839_v63, %v10840_v6  ;;  %v10846_v24 = vrot.slane %v10845_v1, 2  ;;  %v10851_v13 = vmax.f32 %v10850_v57, %v10275_v10  ;;  %v13543_v46 = vpop.f32.mrb[78].mxu0 }
 0x5c0   : > { %v10278_v29 = vpop.f32.mrb[79].mxu0  ;;  %v6004_v42 = vrot.slane %v6003_v34, 2  ;;  %v6011_v59 = vmax.f32 %v18296_v5, %v6010_v45 }
 0x5c1   : > { %v11038_v11 = vmax.f32 %v5975_v12, %v10841_v3  ;;  %v10847_v33 = vmax.f32 %v10845_v1, %v10846_v24  ;;  %v10852_v62 = vrot.slane %v10851_v13, 4  ;;  %v10858_v9 = vmax.f32 %v10278_v29, %v13542_v58 }
 0x5c2   : > { %v6005_v10 = vmax.f32 %v6003_v34, %v6004_v42 }
 0x5c3   : > { %v11109_v56 = vadd.f32 %v17445_v55, %v11038_v11  ;;  %v10848_v47 = vrot.slane %v10847_v33, 1  ;;  %v10853_v54 = vmax.f32 %v10851_v13, %v10852_v62  ;;  %v10859_v27 = vmax.f32 %v10858_v9, %v13543_v46 }
 0x5c5   : > { %v11276_v15 = vrot.slane %v11109_v56, 4  ;;  %v10849_v19 = vmax.f32 %v10847_v33, %v10848_v47  ;;  %v10854_v22 = vrot.slane %v10853_v54, 2  ;;  %v10860_v41 = vrot.slane %v10859_v27, 4  ;;  %v13546_v48 = vpop.f32.mrb[80].mxu0 }
 0x5c6   : > { %v10291_v16 = vpop.f32.mrb[81].mxu0  ;;  %v6012_v33 = vrot.slane %v6011_v59, 2  ;;  %v6006_v56 = vrot.slane %v6005_v10, 1 }
 0x5c7   : > { %v11277_v43 = vsel %vm11203_vm2, %v11276_v15, %v11275_v38  ;;  %v11039_v31 = vmax.f32 %v5983_v23, %v10849_v19  ;;  %v10855_v60 = vmax.f32 %v10853_v54, %v10854_v22  ;;  %v10861_v17 = vmax.f32 %v10859_v27, %v10860_v41  ;;  %v13547_v57 = vpop.f32.mrb[82].mxu0  ;;  %v18297_v38 = vld [vmem:[#allocation27_spill] sm:$0xff]  ;;  %v18298_v54 = vld [vmem:[#allocation102_spill] sm:$0xff] }
 0x5c8   : > { %v10294_v8 = vpop.f32.mrb[83].mxu0  ;;  %v6018_v3 = vrot.slane %v18297_v38, 4  ;;  %v6026_v27 = vrot.slane %v18298_v54, 4  ;;  %v6013_v41 = vmax.f32 %v6011_v59, %v6012_v33 }
 0x5c9   : > { %v11110_v61 = vadd.f32 %v17445_v55, %v11039_v31  ;;  %v10856_v49 = vrot.slane %v10855_v60, 1  ;;  %v10862_v53 = vrot.slane %v10861_v17, 2  ;;  %v10866_v30 = vmax.f32 %v10291_v16, %v10294_v8 }
 0x5ca   : > { %v6019_v47 = vmax.f32 %v18297_v38, %v6018_v3  ;;  %v6007_v16 = vmax.f32 %v6005_v10, %v6006_v56  ;;  %v6027_v31 = vmax.f32 %v18298_v54, %v6026_v27 }
 0x5cb   : > { %v11278_v44 = vrot.slane %v11110_v61, 3  ;;  %v10857_v63 = vmax.f32 %v10855_v60, %v10856_v49  ;;  %v10863_v40 = vmax.f32 %v10861_v17, %v10862_v53  ;;  %v10867_v7 = vmax.f32 %v10866_v30, %v13546_v48 }
 0x5cc   : > { %v6014_v61 = vrot.slane %v6013_v41, 1 }
 0x5cd   : > { %v11279_v6 = vsel %vm11206_vm11, %v11278_v44, %v11277_v43  ;;  %v11040_v1 = vmax.f32 %v5991_v25, %v10857_v63  ;;  %v10864_v58 = vrot.slane %v10863_v40, 1  ;;  %v10868_v12 = vrot.slane %v10867_v7, 4  ;;  %v13550_v26 = vpop.f32.mrb[84].mxu0 }
 0x5ce   : > { %v10307_v24 = vpop.f32.mrb[85].mxu0  ;;  %v6020_v43 = vrot.slane %v6019_v47, 2  ;;  %v6028_v44 = vrot.slane %v6027_v31, 2  ;;  %v6034_v63 = vrot.slane %v16284_v35, 4 }
 0x5cf   : > { %v11111_v13 = vadd.f32 %v17445_v55, %v11040_v1  ;;  %v10865_v46 = vmax.f32 %v10863_v40, %v10864_v58  ;;  %v10869_v18 = vmax.f32 %v10867_v7, %v10868_v12  ;;  %v10874_v29 = vmax.f32 %v13547_v57, %v10307_v24  ;;  %v13551_v11 = vpop.f32.mrb[86].mxu0 }
 0x5d0   : > { %v10882_v62 = vmax.f32 %v13550_v26, %v13551_v11  ;;  %v10310_v9 = vpop.f32.mrb[87].mxu0  ;;  %v6021_v42 = vmax.f32 %v6019_v47, %v6020_v43  ;;  %v6029_v10 = vmax.f32 %v6027_v31, %v6028_v44  ;;  %v6035_v38 = vmax.f32 %v16284_v35, %v6034_v63  ;;  %v18301_v63 = vld [vmem:[#allocation113_spill] sm:$0xff] }
 0x5d1   : > { %v11280_v39 = vrot.slane %v11111_v13, 2  ;;  %v11041_v2 = vmax.f32 %v5999_v52, %v10865_v46  ;;  %v10870_v21 = vrot.slane %v10869_v18, 2  ;;  %v10875_v28 = vmax.f32 %v10874_v29, %v10310_v9  ;;  %v18299_v29 = vld [vmem:[#allocation111_spill] sm:$0xff] }
 0x5d2   : > { %v6022_v52 = vrot.slane %v6021_v42, 1  ;;  %v6042_v11 = vrot.slane %v18299_v29, 4  ;;  %v6036_v56 = vrot.slane %v6035_v38, 2 }
 0x5d3   : > { %v11281_v23 = vsel %vm11209_vm14, %v11280_v39, %v11279_v6  ;;  %v11112_v15 = vadd.f32 %v17445_v55, %v11041_v2  ;;  %v10871_v19 = vmax.f32 %v10869_v18, %v10870_v21  ;;  %v10876_v22 = vrot.slane %v10875_v28, 4 }
 0x5d4   : > { %v6015_v6 = vmax.f32 %v6013_v41, %v6014_v61  ;;  %v6023_v21 = vmax.f32 %v6021_v42, %v6022_v52 }
 0x5d5   : > { %v11282_v48 = vrot.slane %v11112_v15, 1  ;;  %v10872_v51 = vrot.slane %v10871_v19, 1  ;;  %v10877_v0 = vmax.f32 %v10875_v28, %v10876_v22  ;;  %v13554_v34 = vpop.f32.mrb[88].mxu0  ;;  %v6030_v28 = vrot.slane %v6029_v10, 1 }
 0x5d6   : > { %v10323_v60 = vpop.f32.mrb[89].mxu0  ;;  %v6043_v15 = vmax.f32 %v18299_v29, %v6042_v11 }
 0x5d7   : > { %v11283_v17 = vsel %vm11212_vm1, %v11282_v48, %v11281_v23  ;;  %v10873_v57 = vmax.f32 %v10871_v19, %v10872_v51  ;;  %v10878_v5 = vrot.slane %v10877_v0, 2  ;;  %v10883_v45 = vmax.f32 %v10882_v62, %v10323_v60  ;;  %v13555_v8 = vpop.f32.mrb[90].mxu0 }
 0x5d8   : > { %11325 = vst [vmem:[%s17171_s28 + $0x28] sm:$0xff] %v11283_v17  ;;  %v10326_v49 = vpop.f32.mrb[91].mxu0 }
 0x5d9   : > { %v11042_v53 = vmax.f32 %v6007_v16, %v10873_v57  ;;  %v10879_v30 = vmax.f32 %v10877_v0, %v10878_v5  ;;  %v10884_v25 = vrot.slane %v10883_v45, 4  ;;  %v10890_v14 = vmax.f32 %v10326_v49, %v13554_v34  ;;  %v18300_v16 = vld [vmem:[#allocation112_spill] sm:$0xff] }
 0x5da   : > { %v6031_v0 = vmax.f32 %v6029_v10, %v6030_v28  ;;  %v6037_v34 = vmax.f32 %v6035_v38, %v6036_v56  ;;  %v6050_v43 = vrot.slane %v18300_v16, 4 }
 0x5db   : > { %v10880_v40 = vrot.slane %v10879_v30, 1  ;;  %v10885_v7 = vmax.f32 %v10883_v45, %v10884_v25  ;;  %v10891_v59 = vmax.f32 %v10890_v14, %v13555_v8  ;;  %v11113_v47 = vadd.f32 %v17445_v55, %v11042_v53 }
 0x5dc   : > { %v6044_v8 = vrot.slane %v6043_v15, 2  ;;  %v6038_v42 = vrot.slane %v6037_v34, 1  ;;  %v6051_v44 = vmax.f32 %v18300_v16, %v6050_v43 }
 0x5dd   : > { %v10881_v1 = vmax.f32 %v10879_v30, %v10880_v40  ;;  %v10886_v58 = vrot.slane %v10885_v7, 2  ;;  %v10892_v12 = vrot.slane %v10891_v59, 4  ;;  %v13558_v26 = vpop.f32.mrb[92].mxu0  ;;  %v6058_v40 = vrot.slane %v18301_v63, 4 }
 0x5de   : > { %v10339_v3 = vpop.f32.mrb[93].mxu0  ;;  %v6039_v38 = vmax.f32 %v6037_v34, %v6038_v42 }
 0x5df   : > { %v11043_v24 = vmax.f32 %v6015_v6, %v10881_v1  ;;  %v10887_v13 = vmax.f32 %v10885_v7, %v10886_v58  ;;  %v10893_v46 = vmax.f32 %v10891_v59, %v10892_v12  ;;  %v13559_v18 = vpop.f32.mrb[94].mxu0  ;;  %v6045_v58 = vmax.f32 %v6043_v15, %v6044_v8 }
 0x5e0   : > { %v10342_v33 = vpop.f32.mrb[95].mxu0 }
 0x5e1   : > { %v11114_v62 = vadd.f32 %v17445_v55, %v11043_v24  ;;  %v10888_v9 = vrot.slane %v10887_v13, 1  ;;  %v10894_v39 = vrot.slane %v10893_v46, 2  ;;  %v10898_v2 = vmax.f32 %v10339_v3, %v10342_v33 }
 0x5e2   : > { %v6052_v3 = vrot.slane %v6051_v44, 2  ;;  %v6059_v24 = vmax.f32 %v18301_v63, %v6058_v40 }
 0x5e3   : > { %v11284_v54 = vrot.slane %v11114_v62, 7  ;;  %v10889_v35 = vmax.f32 %v10887_v13, %v10888_v9  ;;  %v10895_v27 = vmax.f32 %v10893_v46, %v10894_v39  ;;  %v10899_v23 = vmax.f32 %v10898_v2, %v13558_v26 }
 0x5e4   : > { %v6046_v62 = vrot.slane %v6045_v58, 1  ;;  %v6053_v56 = vmax.f32 %v6051_v44, %v6052_v3 }
 0x5e5   : > { %v11285_v19 = vsel %vm11194_vm12, %v11284_v54, %v11113_v47  ;;  %v11044_v22 = vmax.f32 %v6023_v21, %v10889_v35  ;;  %v10896_v41 = vrot.slane %v10895_v27, 1  ;;  %v10900_v48 = vrot.slane %v10899_v23, 4  ;;  %v13562_v51 = vpop.f32.mrb[96].mxu0  ;;  %v18302_v54 = vld [vmem:[#allocation114_spill] sm:$0xff] }
 0x5e6   : > { %v10355_v31 = vpop.f32.mrb[97].mxu0  ;;  %v6060_v47 = vrot.slane %v6059_v24, 2  ;;  %v6066_v35 = vrot.slane %v18302_v54, 4  ;;  %v6054_v16 = vrot.slane %v6053_v56, 1 }
 0x5e7   : > { %v11115_v60 = vadd.f32 %v17445_v55, %v11044_v22  ;;  %v10897_v17 = vmax.f32 %v10895_v27, %v10896_v41  ;;  %v10901_v57 = vmax.f32 %v10899_v23, %v10900_v48  ;;  %v10906_v5 = vmax.f32 %v13559_v18, %v10355_v31  ;;  %v13563_v45 = vpop.f32.mrb[98].mxu0 }
 0x5e8   : > { %v10914_v61 = vmax.f32 %v13562_v51, %v13563_v45  ;;  %v10358_v49 = vpop.f32.mrb[99].mxu0  ;;  %v6047_v22 = vmax.f32 %v6045_v58, %v6046_v62  ;;  %v6061_v43 = vmax.f32 %v6059_v24, %v6060_v47  ;;  %v6067_v31 = vmax.f32 %v18302_v54, %v6066_v35 }
 0x5e9   : > { %v11286_v53 = vrot.slane %v11115_v60, 6  ;;  %v11045_v30 = vmax.f32 %v6031_v0, %v10897_v17  ;;  %v10902_v25 = vrot.slane %v10901_v57, 2  ;;  %v10907_v14 = vmax.f32 %v10906_v5, %v10358_v49 }
 0x5ea   : > { %v6055_v44 = vmax.f32 %v6053_v56, %v6054_v16  ;;  %v6062_v63 = vrot.slane %v6061_v43, 1  ;;  %v6068_v40 = vrot.slane %v6067_v31, 2 }
 0x5eb   : > { %v11287_v7 = vsel %vm11197_vm9, %v11286_v53, %v11285_v19  ;;  %v11116_v59 = vadd.f32 %v17445_v55, %v11045_v30  ;;  %v10903_v6 = vmax.f32 %v10901_v57, %v10902_v25  ;;  %v10908_v1 = vrot.slane %v10907_v14, 4 }
 0x5ec   : > { %v6063_v3 = vmax.f32 %v6061_v43, %v6062_v63  ;;  %v6069_v24 = vmax.f32 %v6067_v31, %v6068_v40 }
 0x5ed   : > { %v11288_v12 = vrot.slane %v11116_v59, 5  ;;  %v10904_v26 = vrot.slane %v10903_v6, 1  ;;  %v10909_v52 = vmax.f32 %v10907_v14, %v10908_v1  ;;  %v13566_v10 = vpop.f32.mrb[100].mxu0 }
 0x5ee   : > { %v10371_v13 = vpop.f32.mrb[101].mxu0  ;;  %v6070_v54 = vrot.slane %v6069_v24, 1 }
 0x5ef   : > { %v11289_v46 = vsel %vm11200_vm3, %v11288_v12, %v11287_v7  ;;  %v10905_v18 = vmax.f32 %v10903_v6, %v10904_v26  ;;  %v10910_v29 = vrot.slane %v10909_v52, 2  ;;  %v10915_v11 = vmax.f32 %v10914_v61, %v10371_v13  ;;  %v13567_v33 = vpop.f32.mrb[102].mxu0  ;;  %v18303_v61 = vld [vmem:[#allocation115_spill] sm:$0xff] }
 0x5f0   : > { %v10374_v9 = vpop.f32.mrb[103].mxu0  ;;  %v6074_v49 = vrot.slane %v18303_v61, 4  ;;  %v6082_v13 = vrot.slane %v16372_v20, 4  ;;  %v6071_v16 = vmax.f32 %v6069_v24, %v6070_v54 }
 0x5f1   : > { %v11046_v39 = vmax.f32 %v6039_v38, %v10905_v18  ;;  %v10911_v2 = vmax.f32 %v10909_v52, %v10910_v29  ;;  %v10916_v21 = vrot.slane %v10915_v11, 4  ;;  %v10922_v28 = vmax.f32 %v10374_v9, %v13566_v10 }
 0x5f2   : > { %v6075_v58 = vmax.f32 %v18303_v61, %v6074_v49  ;;  %v6083_v35 = vmax.f32 %v16372_v20, %v6082_v13 }
 0x5f3   : > { %v11117_v27 = vadd.f32 %v17445_v55, %v11046_v39  ;;  %v10912_v23 = vrot.slane %v10911_v2, 1  ;;  %v10917_v15 = vmax.f32 %v10915_v11, %v10916_v21  ;;  %v10923_v19 = vmax.f32 %v10922_v28, %v13567_v33 }
 0x5f4   : > { %v6076_v9 = vrot.slane %v6075_v58, 2  ;;  %v6084_v43 = vrot.slane %v6083_v35, 2 }
 0x5f5   : > { %v11290_v41 = vrot.slane %v11117_v27, 4  ;;  %v10913_v48 = vmax.f32 %v10911_v2, %v10912_v23  ;;  %v10918_v51 = vrot.slane %v10917_v15, 2  ;;  %v10924_v0 = vrot.slane %v10923_v19, 4  ;;  %v13570_v34 = vpop.f32.mrb[104].mxu0 }
 0x5f6   : > { %v10387_v60 = vpop.f32.mrb[105].mxu0  ;;  %v6090_v27 = vrot.slane %v16376_v50, 4 }
 0x5f7   : > { %v11291_v17 = vsel %vm11203_vm2, %v11290_v41, %v11289_v46  ;;  %v11047_v57 = vmax.f32 %v6047_v22, %v10913_v48  ;;  %v10919_v5 = vmax.f32 %v10917_v15, %v10918_v51  ;;  %v10925_v45 = vmax.f32 %v10923_v19, %v10924_v0  ;;  %v13571_v8 = vpop.f32.mrb[106].mxu0 }
 0x5f8   : > { %v10390_v53 = vpop.f32.mrb[107].mxu0  ;;  %v6077_v41 = vmax.f32 %v6075_v58, %v6076_v9  ;;  %v6091_v31 = vmax.f32 %v16376_v50, %v6090_v27 }
 0x5f9   : > { %v11118_v30 = vadd.f32 %v17445_v55, %v11047_v57  ;;  %v10920_v25 = vrot.slane %v10919_v5, 1  ;;  %v10926_v14 = vrot.slane %v10925_v45, 2  ;;  %v10930_v42 = vmax.f32 %v10387_v60, %v10390_v53 }
 0x5fb   : > { %v11292_v7 = vrot.slane %v11118_v30, 3  ;;  %v10921_v59 = vmax.f32 %v10919_v5, %v10920_v25  ;;  %v10927_v6 = vmax.f32 %v10925_v45, %v10926_v14  ;;  %v10931_v1 = vmax.f32 %v10930_v42, %v13570_v34 }
 0x5fc   : > { %v6085_v14 = vmax.f32 %v6083_v35, %v6084_v43  ;;  %v6092_v42 = vrot.slane %v6091_v31, 2 }
 0x5fd   : > { %v11293_v12 = vsel %vm11206_vm11, %v11292_v7, %v11291_v17  ;;  %v11048_v26 = vmax.f32 %v6055_v44, %v10921_v59  ;;  %v10928_v52 = vrot.slane %v10927_v6, 1  ;;  %v10932_v10 = vrot.slane %v10931_v1, 4  ;;  %v13574_v38 = vpop.f32.mrb[108].mxu0 }
 0x5fe   : > { %v10403_v46 = vpop.f32.mrb[109].mxu0  ;;  %v6098_v44 = vrot.slane %v16397_v37, 4 }
 0x5ff   : > { %v11119_v18 = vadd.f32 %v17445_v55, %v11048_v26  ;;  %v10929_v29 = vmax.f32 %v10927_v6, %v10928_v52  ;;  %v10933_v11 = vmax.f32 %v10931_v1, %v10932_v10  ;;  %v10938_v33 = vmax.f32 %v13571_v8, %v10403_v46  ;;  %v13575_v62 = vpop.f32.mrb[110].mxu0 }
 0x600   : > { %v10946_v39 = vmax.f32 %v13574_v38, %v13575_v62  ;;  %v10406_v2 = vpop.f32.mrb[111].mxu0  ;;  %v6078_v8 = vrot.slane %v6077_v41, 1  ;;  %v6093_v26 = vmax.f32 %v6091_v31, %v6092_v42  ;;  %v6099_v52 = vmax.f32 %v16397_v37, %v6098_v44 }
 0x601   : > { %v11294_v21 = vrot.slane %v11119_v18, 2  ;;  %v11049_v28 = vmax.f32 %v6063_v3, %v10929_v29  ;;  %v10934_v56 = vrot.slane %v10933_v11, 2  ;;  %v10939_v47 = vmax.f32 %v10938_v33, %v10406_v2 }
 0x602   : > { %v6079_v7 = vmax.f32 %v6077_v41, %v6078_v8  ;;  %v6106_v46 = vrot.slane %v16415_v4, 4  ;;  %v6100_v2 = vrot.slane %v6099_v52, 2 }
 0x603   : > { %v11295_v23 = vsel %vm11209_vm14, %v11294_v21, %v11293_v12  ;;  %v11120_v15 = vadd.f32 %v17445_v55, %v11049_v28  ;;  %v10935_v19 = vmax.f32 %v10933_v11, %v10934_v56  ;;  %v10940_v22 = vrot.slane %v10939_v47, 4 }
 0x604   : > { %v6086_v12 = vrot.slane %v6085_v14, 1  ;;  %v6107_v54 = vmax.f32 %v16415_v4, %v6106_v46  ;;  %v6101_v41 = vmax.f32 %v6099_v52, %v6100_v2 }
 0x605   : > { %v11296_v48 = vrot.slane %v11120_v15, 1  ;;  %v10936_v51 = vrot.slane %v10935_v19, 1  ;;  %v10941_v0 = vmax.f32 %v10939_v47, %v10940_v22  ;;  %v13578_v34 = vpop.f32.mrb[112].mxu0 }
 0x606   : > { %v10419_v60 = vpop.f32.mrb[113].mxu0  ;;  %v6087_v9 = vmax.f32 %v6085_v14, %v6086_v12  ;;  %v6102_v8 = vrot.slane %v6101_v41, 1 }
 0x607   : > { %v11297_v20 = vsel %vm11212_vm1, %v11296_v48, %v11295_v23  ;;  %v10937_v17 = vmax.f32 %v10935_v19, %v10936_v51  ;;  %v10942_v57 = vrot.slane %v10941_v0, 2  ;;  %v10947_v5 = vmax.f32 %v10946_v39, %v10419_v60  ;;  %v13579_v45 = vpop.f32.mrb[114].mxu0 }
 0x608   : > { %11326 = vst [vmem:[%s17171_s28 + $0x30] sm:$0xff] %v11297_v20  ;;  %v10422_v61 = vpop.f32.mrb[115].mxu0  ;;  %v6094_v39 = vrot.slane %v6093_v26, 1  ;;  %v6114_v48 = vrot.slane %v16442_v32, 4  ;;  %v6108_v60 = vrot.slane %v6107_v54, 2 }
 0x609   : > { %v11050_v49 = vmax.f32 %v6071_v16, %v10937_v17  ;;  %v10943_v53 = vmax.f32 %v10941_v0, %v10942_v57  ;;  %v10948_v30 = vrot.slane %v10947_v5, 4  ;;  %v10954_v25 = vmax.f32 %v10422_v61, %v13578_v34 }
 0x60a   : > { %v6095_v22 = vmax.f32 %v6093_v26, %v6094_v39  ;;  %v6115_v61 = vmax.f32 %v16442_v32, %v6114_v48  ;;  %v6109_v42 = vmax.f32 %v6107_v54, %v6108_v60 }
 0x60b   : > { %v10944_v63 = vrot.slane %v10943_v53, 1  ;;  %v10949_v50 = vmax.f32 %v10947_v5, %v10948_v30  ;;  %v10955_v40 = vmax.f32 %v10954_v25, %v13579_v45  ;;  %v11121_v21 = vadd.f32 %v17445_v55, %v11050_v49 }
 0x60c   : > { %v6122_v49 = vrot.slane %v16446_v36, 4 }
 0x60d   : > { %v10945_v59 = vmax.f32 %v10943_v53, %v10944_v63  ;;  %v10950_v6 = vrot.slane %v10949_v50, 2  ;;  %v10956_v1 = vrot.slane %v10955_v40, 4  ;;  %v13582_v58 = vpop.f32.mrb[116].mxu0 }
 0x60e   : > { %v10435_v10 = vpop.f32.mrb[117].mxu0 }
 0x60f   : > { %v11051_v38 = vmax.f32 %v6079_v7, %v10945_v59  ;;  %v10951_v3 = vmax.f32 %v10949_v50, %v10950_v6  ;;  %v10957_v24 = vmax.f32 %v10955_v40, %v10956_v1  ;;  %v13583_v13 = vpop.f32.mrb[118].mxu0  ;;  %v6103_v7 = vmax.f32 %v6101_v41, %v6102_v8 }
 0x610   : > { %v10438_v18 = vpop.f32.mrb[119].mxu0  ;;  %v6116_v59 = vrot.slane %v6115_v61, 2  ;;  %v6123_v6 = vmax.f32 %v16446_v36, %v6122_v49 }
 0x611   : > { %v11122_v29 = vadd.f32 %v17445_v55, %v11051_v38  ;;  %v10952_v11 = vrot.slane %v10951_v3, 1  ;;  %v10958_v33 = vrot.slane %v10957_v24, 2  ;;  %v10962_v62 = vmax.f32 %v10435_v10, %v10438_v18 }
 0x612   : > { %v6110_v10 = vrot.slane %v6109_v42, 1  ;;  %v6117_v18 = vmax.f32 %v6115_v61, %v6116_v59 }
 0x613   : > { %v11298_v28 = vrot.slane %v11122_v29, 7  ;;  %v10953_v37 = vmax.f32 %v10951_v3, %v10952_v11  ;;  %v10959_v56 = vmax.f32 %v10957_v24, %v10958_v33  ;;  %v10963_v47 = vmax.f32 %v10962_v62, %v13582_v58 }
 0x614   : > { %v6124_v29 = vrot.slane %v6123_v6, 2 }
 0x615   : > { %v11299_v35 = vsel %vm11194_vm12, %v11298_v28, %v11121_v21  ;;  %v11052_v27 = vmax.f32 %v6087_v9, %v10953_v37  ;;  %v10960_v23 = vrot.slane %v10959_v56, 1  ;;  %v10964_v15 = vrot.slane %v10963_v47, 4  ;;  %v13586_v19 = vpop.f32.mrb[120].mxu0 }
 0x616   : > { %v10451_v51 = vpop.f32.mrb[121].mxu0  ;;  %v6111_v9 = vmax.f32 %v6109_v42, %v6110_v10  ;;  %v6118_v37 = vrot.slane %v6117_v18, 1 }
 0x617   : > { %v11123_v0 = vadd.f32 %v17445_v55, %v11052_v27  ;;  %v10961_v34 = vmax.f32 %v10959_v56, %v10960_v23  ;;  %v10965_v16 = vmax.f32 %v10963_v47, %v10964_v15  ;;  %v10970_v43 = vmax.f32 %v13583_v13, %v10451_v51  ;;  %v13587_v31 = vpop.f32.mrb[122].mxu0 }
 0x618   : > { %v10978_v20 = vmax.f32 %v13586_v19, %v13587_v31  ;;  %v10454_v4 = vpop.f32.mrb[123].mxu0  ;;  %v6125_v56 = vmax.f32 %v6123_v6, %v6124_v29 }
 0x619   : > { %v11300_v17 = vrot.slane %v11123_v0, 6  ;;  %v11053_v57 = vmax.f32 %v6095_v22, %v10961_v34  ;;  %v10966_v5 = vrot.slane %v10965_v16, 2  ;;  %v10971_v45 = vmax.f32 %v10970_v43, %v10454_v4 }
 0x61a   : > { %v6119_v22 = vmax.f32 %v6117_v18, %v6118_v37  ;;  %v6126_v41 = vrot.slane %v6125_v56, 1 }
 0x61b   : > { %v11301_v53 = vsel %vm11197_vm9, %v11300_v17, %v11299_v35  ;;  %v11124_v30 = vadd.f32 %v17445_v55, %v11053_v57  ;;  %v10967_v25 = vmax.f32 %v10965_v16, %v10966_v5  ;;  %v10972_v14 = vrot.slane %v10971_v45, 4 }
 0x61c   : > { %v6127_v31 = vmax.f32 %v6125_v56, %v6126_v41 }
 0x61d   : > { %v11302_v44 = vrot.slane %v11124_v30, 5  ;;  %v10968_v63 = vrot.slane %v10967_v25, 1  ;;  %v10973_v50 = vmax.f32 %v10971_v45, %v10972_v14  ;;  %v13590_v40 = vpop.f32.mrb[128].mxu1 }
 0x61e   : > { %v10467_v1 = vpop.f32.mrb[129].mxu1 }
 0x61f   : > { %v11303_v32 = vsel %vm11200_vm3, %v11302_v44, %v11301_v53  ;;  %v10969_v58 = vmax.f32 %v10967_v25, %v10968_v63  ;;  %v10974_v12 = vrot.slane %v10973_v50, 2  ;;  %v10979_v26 = vmax.f32 %v10978_v20, %v10467_v1  ;;  %v13591_v52 = vpop.f32.mrb[130].mxu1 }
 0x620   : > { %v10470_v38 = vpop.f32.mrb[131].mxu1 }
 0x621   : > { %v11054_v3 = vmax.f32 %v6103_v7, %v10969_v58  ;;  %v10975_v24 = vmax.f32 %v10973_v50, %v10974_v12  ;;  %v10980_v13 = vrot.slane %v10979_v26, 4  ;;  %v10986_v46 = vmax.f32 %v10470_v38, %v13590_v40 }
 0x623   : > { %v11125_v11 = vadd.f32 %v17445_v55, %v11054_v3  ;;  %v10976_v33 = vrot.slane %v10975_v24, 1  ;;  %v10981_v62 = vmax.f32 %v10979_v26, %v10980_v13  ;;  %v10987_v36 = vmax.f32 %v10986_v46, %v13591_v52 }
 0x625   : > { %v11304_v39 = vrot.slane %v11125_v11, 4  ;;  %v10977_v2 = vmax.f32 %v10975_v24, %v10976_v33  ;;  %v10982_v21 = vrot.slane %v10981_v62, 2  ;;  %v10988_v28 = vrot.slane %v10987_v36, 4 }
 0x627   : > { %v11305_v47 = vsel %vm11203_vm2, %v11304_v39, %v11303_v32  ;;  %v11055_v54 = vmax.f32 %v6111_v9, %v10977_v2  ;;  %v10983_v35 = vmax.f32 %v10981_v62, %v10982_v21  ;;  %v10989_v27 = vmax.f32 %v10987_v36, %v10988_v28 }
 0x629   : > { %v11126_v23 = vadd.f32 %v17445_v55, %v11055_v54  ;;  %v10984_v15 = vrot.slane %v10983_v35, 1  ;;  %v10990_v19 = vrot.slane %v10989_v27, 2 }
 0x62b   : > { %v11306_v48 = vrot.slane %v11126_v23, 3  ;;  %v10985_v51 = vmax.f32 %v10983_v35, %v10984_v15  ;;  %v10991_v0 = vmax.f32 %v10989_v27, %v10990_v19 }
 0x62d   : > { %v11307_v34 = vsel %vm11206_vm11, %v11306_v48, %v11305_v47  ;;  %v11056_v16 = vmax.f32 %v6119_v22, %v10985_v51  ;;  %v10992_v43 = vrot.slane %v10991_v0, 1 }
 0x62f   : > { %v11127_v60 = vadd.f32 %v17445_v55, %v11056_v16  ;;  %v10993_v20 = vmax.f32 %v10991_v0, %v10992_v43 }
 0x631   : > { %v11308_v4 = vrot.slane %v11127_v60, 2  ;;  %v11057_v17 = vmax.f32 %v6127_v31, %v10993_v20 }
 0x633   : > { %v11309_v57 = vsel %vm11209_vm14, %v11308_v4, %v11307_v34  ;;  %v11128_v5 = vadd.f32 %v17445_v55, %v11057_v17 }
 0x635   : > { %v11310_v45 = vrot.slane %v11128_v5, 1 }
 0x637   : > { %v11311_v8 = vsel %vm11212_vm1, %v11310_v45, %v11309_v57 }
 0x638   : > { %11327 = vst [vmem:[%s17171_s28 + $0x38] sm:$0xff] %v11311_v8 }
 0x639 PF: > { %s15_s18 = sadd.s32 1, %s13644_s18  }
 0x63a   : > { %p12_p4 = scmp.ge.s32.totalorder %s15_s18, 4  }
 0x63c   :  { %14 = sbr.rel (!%p12_p4) target bundleno = 1 (0x1), region = 73 }

</bundles_post_ra>
